<compile_context>
chip_gen: v6e
topology: v6e:2x2x1
jax: 0.10.0
libtpu: 0.0.40
codegen_flags: <defaults>
</compile_context>

<pallas_src>
import math
import sys
from functools import lru_cache, partial

import jax
import jax.numpy as jnp
from jax import lax
from jax.experimental import pallas as pl
from jax.experimental.pallas import tpu as pltpu

_VMEM_LIMIT = 32 * 1024 * 1024        # explicit scoped-VMEM cap (covers v5e's 16 MiB default)
_ACC_CAP_BYTES = 1 << 20              # per-block f32 working-set cap for the conv kernels


# ---------------------------------------------------------------------------
# small helpers
# ---------------------------------------------------------------------------
def _round_up(x, m):
    return (x + m - 1) // m * m


def _largest_divisor_tile(n, cap, align):
    """Largest d with d | n, d % align == 0 and d <= cap; else the full dim n."""
    limit = min(n, cap)
    d = (limit // align) * align
    while d >= align:
        if n % d == 0:
            return d
        d -= align
    return n  # full-dim block (allowed by Pallas when block == array dim)


def _pick_row_block(ho, wop, cout, cap_bytes=_ACC_CAP_BYTES):
    """Largest divisor rb of ho with rb * wop * cout * 4 bytes <= cap."""
    best = 1
    for d in range(1, ho + 1):
        if ho % d == 0 and d * wop * cout * 4 <= cap_bytes:
            best = d
    return best


# ---------------------------------------------------------------------------
# Pallas kernels
# ---------------------------------------------------------------------------
def _conv3x3_kernel(*refs, taps, rb, wop, cin, use_prelu, use_addend):
    """Fused 3x3 conv.  All 9 taps are in-kernel window slices of the VMEM-resident padded image.

    epilogue: out = [prelu](scale * acc + shift) [+ addend]   (per-output-channel params)
    """
    x_ref, w_ref, scale_ref, shift_ref = refs[:4]
    i = 4
    alpha_ref = add_ref = None
    if use_prelu:
        alpha_ref = refs[i]; i += 1
    if use_addend:
        add_ref = refs[i]; i += 1
    o_ref, acc_ref = refs[i], refs[i + 1]

    r0 = pl.program_id(1) * rb
    rows = rb * wop

    for dy in range(3):
        part = None
        for dx in range(3):
            _, _, rp, roff, cp, coff = taps[3 * dy + dx]
            a = x_ref[rp, pl.ds(r0 + roff, rb), cp, pl.ds(coff, wop), :]   # (rb, wop, cin)
            d = jnp.dot(a.reshape(rows, cin), w_ref[dy, dx],
                        preferred_element_type=jnp.float32)
            part = d if part is None else part + d
        if dy == 0:
            acc_ref[...] = part
        else:
            acc_ref[...] = acc_ref[...] + part

    y = acc_ref[...] * scale_ref[...] + shift_ref[...]
    if use_prelu:
        y = jnp.where(y > 0, y, y * alpha_ref[...])
    if use_addend:
        y = y + add_ref[...].astype(jnp.float32)
    o_ref[...] = y.astype(o_ref.dtype)


def _mm_kernel(*refs, use_prelu, use_addend):
    """Generic fused matmul: out = [prelu](scale * (A @ B) + shift) [+ addend]."""
    a_ref, b_ref, scale_ref, shift_ref = refs[:4]
    i = 4
    alpha_ref = add_ref = None
    if use_prelu:
        alpha_ref = refs[i]; i += 1
    if use_addend:
        add_ref = refs[i]; i += 1
    o_ref, acc_ref = refs[i], refs[i + 1]

    k = pl.program_id(2)

    @pl.when(k == 0)
    def _():
        acc_ref[...] = jnp.zeros_like(acc_ref)

    acc_ref[...] += jnp.dot(a_ref[...], b_ref[...], preferred_element_type=jnp.float32)

    @pl.when(k == pl.num_programs(2) - 1)
    def _():
        y = acc_ref[...] * scale_ref[...] + shift_ref[...]
        if use_prelu:
            y = jnp.where(y > 0, y, y * alpha_ref[...])
        if use_addend:
            y = y + add_ref[...].astype(jnp.float32)
        o_ref[...] = y.astype(o_ref.dtype)


# ---------------------------------------------------------------------------
# cached pallas_call builders (shape-specialized, built once at trace time)
# ---------------------------------------------------------------------------
@lru_cache(maxsize=None)
def _get_conv3x3_call(B, PR, Hc, PC, Wc, cin, cout, Ho, wop, rb, taps,
                      use_prelu, use_addend):
    mblocks = Ho // rb
    rows_blk = rb * wop

    in_specs = [
        # whole padded (parity-split) image for one batch element; m-invariant -> fetched once per b
        pl.BlockSpec((None, PR, Hc, PC, Wc, cin), lambda b, m: (b, 0, 0, 0, 0, 0)),
        # full weight, grid-invariant -> loaded once per conv
        pl.BlockSpec((3, 3, cin, cout), lambda b, m: (0, 0, 0, 0)),
        pl.BlockSpec((1, cout), lambda b, m: (0, 0)),
        pl.BlockSpec((1, cout), lambda b, m: (0, 0)),
    ]
    if use_prelu:
        in_specs.append(pl.BlockSpec((1, cout), lambda b, m: (0, 0)))
    if use_addend:
        in_specs.append(pl.BlockSpec((None, rows_blk, cout), lambda b, m: (b, m, 0)))

    return pl.pallas_call(
        partial(_conv3x3_kernel, taps=taps, rb=rb, wop=wop, cin=cin,
                use_prelu=use_prelu, use_addend=use_addend),
        out_shape=jax.ShapeDtypeStruct((B, Ho * wop, cout), jnp.bfloat16),
        grid_spec=pltpu.PrefetchScalarGridSpec(
            num_scalar_prefetch=0,
            grid=(B, mblocks),
            in_specs=in_specs,
            out_specs=pl.BlockSpec((None, rows_blk, cout), lambda b, m: (b, m, 0)),
            scratch_shapes=[pltpu.VMEM((rows_blk, cout), jnp.float32)],
        ),
        compiler_params=pltpu.CompilerParams(
            dimension_semantics=("parallel", "parallel"),
            vmem_limit_bytes=_VMEM_LIMIT),
    )


@lru_cache(maxsize=None)
def _get_mm_call(M, K, N, use_prelu, use_addend, out_dtype_name):
    tm = _largest_divisor_tile(M, 512, 8)
    tn = _largest_divisor_tile(N, 256, 128)   # <=256 so N=512 gets >=2 parallel blocks (megacore)
    tk = _largest_divisor_tile(K, 3584, 128)

    in_specs = [
        pl.BlockSpec((tm, tk), lambda i, j, k: (i, k)),
        pl.BlockSpec((tk, tn), lambda i, j, k: (k, j)),
        pl.BlockSpec((1, tn), lambda i, j, k: (0, j)),
        pl.BlockSpec((1, tn), lambda i, j, k: (0, j)),
    ]
    if use_prelu:
        in_specs.append(pl.BlockSpec((1, tn), lambda i, j, k: (0, j)))
    if use_addend:
        in_specs.append(pl.BlockSpec((tm, tn), lambda i, j, k: (i, j)))

    return pl.pallas_call(
        partial(_mm_kernel, use_prelu=use_prelu, use_addend=use_addend),
        out_shape=jax.ShapeDtypeStruct((M, N), jnp.dtype(out_dtype_name)),
        grid_spec=pltpu.PrefetchScalarGridSpec(
            num_scalar_prefetch=0,
            grid=(M // tm, N // tn, K // tk),
            in_specs=in_specs,
            out_specs=pl.BlockSpec((tm, tn), lambda i, j, k: (i, j)),
            scratch_shapes=[pltpu.VMEM((tm, tn), jnp.float32)],
        ),
        compiler_params=pltpu.CompilerParams(
            dimension_semantics=("parallel", "parallel", "arbitrary"),
            vmem_limit_bytes=_VMEM_LIMIT),
    )


# ---------------------------------------------------------------------------
# layer wrappers (JAX glue around the Pallas kernels)
# ---------------------------------------------------------------------------
def matmul_fused(a, b, scale, shift, alpha=None, addend=None, out_dtype=jnp.bfloat16):
    M, K = a.shape
    _, N = b.shape
    call = _get_mm_call(M, K, N, alpha is not None, addend is not None,
                        jnp.dtype(out_dtype).name)
    args = [a, b, scale, shift]
    if alpha is not None:
        args.append(alpha)
    if addend is not None:
        args.append(addend)
    return call(*args)


def conv3x3_im2col(x, w, scale, shift, stride, alpha=None, addend=None,
                   pre_scale=None, pre_shift=None):
    """im2col 3x3 conv (stem / fallback only): 9x channel blow-up, so avoid for big layers."""
    B, H, W, C = x.shape
    cout = w.shape[-1]
    if pre_scale is not None:
        x = (x.astype(jnp.float32) * pre_scale.reshape(1, 1, 1, -1)
             + pre_shift.reshape(1, 1, 1, -1)).astype(jnp.bfloat16)
    Ho = (H - 1) // stride + 1
    Wo = (W - 1) // stride + 1
    xp = jnp.pad(x, ((0, 0), (1, 1), (1, 1), (0, 0)))
    cols = [xp[:, dy:dy + (Ho - 1) * stride + 1:stride,
               dx:dx + (Wo - 1) * stride + 1:stride, :]
            for dy in range(3) for dx in range(3)]
    patches = jnp.concatenate(cols, axis=-1).reshape(B * Ho * Wo, 9 * C)
    wmat = w.reshape(9 * C, cout)
    add = None if addend is None else addend.reshape(B * Ho * Wo, cout)
    out = matmul_fused(patches, wmat, scale, shift, alpha=alpha, addend=add)
    return out.reshape(B, Ho, Wo, cout)


def conv3x3_fused(x, w, scale, shift, stride, alpha=None, addend=None,
                  pre_scale=None, pre_shift=None):
    """3x3 conv (pad=1, no bias) + folded BN (+PReLU) (+residual add), NHWC bf16.

    pre_scale/pre_shift: per-input-channel affine (the preceding standalone BatchNorm),
    folded into the padding pass so it costs no extra HBM traffic / kernel launch.
    """
    B, H, W, C = x.shape
    if C < 8:   # stem conv (C=3): K=27 im2col is simpler & cheaper than a lane-sparse fused path
        return conv3x3_im2col(x, w, scale, shift, stride, alpha=alpha, addend=addend,
                              pre_scale=pre_scale, pre_shift=pre_shift)
    cout = w.shape[-1]
    Ho = (H - 1) // stride + 1
    Wo = (W - 1) // stride + 1
    wop = _round_up(Wo, 8)                                  # lane/sublane-friendly output width

    if pre_scale is not None:   # fuse the preceding BatchNorm into the (required) padding pass
        x = (x.astype(jnp.float32) * pre_scale.reshape(1, 1, 1, -1)
             + pre_shift.reshape(1, 1, 1, -1)).astype(jnp.bfloat16)

    if stride == 1:
        PR = PC = 1
        Hc, Wc = H + 2, wop + 2
        xp = jnp.pad(x, ((0, 0), (1, 1), (1, Wc - W - 1), (0, 0)))
        xr = xp.reshape(B, 1, Hc, 1, Wc, C)
        taps = tuple((dy, dx, 0, dy, 0, dx) for dy in range(3) for dx in range(3))
    else:
        # stride 2: split padded rows/cols by parity so every tap is a contiguous window
        PR = PC = 2
        Hc, Wc = Ho + 1, wop + 1
        xp = jnp.pad(x, ((0, 0), (1, 2 * Hc - H - 1), (1, 2 * Wc - W - 1), (0, 0)))
        xr = jnp.transpose(xp.reshape(B, Hc, 2, Wc, 2, C), (0, 2, 1, 4, 3, 5))
        taps = tuple((dy, dx, dy % 2, dy // 2, dx % 2, dx // 2)
                     for dy in range(3) for dx in range(3))

    rb = _pick_row_block(Ho, wop, cout)

    args = [xr, w, scale, shift]
    if alpha is not None:
        args.append(alpha)
    if addend is not None:
        add = addend
        if wop > Wo:
            add = jnp.pad(add, ((0, 0), (0, 0), (0, wop - Wo), (0, 0)))
        args.append(add.reshape(B, Ho * wop, cout))

    call = _get_conv3x3_call(B, PR, Hc, PC, Wc, C, cout, Ho, wop, rb, taps,
                             alpha is not None, addend is not None)
    out = call(*args).reshape(B, Ho, wop, cout)
    if wop > Wo:
        out = out[:, :, :Wo, :]
    return out


def conv1x1_fused(x, w, stride, scale, shift):
    """1x1 strided conv + folded BN (shortcut branch)."""
    xs = x[:, ::stride, ::stride, :]
    B, Ho, Wo, C = xs.shape
    out = matmul_fused(xs.reshape(B * Ho * Wo, C), w, scale, shift)
    return out.reshape(B, Ho, Wo, w.shape[-1])


# ---------------------------------------------------------------------------
# model forward
# ---------------------------------------------------------------------------
def get_block_cfg(num_layers):
    cfgs = {
        50: [(64, 64, 3), (64, 128, 4), (128, 256, 14), (256, 512, 3)],
        100: [(64, 64, 3), (64, 128, 13), (128, 256, 30), (256, 512, 3)],
        152: [(64, 64, 3), (64, 128, 8), (128, 256, 36), (256, 512, 3)],
    }
    units = []
    for cin, cout, n in cfgs[num_layers]:
        units.append((cin, cout, 2))
        units.extend([(cout, cout, 1)] * (n - 1))
    return tuple(units)


def seresnet_ir_forward(params, x_nchw, cfg, use_fused_conv=True):
    conv = conv3x3_fused if use_fused_conv else conv3x3_im2col
    x = jnp.transpose(x_nchw, (0, 2, 3, 1)).astype(jnp.bfloat16)     # NCHW -> NHWC, bf16

    p = params['input']                                              # conv + BN + PReLU
    x = conv(x, p['w'], p['bn_s'], p['bn_t'], 1, alpha=p['alpha'])

    for u, (cin, cout, stride) in zip(params['body'], cfg):
        if cin == cout:
            sc = x if stride == 1 else x[:, ::stride, ::stride, :]   # MaxPool2d(1, stride)
        else:
            scp = u['shortcut']
            sc = conv1x1_fused(x, scp['w'], stride, scp['s'], scp['t'])
        # BN(in_channel) is folded into conv1's padding pass (pre_scale/pre_shift)
        y = conv(x, u['w1'], u['bn2_s'], u['bn2_t'], 1, alpha=u['alpha'],
                 pre_scale=u['bn1_s'], pre_shift=u['bn1_t'])
        x = conv(y, u['w2'], u['bn3_s'], u['bn3_t'], stride, addend=sc)

    # Output layer: BN2d(512) is folded into the Linear weight/bias at init; Dropout = identity
    p = params['output']
    B = x.shape[0]
    flat = jnp.transpose(x, (0, 3, 1, 2)).reshape(B, -1)             # PyTorch NCHW flatten
    mpad = _round_up(max(B, 8), 8)
    flat = jnp.pad(flat, ((0, mpad - B), (0, 0)))
    feat = matmul_fused(flat, p['lin_w'], p['lin_scale'], p['lin_shift'],
                        out_dtype=jnp.float32)[:B]                   # (BN2d+)Linear + BN1d
    return feat


# ---------------------------------------------------------------------------
# deterministic synthetic parameters (pre-reshaped / pre-folded into kernel layouts)
# ---------------------------------------------------------------------------
def init_params(key, num_layers=50, feature_dim=512):
    cnt = [0]

    def nk():
        cnt[0] += 1
        return jax.random.fold_in(key, cnt[0])

    def bn(c):
        eps = 1e-5
        gamma = 0.5 + 0.5 * jax.random.uniform(nk(), (c,), jnp.float32)
        beta = 0.1 * jax.random.normal(nk(), (c,), jnp.float32)
        mean = 0.1 * jax.random.normal(nk(), (c,), jnp.float32)
        var = 1.0 + jax.random.uniform(nk(), (c,), jnp.float32)
        s = gamma / jnp.sqrt(var + eps)
        return s.reshape(1, c), (beta - s * mean).reshape(1, c)

    def w3(cin, cout):
        w = jax.random.normal(nk(), (cout, cin, 3, 3), jnp.float32) * (0.5 / math.sqrt(9 * cin))
        return jnp.transpose(w, (2, 3, 1, 0)).astype(jnp.bfloat16)   # OIHW -> HWIO (3,3,Cin,Cout)

    def w1(cin, cout):
        w = jax.random.normal(nk(), (cout, cin), jnp.float32) * (0.5 / math.sqrt(cin))
        return w.T.astype(jnp.bfloat16)                              # (Cin, Cout)

    def prelu(c):
        return (0.25 + 0.05 * jax.random.normal(nk(), (c,), jnp.float32)).reshape(1, c)

    cfg = get_block_cfg(num_layers)
    params = {}
    s, t = bn(64)
    params['input'] = dict(w=w3(3, 64), bn_s=s, bn_t=t, alpha=prelu(64))

    body = []
    for cin, cout, stride in cfg:
        u = {}
        if cin != cout:
            ss, st = bn(cout)
            u['shortcut'] = dict(w=w1(cin, cout), s=ss, t=st)
        u['bn1_s'], u['bn1_t'] = bn(cin)
        u['w1'] = w3(cin, cout)
        u['bn2_s'], u['bn2_t'] = bn(cout)
        u['alpha'] = prelu(cout)
        u['w2'] = w3(cout, cout)
        u['bn3_s'], u['bn3_t'] = bn(cout)
        body.append(u)
    params['body'] = body

    # Output layer: fold BN2d(512) into the Linear (NCHW flatten is channel-major, 49 pixels per
    # channel) and the Linear bias into the BN1d shift, so the whole output layer is one matmul.
    s2d, t2d = bn(512)
    kdim = 512 * 7 * 7
    lin_w = jax.random.normal(nk(), (feature_dim, kdim), jnp.float32) / math.sqrt(kdim)
    lin_b = 0.1 * jax.random.normal(nk(), (feature_dim,), jnp.float32)
    b1s, b1t = bn(feature_dim)
    w_lin = lin_w.T                                           # (kdim, feature_dim)
    s_vec = jnp.repeat(s2d.reshape(-1), 49)                   # per-flatten-element BN2d scale
    t_vec = jnp.repeat(t2d.reshape(-1), 49)
    w_fold = w_lin * s_vec[:, None]
    bias_extra = t_vec @ w_lin                                # (feature_dim,)
    params['output'] = dict(
        lin_w=w_fold.astype(jnp.bfloat16),
        lin_scale=b1s,
        lin_shift=b1s * (lin_b + bias_extra).reshape(1, -1) + b1t,
    )
    return params, cfg


# ---------------------------------------------------------------------------
# small correctness self-test of the conv kernel against a plain-JAX reference
# ---------------------------------------------------------------------------
def _conv_reference(x, w, scale, shift, stride, alpha=None, addend=None,
                    pre_scale=None, pre_shift=None):
    xf = x.astype(jnp.float32)
    if pre_scale is not None:
        xf = xf * pre_scale.reshape(1, 1, 1, -1) + pre_shift.reshape(1, 1, 1, -1)
        xf = xf.astype(jnp.bfloat16).astype(jnp.float32)
    y = lax.conv_general_dilated(
        xf, w.astype(jnp.float32),
        window_strides=(stride, stride), padding=((1, 1), (1, 1)),
        dimension_numbers=('NHWC', 'HWIO', 'NHWC'))
    y = y * scale.reshape(1, 1, 1, -1) + shift.reshape(1, 1, 1, -1)
    if alpha is not None:
        y = jnp.where(y > 0, y, y * alpha.reshape(1, 1, 1, -1))
    if addend is not None:
        y = y + addend.astype(jnp.float32)
    return y


def _selftest(conv_fn):
    key = jax.random.PRNGKey(0)
    k1, k2, k3, k4, k5, k6 = jax.random.split(key, 6)
    B, H, W, C, Co = 2, 16, 16, 32, 64
    x = jax.random.normal(k1, (B, H, W, C), jnp.float32).astype(jnp.bfloat16)
    w = (jax.random.normal(k2, (3, 3, C, Co), jnp.float32) / math.sqrt(9 * C)).astype(jnp.bfloat16)
    scale = 0.5 + jax.random.uniform(k3, (1, Co), jnp.float32)
    shift = 0.1 * jax.random.normal(k4, (1, Co), jnp.float32)
    alpha = jnp.full((1, Co), 0.25, jnp.float32)
    ps = 0.8 + 0.4 * jax.random.uniform(k5, (1, C), jnp.float32)
    pt = 0.1 * jax.random.normal(k6, (1, C), jnp.float32)

    got = conv_fn(x, w, scale, shift, 1, alpha=alpha,
                  pre_scale=ps, pre_shift=pt).astype(jnp.float32)
    ref = _conv_reference(x, w, scale, shift, 1, alpha=alpha, pre_scale=ps, pre_shift=pt)
    assert jnp.allclose(got, ref, atol=3e-2, rtol=3e-2), "stride-1 conv mismatch"

    addend = jax.random.normal(k1, (B, H // 2, W // 2, Co), jnp.float32).astype(jnp.bfloat16)
    got = conv_fn(x, w, scale, shift, 2, addend=addend).astype(jnp.float32)
    ref = _conv_reference(x, w, scale, shift, 2, addend=addend)
    assert jnp.allclose(got, ref, atol=3e-2, rtol=3e-2), "stride-2 conv mismatch"


# ---------------------------------------------------------------------------
if __name__ == "__main__":
    # Verify the fused conv kernel on small shapes; fall back (loudly) to the im2col path
    # only if this backend cannot lower it - the fallback is ~9x activation HBM traffic.
    use_fused = True
    try:
        _selftest(conv3x3_fused)
    except Exception as e:  # noqa: BLE001
        print(f"WARNING: fused conv kernel unavailable ({type(e).__name__}: {e}); "
              "falling back to im2col conv path (much slower)", file=sys.stderr)
        _selftest(conv3x3_im2col)
        use_fused = False

    # Full SEResNet_IR(50, mode='ir') forward.  Input must be 112x112 so that the
    # hard-coded 512*7*7 Flatten -> Linear of the output layer matches.
    params, cfg = init_params(jax.random.PRNGKey(0), num_layers=50, feature_dim=512)
    x = jax.random.normal(jax.random.PRNGKey(0), (2, 3, 112, 112), jnp.float32)

    fwd = jax.jit(partial(seresnet_ir_forward, cfg=cfg, use_fused_conv=use_fused))
    try:
        feat = jax.block_until_ready(fwd(params, x))
    except Exception as e:  # noqa: BLE001
        if not use_fused:
            raise
        print(f"WARNING: fused forward failed ({type(e).__name__}: {e}); "
              "retrying with im2col conv path (much slower)", file=sys.stderr)
        fwd = jax.jit(partial(seresnet_ir_forward, cfg=cfg, use_fused_conv=False))
        feat = jax.block_until_ready(fwd(params, x))

    assert feat.shape == (2, 512), feat.shape
    assert bool(jnp.all(jnp.isfinite(feat)))
    print("KERNEL_OK")
</pallas_src>

<mosaic_0001>
module attributes {stable_mosaic.version = 11 : i64} {
  func.func @_conv3x3_kernel(%arg0: i32, %arg1: i32, %arg2: memref<1x1x18x1x18x32xbf16, #tpu.memory_space<vmem>>, %arg3: memref<3x3x32x64xbf16, #tpu.memory_space<vmem>>, %arg4: memref<1x64xf32, #tpu.memory_space<vmem>>, %arg5: memref<1x64xf32, #tpu.memory_space<vmem>>, %arg6: memref<1x64xf32, #tpu.memory_space<vmem>>, %arg7: memref<1x256x64xbf16, #tpu.memory_space<vmem>>, %arg8: memref<256x64xf32, #tpu.memory_space<vmem>>) attributes {dimension_semantics = [#tpu.dimension_semantics<parallel>, #tpu.dimension_semantics<parallel>], iteration_bounds = array<i64: 2, 1>, scalar_prefetch = 0 : i64, scratch_operands = 1 : i64, tpu.core_type = #tpu.core_type<tc>, window_params = [{transform_indices = @transform_0, window_bounds = array<i64: 1, 1, 18, 1, 18, 32>}, {pipeline_mode = #tpu.pipeline_mode<synchronous>, transform_indices = @transform_1, window_bounds = array<i64: 3, 3, 32, 64>}, {pipeline_mode = #tpu.pipeline_mode<synchronous>, transform_indices = @transform_2, window_bounds = array<i64: 1, 64>}, {pipeline_mode = #tpu.pipeline_mode<synchronous>, transform_indices = @transform_3, window_bounds = array<i64: 1, 64>}, {pipeline_mode = #tpu.pipeline_mode<synchronous>, transform_indices = @transform_4, window_bounds = array<i64: 1, 64>}, {transform_indices = @transform_5, window_bounds = array<i64: 1, 256, 64>}]} {
    %c16_i32 = arith.constant 16 : i32
    %0 = arith.muli %arg1, %c16_i32 : i32
    %c0_i32 = arith.constant 0 : i32
    %1 = arith.addi %0, %c0_i32 : i32
    %c0 = arith.constant 0 : index
    %c0_0 = arith.constant 0 : index
    %2 = arith.index_cast %1 : i32 to index
    %c0_1 = arith.constant 0 : index
    %c0_2 = arith.constant 0 : index
    %c0_3 = arith.constant 0 : index
    %3 = vector.load %arg2[%c0, %c0_0, %2, %c0_1, %c0_2, %c0_3] : memref<1x1x18x1x18x32xbf16, #tpu.memory_space<vmem>>, vector<1x1x16x1x16x32xbf16>
    %4 = vector.shape_cast %3 : vector<1x1x16x1x16x32xbf16> to vector<16x16x32xbf16>
    %5 = vector.shape_cast %4 : vector<16x16x32xbf16> to vector<256x32xbf16>
    %c0_4 = arith.constant 0 : index
    %c0_5 = arith.constant 0 : index
    %c0_6 = arith.constant 0 : index
    %c0_7 = arith.constant 0 : index
    %6 = vector.load %arg3[%c0_4, %c0_5, %c0_6, %c0_7] : memref<3x3x32x64xbf16, #tpu.memory_space<vmem>>, vector<1x1x32x64xbf16>
    %7 = vector.shape_cast %6 : vector<1x1x32x64xbf16> to vector<32x64xbf16>
    %cst = arith.constant dense<0.000000e+00> : vector<256x64xf32>
    %8 = tpu.matmul %5, %7, %cst {dimension_numbers = #tpu.dot_dimension_numbers<[1], [0], [0], [1], [0, 0, 1, 1], [], []>} : vector<256x32xbf16>, vector<32x64xbf16>, vector<256x64xf32> -> vector<256x64xf32>
    %c0_i32_8 = arith.constant 0 : i32
    %9 = arith.addi %0, %c0_i32_8 : i32
    %c0_9 = arith.constant 0 : index
    %c0_10 = arith.constant 0 : index
    %10 = arith.index_cast %9 : i32 to index
    %c0_11 = arith.constant 0 : index
    %c1 = arith.constant 1 : index
    %c0_12 = arith.constant 0 : index
    %11 = vector.load %arg2[%c0_9, %c0_10, %10, %c0_11, %c1, %c0_12] : memref<1x1x18x1x18x32xbf16, #tpu.memory_space<vmem>>, vector<1x1x16x1x16x32xbf16>
    %12 = vector.shape_cast %11 : vector<1x1x16x1x16x32xbf16> to vector<16x16x32xbf16>
    %13 = vector.shape_cast %12 : vector<16x16x32xbf16> to vector<256x32xbf16>
    %c0_13 = arith.constant 0 : index
    %c1_14 = arith.constant 1 : index
    %c0_15 = arith.constant 0 : index
    %c0_16 = arith.constant 0 : index
    %14 = vector.load %arg3[%c0_13, %c1_14, %c0_15, %c0_16] : memref<3x3x32x64xbf16, #tpu.memory_space<vmem>>, vector<1x1x32x64xbf16>
    %15 = vector.shape_cast %14 : vector<1x1x32x64xbf16> to vector<32x64xbf16>
    %cst_17 = arith.constant dense<0.000000e+00> : vector<256x64xf32>
    %16 = tpu.matmul %13, %15, %cst_17 {dimension_numbers = #tpu.dot_dimension_numbers<[1], [0], [0], [1], [0, 0, 1, 1], [], []>} : vector<256x32xbf16>, vector<32x64xbf16>, vector<256x64xf32> -> vector<256x64xf32>
    %17 = arith.addf %8, %16 : vector<256x64xf32>
    %c0_i32_18 = arith.constant 0 : i32
    %18 = arith.addi %0, %c0_i32_18 : i32
    %c0_19 = arith.constant 0 : index
    %c0_20 = arith.constant 0 : index
    %19 = arith.index_cast %18 : i32 to index
    %c0_21 = arith.constant 0 : index
    %c2 = arith.constant 2 : index
    %c0_22 = arith.constant 0 : index
    %20 = vector.load %arg2[%c0_19, %c0_20, %19, %c0_21, %c2, %c0_22] : memref<1x1x18x1x18x32xbf16, #tpu.memory_space<vmem>>, vector<1x1x16x1x16x32xbf16>
    %21 = vector.shape_cast %20 : vector<1x1x16x1x16x32xbf16> to vector<16x16x32xbf16>
    %22 = vector.shape_cast %21 : vector<16x16x32xbf16> to vector<256x32xbf16>
    %c0_23 = arith.constant 0 : index
    %c2_24 = arith.constant 2 : index
    %c0_25 = arith.constant 0 : index
    %c0_26 = arith.constant 0 : index
    %23 = vector.load %arg3[%c0_23, %c2_24, %c0_25, %c0_26] : memref<3x3x32x64xbf16, #tpu.memory_space<vmem>>, vector<1x1x32x64xbf16>
    %24 = vector.shape_cast %23 : vector<1x1x32x64xbf16> to vector<32x64xbf16>
    %cst_27 = arith.constant dense<0.000000e+00> : vector<256x64xf32>
    %25 = tpu.matmul %22, %24, %cst_27 {dimension_numbers = #tpu.dot_dimension_numbers<[1], [0], [0], [1], [0, 0, 1, 1], [], []>} : vector<256x32xbf16>, vector<32x64xbf16>, vector<256x64xf32> -> vector<256x64xf32>
    %26 = arith.addf %17, %25 : vector<256x64xf32>
    %c0_28 = arith.constant 0 : index
    %c0_29 = arith.constant 0 : index
    %27 = vector.load %arg8[%c0_28, %c0_29] : memref<256x64xf32, #tpu.memory_space<vmem>>, vector<256x64xf32>
    tpu.vector_store %arg8[%c0_28, %c0_29], %26 {strides = array<i32>} : memref<256x64xf32, #tpu.memory_space<vmem>>, vector<256x64xf32>,
    %c1_i32 = arith.constant 1 : i32
    %28 = arith.addi %0, %c1_i32 : i32
    %c0_30 = arith.constant 0 : index
    %c0_31 = arith.constant 0 : index
    %29 = arith.index_cast %28 : i32 to index
    %c0_32 = arith.constant 0 : index
    %c0_33 = arith.constant 0 : index
    %c0_34 = arith.constant 0 : index
    %30 = vector.load %arg2[%c0_30, %c0_31, %29, %c0_32, %c0_33, %c0_34] : memref<1x1x18x1x18x32xbf16, #tpu.memory_space<vmem>>, vector<1x1x16x1x16x32xbf16>
    %31 = vector.shape_cast %30 : vector<1x1x16x1x16x32xbf16> to vector<16x16x32xbf16>
    %32 = vector.shape_cast %31 : vector<16x16x32xbf16> to vector<256x32xbf16>
    %c1_35 = arith.constant 1 : index
    %c0_36 = arith.constant 0 : index
    %c0_37 = arith.constant 0 : index
    %c0_38 = arith.constant 0 : index
    %33 = vector.load %arg3[%c1_35, %c0_36, %c0_37, %c0_38] : memref<3x3x32x64xbf16, #tpu.memory_space<vmem>>, vector<1x1x32x64xbf16>
    %34 = vector.shape_cast %33 : vector<1x1x32x64xbf16> to vector<32x64xbf16>
    %cst_39 = arith.constant dense<0.000000e+00> : vector<256x64xf32>
    %35 = tpu.matmul %32, %34, %cst_39 {dimension_numbers = #tpu.dot_dimension_numbers<[1], [0], [0], [1], [0, 0, 1, 1], [], []>} : vector<256x32xbf16>, vector<32x64xbf16>, vector<256x64xf32> -> vector<256x64xf32>
    %c1_i32_40 = arith.constant 1 : i32
    %36 = arith.addi %0, %c1_i32_40 : i32
    %c0_41 = arith.constant 0 : index
    %c0_42 = arith.constant 0 : index
    %37 = arith.index_cast %36 : i32 to index
    %c0_43 = arith.constant 0 : index
    %c1_44 = arith.constant 1 : index
    %c0_45 = arith.constant 0 : index
    %38 = vector.load %arg2[%c0_41, %c0_42, %37, %c0_43, %c1_44, %c0_45] : memref<1x1x18x1x18x32xbf16, #tpu.memory_space<vmem>>, vector<1x1x16x1x16x32xbf16>
    %39 = vector.shape_cast %38 : vector<1x1x16x1x16x32xbf16> to vector<16x16x32xbf16>
    %40 = vector.shape_cast %39 : vector<16x16x32xbf16> to vector<256x32xbf16>
    %c1_46 = arith.constant 1 : index
    %c1_47 = arith.constant 1 : index
    %c0_48 = arith.constant 0 : index
    %c0_49 = arith.constant 0 : index
    %41 = vector.load %arg3[%c1_46, %c1_47, %c0_48, %c0_49] : memref<3x3x32x64xbf16, #tpu.memory_space<vmem>>, vector<1x1x32x64xbf16>
    %42 = vector.shape_cast %41 : vector<1x1x32x64xbf16> to vector<32x64xbf16>
    %cst_50 = arith.constant dense<0.000000e+00> : vector<256x64xf32>
    %43 = tpu.matmul %40, %42, %cst_50 {dimension_numbers = #tpu.dot_dimension_numbers<[1], [0], [0], [1], [0, 0, 1, 1], [], []>} : vector<256x32xbf16>, vector<32x64xbf16>, vector<256x64xf32> -> vector<256x64xf32>
    %44 = arith.addf %35, %43 : vector<256x64xf32>
    %c1_i32_51 = arith.constant 1 : i32
    %45 = arith.addi %0, %c1_i32_51 : i32
    %c0_52 = arith.constant 0 : index
    %c0_53 = arith.constant 0 : index
    %46 = arith.index_cast %45 : i32 to index
    %c0_54 = arith.constant 0 : index
    %c2_55 = arith.constant 2 : index
    %c0_56 = arith.constant 0 : index
    %47 = vector.load %arg2[%c0_52, %c0_53, %46, %c0_54, %c2_55, %c0_56] : memref<1x1x18x1x18x32xbf16, #tpu.memory_space<vmem>>, vector<1x1x16x1x16x32xbf16>
    %48 = vector.shape_cast %47 : vector<1x1x16x1x16x32xbf16> to vector<16x16x32xbf16>
    %49 = vector.shape_cast %48 : vector<16x16x32xbf16> to vector<256x32xbf16>
    %c1_57 = arith.constant 1 : index
    %c2_58 = arith.constant 2 : index
    %c0_59 = arith.constant 0 : index
    %c0_60 = arith.constant 0 : index
    %50 = vector.load %arg3[%c1_57, %c2_58, %c0_59, %c0_60] : memref<3x3x32x64xbf16, #tpu.memory_space<vmem>>, vector<1x1x32x64xbf16>
    %51 = vector.shape_cast %50 : vector<1x1x32x64xbf16> to vector<32x64xbf16>
    %cst_61 = arith.constant dense<0.000000e+00> : vector<256x64xf32>
    %52 = tpu.matmul %49, %51, %cst_61 {dimension_numbers = #tpu.dot_dimension_numbers<[1], [0], [0], [1], [0, 0, 1, 1], [], []>} : vector<256x32xbf16>, vector<32x64xbf16>, vector<256x64xf32> -> vector<256x64xf32>
    %53 = arith.addf %44, %52 : vector<256x64xf32>
    %c0_62 = arith.constant 0 : index
    %c0_63 = arith.constant 0 : index
    %54 = vector.load %arg8[%c0_62, %c0_63] : memref<256x64xf32, #tpu.memory_space<vmem>>, vector<256x64xf32>
    %55 = arith.addf %54, %53 : vector<256x64xf32>
    %c0_64 = arith.constant 0 : index
    %c0_65 = arith.constant 0 : index
    %56 = vector.load %arg8[%c0_64, %c0_65] : memref<256x64xf32, #tpu.memory_space<vmem>>, vector<256x64xf32>
    tpu.vector_store %arg8[%c0_64, %c0_65], %55 {strides = array<i32>} : memref<256x64xf32, #tpu.memory_space<vmem>>, vector<256x64xf32>,
    %c2_i32 = arith.constant 2 : i32
    %57 = arith.addi %0, %c2_i32 : i32
    %c0_66 = arith.constant 0 : index
    %c0_67 = arith.constant 0 : index
    %58 = arith.index_cast %57 : i32 to index
    %c0_68 = arith.constant 0 : index
    %c0_69 = arith.constant 0 : index
    %c0_70 = arith.constant 0 : index
    %59 = vector.load %arg2[%c0_66, %c0_67, %58, %c0_68, %c0_69, %c0_70] : memref<1x1x18x1x18x32xbf16, #tpu.memory_space<vmem>>, vector<1x1x16x1x16x32xbf16>
    %60 = vector.shape_cast %59 : vector<1x1x16x1x16x32xbf16> to vector<16x16x32xbf16>
    %61 = vector.shape_cast %60 : vector<16x16x32xbf16> to vector<256x32xbf16>
    %c2_71 = arith.constant 2 : index
    %c0_72 = arith.constant 0 : index
    %c0_73 = arith.constant 0 : index
    %c0_74 = arith.constant 0 : index
    %62 = vector.load %arg3[%c2_71, %c0_72, %c0_73, %c0_74] : memref<3x3x32x64xbf16, #tpu.memory_space<vmem>>, vector<1x1x32x64xbf16>
    %63 = vector.shape_cast %62 : vector<1x1x32x64xbf16> to vector<32x64xbf16>
    %cst_75 = arith.constant dense<0.000000e+00> : vector<256x64xf32>
    %64 = tpu.matmul %61, %63, %cst_75 {dimension_numbers = #tpu.dot_dimension_numbers<[1], [0], [0], [1], [0, 0, 1, 1], [], []>} : vector<256x32xbf16>, vector<32x64xbf16>, vector<256x64xf32> -> vector<256x64xf32>
    %c2_i32_76 = arith.constant 2 : i32
    %65 = arith.addi %0, %c2_i32_76 : i32
    %c0_77 = arith.constant 0 : index
    %c0_78 = arith.constant 0 : index
    %66 = arith.index_cast %65 : i32 to index
    %c0_79 = arith.constant 0 : index
    %c1_80 = arith.constant 1 : index
    %c0_81 = arith.constant 0 : index
    %67 = vector.load %arg2[%c0_77, %c0_78, %66, %c0_79, %c1_80, %c0_81] : memref<1x1x18x1x18x32xbf16, #tpu.memory_space<vmem>>, vector<1x1x16x1x16x32xbf16>
    %68 = vector.shape_cast %67 : vector<1x1x16x1x16x32xbf16> to vector<16x16x32xbf16>
    %69 = vector.shape_cast %68 : vector<16x16x32xbf16> to vector<256x32xbf16>
    %c2_82 = arith.constant 2 : index
    %c1_83 = arith.constant 1 : index
    %c0_84 = arith.constant 0 : index
    %c0_85 = arith.constant 0 : index
    %70 = vector.load %arg3[%c2_82, %c1_83, %c0_84, %c0_85] : memref<3x3x32x64xbf16, #tpu.memory_space<vmem>>, vector<1x1x32x64xbf16>
    %71 = vector.shape_cast %70 : vector<1x1x32x64xbf16> to vector<32x64xbf16>
    %cst_86 = arith.constant dense<0.000000e+00> : vector<256x64xf32>
    %72 = tpu.matmul %69, %71, %cst_86 {dimension_numbers = #tpu.dot_dimension_numbers<[1], [0], [0], [1], [0, 0, 1, 1], [], []>} : vector<256x32xbf16>, vector<32x64xbf16>, vector<256x64xf32> -> vector<256x64xf32>
    %73 = arith.addf %64, %72 : vector<256x64xf32>
    %c2_i32_87 = arith.constant 2 : i32
    %74 = arith.addi %0, %c2_i32_87 : i32
    %c0_88 = arith.constant 0 : index
    %c0_89 = arith.constant 0 : index
    %75 = arith.index_cast %74 : i32 to index
    %c0_90 = arith.constant 0 : index
    %c2_91 = arith.constant 2 : index
    %c0_92 = arith.constant 0 : index
    %76 = vector.load %arg2[%c0_88, %c0_89, %75, %c0_90, %c2_91, %c0_92] : memref<1x1x18x1x18x32xbf16, #tpu.memory_space<vmem>>, vector<1x1x16x1x16x32xbf16>
    %77 = vector.shape_cast %76 : vector<1x1x16x1x16x32xbf16> to vector<16x16x32xbf16>
    %78 = vector.shape_cast %77 : vector<16x16x32xbf16> to vector<256x32xbf16>
    %c2_93 = arith.constant 2 : index
    %c2_94 = arith.constant 2 : index
    %c0_95 = arith.constant 0 : index
    %c0_96 = arith.constant 0 : index
    %79 = vector.load %arg3[%c2_93, %c2_94, %c0_95, %c0_96] : memref<3x3x32x64xbf16, #tpu.memory_space<vmem>>, vector<1x1x32x64xbf16>
    %80 = vector.shape_cast %79 : vector<1x1x32x64xbf16> to vector<32x64xbf16>
    %cst_97 = arith.constant dense<0.000000e+00> : vector<256x64xf32>
    %81 = tpu.matmul %78, %80, %cst_97 {dimension_numbers = #tpu.dot_dimension_numbers<[1], [0], [0], [1], [0, 0, 1, 1], [], []>} : vector<256x32xbf16>, vector<32x64xbf16>, vector<256x64xf32> -> vector<256x64xf32>
    %82 = arith.addf %73, %81 : vector<256x64xf32>
    %c0_98 = arith.constant 0 : index
    %c0_99 = arith.constant 0 : index
    %83 = vector.load %arg8[%c0_98, %c0_99] : memref<256x64xf32, #tpu.memory_space<vmem>>, vector<256x64xf32>
    %84 = arith.addf %83, %82 : vector<256x64xf32>
    %c0_100 = arith.constant 0 : index
    %c0_101 = arith.constant 0 : index
    %85 = vector.load %arg8[%c0_100, %c0_101] : memref<256x64xf32, #tpu.memory_space<vmem>>, vector<256x64xf32>
    tpu.vector_store %arg8[%c0_100, %c0_101], %84 {strides = array<i32>} : memref<256x64xf32, #tpu.memory_space<vmem>>, vector<256x64xf32>,
    %c0_102 = arith.constant 0 : index
    %c0_103 = arith.constant 0 : index
    %86 = vector.load %arg8[%c0_102, %c0_103] : memref<256x64xf32, #tpu.memory_space<vmem>>, vector<256x64xf32>
    %c0_104 = arith.constant 0 : index
    %c0_105 = arith.constant 0 : index
    %87 = vector.load %arg4[%c0_104, %c0_105] : memref<1x64xf32, #tpu.memory_space<vmem>>, vector<1x64xf32>
    %88 = vector.broadcast %87 : vector<1x64xf32> to vector<256x64xf32>
    %89 = arith.mulf %86, %88 : vector<256x64xf32>
    %c0_106 = arith.constant 0 : index
    %c0_107 = arith.constant 0 : index
    %90 = vector.load %arg5[%c0_106, %c0_107] : memref<1x64xf32, #tpu.memory_space<vmem>>, vector<1x64xf32>
    %91 = vector.broadcast %90 : vector<1x64xf32> to vector<256x64xf32>
    %92 = arith.addf %89, %91 : vector<256x64xf32>
    %cst_108 = arith.constant 0.000000e+00 : f32
    %93 = vector.broadcast %cst_108 : f32 to vector<256x64xf32>
    %94 = arith.cmpf ogt, %92, %93 : vector<256x64xf32>
    %c0_109 = arith.constant 0 : index
    %c0_110 = arith.constant 0 : index
    %95 = vector.load %arg6[%c0_109, %c0_110] : memref<1x64xf32, #tpu.memory_space<vmem>>, vector<1x64xf32>
    %96 = vector.broadcast %95 : vector<1x64xf32> to vector<256x64xf32>
    %97 = arith.mulf %92, %96 : vector<256x64xf32>
    %98 = arith.select %94, %92, %97 : vector<256x64xi1>, vector<256x64xf32>
    %99 = arith.truncf %98 : vector<256x64xf32> to vector<256x64xbf16>
    %c0_111 = arith.constant 0 : index
    %c0_112 = arith.constant 0 : index
    %c0_113 = arith.constant 0 : index
    %100 = vector.load %arg7[%c0_111, %c0_112, %c0_113] : memref<1x256x64xbf16, #tpu.memory_space<vmem>>, vector<1x256x64xbf16>
    %101 = vector.shape_cast %100 : vector<1x256x64xbf16> to vector<256x64xbf16>
    %102 = vector.shape_cast %99 : vector<256x64xbf16> to vector<1x256x64xbf16>
    tpu.vector_store %arg7[%c0_111, %c0_112, %c0_113], %102 {strides = array<i32>} : memref<1x256x64xbf16, #tpu.memory_space<vmem>>, vector<1x256x64xbf16>,
    return
  }
  func.func @transform_0(%arg0: i32, %arg1: i32) -> (i32, i32, i32, i32, i32, i32) {
    %c0_i32 = arith.constant 0 : i32
    %c0_i32_0 = arith.constant 0 : i32
    %c0_i32_1 = arith.constant 0 : i32
    %c0_i32_2 = arith.constant 0 : i32
    %c0_i32_3 = arith.constant 0 : i32
    %c0_i32_4 = arith.constant 0 : i32
    return %arg0, %c0_i32, %c0_i32_0, %c0_i32_1, %c0_i32_2, %c0_i32_3 : i32, i32, i32, i32, i32, i32
  }
  func.func @transform_1(%arg0: i32, %arg1: i32) -> (i32, i32, i32, i32) {
    %c0_i32 = arith.constant 0 : i32
    %c0_i32_0 = arith.constant 0 : i32
    %c0_i32_1 = arith.constant 0 : i32
    %c0_i32_2 = arith.constant 0 : i32
    %c0_i32_3 = arith.constant 0 : i32
    return %c0_i32, %c0_i32_0, %c0_i32_1, %c0_i32_2 : i32, i32, i32, i32
  }
  func.func @transform_2(%arg0: i32, %arg1: i32) -> (i32, i32) {
    %c0_i32 = arith.constant 0 : i32
    %c0_i32_0 = arith.constant 0 : i32
    %c0_i32_1 = arith.constant 0 : i32
    return %c0_i32, %c0_i32_0 : i32, i32
  }
  func.func @transform_3(%arg0: i32, %arg1: i32) -> (i32, i32) {
    %c0_i32 = arith.constant 0 : i32
    %c0_i32_0 = arith.constant 0 : i32
    %c0_i32_1 = arith.constant 0 : i32
    return %c0_i32, %c0_i32_0 : i32, i32
  }
  func.func @transform_4(%arg0: i32, %arg1: i32) -> (i32, i32) {
    %c0_i32 = arith.constant 0 : i32
    %c0_i32_0 = arith.constant 0 : i32
    %c0_i32_1 = arith.constant 0 : i32
    return %c0_i32, %c0_i32_0 : i32, i32
  }
  func.func @transform_5(%arg0: i32, %arg1: i32) -> (i32, i32, i32) {
    %c0_i32 = arith.constant 0 : i32
    %c0_i32_0 = arith.constant 0 : i32
    return %arg0, %arg1, %c0_i32 : i32, i32, i32
  }
}

module attributes {stable_mosaic.version = 11 : i64} {
  func.func @_mm_kernel(%arg0: i32, %arg1: i32, %arg2: i32, %arg3: memref<512x288xbf16, #tpu.memory_space<vmem>>, %arg4: memref<288x64xbf16, #tpu.memory_space<vmem>>, %arg5: memref<1x64xf32, #tpu.memory_space<vmem>>, %arg6: memref<1x64xf32, #tpu.memory_space<vmem>>, %arg7: memref<1x64xf32, #tpu.memory_space<vmem>>, %arg8: memref<512x64xbf16, #tpu.memory_space<vmem>>, %arg9: memref<512x64xf32, #tpu.memory_space<vmem>>) attributes {dimension_semantics = [#tpu.dimension_semantics<parallel>, #tpu.dimension_semantics<parallel>, #tpu.dimension_semantics<arbitrary>], iteration_bounds = array<i64: 1, 1, 1>, scalar_prefetch = 0 : i64, scratch_operands = 1 : i64, tpu.core_type = #tpu.core_type<tc>, window_params = [{transform_indices = @transform_0, window_bounds = array<i64: 512, 288>}, {transform_indices = @transform_1, window_bounds = array<i64: 288, 64>}, {transform_indices = @transform_2, window_bounds = array<i64: 1, 64>}, {transform_indices = @transform_3, window_bounds = array<i64: 1, 64>}, {transform_indices = @transform_4, window_bounds = array<i64: 1, 64>}, {transform_indices = @transform_5, window_bounds = array<i64: 512, 64>}]} {
    %c0_i32 = arith.constant 0 : i32
    %0 = arith.cmpi eq, %arg2, %c0_i32 : i32
    %1 = arith.extui %0 : i1 to i32
    %c0_i32_0 = arith.constant 0 : i32
    %2 = arith.cmpi ne, %1, %c0_i32_0 : i32
    scf.if %2 {
      %cst_10 = arith.constant 0.000000e+00 : f32
      %12 = vector.broadcast %cst_10 : f32 to vector<512x64xf32>
      %c0_11 = arith.constant 0 : index
      %c0_12 = arith.constant 0 : index
      %13 = vector.load %arg9[%c0_11, %c0_12] : memref<512x64xf32, #tpu.memory_space<vmem>>, vector<512x64xf32>
      tpu.vector_store %arg9[%c0_11, %c0_12], %12 {strides = array<i32>} : memref<512x64xf32, #tpu.memory_space<vmem>>, vector<512x64xf32>,
    } else {
    }
    %c0 = arith.constant 0 : index
    %c0_1 = arith.constant 0 : index
    %3 = vector.load %arg9[%c0, %c0_1] : memref<512x64xf32, #tpu.memory_space<vmem>>, vector<512x64xf32>
    %c0_2 = arith.constant 0 : index
    %c0_3 = arith.constant 0 : index
    %4 = vector.load %arg3[%c0_2, %c0_3] : memref<512x288xbf16, #tpu.memory_space<vmem>>, vector<512x288xbf16>
    %c0_4 = arith.constant 0 : index
    %c0_5 = arith.constant 0 : index
    %5 = vector.load %arg4[%c0_4, %c0_5] : memref<288x64xbf16, #tpu.memory_space<vmem>>, vector<288x64xbf16>
    %cst = arith.constant dense<0.000000e+00> : vector<512x64xf32>
    %6 = tpu.matmul %4, %5, %cst {dimension_numbers = #tpu.dot_dimension_numbers<[1], [0], [0], [1], [0, 0, 1, 1], [], []>} : vector<512x288xbf16>, vector<288x64xbf16>, vector<512x64xf32> -> vector<512x64xf32>
    %7 = arith.addf %3, %6 : vector<512x64xf32>
    %c0_6 = arith.constant 0 : index
    %c0_7 = arith.constant 0 : index
    %8 = vector.load %arg9[%c0_6, %c0_7] : memref<512x64xf32, #tpu.memory_space<vmem>>, vector<512x64xf32>
    tpu.vector_store %arg9[%c0_6, %c0_7], %7 {strides = array<i32>} : memref<512x64xf32, #tpu.memory_space<vmem>>, vector<512x64xf32>,
    %c0_i32_8 = arith.constant 0 : i32
    %9 = arith.cmpi eq, %arg2, %c0_i32_8 : i32
    %10 = arith.extui %9 : i1 to i32
    %c0_i32_9 = arith.constant 0 : i32
    %11 = arith.cmpi ne, %10, %c0_i32_9 : i32
    scf.if %11 {
      %c0_10 = arith.constant 0 : index
      %c0_11 = arith.constant 0 : index
      %12 = vector.load %arg9[%c0_10, %c0_11] : memref<512x64xf32, #tpu.memory_space<vmem>>, vector<512x64xf32>
      %c0_12 = arith.constant 0 : index
      %c0_13 = arith.constant 0 : index
      %13 = vector.load %arg5[%c0_12, %c0_13] : memref<1x64xf32, #tpu.memory_space<vmem>>, vector<1x64xf32>
      %14 = vector.broadcast %13 : vector<1x64xf32> to vector<512x64xf32>
      %15 = arith.mulf %12, %14 : vector<512x64xf32>
      %c0_14 = arith.constant 0 : index
      %c0_15 = arith.constant 0 : index
      %16 = vector.load %arg6[%c0_14, %c0_15] : memref<1x64xf32, #tpu.memory_space<vmem>>, vector<1x64xf32>
      %17 = vector.broadcast %16 : vector<1x64xf32> to vector<512x64xf32>
      %18 = arith.addf %15, %17 : vector<512x64xf32>
      %cst_16 = arith.constant 0.000000e+00 : f32
      %19 = vector.broadcast %cst_16 : f32 to vector<512x64xf32>
      %20 = arith.cmpf ogt, %18, %19 : vector<512x64xf32>
      %c0_17 = arith.constant 0 : index
      %c0_18 = arith.constant 0 : index
      %21 = vector.load %arg7[%c0_17, %c0_18] : memref<1x64xf32, #tpu.memory_space<vmem>>, vector<1x64xf32>
      %22 = vector.broadcast %21 : vector<1x64xf32> to vector<512x64xf32>
      %23 = arith.mulf %18, %22 : vector<512x64xf32>
      %24 = arith.select %20, %18, %23 : vector<512x64xi1>, vector<512x64xf32>
      %25 = arith.truncf %24 : vector<512x64xf32> to vector<512x64xbf16>
      %c0_19 = arith.constant 0 : index
      %c0_20 = arith.constant 0 : index
      %26 = vector.load %arg8[%c0_19, %c0_20] : memref<512x64xbf16, #tpu.memory_space<vmem>>, vector<512x64xbf16>
      tpu.vector_store %arg8[%c0_19, %c0_20], %25 {strides = array<i32>} : memref<512x64xbf16, #tpu.memory_space<vmem>>, vector<512x64xbf16>,
    } else {
    }
    return
  }
  func.func @transform_0(%arg0: i32, %arg1: i32, %arg2: i32) -> (i32, i32) {
    %c0_i32 = arith.constant 0 : i32
    return %arg0, %arg2 : i32, i32
  }
  func.func @transform_1(%arg0: i32, %arg1: i32, %arg2: i32) -> (i32, i32) {
    %c0_i32 = arith.constant 0 : i32
    return %arg2, %arg1 : i32, i32
  }
  func.func @transform_2(%arg0: i32, %arg1: i32, %arg2: i32) -> (i32, i32) {
    %c0_i32 = arith.constant 0 : i32
    %c0_i32_0 = arith.constant 0 : i32
    return %c0_i32, %arg1 : i32, i32
  }
  func.func @transform_3(%arg0: i32, %arg1: i32, %arg2: i32) -> (i32, i32) {
    %c0_i32 = arith.constant 0 : i32
    %c0_i32_0 = arith.constant 0 : i32
    return %c0_i32, %arg1 : i32, i32
  }
  func.func @transform_4(%arg0: i32, %arg1: i32, %arg2: i32) -> (i32, i32) {
    %c0_i32 = arith.constant 0 : i32
    %c0_i32_0 = arith.constant 0 : i32
    return %c0_i32, %arg1 : i32, i32
  }
  func.func @transform_5(%arg0: i32, %arg1: i32, %arg2: i32) -> (i32, i32) {
    %c0_i32 = arith.constant 0 : i32
    return %arg0, %arg1 : i32, i32
  }
}

</mosaic_0001>

<bundles_post_ra>
// kernel: tpu_custom_call.1
= control target key start
LH: loop header
LB: loop body
LE: loop exit
PB: predicated region body
PF: predicated region fallthrough
CT: control target
= control target key end

     0   :  { %s6613_s18 = smov 0   ;;  %s6615_s19 = smov 0   ;;  %s9378_s0 = inlined_call_operand.vmem [shape: bf16[2,1,18,1,18,32], index: 0, kind: input, shape index: {}]   ;;  %s9379_s1 = inlined_call_operand.vmem [shape: bf16[3,3,32,64], index: 1, kind: input, shape index: {}]   ;;  %s9380_s2 = inlined_call_operand.vmem [shape: f32[1,64], index: 2, kind: input, shape index: {}]   ;;  %s9381_s3 = inlined_call_operand.vmem [shape: f32[1,64], index: 3, kind: input, shape index: {}]   ;;  %s9382_s4 = inlined_call_operand.vmem [shape: f32[1,64], index: 4, kind: input, shape index: {}]   ;;  %s9383_s5 = inlined_call_operand.vmem [shape: bf16[2,256,64], index: 5, kind: output, shape index: {}]  }
   0x1   :  { %s6617_s20 = smov 0  }
   0x2 LB: > { %s27_s21 = sadd.s32 1, %s6577_s19  ;;  %p5395_p0 = scmp.ge.s32.totalorder %s6581_s20, 1  ;;  %s6581_s20 = sphi %s6617_s20, %s15_s20   ;;  %s6577_s19 = sphi %s6615_s19, %s9630_s19   ;;  %s6573_s18 = sphi %s6613_s18, %s9629_s18  }
   0x3   : > { %p29_p1 = scmp.ge.s32.totalorder %s27_s21, 2  ;;  %p201_p2 = scmp.lt.s32.totalorder %s6581_s20, 3 }
   0x5   : > { %s9632_s21 = smov (%p29_p1, %s27_s21), 0  ;;  %p202_p3 = pnand %p5395_p0, %p201_p2 }
   0x7   : > { %205 = sbr.rel (%p202_p3) target bundleno = 585 (0x249), region = 40 }
   0xc   : > { %v6498_v0 = vld [vmem:[%s9379_s1 + $0x18] sm:$0xff]   ;;  %p233_p4 = scmp.lt.s32.totalorder %s6573_s18, 1  ;;  %v6499_v1 = vld [vmem:[%s9379_s1 + $0x10] sm:$0xff]   ;;  %v6642_v2 = vld [vmem:[%s9379_s1 + $0x8] sm:$0xff]   ;;  %vm305_vm0 = vsmask.f32 3328 }
   0xd   : > { %6469 = vmatprep.subr.bf16.mxu1 %v6498_v0  ;;  %6145 = vmatprep.subr.bf16.mxu0 %v6498_v0  ;;  %v6648_v3 = vld [vmem:[%s9379_s1 + $0x28] sm:$0xff]   ;;  %vm306_vm1 = vsmask.f32 7440  ;;  %vm757_vm2 = vcmask 261120   ;;  %vm1316_vm4 = vcmask 1042432   ;;  %vm1317_vm5 = vcmask 1046532  }
   0xe   : > { %s9634_s18 = smov (!%p233_p4, %s6573_s18), 1  ;;  %6471 = vmatpush3.bf16.msra.mxu1 %v6498_v0  ;;  %6146 = vmatpush3.bf16.msra.mxu0 %v6498_v0  ;;  %vm6694_vm3 = vmor %vm305_vm0, %vm306_vm1  ;;  %vm1737_vm7 = vcmask 523264   ;;  %vm5267_vm8 = vcmask 519168  }
   0xf   : > { %6470 = vmatprep.subr.bf16.mxu1 %v6499_v1  ;;  %6147 = vmatprep.subr.bf16.mxu0 %v6499_v1  ;;  %s6473_s28 = smul.u32 216, %s9634_s18  ;;  %vm6985_vm6 = vmor %vm1316_vm4, %vm1317_vm5  ;;  %s5950_s26 = sshll.u32 %s9634_s18, 7 }
  0x11   : > { %s6653_s8 = scalar_lea.vmem %s9378_s0, %s6473_s28  ;;  %s9139_s28 = scalar_lea.vmem %s9383_s5, %s5950_s26 }
  0x12   : > { %6472 = vmatpush3.bf16.msra.mxu1 %v6499_v1  ;;  %6148 = vmatpush3.bf16.msra.mxu0 %v6499_v1  ;;  %v6656_v4 = vld [vmem:[%s6653_s8] sm:$0xf]  ;;  %v6659_v5 = vld [vmem:[%s6653_s8 + $0x4] sm:$0xf]  ;;  %v6662_v6 = vld [vmem:[%s6653_s8 + $0x8] sm:$0x1] }
  0x13   : > { %v309_v7 = vshrl.u32 %v6656_v4, 16  ;;  %v312_v8 = vshll.u32 %v6656_v4, 16  ;;  %v318_v9 = vshll.u32 %v6659_v5, 16  ;;  %v322_v10 = vshrl.u32 %v6659_v5, 16  ;;  %v6669_v11 = vld [vmem:[%s6653_s8 + $0x60] sm:$0xf]  ;;  %6181 = vmatprep.subr.bf16.mxu1 %v6642_v2  ;;  %6217 = vmatprep.subr.bf16.mxu0 %v6648_v3 }
  0x14   : > { %v328_v12 = vshll.u32 %v6662_v6, 16  ;;  %v6676_v14 = vld [vmem:[%s6653_s8 + $0x64] sm:$0xf]  ;;  %v6679_v15 = vld [vmem:[%s6653_s8 + $0x68] sm:$0x1]  ;;  %v501_v21 = vshrl.u32 %v6669_v11, 16 }
  0x15   : > { %v311_v16 = vrot.slane %v309_v7, 4  ;;  %v314_v17 = vrot.slane %v312_v8, 5  ;;  %v320_v18 = vrot.slane %v318_v9, 5  ;;  %v324_v19 = vrot.slane %v322_v10, 4  ;;  %v6687_v28 = vld [vmem:[%s6653_s8 + $0xc] sm:$0xf] }
  0x16   : > { %v330_v20 = vrot.slane %v328_v12, 5  ;;  %v504_v22 = vshll.u32 %v6669_v11, 16  ;;  %v510_v23 = vshll.u32 %v6676_v14, 16  ;;  %v514_v26 = vshrl.u32 %v6676_v14, 16  ;;  %v6690_v29 = vld [vmem:[%s6653_s8 + $0x10] sm:$0xf] }
  0x17   : > { %v315_v24 = vor.u32 %v314_v17, %v311_v16  ;;  %v325_v25 = vor.u32 %v324_v19, %v320_v18  ;;  %v520_v27 = vshll.u32 %v6679_v15, 16  ;;  %v503_v31 = vrot.slane %v501_v21, 4  ;;  %v6701_v40 = vld [vmem:[%s6653_s8 + $0x14] sm:$0x1]  ;;  %v6712_v52 = vld [vmem:[%s6653_s8 + $0x6c] sm:$0xf] }
  0x18   : > { %v506_v32 = vrot.slane %v504_v22, 5  ;;  %v512_v33 = vrot.slane %v510_v23, 5  ;;  %v516_v37 = vrot.slane %v514_v26, 4  ;;  %v333_v41 = vshrl.u32 %v6687_v28, 16  ;;  %v6716_v57 = vld [vmem:[%s6653_s8 + $0x70] sm:$0xf] }
  0x19   : > { %v316_v35 = vrot.slane %v315_v24, 4  ;;  %v326_v36 = vrot.slane %v325_v25, 4  ;;  %v522_v38 = vrot.slane %v520_v27, 5  ;;  %v336_v42 = vshll.u32 %v6687_v28, 16  ;;  %v6724_v62 = vld [vmem:[%s6653_s8 + $0x74] sm:$0x1] }
  0x1a   : > { %v507_v39 = vor.u32 %v506_v32, %v503_v31  ;;  %v342_v43 = vshll.u32 %v6690_v29, 16  ;;  %v517_v46 = vor.u32 %v516_v37, %v512_v33  ;;  %v346_v47 = vshrl.u32 %v6690_v29, 16  ;;  %v6730_v8 = vld [vmem:[%s6653_s8 + $0x18] sm:$0xf]  ;;  %v6737_v21 = vld [vmem:[%s6653_s8 + $0x1c] sm:$0xf] }
  0x1b   : > { %v321_v44 = vsel %vm6694_vm3, %v316_v35, %v320_v18  ;;  %v331_v45 = vsel %vm6694_vm3, %v326_v36, %v330_v20  ;;  %v335_v50 = vrot.slane %v333_v41, 4  ;;  %v338_v51 = vrot.slane %v336_v42, 5  ;;  %v6743_v25 = vld [vmem:[%s6653_s8 + $0x20] sm:$0x1]  ;;  %v6750_v35 = vld [vmem:[%s6653_s8 + $0x78] sm:$0xf] }
  0x1c   : > { %v5403_v48 = vcombine.low %v321_v44, %v331_v45  ;;  %v508_v49 = vrot.slane %v507_v39, 4  ;;  %v518_v53 = vrot.slane %v517_v46, 4  ;;  %v344_v54 = vrot.slane %v342_v43, 5  ;;  %v6503_v41 = vld [vmem:[%s9379_s1 + $0x20] sm:$0xff]   ;;  %v6759_v46 = vld [vmem:[%s6653_s8 + $0x7c] sm:$0xf] }
  0x1d   : > { %v348_v55 = vrot.slane %v346_v47, 4  ;;  %v352_v56 = vshll.u32 %v6701_v40, 16  ;;  %v339_v59 = vor.u32 %v338_v51, %v335_v50  ;;  %v525_v7 = vshrl.u32 %v6712_v52, 16 }
  0x1e   : > { %6149 = vmatprep.mubr.msk.bf16.mxu0 %vm757_vm2, %v5403_v48  ;;  %v513_v58 = vsel %vm6694_vm3, %v508_v49, %v512_v33  ;;  %v523_v63 = vsel %vm6694_vm3, %v518_v53, %v522_v38  ;;  %v528_v12 = vshll.u32 %v6712_v52, 16  ;;  %v534_v16 = vshll.u32 %v6716_v57, 16 }
  0x1f   : > { %v349_v0 = vor.u32 %v348_v55, %v344_v54  ;;  %v354_v1 = vrot.slane %v352_v56, 5  ;;  %v5411_v9 = vcombine.low %v513_v58, %v523_v63  ;;  %v340_v10 = vrot.slane %v339_v59, 4  ;;  %v6766_v56 = vld [vmem:[%s6653_s8 + $0x80] sm:$0x1] }
  0x20   : > { %v527_v18 = vrot.slane %v525_v7, 4  ;;  %v538_v19 = vshrl.u32 %v6716_v57, 16  ;;  %v544_v20 = vshll.u32 %v6724_v62, 16  ;;  %v530_v23 = vrot.slane %v528_v12, 5 }
  0x21   : > { %v350_v17 = vrot.slane %v349_v0, 4  ;;  %6165 = vmatprep.mubr.msk.bf16.mxu1 %vm757_vm2, %v5411_v9  ;;  %v345_v22 = vsel %vm6694_vm3, %v340_v10, %v344_v54  ;;  %v536_v24 = vrot.slane %v534_v16, 5  ;;  %v357_v26 = vshrl.u32 %v6730_v8, 16  ;;  %v6783_v16 = vld [vmem:[%s6653_s8 + $0x28] sm:$0xf] }
  0x22   : > { %v540_v31 = vrot.slane %v538_v19, 4  ;;  %v546_v32 = vrot.slane %v544_v20, 5  ;;  %v360_v33 = vshll.u32 %v6730_v8, 16  ;;  %v531_v37 = vor.u32 %v530_v23, %v527_v18 }
  0x23   : > { %v355_v27 = vsel %vm6694_vm3, %v350_v17, %v354_v1  ;;  %v359_v38 = vrot.slane %v357_v26, 4  ;;  %v366_v39 = vshll.u32 %v6737_v21, 16  ;;  %v370_v44 = vshrl.u32 %v6737_v21, 16  ;;  %v6772_v1 = vld [vmem:[%s6653_s8 + $0x24] sm:$0xf] }
  0x24   : > { %v5404_v36 = vcombine.low %v345_v22, %v355_v27  ;;  %v541_v42 = vor.u32 %v540_v31, %v536_v24  ;;  %v362_v43 = vrot.slane %v360_v33, 5  ;;  %v376_v45 = vshll.u32 %v6743_v25, 16  ;;  %v6502_v22 = vld [vmem:[%s9379_s1] sm:$0xff]   ;;  %v6792_v27 = vld [vmem:[%s6653_s8 + $0x2c] sm:$0x1] }
  0x25   : > { %v532_v47 = vrot.slane %v531_v37, 4  ;;  %v368_v48 = vrot.slane %v366_v39, 5  ;;  %v549_v49 = vshrl.u32 %v6750_v35, 16  ;;  %v552_v50 = vshll.u32 %v6750_v35, 16 }
  0x26   : > { %6150 = vmatmul.mubr.msk.bf16.vlgmr.msra.gmra.mxu0 %vm757_vm2, %v5404_v36  ;;  %v542_v51 = vrot.slane %v541_v42, 4  ;;  %v363_v53 = vor.u32 %v362_v43, %v359_v38  ;;  %v372_v54 = vrot.slane %v370_v44, 4  ;;  %v378_v55 = vrot.slane %v376_v45, 5  ;;  %v6799_v38 = vld [vmem:[%s6653_s8 + $0x84] sm:$0xf] }
  0x27   : > { %6218 = vmatpush3.bf16.msra.mxu0 %v6648_v3  ;;  %v537_v58 = vsel %vm6694_vm3, %v532_v47, %v536_v24  ;;  %v551_v59 = vrot.slane %v549_v49, 4  ;;  %v554_v63 = vrot.slane %v552_v50, 5  ;;  %v558_v0 = vshll.u32 %v6759_v46, 16  ;;  %v6777_v3 = vld [vmem:[%s9379_s1 + $0x38] sm:$0xff]   ;;  %9439 = vst [vmem:[#allocation3_spill] sm:$0xff] %v6799_v38 }
  0x28   : > { %6219 = vmatprep.subr.bf16.mxu0 %v6503_v41  ;;  %v547_v7 = vsel %vm6694_vm3, %v542_v51, %v546_v32  ;;  %v364_v9 = vrot.slane %v363_v53, 4  ;;  %v373_v10 = vor.u32 %v372_v54, %v368_v48  ;;  %v562_v12 = vshrl.u32 %v6759_v46, 16  ;;  %v6807_v44 = vld [vmem:[%s6653_s8 + $0x88] sm:$0xf]  ;;  %v6818_v54 = vld [vmem:[%s6653_s8 + $0x8c] sm:$0x1] }
  0x29   : > { %v5412_v17 = vcombine.low %v537_v58, %v547_v7  ;;  %v555_v18 = vor.u32 %v554_v63, %v551_v59  ;;  %v560_v19 = vrot.slane %v558_v0, 5  ;;  %v568_v20 = vshll.u32 %v6766_v56, 16  ;;  %9440 = vst [vmem:[#allocation4_spill] sm:$0xff] %v6818_v54  ;;  %v6826_v7 = vld [vmem:[%s6653_s8 + $0x30] sm:$0xf] }
  0x2a   : > { %v369_v23 = vsel %vm6694_vm3, %v364_v9, %v368_v48  ;;  %v374_v24 = vrot.slane %v373_v10, 4  ;;  %v564_v26 = vrot.slane %v562_v12, 4  ;;  %v381_v31 = vshrl.u32 %v6772_v1, 16 }
  0x2b   : > { %6220 = vmatpush3.bf16.msra.mxu0 %v6503_v41  ;;  %6166 = vmatmul.mubr.msk.bf16.vlgmr.msra.gmra.mxu1 %vm757_vm2, %v5412_v17  ;;  %v556_v32 = vrot.slane %v555_v18, 4  ;;  %v570_v33 = vrot.slane %v568_v20, 5  ;;  %v384_v36 = vshll.u32 %v6772_v1, 16  ;;  %v390_v37 = vshll.u32 %v6783_v16, 16  ;;  %v6831_v18 = vld [vmem:[%s6653_s8 + $0x34] sm:$0xf] }
  0x2c   : > { %6289 = vmatprep.subr.bf16.mxu0 %v6777_v3  ;;  %6182 = vmatpush3.bf16.msra.mxu1 %v6642_v2  ;;  %v379_v39 = vsel %vm6694_vm3, %v374_v24, %v378_v55  ;;  %v565_v42 = vor.u32 %v564_v26, %v560_v19  ;;  %v383_v41 = vrot.slane %v381_v31, 4  ;;  %v394_v43 = vshrl.u32 %v6783_v16, 16  ;;  %v6814_v2 = vld [vmem:[%s9379_s1 + $0x48] sm:$0xff]  }
  0x2d   : > { %v5405_v45 = vcombine.low %v369_v23, %v379_v39  ;;  %v561_v47 = vsel %vm6694_vm3, %v556_v32, %v560_v19  ;;  %v386_v48 = vrot.slane %v384_v36, 5  ;;  %v392_v49 = vrot.slane %v390_v37, 5  ;;  %6183 = vmatprep.subr.bf16.mxu1 %v6502_v22  ;;  %v6836_v36 = vld [vmem:[%s6653_s8 + $0x38] sm:$0x1] }
  0x2e   : > { %v566_v50 = vrot.slane %v565_v42, 4  ;;  %v396_v51 = vrot.slane %v394_v43, 4  ;;  %v400_v53 = vshll.u32 %v6792_v27, 16  ;;  %v573_v55 = vshrl.u32 %v6799_v38, 16  ;;  %v6848_v43 = vld [vmem:[%s6653_s8 + $0x94] sm:$0xf] }
  0x2f   : > { %6153 = vmatprep.mubr.msk.bf16.mxu0 %vm757_vm2, %v5405_v45  ;;  %v387_v58 = vor.u32 %v386_v48, %v383_v41  ;;  %v576_v59 = vshll.u32 %v6799_v38, 16  ;;  %v582_v63 = vshll.u32 %v6807_v44, 16  ;;  %v586_v0 = vshrl.u32 %v6807_v44, 16  ;;  %v6845_v41 = vld [vmem:[%s6653_s8 + $0x90] sm:$0xf]  ;;  %9442 = vst [vmem:[#allocation6_spill] sm:$0xff] %v6848_v43 }
  0x30   : > { %v571_v9 = vsel %vm6694_vm3, %v566_v50, %v570_v33  ;;  %v397_v10 = vor.u32 %v396_v51, %v392_v49  ;;  %v402_v12 = vrot.slane %v400_v53, 5  ;;  %v575_v17 = vrot.slane %v573_v55, 4  ;;  %6184 = vmatpush3.bf16.msra.mxu1 %v6502_v22  ;;  %9441 = vst [vmem:[#allocation5_spill] sm:$0xff] %v6845_v41  ;;  %v1269_v38 = vld [vmem:[%s6653_s8 + $0xc] sm:$0xe] }
  0x31   : > { %v5413_v19 = vcombine.low %v561_v47, %v571_v9  ;;  %v388_v20 = vrot.slane %v387_v58, 4  ;;  %v578_v23 = vrot.slane %v576_v59, 5  ;;  %v584_v24 = vrot.slane %v582_v63, 5  ;;  %6253 = vmatprep.subr.bf16.mxu1 %v6814_v2  ;;  %v6853_v58 = vld [vmem:[%s6653_s8 + $0x98] sm:$0x1] }
  0x32   : > { %v398_v26 = vrot.slane %v397_v10, 4  ;;  %v588_v31 = vrot.slane %v586_v0, 4  ;;  %v592_v32 = vshll.u32 %v6818_v54, 16  ;;  %v405_v33 = vshrl.u32 %v6826_v7, 16  ;;  %9443 = vst [vmem:[#allocation7_spill] sm:$0xff] %v6853_v58 }
  0x33   : > { %6169 = vmatprep.mubr.msk.bf16.mxu1 %vm757_vm2, %v5413_v19  ;;  %v393_v22 = vsel %vm6694_vm3, %v388_v20, %v392_v49  ;;  %v579_v37 = vor.u32 %v578_v23, %v575_v17  ;;  %v408_v39 = vshll.u32 %v6826_v7, 16  ;;  %v414_v42 = vshll.u32 %v6831_v18, 16  ;;  %v6864_v20 = vld [vmem:[%s6653_s8 + $0x3c] sm:$0xf] }
  0x34   : > { %v403_v45 = vsel %vm6694_vm3, %v398_v26, %v402_v12  ;;  %v589_v47 = vor.u32 %v588_v31, %v584_v24  ;;  %v594_v48 = vrot.slane %v592_v32, 5  ;;  %v407_v50 = vrot.slane %v405_v33, 4  ;;  %v6869_v33 = vld [vmem:[%s6653_s8 + $0x40] sm:$0xf] }
  0x35   : > { %v5406_v51 = vcombine.low %v393_v22, %v403_v45  ;;  %v580_v53 = vrot.slane %v579_v37, 4  ;;  %v410_v55 = vrot.slane %v408_v39, 5  ;;  %v416_v49 = vrot.slane %v414_v42, 5 }
  0x36   : > { %v590_v59 = vrot.slane %v589_v47, 4  ;;  %v418_v63 = vshrl.u32 %v6831_v18, 16  ;;  %v424_v0 = vshll.u32 %v6836_v36, 16  ;;  %v597_v9 = vshrl.u32 %v6845_v41, 16 }
  0x37   : > { %6154 = vmatmul.mubr.msk.bf16.gmra.mxu0 %vm757_vm2, %v5406_v51  ;;  %v585_v10 = vsel %vm6694_vm3, %v580_v53, %v584_v24  ;;  %v411_v12 = vor.u32 %v410_v55, %v407_v50  ;;  %v600_v17 = vshll.u32 %v6845_v41, 16  ;;  %v606_v19 = vshll.u32 %v6848_v43, 16  ;;  %v6878_v53 = vld [vmem:[%s6653_s8 + $0x44] sm:$0x1] }
  0x38   : > { %v595_v23 = vsel %vm6694_vm3, %v590_v59, %v594_v48  ;;  %v420_v26 = vrot.slane %v418_v63, 4  ;;  %v426_v31 = vrot.slane %v424_v0, 5  ;;  %v599_v32 = vrot.slane %v597_v9, 4  ;;  %v6883_v63 = vld [vmem:[%s6653_s8 + $0x9c] sm:$0xf] }
  0x39   : > { %v5414_v22 = vcombine.low %v585_v10, %v595_v23  ;;  %v412_v37 = vrot.slane %v411_v12, 4  ;;  %v602_v24 = vrot.slane %v600_v17, 5  ;;  %v608_v39 = vrot.slane %v606_v19, 5  ;;  %9444 = vst [vmem:[#allocation8_spill] sm:$0xff] %v6883_v63  ;;  %v6886_v17 = vld [vmem:[%s6653_s8 + $0xa0] sm:$0xf] }
  0x3a   : > { %v421_v42 = vor.u32 %v420_v26, %v416_v49  ;;  %v610_v45 = vshrl.u32 %v6848_v43, 16  ;;  %v616_v47 = vshll.u32 %v6853_v58, 16  ;;  %v429_v50 = vshrl.u32 %v6864_v20, 16  ;;  %9445 = vst [vmem:[#allocation9_spill] sm:$0xff] %v6886_v17 }
  0x3b   : > { %6170 = vmatmul.mubr.msk.bf16.gmra.mxu1 %vm757_vm2, %v5414_v22  ;;  %v417_v48 = vsel %vm6694_vm3, %v412_v37, %v416_v49  ;;  %v603_v51 = vor.u32 %v602_v24, %v599_v32  ;;  %v432_v55 = vshll.u32 %v6864_v20, 16  ;;  %v438_v59 = vshll.u32 %v6869_v33, 16  ;;  %v6890_v32 = vld [vmem:[%s6653_s8 + $0xa4] sm:$0x1] }
  0x3c   : > { %v422_v0 = vrot.slane %v421_v42, 4  ;;  %v612_v9 = vrot.slane %v610_v45, 4  ;;  %v618_v10 = vrot.slane %v616_v47, 5  ;;  %v431_v12 = vrot.slane %v429_v50, 4  ;;  %9446 = vst [vmem:[#allocation10_spill] sm:$0xff] %v6890_v32 }
  0x3d   : > { %v604_v19 = vrot.slane %v603_v51, 4  ;;  %v434_v23 = vrot.slane %v432_v55, 5  ;;  %v440_v26 = vrot.slane %v438_v59, 5  ;;  %v442_v49 = vshrl.u32 %v6869_v33, 16  ;;  %v6897_v45 = vld [vmem:[%s6653_s8 + $0x48] sm:$0xf] }
  0x3e   : > { %v427_v22 = vsel %vm6694_vm3, %v422_v0, %v426_v31  ;;  %v613_v37 = vor.u32 %v612_v9, %v608_v39  ;;  %v448_v24 = vshll.u32 %v6878_v53, 16  ;;  %v621_v42 = vshrl.u32 %v6883_v63, 16 }
  0x3f   : > { %v5407_v47 = vcombine.low %v417_v48, %v427_v22  ;;  %v609_v50 = vsel %vm6694_vm3, %v604_v19, %v608_v39  ;;  %v435_v51 = vor.u32 %v434_v23, %v431_v12  ;;  %v444_v55 = vrot.slane %v442_v49, 4  ;;  %v6909_v23 = vld [vmem:[%s6653_s8 + $0x4c] sm:$0xf] }
  0x40   : > { %v614_v59 = vrot.slane %v613_v37, 4  ;;  %v450_v34 = vrot.slane %v448_v24, 5  ;;  %v623_v61 = vrot.slane %v621_v42, 4  ;;  %v624_v31 = vshll.u32 %v6883_v63, 16 }
  0x41   : > { %6157 = vmatprep.mubr.msk.bf16.mxu0 %vm757_vm2, %v5407_v47  ;;  %v436_v0 = vrot.slane %v435_v51, 4  ;;  %v445_v9 = vor.u32 %v444_v55, %v440_v26  ;;  %v630_v13 = vshll.u32 %v6886_v17, 16  ;;  %v634_v48 = vshrl.u32 %v6886_v17, 16  ;;  %v6915_v47 = vld [vmem:[%s6653_s8 + $0x50] sm:$0x1] }
  0x42   : > { %v619_v39 = vsel %vm6694_vm3, %v614_v59, %v618_v10  ;;  %v626_v12 = vrot.slane %v624_v31, 5  ;;  %v640_v19 = vshll.u32 %v6890_v32, 16  ;;  %v453_v49 = vshrl.u32 %v6897_v45, 16  ;;  %v6918_v31 = vld [vmem:[%s6653_s8 + $0xa8] sm:$0xf] }
  0x43   : > { %v5415_v22 = vcombine.low %v609_v50, %v619_v39  ;;  %v441_v37 = vsel %vm6694_vm3, %v436_v0, %v440_v26  ;;  %v446_v24 = vrot.slane %v445_v9, 4  ;;  %v632_v42 = vrot.slane %v630_v13, 5  ;;  %9447 = vst [vmem:[#allocation11_spill] sm:$0xff] %v6918_v31 }
  0x44   : > { %v627_v51 = vor.u32 %v626_v12, %v623_v61  ;;  %v636_v55 = vrot.slane %v634_v48, 4  ;;  %v642_v10 = vrot.slane %v640_v19, 5  ;;  %v455_v59 = vrot.slane %v453_v49, 4  ;;  %v6928_v48 = vld [vmem:[%s6653_s8 + $0xac] sm:$0xf] }
  0x45   : > { %6173 = vmatprep.mubr.msk.bf16.mxu1 %vm757_vm2, %v5415_v22  ;;  %v451_v50 = vsel %vm6694_vm3, %v446_v24, %v450_v34  ;;  %v456_v39 = vshll.u32 %v6897_v45, 16  ;;  %v462_v26 = vshll.u32 %v6909_v23, 16  ;;  %v466_v13 = vshrl.u32 %v6909_v23, 16  ;;  %9448 = vst [vmem:[#allocation12_spill] sm:$0xff] %v6928_v48  ;;  %v6931_v12 = vld [vmem:[%s6653_s8 + $0xb0] sm:$0x1] }
  0x46   : > { %v5408_v0 = vcombine.low %v441_v37, %v451_v50  ;;  %v628_v9 = vrot.slane %v627_v51, 4  ;;  %v637_v60 = vor.u32 %v636_v55, %v632_v42  ;;  %v472_v61 = vshll.u32 %v6915_v47, 16  ;;  %9449 = vst [vmem:[#allocation13_spill] sm:$0xff] %v6931_v12 }
  0x47   : > { %v458_v19 = vrot.slane %v456_v39, 5  ;;  %v464_v49 = vrot.slane %v462_v26, 5  ;;  %v468_v34 = vrot.slane %v466_v13, 4  ;;  %v645_v22 = vshrl.u32 %v6918_v31, 16  ;;  %v6940_v39 = vld [vmem:[%s6653_s8 + $0x54] sm:$0xf] }
  0x48   : > { %6158 = vmatmul.mubr.msk.bf16.gmra.mxu0 %vm757_vm2, %v5408_v0  ;;  %v633_v37 = vsel %vm6694_vm3, %v628_v9, %v632_v42  ;;  %v638_v24 = vrot.slane %v637_v60, 4  ;;  %v474_v51 = vrot.slane %v472_v61, 5  ;;  %v648_v55 = vshll.u32 %v6918_v31, 16  ;;  %v6943_v26 = vld [vmem:[%s6653_s8 + $0x58] sm:$0xf] }
  0x49   : > { %v459_v50 = vor.u32 %v458_v19, %v455_v59  ;;  %v469_v32 = vor.u32 %v468_v34, %v464_v49  ;;  %v647_v63 = vrot.slane %v645_v22, 4  ;;  %v654_v17 = vshll.u32 %v6928_v48, 16  ;;  %v6950_v59 = vld [vmem:[%s6653_s8 + $0x5c] sm:$0x1] }
  0x4a   : > { %v643_v13 = vsel %vm6694_vm3, %v638_v24, %v642_v10  ;;  %v650_v42 = vrot.slane %v648_v55, 5  ;;  %v658_v60 = vshrl.u32 %v6928_v48, 16  ;;  %v664_v0 = vshll.u32 %v6931_v12, 16  ;;  %v6961_v55 = vld [vmem:[%s6653_s8 + $0xb4] sm:$0xf] }
  0x4b   : > { %v5416_v9 = vcombine.low %v633_v37, %v643_v13  ;;  %v460_v61 = vrot.slane %v459_v50, 4  ;;  %v470_v19 = vrot.slane %v469_v32, 4  ;;  %v656_v34 = vrot.slane %v654_v17, 5  ;;  %9450 = vst [vmem:[#allocation14_spill] sm:$0xff] %v6961_v55 }
  0x4c   : > { %v651_v22 = vor.u32 %v650_v42, %v647_v63  ;;  %v660_v31 = vrot.slane %v658_v60, 4  ;;  %v666_v58 = vrot.slane %v664_v0, 5  ;;  %v477_v41 = vshrl.u32 %v6940_v39, 16  ;;  %v6964_v42 = vld [vmem:[%s6653_s8 + $0xb8] sm:$0xf] }
  0x4d   : > { %6174 = vmatmul.mubr.msk.bf16.gmra.mxu1 %vm757_vm2, %v5416_v9  ;;  %v465_v10 = vsel %vm6694_vm3, %v460_v61, %v464_v49  ;;  %v475_v24 = vsel %vm6694_vm3, %v470_v19, %v474_v51  ;;  %v480_v37 = vshll.u32 %v6940_v39, 16  ;;  %v486_v32 = vshll.u32 %v6943_v26, 16  ;;  %v6972_v19 = vld [vmem:[%s6653_s8 + $0xbc] sm:$0x1] }
  0x4e   : > { %v5409_v63 = vcombine.low %v465_v10, %v475_v24  ;;  %v652_v17 = vrot.slane %v651_v22, 4  ;;  %v661_v50 = vor.u32 %v660_v31, %v656_v34  ;;  %v479_v13 = vrot.slane %v477_v41, 4 }
  0x4f   : > { %v482_v60 = vrot.slane %v480_v37, 5  ;;  %v488_v0 = vrot.slane %v486_v32, 5  ;;  %v490_v49 = vshrl.u32 %v6943_v26, 16  ;;  %v496_v51 = vshll.u32 %v6950_v59, 16  ;;  %v1268_v32 = vld [vmem:[%s6653_s8] sm:$0xe] }
  0x50   : > { %6161 = vmatprep.mubr.msk.bf16.mxu0 %vm757_vm2, %v5409_v63  ;;  %v657_v9 = vsel %vm6694_vm3, %v652_v17, %v656_v34  ;;  %v662_v61 = vrot.slane %v661_v50, 4  ;;  %v669_v41 = vshrl.u32 %v6961_v55, 16  ;;  %v672_v31 = vshll.u32 %v6961_v55, 16 }
  0x51   : > { %v483_v22 = vor.u32 %v482_v60, %v479_v13  ;;  %v492_v10 = vrot.slane %v490_v49, 4  ;;  %v498_v24 = vrot.slane %v496_v51, 5  ;;  %v678_v37 = vshll.u32 %v6964_v42, 16 }
  0x52   : > { %v667_v63 = vsel %vm6694_vm3, %v662_v61, %v666_v58  ;;  %v671_v12 = vrot.slane %v669_v41, 4  ;;  %v674_v48 = vrot.slane %v672_v31, 5  ;;  %v682_v34 = vshrl.u32 %v6964_v42, 16 }
  0x53   : > { %v5417_v17 = vcombine.low %v657_v9, %v667_v63  ;;  %v484_v50 = vrot.slane %v483_v22, 4  ;;  %v493_v43 = vor.u32 %v492_v10, %v488_v0  ;;  %v680_v54 = vrot.slane %v678_v37, 5  ;;  %v1270_v10 = vld [vmem:[%s6653_s8 + $0x18] sm:$0xe] }
  0x54   : > { %v675_v55 = vor.u32 %v674_v48, %v671_v12  ;;  %v684_v13 = vrot.slane %v682_v34, 4  ;;  %v688_v60 = vshll.u32 %v6972_v19, 16  ;;  %v5471_v58 = vrot.slane %v1268_v32, 9 }
  0x55   : > { %6177 = vmatprep.mubr.msk.bf16.mxu1 %vm757_vm2, %v5417_v17  ;;  %v489_v51 = vsel %vm6694_vm3, %v484_v50, %v488_v0  ;;  %v494_v9 = vrot.slane %v493_v43, 4  ;;  %v1321_v61 = vrot.slane %v6659_v5, 5  ;;  %v5438_v48 = vcombine.low %v6687_v28, %v6690_v29 }
  0x56   : > { %v676_v12 = vrot.slane %v675_v55, 4  ;;  %v685_v41 = vor.u32 %v684_v13, %v680_v54  ;;  %v690_v31 = vrot.slane %v688_v60, 5  ;;  %v5472_v22 = vrot.slane %v1269_v38, 9  ;;  %v1271_v13 = vld [vmem:[%s6653_s8 + $0x24] sm:$0xe] }
  0x57   : > { %v499_v37 = vsel %vm6694_vm3, %v494_v9, %v498_v24  ;;  %v1322_v32 = vsel %vm6985_vm6, %v5471_v58, %v1321_v61  ;;  %v1323_v63 = vrot.slane %v1321_v61, 4  ;;  %v9453_v43 = vrot.slane %v6690_v29, 5 }
  0x58   : > { %v5410_v34 = vcombine.low %v489_v51, %v499_v37  ;;  %v681_v17 = vsel %vm6694_vm3, %v676_v12, %v680_v54  ;;  %v686_v55 = vrot.slane %v685_v41, 4  ;;  %v9455_v24 = vrot.slane %v6662_v6, 5 }
  0x59   : > { %v1330_v0 = vrot.slane %v9453_v43, 4  ;;  %v9454_v50 = vmov %v9453_v43  ;;  %v9456_v58 = vrot.slane %v6701_v40, 5  ;;  %v5439_v54 = vcombine.low %v6730_v8, %v6737_v21  ;;  %v9467_v8 = vld [vmem:[#allocation11_spill] sm:$0xff] }
  0x5a   : > { %v1329_v38 = vsel %vm6985_vm6, %v5472_v22, %v9454_v50  ;;  %v1325_v60 = vsel %vm6985_vm6, %v1323_v63, %v9455_v24  ;;  %v5473_v9 = vrot.slane %v1270_v10, 9  ;;  %v1380_v61 = vrot.slane %v6679_v15, 5  ;;  %6162 = vmatmul.mubr.msk.bf16.gmra.mxu0 %vm757_vm2, %v5410_v34  ;;  %v1272_v22 = vld [vmem:[%s6653_s8 + $0x30] sm:$0xe] }
  0x5b   : > { %v1332_v51 = vsel %vm6985_vm6, %v1330_v0, %v9456_v58  ;;  %v691_v6 = vsel %vm6694_vm3, %v686_v55, %v690_v31  ;;  %v5491_v12 = vcombine.low %v1322_v32, %v1325_v60  ;;  %v1335_v41 = vrot.slane %v6737_v21, 5  ;;  %v1273_v32 = vld [vmem:[%s6653_s8 + $0x3c] sm:$0xe] }
  0x5c   : > { %v5418_v40 = vcombine.low %v681_v17, %v691_v6  ;;  %v5492_v37 = vcombine.low %v1329_v38, %v1332_v51  ;;  %v1338_v63 = vrot.slane %v6743_v25, 5  ;;  %v5474_v43 = vrot.slane %v1271_v13, 9  ;;  %v1274_v38 = vld [vmem:[%s6653_s8 + $0x48] sm:$0xe] }
  0x5d   : > { %6221 = vmatprep.mubr.msk.bf16.mxu0 %vm757_vm2, %v5491_v12  ;;  %v1336_v10 = vsel %vm6985_vm6, %v5473_v9, %v1335_v41  ;;  %v1337_v0 = vrot.slane %v1335_v41, 4  ;;  %v1342_v34 = vrot.slane %v6783_v16, 5  ;;  %v1345_v31 = vrot.slane %v6792_v27, 5 }
  0x5e   : > { %6178 = vmatmul.mubr.msk.bf16.gmra.mxu1 %vm757_vm2, %v5418_v40  ;;  %v5440_v17 = vcombine.low %v6772_v1, %v6783_v16  ;;  %v5475_v55 = vrot.slane %v1272_v22, 9  ;;  %v1349_v25 = vrot.slane %v6831_v18, 5  ;;  %v1352_v50 = vrot.slane %v6836_v36, 5  ;;  %v1275_v22 = vld [vmem:[%s6653_s8 + $0x54] sm:$0xe]  ;;  %v9462_v1 = vld [vmem:[#allocation7_spill] sm:$0xff] }
  0x5f   : > { %v9457_v13 = vcombine.low %v6656_v4, %v6659_v5  ;;  %v1339_v27 = vsel %vm6985_vm6, %v1337_v0, %v1338_v63  ;;  %v7046_v24 = vsel %vm6985_vm6, %v5474_v43, %v1342_v34  ;;  %v1344_v60 = vrot.slane %v1342_v34, 4  ;;  %v6517_v40 = vld [vmem:[%s9379_s1 + $0x30] sm:$0xff]  }
  0x60   : > { %v5441_v58 = vcombine.low %v6826_v7, %v6831_v18  ;;  %v5493_v51 = vcombine.low %v1336_v10, %v1339_v27  ;;  %v7052_v36 = vsel %vm6985_vm6, %v5475_v55, %v1349_v25  ;;  %v1351_v9 = vrot.slane %v1349_v25, 4  ;;  %v1276_v55 = vld [vmem:[%s6653_s8 + $0x60] sm:$0xe] }
  0x61   : > { %6185 = vmatprep.mubr.msk.bf16.mxu1 %vm757_vm2, %v9457_v13  ;;  %v5476_v4 = vrot.slane %v1273_v32, 9  ;;  %v1346_v5 = vsel %vm6985_vm6, %v1344_v60, %v1345_v31  ;;  %v5442_v6 = vcombine.low %v6864_v20, %v6869_v33  ;;  %v1356_v12 = vrot.slane %v6869_v33, 5  ;;  %v6515_v13 = vld [vmem:[%s9379_s1 + $0x40] sm:$0xff]   ;;  %v1277_v60 = vld [vmem:[%s6653_s8 + $0x6c] sm:$0xe] }
  0x62   : > { %v1359_v41 = vrot.slane %v6878_v53, 5  ;;  %v1353_v63 = vsel %vm6985_vm6, %v1351_v9, %v1352_v50  ;;  %v5443_v43 = vcombine.low %v6897_v45, %v6909_v23  ;;  %v5477_v10 = vrot.slane %v1274_v38, 9  ;;  %6222 = vmatmul.mubr.msk.bf16.vlgmr.msra.gmra.mxu0 %vm757_vm2, %v5492_v37 }
  0x63   : > { %v1363_v0 = vrot.slane %v6909_v23, 5  ;;  %v5494_v34 = vcombine.low %v7046_v24, %v1346_v5  ;;  %v5495_v53 = vcombine.low %v7052_v36, %v1353_v63  ;;  %v1358_v31 = vrot.slane %v1356_v12, 4  ;;  %6290 = vmatpush3.bf16.msra.mxu0 %v6777_v3  ;;  %6225 = vmatprep.mubr.msk.bf16.mxu0 %vm757_vm2, %v5493_v51  ;;  %v7099_v51 = vld [vmem:[%s9379_s1 + $0x78] sm:$0xff]  }
  0x64   : > { %v1366_v32 = vrot.slane %v6915_v47, 5  ;;  %v7078_v25 = vsel %vm6985_vm6, %v5476_v4, %v1356_v12  ;;  %v5478_v38 = vrot.slane %v1275_v22, 9  ;;  %v1370_v27 = vrot.slane %v6943_v26, 5  ;;  %6291 = vmatprep.subr.bf16.mxu0 %v6517_v40  ;;  %v1278_v12 = vld [vmem:[%s6653_s8 + $0x78] sm:$0xe] }
  0x65   : > { %v7082_v37 = vsel %vm6985_vm6, %v5477_v10, %v1363_v0  ;;  %v1365_v50 = vrot.slane %v1363_v0, 4  ;;  %v7089_v47 = vsel %vm6985_vm6, %v1358_v31, %v1359_v41  ;;  %v1373_v24 = vrot.slane %v6950_v59, 5 }
  0x66   : > { %6186 = vmatmul.mubr.msk.bf16.vlgmr.msra.gmra.mxu1 %vm757_vm2, %v5438_v48  ;;  %v5479_v59 = vrot.slane %v1276_v55, 9  ;;  %v1377_v4 = vrot.slane %v6676_v14, 5  ;;  %v5496_v28 = vcombine.low %v7078_v25, %v7089_v47  ;;  %v7123_v48 = vsel %vm6985_vm6, %v5478_v38, %v1370_v27  ;;  %v1280_v38 = vld [vmem:[%s6653_s8 + $0x90] sm:$0xe] }
  0x67   : > { %v7107_v36 = vsel %vm6985_vm6, %v1365_v50, %v1366_v32  ;;  %6254 = vmatpush3.bf16.msra.mxu1 %v6814_v2  ;;  %6189 = vmatprep.mubr.msk.bf16.mxu1 %vm757_vm2, %v5439_v54  ;;  %v1372_v5 = vrot.slane %v1370_v27, 4  ;;  %v5480_v21 = vrot.slane %v1277_v60, 9  ;;  %v1384_v2 = vrot.slane %v6716_v57, 5  ;;  %v7132_v54 = vld [vmem:[%s9379_s1 + $0x58] sm:$0xff]  }
  0x68   : > { %v5497_v29 = vcombine.low %v7082_v37, %v7107_v36  ;;  %v1379_v41 = vrot.slane %v1377_v4, 4  ;;  %6255 = vmatprep.subr.bf16.mxu1 %v6515_v13  ;;  %6292 = vmatpush3.bf16.msra.mxu0 %v6517_v40  ;;  %v7140_v63 = vsel %vm6985_vm6, %v5479_v59, %v1377_v4  ;;  %v1387_v10 = vrot.slane %v6724_v62, 5  ;;  %v1279_v40 = vld [vmem:[%s6653_s8 + $0x84] sm:$0xe]  ;;  %v1281_v60 = vld [vmem:[%s6653_s8 + $0x9c] sm:$0xe] }
  0x69   : > { %v7136_v22 = vsel %vm6985_vm6, %v1372_v5, %v1373_v24  ;;  %6361 = vmatprep.subr.bf16.mxu0 %v7099_v51  ;;  %v7155_v32 = vsel %vm6985_vm6, %v5480_v21, %v1384_v2  ;;  %v1386_v55 = vrot.slane %v1384_v2, 4  ;;  %v5481_v50 = vrot.slane %v1278_v12, 9  ;;  %v9459_v5 = vld [vmem:[#allocation4_spill] sm:$0xff]  ;;  %v9461_v21 = vld [vmem:[#allocation5_spill] sm:$0xff] }
  0x6a   : > { %v7151_v31 = vsel %vm6985_vm6, %v1379_v41, %v1380_v61  ;;  %6226 = vmatmul.mubr.msk.bf16.gmra.mxu0 %vm757_vm2, %v5494_v34  ;;  %v5498_v62 = vcombine.low %v7123_v48, %v7136_v22  ;;  %v1391_v27 = vrot.slane %v6759_v46, 5  ;;  %v1394_v15 = vrot.slane %v6766_v56, 5  ;;  %v9458_v61 = vld [vmem:[#allocation3_spill] sm:$0xff]  ;;  %v9464_v24 = vld [vmem:[#allocation8_spill] sm:$0xff]  ;;  %v7259_v36 = vld [vmem:[%s6653_s8 + $0x14] sm:$0x1] }
  0x6b   : > { %6256 = vmatpush3.bf16.msra.mxu1 %v6515_v13  ;;  %6229 = vmatprep.mubr.msk.bf16.mxu0 %vm757_vm2, %v5495_v53  ;;  %v7169_v59 = vsel %vm6985_vm6, %v1386_v55, %v1387_v10  ;;  %v5482_v4 = vrot.slane %v1279_v40, 9  ;;  %v1398_v34 = vrot.slane %v6807_v44, 5  ;;  %v1401_v12 = vrot.slane %v9459_v5, 5  ;;  %v9460_v53 = vld [vmem:[#allocation6_spill] sm:$0xff]  ;;  %v7325_v48 = vld [vmem:[%s6653_s8 + $0x2c] sm:$0x1] }
  0x6c   : > { %6325 = vmatprep.subr.bf16.mxu1 %v7132_v54  ;;  %v5499_v56 = vcombine.low %v7140_v63, %v7151_v31  ;;  %v1393_v41 = vrot.slane %v1391_v27, 4  ;;  %v5483_v55 = vrot.slane %v1280_v38, 9  ;;  %v1405_v5 = vrot.slane %v9460_v53, 5  ;;  %v1282_v38 = vld [vmem:[%s6653_s8 + $0xa8] sm:$0xe] }
  0x6d   : > { %v7186_v10 = vsel %vm6985_vm6, %v5482_v4, %v1398_v34  ;;  %v1400_v40 = vrot.slane %v1398_v34, 4  ;;  %v7195_v2 = vsel %vm6985_vm6, %v5481_v50, %v1391_v27  ;;  %v1408_v16 = vrot.slane %v9462_v1, 5  ;;  %v9466_v4 = vld [vmem:[#allocation12_spill] sm:$0xff] }
  0x6e   : > { %6190 = vmatmul.mubr.msk.bf16.gmra.mxu1 %vm757_vm2, %v5440_v17  ;;  %v9463_v17 = vld [vmem:[#allocation9_spill] sm:$0xff]  ;;  %v5484_v34 = vrot.slane %v1281_v60, 9  ;;  %v7203_v0 = vsel %vm6985_vm6, %v1393_v41, %v1394_v15  ;;  %v7211_v18 = vsel %vm6985_vm6, %v5483_v55, %v1405_v5  ;;  %v9465_v60 = vld [vmem:[#allocation10_spill] sm:$0xff]  ;;  %v1419_v55 = vrot.slane %v9466_v4, 5  ;;  %v7227_v50 = vld [vmem:[%s6653_s8 + $0xc] sm:$0xf] }
  0x6f   : > { %6193 = vmatprep.mubr.msk.bf16.mxu1 %vm757_vm2, %v5441_v58  ;;  %v7207_v7 = vsel %vm6985_vm6, %v1400_v40, %v1401_v12  ;;  %v1407_v58 = vrot.slane %v1405_v5, 4  ;;  %v1412_v27 = vrot.slane %v9463_v17, 5  ;;  %v1415_v1 = vrot.slane %v9465_v60, 5  ;;  %v1283_v41 = vld [vmem:[%s6653_s8 + $0xb4] sm:$0xe] }
  0x70   : > { %v5485_v40 = vrot.slane %v1282_v38, 9  ;;  %v9468_v5 = vld [vmem:[#allocation13_spill] sm:$0xff]  ;;  %v1421_v47 = vrot.slane %v1419_v55, 4  ;;  %v1429_v37 = vrot.slane %v6972_v19, 5  ;;  %v1847_v23 = vshll.u32 %v7259_v36, 16 }
  0x71   : > { %v7222_v12 = vsel %vm6985_vm6, %v1407_v58, %v1408_v16  ;;  %v1422_v13 = vrot.slane %v9468_v5, 5  ;;  %v7237_v16 = vsel %vm6985_vm6, %v5484_v34, %v1412_v27  ;;  %v1414_v38 = vrot.slane %v1412_v27, 4  ;;  %v9469_v58 = vld [vmem:[#allocation14_spill] sm:$0xff]  ;;  %v7251_v34 = vld [vmem:[%s6653_s8 + $0x10] sm:$0xf] }
  0x72   : > { %6230 = vmatmul.mubr.msk.bf16.gmra.mxu0 %vm757_vm2, %v5496_v28  ;;  %v7247_v25 = vsel %vm6985_vm6, %v5485_v40, %v1419_v55  ;;  %v5486_v28 = vrot.slane %v1283_v41, 9  ;;  %v1426_v5 = vrot.slane %v6964_v42, 5  ;;  %v1831_v40 = vshll.u32 %v7227_v50, 16  ;;  %v7309_v41 = vld [vmem:[%s6653_s8 + $0x24] sm:$0xf] }
  0x73   : > { %6233 = vmatprep.mubr.msk.bf16.mxu0 %vm757_vm2, %v5497_v29  ;;  %v7255_v27 = vsel %vm6985_vm6, %v1414_v38, %v1415_v1  ;;  %v1828_v29 = vshrl.u32 %v7227_v50, 16  ;;  %v7271_v1 = vsel %vm6985_vm6, %v1421_v47, %v1422_v13  ;;  %v7278_v38 = vld [vmem:[%s6653_s8 + $0x18] sm:$0xf]  ;;  %v1837_v13 = vshll.u32 %v7251_v34, 16  ;;  %v7288_v47 = vld [vmem:[%s6653_s8 + $0x1c] sm:$0xf] }
  0x74   : > { %v7275_v19 = vsel %vm6985_vm6, %v5486_v28, %v1426_v5  ;;  %v1428_v55 = vrot.slane %v1426_v5, 4  ;;  %v5501_v28 = vcombine.low %v7195_v2, %v7203_v0  ;;  %v1841_v45 = vshrl.u32 %v7251_v34, 16  ;;  %v7318_v0 = vld [vmem:[%s6653_s8 + $0x28] sm:$0xf] }
  0x75   : > { %v1830_v33 = vrot.slane %v1828_v29, 4  ;;  %v1852_v20 = vshrl.u32 %v7278_v38, 16  ;;  %v1849_v60 = vrot.slane %v1847_v23, 5  ;;  %v1885_v23 = vshll.u32 %v7318_v0, 16 }
  0x76   : > { %6194 = vmatmul.mubr.msk.bf16.gmra.mxu1 %vm757_vm2, %v5442_v6  ;;  %v1833_v6 = vrot.slane %v1831_v40, 5  ;;  %v7294_v5 = vsel %vm6985_vm6, %v1428_v55, %v1429_v37  ;;  %v1839_v40 = vrot.slane %v1837_v13, 5  ;;  %v1843_v2 = vrot.slane %v1841_v45, 4 }
  0x77   : > { %6197 = vmatprep.mubr.msk.bf16.mxu1 %vm757_vm2, %v5443_v43  ;;  %v7299_v43 = vld [vmem:[%s6653_s8 + $0x20] sm:$0x1]  ;;  %v1855_v37 = vshll.u32 %v7278_v38, 16  ;;  %v1861_v55 = vshll.u32 %v7288_v47, 16  ;;  %v1865_v13 = vshrl.u32 %v7288_v47, 16 }
  0x78   : > { %9470 = vst [vmem:[#allocation3_spill] sm:$0xff] %v7299_v43  ;;  %v1834_v29 = vor.u32 %v1833_v6, %v1830_v33  ;;  %v1854_v6 = vrot.slane %v1852_v20, 4  ;;  %v1871_v15 = vshll.u32 %v7299_v43, 16  ;;  %v1844_v45 = vor.u32 %v1843_v2, %v1839_v40 }
  0x79   : > { %v1857_v9 = vrot.slane %v1855_v37, 5  ;;  %v1863_v3 = vrot.slane %v1861_v55, 5  ;;  %v9471_v43 = vcombine.low %v6940_v39, %v6943_v26  ;;  %v9472_v2 = vcombine.low %v6669_v11, %v6676_v14  ;;  %v7343_v26 = vld [vmem:[%s6653_s8 + $0x30] sm:$0xf] }
  0x7a   : > { %6234 = vmatmul.mubr.msk.bf16.gmra.mxu0 %vm757_vm2, %v5498_v62  ;;  %v1835_v33 = vrot.slane %v1834_v29, 4  ;;  %v1867_v62 = vrot.slane %v1865_v13, 4  ;;  %v1873_v20 = vrot.slane %v1871_v15, 5  ;;  %v1876_v29 = vshrl.u32 %v7309_v41, 16 }
  0x7b   : > { %6237 = vmatprep.mubr.msk.bf16.mxu0 %vm757_vm2, %v5499_v56  ;;  %v1845_v63 = vrot.slane %v1844_v45, 4  ;;  %v1858_v31 = vor.u32 %v1857_v9, %v1854_v6  ;;  %v1879_v56 = vshll.u32 %v7309_v41, 16  ;;  %v1889_v37 = vshrl.u32 %v7318_v0, 16  ;;  %v7348_v6 = vld [vmem:[%s6653_s8 + $0x34] sm:$0xf] }
  0x7c   : > { %v1840_v22 = vsel %vm6694_vm3, %v1835_v33, %v1839_v40  ;;  %v1868_v15 = vor.u32 %v1867_v62, %v1863_v3  ;;  %v1878_v40 = vrot.slane %v1876_v29, 4  ;;  %v1895_v39 = vshll.u32 %v7325_v48, 16 }
  0x7d   : > { %v1850_v9 = vsel %vm6694_vm3, %v1845_v63, %v1849_v60  ;;  %v1881_v55 = vrot.slane %v1879_v56, 5  ;;  %v1887_v33 = vrot.slane %v1885_v23, 5  ;;  %v5616_v13 = vcombine.low %v7278_v38, %v7288_v47  ;;  %v7357_v60 = vld [vmem:[%s6653_s8 + $0x38] sm:$0x1]  ;;  %v6535_v38 = vld [vmem:[%s9379_s1 + $0x50] sm:$0xff]  }
  0x7e   : > { %6198 = vmatmul.mubr.msk.bf16.gmra.mxu1 %vm757_vm2, %v9471_v43  ;;  %v1859_v43 = vrot.slane %v1858_v31, 4  ;;  %v7350_v11 = vcombine.low %v1840_v22, %v1850_v9  ;;  %v1869_v14 = vrot.slane %v1868_v15, 4  ;;  %v1891_v45 = vrot.slane %v1889_v37, 4 }
  0x7f   : > { %6201 = vmatprep.mubr.msk.bf16.mxu1 %vm757_vm2, %v9472_v2  ;;  %v1882_v29 = vor.u32 %v1881_v55, %v1878_v40  ;;  %v1897_v2 = vrot.slane %v1895_v39, 5  ;;  %v1900_v63 = vshrl.u32 %v7343_v26, 16  ;;  %v9473_v31 = vcombine.low %v7155_v32, %v7169_v59  ;;  %v7372_v40 = vld [vmem:[%s6653_s8 + $0x40] sm:$0xf] }
  0x80   : > { %v1864_v62 = vsel %vm6694_vm3, %v1859_v43, %v1863_v3  ;;  %v1874_v22 = vsel %vm6694_vm3, %v1869_v14, %v1873_v20  ;;  %v1892_v56 = vor.u32 %v1891_v45, %v1887_v33  ;;  %v1903_v23 = vshll.u32 %v7343_v26, 16  ;;  %v7369_v3 = vld [vmem:[%s6653_s8 + $0x3c] sm:$0xf] }
  0x81   : > { %v1909_v15 = vshll.u32 %v7348_v6, 16  ;;  %v1883_v37 = vrot.slane %v1882_v29, 4  ;;  %v1902_v59 = vrot.slane %v1900_v63, 4  ;;  %v1913_v39 = vshrl.u32 %v7348_v6, 16  ;;  %v7388_v63 = vld [vmem:[%s6653_s8 + $0x44] sm:$0x1] }
  0x82   : > { %6238 = vmatmul.mubr.msk.bf16.gmra.mxu0 %vm757_vm2, %v9473_v31  ;;  %v1893_v20 = vrot.slane %v1892_v56, 4  ;;  %v1905_v9 = vrot.slane %v1903_v23, 5  ;;  %v1919_v55 = vshll.u32 %v7357_v60, 16  ;;  %v9474_v14 = vcombine.low %v6712_v52, %v6716_v57  ;;  %v7399_v23 = vld [vmem:[%s6653_s8 + $0x48] sm:$0xf] }
  0x83   : > { %6241 = vmatprep.mubr.msk.bf16.mxu0 %vm757_vm2, %v5501_v28  ;;  %v1911_v43 = vrot.slane %v1909_v15, 5  ;;  %v7383_v45 = vcombine.low %v1864_v62, %v1874_v22  ;;  %v1888_v28 = vsel %vm6694_vm3, %v1883_v37, %v1887_v33  ;;  %v1915_v29 = vrot.slane %v1913_v39, 4 }
  0x84   : > { %v1924_v31 = vshrl.u32 %v7369_v3, 16  ;;  %v9475_v56 = vcombine.low %v6750_v35, %v6759_v46  ;;  %v1898_v52 = vsel %vm6694_vm3, %v1893_v20, %v1897_v2  ;;  %v1906_v57 = vor.u32 %v1905_v9, %v1902_v59  ;;  %v7407_v59 = vld [vmem:[%s6653_s8 + $0x4c] sm:$0xf] }
  0x85   : > { %v1921_v62 = vrot.slane %v1919_v55, 5  ;;  %v1927_v22 = vshll.u32 %v7369_v3, 16  ;;  %v1916_v33 = vor.u32 %v1915_v29, %v1911_v43  ;;  %v1933_v39 = vshll.u32 %v7372_v40, 16 }
  0x86   : > { %6202 = vmatmul.mubr.msk.bf16.gmra.mxu1 %vm757_vm2, %v9474_v14  ;;  %v1926_v37 = vrot.slane %v1924_v31, 4  ;;  %v1907_v35 = vrot.slane %v1906_v57, 4  ;;  %v1937_v14 = vshrl.u32 %v7372_v40, 16  ;;  %v1943_v2 = vshll.u32 %v7388_v63, 16 }
  0x87   : > { %6205 = vmatprep.mubr.msk.bf16.mxu1 %vm757_vm2, %v9475_v56  ;;  %v1929_v46 = vrot.slane %v1927_v22, 5  ;;  %v7409_v20 = vcombine.low %v1888_v28, %v1898_v52  ;;  %v1917_v9 = vrot.slane %v1916_v33, 4  ;;  %v1935_v55 = vrot.slane %v1933_v39, 5  ;;  %v7421_v28 = vld [vmem:[%s6653_s8 + $0x50] sm:$0x1] }
  0x88   : > { %v1948_v29 = vshrl.u32 %v7399_v23, 16  ;;  %v9476_v31 = vcombine.low %v7186_v10, %v7207_v7  ;;  %v1912_v56 = vsel %vm6694_vm3, %v1907_v35, %v1911_v43  ;;  %v1939_v22 = vrot.slane %v1937_v14, 4 }
  0x89   : > { %v1930_v57 = vor.u32 %v1929_v46, %v1926_v37  ;;  %v9477_v52 = vcombine.low %v7211_v18, %v7222_v12  ;;  %v1922_v10 = vsel %vm6694_vm3, %v1917_v9, %v1921_v62  ;;  %v1951_v33 = vshll.u32 %v7399_v23, 16  ;;  %v7432_v37 = vld [vmem:[%s6653_s8 + $0x54] sm:$0xf] }
  0x8a   : > { %6242 = vmatmul.mubr.msk.bf16.gmra.mxu0 %vm757_vm2, %v9476_v31  ;;  %v1950_v7 = vrot.slane %v1948_v29, 4  ;;  %v1957_v43 = vshll.u32 %v7407_v59, 16  ;;  %v1940_v35 = vor.u32 %v1939_v22, %v1935_v55  ;;  %v1945_v46 = vrot.slane %v1943_v2, 5  ;;  %v7436_v31 = vld [vmem:[%s6653_s8 + $0x58] sm:$0xf] }
  0x8b   : > { %6245 = vmatprep.mubr.msk.bf16.mxu0 %vm757_vm2, %v9477_v52  ;;  %v1931_v39 = vrot.slane %v1930_v57, 4  ;;  %v1961_v14 = vshrl.u32 %v7407_v59, 16  ;;  %v9478_v18 = vcombine.low %v9458_v61, %v6807_v44  ;;  %v7442_v12 = vcombine.low %v1912_v56, %v1922_v10  ;;  %v7453_v10 = vld [vmem:[%s6653_s8 + $0x5c] sm:$0x1] }
  0x8c   : > { %v1953_v62 = vrot.slane %v1951_v33, 5  ;;  %v1959_v9 = vrot.slane %v1957_v43, 5  ;;  %v1967_v29 = vshll.u32 %v7421_v28, 16  ;;  %v9479_v57 = vcombine.low %v9461_v21, %v9460_v53 }
  0x8d   : > { %v1936_v2 = vsel %vm6694_vm3, %v1931_v39, %v1935_v55  ;;  %v1941_v22 = vrot.slane %v1940_v35, 4  ;;  %v1963_v52 = vrot.slane %v1961_v14, 4  ;;  %v1972_v44 = vshrl.u32 %v7432_v37, 16  ;;  %v7461_v39 = vld [vmem:[%s6653_s8 + $0x60] sm:$0xf] }
  0x8e   : > { %6206 = vmatmul.mubr.msk.bf16.gmra.mxu1 %vm757_vm2, %v9478_v18  ;;  %v1954_v61 = vor.u32 %v1953_v62, %v1950_v7  ;;  %v1969_v56 = vrot.slane %v1967_v29, 5  ;;  %v1975_v33 = vshll.u32 %v7432_v37, 16  ;;  %v1981_v43 = vshll.u32 %v7436_v31, 16  ;;  %v7466_v29 = vld [vmem:[%s6653_s8 + $0x64] sm:$0xf] }
  0x8f   : > { %6209 = vmatprep.mubr.msk.bf16.mxu1 %vm757_vm2, %v9479_v57  ;;  %v1946_v53 = vsel %vm6694_vm3, %v1941_v22, %v1945_v46  ;;  %v1964_v21 = vor.u32 %v1963_v52, %v1959_v9  ;;  %v1974_v18 = vrot.slane %v1972_v44, 4  ;;  %v1985_v55 = vshrl.u32 %v7436_v31, 16  ;;  %v7482_v7 = vld [vmem:[%s6653_s8 + $0x68] sm:$0x1] }
  0x90   : > { %v1955_v35 = vrot.slane %v1954_v61, 4  ;;  %v1977_v14 = vrot.slane %v1975_v33, 5  ;;  %v1983_v62 = vrot.slane %v1981_v43, 5  ;;  %v9480_v57 = vcombine.low %v7237_v16, %v7255_v27 }
  0x91   : > { %v7472_v46 = vcombine.low %v1936_v2, %v1946_v53  ;;  %v1965_v22 = vrot.slane %v1964_v21, 4  ;;  %v1987_v52 = vrot.slane %v1985_v55, 4  ;;  %v1991_v44 = vshll.u32 %v7453_v10, 16 }
  0x92   : > { %6246 = vmatmul.mubr.msk.bf16.gmra.mxu0 %vm757_vm2, %v9480_v57  ;;  %v9481_v61 = vcombine.low %v7247_v25, %v7271_v1  ;;  %v1960_v33 = vsel %vm6694_vm3, %v1955_v35, %v1959_v9  ;;  %v1978_v43 = vor.u32 %v1977_v14, %v1974_v18  ;;  %v1996_v16 = vshrl.u32 %v7461_v39, 16  ;;  %v7490_v1 = vld [vmem:[%s6653_s8 + $0x6c] sm:$0xf] }
  0x93   : > { %v1999_v27 = vshll.u32 %v7461_v39, 16  ;;  %v1970_v2 = vsel %vm6694_vm3, %v1965_v22, %v1969_v56  ;;  %v1988_v53 = vor.u32 %v1987_v52, %v1983_v62  ;;  %v1993_v21 = vrot.slane %v1991_v44, 5 }
  0x94   : > { %6249 = vmatprep.mubr.msk.bf16.mxu0 %vm757_vm2, %v9481_v61  ;;  %v2005_v25 = vshll.u32 %v7466_v29, 16  ;;  %v9482_v9 = vcombine.low %v9464_v24, %v9463_v17  ;;  %v1979_v18 = vrot.slane %v1978_v43, 4  ;;  %v1998_v35 = vrot.slane %v1996_v16, 4  ;;  %v7505_v17 = vld [vmem:[%s6653_s8 + $0x70] sm:$0xf] }
  0x95   : > { %v2001_v14 = vrot.slane %v1999_v27, 5  ;;  %v9483_v56 = vcombine.low %v9467_v8, %v9466_v4  ;;  %v1989_v57 = vrot.slane %v1988_v53, 4  ;;  %v2009_v52 = vshrl.u32 %v7466_v29, 16  ;;  %v7512_v16 = vld [vmem:[%s6653_s8 + $0x74] sm:$0x1] }
  0x96   : > { %6210 = vmatmul.mubr.msk.bf16.gmra.mxu1 %vm757_vm2, %v9482_v9  ;;  %v2007_v22 = vrot.slane %v2005_v25, 5  ;;  %v2015_v24 = vshll.u32 %v7482_v7, 16  ;;  %v7507_v44 = vcombine.low %v1960_v33, %v1970_v2  ;;  %v1984_v61 = vsel %vm6694_vm3, %v1979_v18, %v1983_v62  ;;  %9484 = vst [vmem:[#allocation4_spill] sm:$0xff] %v7512_v16  ;;  %v7521_v33 = vld [vmem:[%s6653_s8 + $0x78] sm:$0xf] }
  0x97   : > { %6213 = vmatprep.mubr.msk.bf16.mxu1 %vm757_vm2, %v9483_v56  ;;  %v2002_v43 = vor.u32 %v2001_v14, %v1998_v35  ;;  %v2020_v8 = vshrl.u32 %v7490_v1, 16  ;;  %v1994_v4 = vsel %vm6694_vm3, %v1989_v57, %v1993_v21  ;;  %v2011_v27 = vrot.slane %v2009_v52, 4  ;;  %v7531_v52 = vld [vmem:[%s6653_s8 + $0x7c] sm:$0xf] }
  0x98   : > { %v2023_v25 = vshll.u32 %v7490_v1, 16  ;;  %v2017_v62 = vrot.slane %v2015_v24, 5  ;;  %v2029_v18 = vshll.u32 %v7505_v17, 16  ;;  %v9485_v35 = vcombine.low %v7275_v19, %v7294_v5 }
  0x99   : > { %v2003_v2 = vrot.slane %v2002_v43, 4  ;;  %v2022_v9 = vrot.slane %v2020_v8, 4  ;;  %v2012_v21 = vor.u32 %v2011_v27, %v2007_v22  ;;  %v2033_v56 = vshrl.u32 %v7505_v17, 16  ;;  %v7542_v8 = vld [vmem:[%s6653_s8 + $0x80] sm:$0x1] }
  0x9a   : > { %6250 = vmatmul.mubr.msk.bf16.gmra.mxu0 %vm757_vm2, %v9485_v35  ;;  %v2025_v14 = vrot.slane %v2023_v25, 5  ;;  %v2039_v57 = vshll.u32 %v7512_v16, 16  ;;  %v9486_v43 = vcombine.low %v7227_v50, %v7251_v34  ;;  %v7537_v24 = vcombine.low %v1984_v61, %v1994_v4  ;;  %9487 = vst [vmem:[#allocation6_spill] sm:$0xff] %v7542_v8 }
  0x9b   : > { %v2008_v19 = vsel %vm6694_vm3, %v2003_v2, %v2007_v22  ;;  %v2031_v5 = vrot.slane %v2029_v18, 5  ;;  %v2044_v27 = vshrl.u32 %v7521_v33, 16  ;;  %v2013_v25 = vrot.slane %v2012_v21, 4 }
  0x9c   : > { %6293 = vmatprep.mubr.msk.bf16.mxu0 %vm757_vm2, %v9486_v43  ;;  %v2026_v35 = vor.u32 %v2025_v14, %v2022_v9  ;;  %v2035_v53 = vrot.slane %v2033_v56, 4  ;;  %v2041_v55 = vrot.slane %v2039_v57, 5  ;;  %v9488_v50 = vcombine.low %v9469_v58, %v6964_v42  ;;  %v7558_v58 = vld [vmem:[%s6653_s8 + $0x84] sm:$0xf]  ;;  %v7561_v14 = vld [vmem:[%s6653_s8 + $0x88] sm:$0xf] }
  0x9d   : > { %v2046_v61 = vrot.slane %v2044_v27, 4  ;;  %v2047_v22 = vshll.u32 %v7521_v33, 16  ;;  %v2053_v4 = vshll.u32 %v7531_v52, 16  ;;  %v2057_v2 = vshrl.u32 %v7531_v52, 16  ;;  %v7645_v56 = vld [vmem:[%s6653_s8 + $0xa4] sm:$0x1] }
  0x9e   : > { %6214 = vmatmul.mubr.msk.bf16.gmra.mxu1 %vm757_vm2, %v9488_v50  ;;  %v2018_v9 = vsel %vm6694_vm3, %v2013_v25, %v2017_v62  ;;  %v2027_v18 = vrot.slane %v2026_v35, 4  ;;  %v2036_v21 = vor.u32 %v2035_v53, %v2031_v5  ;;  %v2063_v42 = vshll.u32 %v7542_v8, 16  ;;  %v7566_v50 = vld [vmem:[%s6653_s8 + $0x8c] sm:$0x1]  ;;  %v6537_v35 = vld [vmem:[%s9379_s1 + $0x70] sm:$0xff]   ;;  %9492 = vst [vmem:[#allocation9_spill] sm:$0xff] %v7645_v56 }
  0x9f   : > { %6257 = vmatprep.mubr.msk.bf16.mxu1 %vm757_vm2, %v7350_v11  ;;  %v2049_v57 = vrot.slane %v2047_v22, 5  ;;  %v2055_v43 = vrot.slane %v2053_v4, 5  ;;  %v2059_v27 = vrot.slane %v2057_v2, 4  ;;  %9489 = vst [vmem:[#allocation5_spill] sm:$0xff] %v7566_v50  ;;  %v7568_v11 = vcombine.low %v2008_v19, %v2018_v9  ;;  %v7587_v9 = vld [vmem:[%s6653_s8 + $0x90] sm:$0xf] }
  0xa0   : > { %v2032_v53 = vsel %vm6694_vm3, %v2027_v18, %v2031_v5  ;;  %v2037_v62 = vrot.slane %v2036_v21, 4  ;;  %v2065_v25 = vrot.slane %v2063_v42, 5  ;;  %v2068_v22 = vshrl.u32 %v7558_v58, 16  ;;  %v5576_v8 = vld [vmem:[%s6653_s8 + $0xc8] sm:$0x1] }
  0xa1   : > { %v2050_v15 = vor.u32 %v2049_v57, %v2046_v61  ;;  %v2060_v32 = vor.u32 %v2059_v27, %v2055_v43  ;;  %v2071_v4 = vshll.u32 %v7558_v58, 16  ;;  %v2077_v5 = vshll.u32 %v7561_v14, 16  ;;  %v7600_v57 = vld [vmem:[%s6653_s8 + $0x94] sm:$0xf] }
  0xa2   : > { %6294 = vmatmul.mubr.msk.bf16.vlgmr.msra.gmra.mxu0 %vm757_vm2, %v5616_v13  ;;  %v2042_v19 = vsel %vm6694_vm3, %v2037_v62, %v2041_v55  ;;  %v2081_v2 = vshrl.u32 %v7561_v14, 16  ;;  %v2087_v61 = vshll.u32 %v7566_v50, 16  ;;  %v9490_v18 = vcombine.low %v7309_v41, %v7318_v0 }
  0xa3   : > { %6362 = vmatpush3.bf16.msra.mxu0 %v7099_v51  ;;  %v2051_v13 = vrot.slane %v2050_v15, 4  ;;  %v2061_v55 = vrot.slane %v2060_v32, 4  ;;  %v2070_v42 = vrot.slane %v2068_v22, 4  ;;  %v7602_v27 = vcombine.low %v2032_v53, %v2042_v19  ;;  %v7610_v15 = vld [vmem:[%s9379_s1 + $0x88] sm:$0xff]  }
  0xa4   : > { %6297 = vmatprep.mubr.msk.bf16.mxu0 %vm757_vm2, %v9490_v18  ;;  %6363 = vmatprep.subr.bf16.mxu0 %v6537_v35  ;;  %v2073_v51 = vrot.slane %v2071_v4, 5  ;;  %v2079_v41 = vrot.slane %v2077_v5, 5  ;;  %v2083_v62 = vrot.slane %v2081_v2, 4  ;;  %v7605_v18 = vld [vmem:[%s6653_s8 + $0x98] sm:$0x1]  ;;  %v2089_v22 = vrot.slane %v2087_v61, 5 }
  0xa5   : > { %9491 = vst [vmem:[#allocation7_spill] sm:$0xff] %v7605_v18  ;;  %v2056_v32 = vsel %vm6694_vm3, %v2051_v13, %v2055_v43  ;;  %v2066_v53 = vsel %vm6694_vm3, %v2061_v55, %v2065_v25  ;;  %v2092_v4 = vshrl.u32 %v7587_v9, 16  ;;  %v2095_v2 = vshll.u32 %v7587_v9, 16  ;;  %v7626_v43 = vld [vmem:[%s6653_s8 + $0x9c] sm:$0xf]  ;;  %v7634_v13 = vld [vmem:[%s9379_s1 + $0x68] sm:$0xff]  }
  0xa6   : > { %6258 = vmatmul.mubr.msk.bf16.vlgmr.msra.gmra.mxu1 %vm757_vm2, %v7383_v45  ;;  %v2074_v19 = vor.u32 %v2073_v51, %v2070_v42  ;;  %v2084_v5 = vor.u32 %v2083_v62, %v2079_v41  ;;  %v2101_v61 = vshll.u32 %v7600_v57, 16  ;;  %v7636_v55 = vcombine.low %v2056_v32, %v2066_v53  ;;  %v7639_v45 = vld [vmem:[%s6653_s8 + $0xa0] sm:$0xf] }
  0xa7   : > { %6326 = vmatpush3.bf16.msra.mxu1 %v7132_v54  ;;  %6261 = vmatprep.mubr.msk.bf16.mxu1 %vm757_vm2, %v7409_v20  ;;  %v2094_v25 = vrot.slane %v2092_v4, 4  ;;  %v2105_v54 = vshrl.u32 %v7600_v57, 16  ;;  %v2111_v20 = vshll.u32 %v7605_v18, 16  ;;  %v2097_v62 = vrot.slane %v2095_v2, 5 }
  0xa8   : > { %6327 = vmatprep.subr.bf16.mxu1 %v6535_v38  ;;  %6364 = vmatpush3.bf16.msra.mxu0 %v6537_v35  ;;  %v2075_v42 = vrot.slane %v2074_v19, 4  ;;  %v2085_v51 = vrot.slane %v2084_v5, 4  ;;  %v2103_v35 = vrot.slane %v2101_v61, 5  ;;  %v2116_v18 = vshrl.u32 %v7626_v43, 16  ;;  %v7658_v61 = vld [vmem:[%s6653_s8 + $0xa8] sm:$0xf] }
  0xa9   : > { %6433 = vmatprep.subr.bf16.mxu0 %v7610_v15  ;;  %v2107_v4 = vrot.slane %v2105_v54, 4  ;;  %v9493_v32 = vcombine.low %v7343_v26, %v7348_v6  ;;  %v2098_v5 = vor.u32 %v2097_v62, %v2094_v25  ;;  %v2119_v2 = vshll.u32 %v7626_v43, 16 }
  0xaa   : > { %v2080_v53 = vsel %vm6694_vm3, %v2075_v42, %v2079_v41  ;;  %v2090_v19 = vsel %vm6694_vm3, %v2085_v51, %v2089_v22  ;;  %v9494_v54 = vcombine.low %v7369_v3, %v7372_v40  ;;  %v2125_v21 = vshll.u32 %v7639_v45, 16  ;;  %v7669_v51 = vld [vmem:[%s6653_s8 + $0xac] sm:$0xf] }
  0xab   : > { %6298 = vmatmul.mubr.msk.bf16.gmra.mxu0 %vm757_vm2, %v9493_v32  ;;  %6328 = vmatpush3.bf16.msra.mxu1 %v6535_v38  ;;  %v2108_v26 = vor.u32 %v2107_v4, %v2103_v35  ;;  %v2113_v32 = vrot.slane %v2111_v20, 5  ;;  %v2118_v38 = vrot.slane %v2116_v18, 4  ;;  %v2099_v41 = vrot.slane %v2098_v5, 4 }
  0xac   : > { %6301 = vmatprep.mubr.msk.bf16.mxu0 %vm757_vm2, %v9494_v54  ;;  %6397 = vmatprep.subr.bf16.mxu1 %v7634_v13  ;;  %v2121_v22 = vrot.slane %v2119_v2, 5  ;;  %v2129_v25 = vshrl.u32 %v7639_v45, 16  ;;  %v2135_v42 = vshll.u32 %v7645_v56, 16  ;;  %v7673_v3 = vcombine.low %v2080_v53, %v2090_v19  ;;  %v7683_v56 = vld [vmem:[%s6653_s8 + $0xb0] sm:$0x1] }
  0xad   : > { %v2109_v18 = vrot.slane %v2108_v26, 4  ;;  %v2127_v20 = vrot.slane %v2125_v21, 5  ;;  %v2140_v62 = vshrl.u32 %v7658_v61, 16  ;;  %v2104_v4 = vsel %vm6694_vm3, %v2099_v41, %v2103_v35  ;;  %9495 = vst [vmem:[#allocation8_spill] sm:$0xff] %v7683_v56  ;;  %v7690_v26 = vld [vmem:[%s6653_s8 + $0xb4] sm:$0xf] }
  0xae   : > { %6262 = vmatmul.mubr.msk.bf16.gmra.mxu1 %vm757_vm2, %v7442_v12  ;;  %v2122_v5 = vor.u32 %v2121_v22, %v2118_v38  ;;  %v2131_v2 = vrot.slane %v2129_v25, 4  ;;  %v2143_v53 = vshll.u32 %v7658_v61, 16  ;;  %v2149_v19 = vshll.u32 %v7669_v51, 16  ;;  %v7694_v41 = vld [vmem:[%s6653_s8 + $0xb8] sm:$0xf] }
  0xaf   : > { %6265 = vmatprep.mubr.msk.bf16.mxu1 %vm757_vm2, %v7472_v46  ;;  %v2114_v12 = vsel %vm6694_vm3, %v2109_v18, %v2113_v32  ;;  %v2142_v21 = vrot.slane %v2140_v62, 4  ;;  %v2137_v35 = vrot.slane %v2135_v42, 5  ;;  %v2153_v38 = vshrl.u32 %v7669_v51, 16 }
  0xb0   : > { %v2123_v46 = vrot.slane %v2122_v5, 4  ;;  %v2132_v50 = vor.u32 %v2131_v2, %v2127_v20  ;;  %v7696_v22 = vcombine.low %v2104_v4, %v2114_v12  ;;  %v2145_v25 = vrot.slane %v2143_v53, 5 }
  0xb1   : > { %v2151_v54 = vrot.slane %v2149_v19, 5  ;;  %v2159_v32 = vshll.u32 %v7683_v56, 16  ;;  %v9496_v18 = vcombine.low %v7399_v23, %v7407_v59  ;;  %v2155_v5 = vrot.slane %v2153_v38, 4  ;;  %v5575_v19 = vld [vmem:[%s6653_s8 + $0xbc] sm:$0x1] }
  0xb2   : > { %v2128_v62 = vsel %vm6694_vm3, %v2123_v46, %v2127_v20  ;;  %v2133_v42 = vrot.slane %v2132_v50, 4  ;;  %v2164_v2 = vshrl.u32 %v7690_v26, 16  ;;  %v9497_v4 = vcombine.low %v7432_v37, %v7436_v31  ;;  %v7717_v56 = vld [vmem:[%s6653_s8 + $0xc0] sm:$0xf] }
  0xb3   : > { %6302 = vmatmul.mubr.msk.bf16.gmra.mxu0 %vm757_vm2, %v9496_v18  ;;  %v2146_v12 = vor.u32 %v2145_v25, %v2142_v21  ;;  %v2161_v53 = vrot.slane %v2159_v32, 5  ;;  %v2167_v23 = vshll.u32 %v7690_v26, 16  ;;  %v2173_v18 = vshll.u32 %v7694_v41, 16 }
  0xb4   : > { %6305 = vmatprep.mubr.msk.bf16.mxu0 %vm757_vm2, %v9497_v4  ;;  %v2138_v20 = vsel %vm6694_vm3, %v2133_v42, %v2137_v35  ;;  %v2156_v50 = vor.u32 %v2155_v5, %v2151_v54  ;;  %v2166_v46 = vrot.slane %v2164_v2, 4  ;;  %v2177_v38 = vshrl.u32 %v7694_v41, 16  ;;  %v7724_v4 = vld [vmem:[%s6653_s8 + $0xc4] sm:$0xf] }
  0xb5   : > { %v2147_v37 = vrot.slane %v2146_v12, 4  ;;  %v2169_v25 = vrot.slane %v2167_v23, 5  ;;  %v2175_v32 = vrot.slane %v2173_v18, 5  ;;  %v7728_v35 = vcombine.low %v2128_v62, %v2138_v20  ;;  %v5649_v20 = vld [vmem:[%s6653_s8 + $0xc] sm:$0xe] }
  0xb6   : > { %6266 = vmatmul.mubr.msk.bf16.gmra.mxu1 %vm757_vm2, %v7507_v44  ;;  %v2157_v42 = vrot.slane %v2156_v50, 4  ;;  %v2179_v5 = vrot.slane %v2177_v38, 4  ;;  %v2183_v2 = vshll.u32 %v5575_v19, 16  ;;  %v2188_v21 = vshrl.u32 %v7717_v56, 16 }
  0xb7   : > { %6269 = vmatprep.mubr.msk.bf16.mxu1 %vm757_vm2, %v7537_v24  ;;  %v2152_v44 = vsel %vm6694_vm3, %v2147_v37, %v2151_v54  ;;  %v2170_v12 = vor.u32 %v2169_v25, %v2166_v46  ;;  %v2191_v23 = vshll.u32 %v7717_v56, 16  ;;  %v2197_v62 = vshll.u32 %v7724_v4, 16 }
  0xb8   : > { %v2162_v18 = vsel %vm6694_vm3, %v2157_v42, %v2161_v53  ;;  %v2180_v16 = vor.u32 %v2179_v5, %v2175_v32  ;;  %v2185_v24 = vrot.slane %v2183_v2, 5  ;;  %v5629_v19 = vcombine.low %v7690_v26, %v7694_v41  ;;  %v5719_v5 = vld [vmem:[%s6653_s8 + $0x18] sm:$0xf]  ;;  %v8032_v26 = vld [vmem:[%s6653_s8 + $0x6c] sm:$0xf] }
  0xb9   : > { %v2171_v50 = vrot.slane %v2170_v12, 4  ;;  %v2190_v54 = vrot.slane %v2188_v21, 4  ;;  %v2193_v46 = vrot.slane %v2191_v23, 5  ;;  %v9498_v38 = vcombine.low %v7461_v39, %v7466_v29 }
  0xba   : > { %v2181_v37 = vrot.slane %v2180_v16, 4  ;;  %v7745_v25 = vrot.slane %v2197_v62, 5  ;;  %v2201_v53 = vshrl.u32 %v7724_v4, 16  ;;  %v2207_v42 = vshll.u32 %v5576_v8, 16 }
  0xbb   : > { %6306 = vmatmul.mubr.msk.bf16.gmra.mxu0 %vm757_vm2, %v9498_v38  ;;  %v9499_v2 = vcombine.low %v7490_v1, %v7505_v17  ;;  %v7753_v21 = vcombine.low %v2152_v44, %v2162_v18  ;;  %v2176_v39 = vsel %vm6694_vm3, %v2171_v50, %v2175_v32  ;;  %v2194_v12 = vor.u32 %v2193_v46, %v2190_v54  ;;  %v5720_v1 = vld [vmem:[%s6653_s8 + $0x1c] sm:$0xf]  ;;  %v5755_v50 = vld [vmem:[%s6653_s8 + $0x20] sm:$0x1] }
  0xbc   : > { %v5665_v23 = vrot.slane %v5649_v20, 9  ;;  %v2186_v16 = vsel %vm6694_vm3, %v2181_v37, %v2185_v24  ;;  %v2203_v62 = vrot.slane %v2201_v53, 4  ;;  %v5630_v8 = vcombine.low %v7717_v56, %v7724_v4  ;;  %v5650_v37 = vld [vmem:[%s6653_s8 + $0x18] sm:$0xe] }
  0xbd   : > { %6309 = vmatprep.mubr.msk.bf16.mxu0 %vm757_vm2, %v9499_v2  ;;  %v2836_v38 = vrot.slane %v7251_v34, 5  ;;  %v2195_v44 = vrot.slane %v2194_v12, 4  ;;  %v2209_v18 = vrot.slane %v2207_v42, 5  ;;  %v2839_v32 = vrot.slane %v7259_v36, 5 }
  0xbe   : > { %6270 = vmatmul.mubr.msk.bf16.gmra.mxu1 %vm757_vm2, %v7568_v11  ;;  %v3406_v20 = vshrl.u32 %v5719_v5, 16  ;;  %v7769_v24 = vcombine.low %v2176_v39, %v2186_v16  ;;  %v2204_v54 = vor.u32 %v2203_v62, %v7745_v25  ;;  %v3409_v34 = vshll.u32 %v5719_v5, 16  ;;  %v5721_v16 = vld [vmem:[%s6653_s8 + $0x24] sm:$0xf] }
  0xbf   : > { %6273 = vmatprep.mubr.msk.bf16.mxu1 %vm757_vm2, %v7602_v27  ;;  %v2838_v46 = vrot.slane %v2836_v38, 4  ;;  %v7775_v11 = vsel %vm6985_vm6, %v5665_v23, %v2836_v38  ;;  %v3415_v42 = vshll.u32 %v5720_v1, 16  ;;  %v3419_v36 = vshrl.u32 %v5720_v1, 16 }
  0xc0   : > { %v3408_v53 = vrot.slane %v3406_v20, 4  ;;  %v2205_v2 = vrot.slane %v2204_v54, 4  ;;  %v3411_v27 = vrot.slane %v3409_v34, 5  ;;  %v3425_v39 = vshll.u32 %v5755_v50, 16 }
  0xc1   : > { %v7779_v12 = vsel %vm6985_vm6, %v2838_v46, %v2839_v32  ;;  %v2200_v5 = vsel %vm6694_vm3, %v2195_v44, %v7745_v25  ;;  %v3417_v62 = vrot.slane %v3415_v42, 5  ;;  %v3421_v23 = vrot.slane %v3419_v36, 4  ;;  %v5722_v46 = vld [vmem:[%s6653_s8 + $0x28] sm:$0xf]  ;;  %v7801_v42 = vld [vmem:[%s6653_s8 + $0x2c] sm:$0x1] }
  0xc2   : > { %v5666_v38 = vrot.slane %v5650_v37, 9  ;;  %v9500_v20 = vcombine.low %v7521_v33, %v7531_v52  ;;  %v2210_v1 = vsel %vm6694_vm3, %v2205_v2, %v2209_v18  ;;  %v5685_v32 = vcombine.low %v7775_v11, %v7779_v12  ;;  %v9502_v33 = vld [vmem:[#allocation3_spill] sm:$0xff] }
  0xc3   : > { %v3412_v50 = vor.u32 %v3411_v27, %v3408_v53  ;;  %v2843_v54 = vrot.slane %v7288_v47, 5  ;;  %v9501_v25 = vcombine.low %v7558_v58, %v7561_v14  ;;  %v3422_v44 = vor.u32 %v3421_v23, %v3417_v62  ;;  %v7990_v11 = vld [vmem:[%s6653_s8 + $0x60] sm:$0xf] }
  0xc4   : > { %6310 = vmatmul.mubr.msk.bf16.gmra.mxu0 %vm757_vm2, %v9500_v20  ;;  %v3427_v34 = vrot.slane %v3425_v39, 5  ;;  %v2846_v37 = vrot.slane %v9502_v33, 5  ;;  %v3430_v18 = vshrl.u32 %v5721_v16, 16  ;;  %v3433_v2 = vshll.u32 %v5721_v16, 16  ;;  %v7827_v33 = vld [vmem:[%s6653_s8 + $0x34] sm:$0xf] }
  0xc5   : > { %6313 = vmatprep.mubr.msk.bf16.mxu0 %vm757_vm2, %v9501_v25  ;;  %v3413_v36 = vrot.slane %v3412_v50, 4  ;;  %v7805_v53 = vsel %vm6985_vm6, %v5666_v38, %v2843_v54  ;;  %v2845_v47 = vrot.slane %v2843_v54, 4  ;;  %v3423_v58 = vrot.slane %v3422_v44, 4  ;;  %v5651_v54 = vld [vmem:[%s6653_s8 + $0x24] sm:$0xe] }
  0xc6   : > { %6274 = vmatmul.mubr.msk.bf16.gmra.mxu1 %vm757_vm2, %v7636_v55  ;;  %v3432_v27 = vrot.slane %v3430_v18, 4  ;;  %v3439_v39 = vshll.u32 %v5722_v46, 16  ;;  %v3443_v23 = vshrl.u32 %v5722_v46, 16  ;;  %v3435_v16 = vrot.slane %v3433_v2, 5 }
  0xc7   : > { %6277 = vmatprep.mubr.msk.bf16.mxu1 %vm757_vm2, %v7673_v3  ;;  %v3418_v20 = vsel %vm6694_vm3, %v3413_v36, %v3417_v62  ;;  %v7815_v38 = vsel %vm6985_vm6, %v2845_v47, %v2846_v37  ;;  %v3449_v50 = vshll.u32 %v7801_v42, 16  ;;  %v7819_v55 = vcombine.low %v2200_v5, %v2210_v1  ;;  %v7824_v3 = vld [vmem:[%s6653_s8 + $0x30] sm:$0xf]  ;;  %v7864_v37 = vld [vmem:[%s6653_s8 + $0x3c] sm:$0xf] }
  0xc8   : > { %v3428_v46 = vsel %vm6694_vm3, %v3423_v58, %v3427_v34  ;;  %v3441_v25 = vrot.slane %v3439_v39, 5  ;;  %v3445_v44 = vrot.slane %v3443_v23, 4  ;;  %v3436_v18 = vor.u32 %v3435_v16, %v3432_v27  ;;  %v7840_v39 = vld [vmem:[%s6653_s8 + $0x38] sm:$0x1] }
  0xc9   : > { %v7829_v62 = vcombine.low %v3418_v20, %v3428_v46  ;;  %v3451_v36 = vrot.slane %v3449_v50, 5  ;;  %v5667_v1 = vrot.slane %v5651_v54, 9  ;;  %v2850_v47 = vrot.slane %v7318_v0, 5  ;;  %v5652_v54 = vld [vmem:[%s6653_s8 + $0x30] sm:$0xe] }
  0xca   : > { %v3446_v5 = vor.u32 %v3445_v44, %v3441_v25  ;;  %v2853_v34 = vrot.slane %v7325_v48, 5  ;;  %v9503_v2 = vcombine.low %v7587_v9, %v7600_v57  ;;  %v3437_v58 = vrot.slane %v3436_v18, 4 }
  0xcb   : > { %v3454_v23 = vshrl.u32 %v7824_v3, 16  ;;  %v3457_v27 = vshll.u32 %v7824_v3, 16  ;;  %v3463_v20 = vshll.u32 %v7827_v33, 16  ;;  %v9504_v16 = vcombine.low %v7626_v43, %v7639_v45 }
  0xcc   : > { %6314 = vmatmul.mubr.msk.bf16.gmra.mxu0 %vm757_vm2, %v9503_v2  ;;  %v3447_v0 = vrot.slane %v3446_v5, 4  ;;  %v2852_v9 = vrot.slane %v2850_v47, 4  ;;  %v3467_v50 = vshrl.u32 %v7827_v33, 16  ;;  %v3442_v46 = vsel %vm6694_vm3, %v3437_v58, %v3441_v25  ;;  %v7867_v25 = vld [vmem:[%s6653_s8 + $0x40] sm:$0xf] }
  0xcd   : > { %6317 = vmatprep.mubr.msk.bf16.mxu0 %vm757_vm2, %v9504_v16  ;;  %v3456_v44 = vrot.slane %v3454_v23, 4  ;;  %v3459_v18 = vrot.slane %v3457_v27, 5  ;;  %v3465_v2 = vrot.slane %v3463_v20, 5  ;;  %v7860_v5 = vsel %vm6985_vm6, %v5667_v1, %v2850_v47 }
  0xce   : > { %6278 = vmatmul.mubr.msk.bf16.gmra.mxu1 %vm757_vm2, %v7696_v22  ;;  %v3452_v43 = vsel %vm6694_vm3, %v3447_v0, %v3451_v36  ;;  %v3469_v16 = vrot.slane %v3467_v50, 4  ;;  %v3473_v48 = vshll.u32 %v7840_v39, 16  ;;  %v7875_v22 = vsel %vm6985_vm6, %v2852_v9, %v2853_v34  ;;  %v7880_v50 = vld [vmem:[%s6653_s8 + $0x44] sm:$0x1] }
  0xcf   : > { %6281 = vmatprep.mubr.msk.bf16.mxu1 %vm757_vm2, %v7728_v35  ;;  %v7871_v58 = vcombine.low %v3442_v46, %v3452_v43  ;;  %v3460_v36 = vor.u32 %v3459_v18, %v3456_v44  ;;  %v5668_v23 = vrot.slane %v5652_v54, 9  ;;  %v2857_v27 = vrot.slane %v7348_v6, 5 }
  0xd0   : > { %v3470_v1 = vor.u32 %v3469_v16, %v3465_v2  ;;  %v3475_v47 = vrot.slane %v3473_v48, 5  ;;  %v2860_v20 = vrot.slane %v7357_v60, 5  ;;  %v3478_v35 = vshrl.u32 %v7864_v37, 16 }
  0xd1   : > { %v3461_v0 = vrot.slane %v3460_v36, 4  ;;  %v3481_v46 = vshll.u32 %v7864_v37, 16  ;;  %v3487_v43 = vshll.u32 %v7867_v25, 16  ;;  %v7887_v9 = vsel %vm6985_vm6, %v5668_v23, %v2857_v27  ;;  %v5653_v36 = vld [vmem:[%s6653_s8 + $0x3c] sm:$0xe] }
  0xd2   : > { %v3471_v34 = vrot.slane %v3470_v1, 4  ;;  %v2859_v48 = vrot.slane %v2857_v27, 4  ;;  %v3491_v6 = vshrl.u32 %v7867_v25, 16  ;;  %v9505_v60 = vcombine.low %v7658_v61, %v7669_v51  ;;  %v7909_v1 = vld [vmem:[%s6653_s8 + $0x48] sm:$0xf] }
  0xd3   : > { %v3466_v54 = vsel %vm6694_vm3, %v3461_v0, %v3465_v2  ;;  %v3480_v44 = vrot.slane %v3478_v35, 4  ;;  %v3483_v18 = vrot.slane %v3481_v46, 5  ;;  %v3489_v16 = vrot.slane %v3487_v43, 5 }
  0xd4   : > { %6318 = vmatmul.mubr.msk.bf16.gmra.mxu0 %vm757_vm2, %v9505_v60  ;;  %v3476_v23 = vsel %vm6694_vm3, %v3471_v34, %v3475_v47  ;;  %v7905_v61 = vsel %vm6985_vm6, %v2859_v48, %v2860_v20  ;;  %v3493_v51 = vrot.slane %v3491_v6, 4  ;;  %v3497_v2 = vshll.u32 %v7880_v50, 16  ;;  %v7927_v48 = vld [vmem:[%s6653_s8 + $0x50] sm:$0x1] }
  0xd5   : > { %6321 = vmatprep.mubr.msk.bf16.mxu0 %vm757_vm2, %v5629_v19  ;;  %v5687_v27 = vcombine.low %v7860_v5, %v7875_v22  ;;  %v7913_v0 = vcombine.low %v3466_v54, %v3476_v23  ;;  %v3484_v41 = vor.u32 %v3483_v18, %v3480_v44  ;;  %v7918_v19 = vld [vmem:[%s6653_s8 + $0x4c] sm:$0xf]  ;;  %v5669_v35 = vrot.slane %v5653_v36, 9  ;;  %v5654_v23 = vld [vmem:[%s6653_s8 + $0x48] sm:$0xe] }
  0xd6   : > { %6282 = vmatmul.mubr.msk.bf16.gmra.mxu1 %vm757_vm2, %v7753_v21  ;;  %v3494_v47 = vor.u32 %v3493_v51, %v3489_v16  ;;  %v3499_v20 = vrot.slane %v3497_v2, 5  ;;  %v2864_v46 = vrot.slane %v7372_v40, 5  ;;  %v2867_v34 = vrot.slane %v7388_v63, 5  ;;  %v7945_v54 = vld [vmem:[%s6653_s8 + $0x54] sm:$0xf] }
  0xd7   : > { %6285 = vmatprep.mubr.msk.bf16.mxu1 %vm757_vm2, %v7769_v24  ;;  %v3485_v43 = vrot.slane %v3484_v41, 4  ;;  %v3502_v6 = vshrl.u32 %v7909_v1, 16  ;;  %v3505_v60 = vshll.u32 %v7909_v1, 16  ;;  %v3511_v18 = vshll.u32 %v7918_v19, 16  ;;  %v8052_v5 = vld [vmem:[%s6653_s8 + $0x70] sm:$0xf] }
  0xd8   : > { %v3495_v21 = vrot.slane %v3494_v47, 4  ;;  %v2866_v44 = vrot.slane %v2864_v46, 4  ;;  %v3515_v63 = vshrl.u32 %v7918_v19, 16  ;;  %v7941_v2 = vsel %vm6985_vm6, %v5669_v35, %v2864_v46  ;;  %v7958_v46 = vld [vmem:[%s6653_s8 + $0x58] sm:$0xf] }
  0xd9   : > { %v3490_v40 = vsel %vm6694_vm3, %v3485_v43, %v3489_v16  ;;  %v3504_v24 = vrot.slane %v3502_v6, 4  ;;  %v3507_v36 = vrot.slane %v3505_v60, 5  ;;  %v3513_v41 = vrot.slane %v3511_v18, 5  ;;  %v7965_v18 = vld [vmem:[%s6653_s8 + $0x5c] sm:$0x1] }
  0xda   : > { %v3500_v51 = vsel %vm6694_vm3, %v3495_v21, %v3499_v20  ;;  %v3521_v47 = vshll.u32 %v7927_v48, 16  ;;  %v7955_v20 = vsel %vm6985_vm6, %v2866_v44, %v2867_v34  ;;  %v3517_v35 = vrot.slane %v3515_v63, 4 }
  0xdb   : > { %v7951_v16 = vcombine.low %v3490_v40, %v3500_v51  ;;  %v3508_v43 = vor.u32 %v3507_v36, %v3504_v24  ;;  %v5670_v60 = vrot.slane %v5654_v23, 9  ;;  %v2871_v21 = vrot.slane %v7407_v59, 5  ;;  %v5655_v23 = vld [vmem:[%s6653_s8 + $0x54] sm:$0xe] }
  0xdc   : > { %6322 = vmatmul.mubr.msk.bf16.gmra.mxu0 %vm757_vm2, %v5630_v8  ;;  %v3523_v6 = vrot.slane %v3521_v47, 5  ;;  %v2874_v56 = vrot.slane %v7421_v28, 5  ;;  %v3518_v8 = vor.u32 %v3517_v35, %v3513_v41  ;;  %v3526_v34 = vshrl.u32 %v7945_v54, 16 }
  0xdd   : > { %6365 = vmatprep.mubr.msk.bf16.mxu0 %vm757_vm2, %v7829_v62  ;;  %v3509_v4 = vrot.slane %v3508_v43, 4  ;;  %v3529_v44 = vshll.u32 %v7945_v54, 16  ;;  %v7973_v62 = vsel %vm6985_vm6, %v5670_v60, %v2871_v21  ;;  %v2873_v59 = vrot.slane %v2871_v21, 4 }
  0xde   : > { %6286 = vmatmul.mubr.msk.bf16.gmra.mxu1 %vm757_vm2, %v7819_v55  ;;  %v3535_v28 = vshll.u32 %v7958_v46, 16  ;;  %v3539_v40 = vshrl.u32 %v7958_v46, 16  ;;  %v3519_v36 = vrot.slane %v3518_v8, 4  ;;  %v3528_v55 = vrot.slane %v3526_v34, 4  ;;  %v7999_v8 = vld [vmem:[%s6653_s8 + $0x64] sm:$0xf] }
  0xdf   : > { %6329 = vmatprep.mubr.msk.bf16.mxu1 %vm757_vm2, %v5685_v32  ;;  %v3531_v63 = vrot.slane %v3529_v44, 5  ;;  %v7986_v51 = vsel %vm6985_vm6, %v2873_v59, %v2874_v56  ;;  %v3545_v35 = vshll.u32 %v7965_v18, 16  ;;  %v3514_v12 = vsel %vm6694_vm3, %v3509_v4, %v3513_v41  ;;  %v6547_v56 = vld [vmem:[%s9379_s1 + $0x80] sm:$0xff]   ;;  %v8006_v41 = vld [vmem:[%s6653_s8 + $0x68] sm:$0x1] }
  0xe0   : > { %v3537_v47 = vrot.slane %v3535_v28, 5  ;;  %v3541_v43 = vrot.slane %v3539_v40, 4  ;;  %v3524_v32 = vsel %vm6694_vm3, %v3519_v36, %v3523_v6  ;;  %v5671_v28 = vrot.slane %v5655_v23, 9 }
  0xe1   : > { %v3532_v21 = vor.u32 %v3531_v63, %v3528_v55  ;;  %v3547_v44 = vrot.slane %v3545_v35, 5  ;;  %v2878_v4 = vrot.slane %v7436_v31, 5  ;;  %v2881_v40 = vrot.slane %v7453_v10, 5  ;;  %v5656_v55 = vld [vmem:[%s6653_s8 + $0x60] sm:$0xe] }
  0xe2   : > { %v3542_v34 = vor.u32 %v3541_v43, %v3537_v47  ;;  %v3550_v36 = vshrl.u32 %v7990_v11, 16  ;;  %v3553_v23 = vshll.u32 %v7990_v11, 16  ;;  %v3559_v43 = vshll.u32 %v7999_v8, 16  ;;  %v6546_v31 = vld [vmem:[%s9379_s1 + $0x60] sm:$0xff]  }
  0xe3   : > { %v3533_v6 = vrot.slane %v3532_v21, 4  ;;  %v5779_v10 = vcombine.low %v3514_v12, %v3524_v32  ;;  %v5672_v12 = vrot.slane %v5656_v55, 9  ;;  %v5812_v30 = vcombine.low %v7864_v37, %v7867_v25 }
  0xe4   : > { %6366 = vmatmul.mubr.msk.bf16.vlgmr.msra.gmra.mxu0 %vm757_vm2, %v7871_v58  ;;  %v3543_v63 = vrot.slane %v3542_v34, 4  ;;  %v3563_v58 = vshrl.u32 %v7999_v8, 16  ;;  %v3552_v21 = vrot.slane %v3550_v36, 4  ;;  %v3555_v59 = vrot.slane %v3553_v23, 5  ;;  %v5657_v23 = vld [vmem:[%s6653_s8 + $0x6c] sm:$0xe] }
  0xe5   : > { %6434 = vmatpush3.bf16.msra.mxu0 %v7610_v15  ;;  %6369 = vmatprep.mubr.msk.bf16.mxu0 %vm757_vm2, %v7913_v0  ;;  %v3538_v35 = vsel %vm6694_vm3, %v3533_v6, %v3537_v47  ;;  %v2880_v15 = vrot.slane %v2878_v4, 4  ;;  %v9506_v0 = vcombine.low %v7805_v53, %v7815_v38  ;;  %v3561_v60 = vrot.slane %v3559_v43, 5 }
  0xe6   : > { %6435 = vmatprep.subr.bf16.mxu0 %v6547_v56  ;;  %v3548_v34 = vsel %vm6694_vm3, %v3543_v63, %v3547_v44  ;;  %v3565_v24 = vrot.slane %v3563_v58, 4  ;;  %v8043_v38 = vsel %vm6985_vm6, %v5671_v28, %v2878_v4  ;;  %v3569_v47 = vshll.u32 %v8006_v41, 16  ;;  %v8056_v28 = vld [vmem:[%s6653_s8 + $0x74] sm:$0x1]  ;;  %v8069_v43 = vpop.f32.mrf.mxu0 }
  0xe7   : > { %6330 = vmatmul.mubr.msk.bf16.vlgmr.msra.gmra.mxu1 %vm757_vm2, %v9506_v0  ;;  %v8039_v53 = vcombine.low %v3538_v35, %v3548_v34  ;;  %v8048_v32 = vsel %vm6985_vm6, %v2880_v15, %v2881_v40  ;;  %v3556_v44 = vor.u32 %v3555_v59, %v3552_v21  ;;  %v2885_v6 = vrot.slane %v7466_v29, 5  ;;  %v8082_v21 = vld [vmem:[%s6653_s8 + $0x78] sm:$0xf] }
  0xe8   : > { %6398 = vmatpush3.bf16.msra.mxu1 %v7634_v13  ;;  %6333 = vmatprep.mubr.msk.bf16.mxu1 %vm757_vm2, %v5687_v27  ;;  %v3566_v13 = vor.u32 %v3565_v24, %v3561_v60  ;;  %v3571_v22 = vrot.slane %v3569_v47, 5  ;;  %v2888_v27 = vrot.slane %v7482_v7, 5  ;;  %v3574_v4 = vshrl.u32 %v8032_v26, 16  ;;  %v8087_v47 = vld [vmem:[%s6653_s8 + $0x7c] sm:$0xf] }
  0xe9   : > { %6399 = vmatprep.subr.bf16.mxu1 %v6546_v31  ;;  %6436 = vmatpush3.bf16.msra.mxu0 %v6547_v56  ;;  %v3577_v36 = vshll.u32 %v8032_v26, 16  ;;  %v3557_v40 = vrot.slane %v3556_v44, 4  ;;  %v8062_v29 = vsel %vm6985_vm6, %v5672_v12, %v2885_v6  ;;  %v2887_v24 = vrot.slane %v2885_v6, 4 }
  0xea   : > { %v3567_v55 = vrot.slane %v3566_v13, 4  ;;  %v3576_v56 = vrot.slane %v3574_v4, 4  ;;  %v3583_v7 = vshll.u32 %v8052_v5, 16  ;;  %v3587_v63 = vshrl.u32 %v8052_v5, 16  ;;  %v8104_v4 = vld [vmem:[%s6653_s8 + $0x80] sm:$0x1] }
  0xeb   : > { %v3579_v59 = vrot.slane %v3577_v36, 5  ;;  %v3562_v58 = vsel %vm6694_vm3, %v3557_v40, %v3561_v60  ;;  %v3593_v15 = vshll.u32 %v8056_v28, 16  ;;  %v9507_v60 = vcombine.low %v7887_v9, %v7905_v61  ;;  %v9510_v9 = vld [vmem:[#allocation4_spill] sm:$0xff]  ;;  %v8107_v40 = vpop.f32.mrf.mxu0 }
  0xec   : > { %6370 = vmatmul.mubr.msk.bf16.gmra.mxu0 %vm757_vm2, %v7951_v16  ;;  %6400 = vmatpush3.bf16.msra.mxu1 %v6546_v31  ;;  %v3572_v35 = vsel %vm6694_vm3, %v3567_v55, %v3571_v22  ;;  %v8078_v16 = vsel %vm6985_vm6, %v2887_v24, %v2888_v27  ;;  %v5691_v31 = vcombine.low %v8043_v38, %v8048_v32  ;;  %v3585_v34 = vrot.slane %v3583_v7, 5  ;;  %v8095_v22 = vpop.f32.mrf.mxu1 }
  0xed   : > { %6373 = vmatprep.mubr.msk.bf16.mxu0 %vm757_vm2, %v5779_v10  ;;  %v5781_v0 = vcombine.low %v3562_v58, %v3572_v35  ;;  %v3580_v10 = vor.u32 %v3579_v59, %v3576_v56  ;;  %v3589_v44 = vrot.slane %v3587_v63, 4  ;;  %v3595_v13 = vrot.slane %v3593_v15, 5  ;;  %9508 = vst [vmem:[#allocation10_spill] sm:$0xff] %v8095_v22 }
  0xee   : > { %v5673_v6 = vrot.slane %v5657_v23, 9  ;;  %v9509_v38 = vcombine.low %v7941_v2, %v7955_v20  ;;  %v2892_v27 = vrot.slane %v7505_v17, 5  ;;  %v2895_v61 = vrot.slane %v9510_v9, 5  ;;  %v5658_v20 = vld [vmem:[%s6653_s8 + $0x78] sm:$0xe]  ;;  %v8129_v9 = vpop.f32.mrf.mxu0 }
  0xef   : > { %6334 = vmatmul.mubr.msk.bf16.gmra.mxu1 %vm757_vm2, %v9507_v60  ;;  %v3581_v32 = vrot.slane %v3580_v10, 4  ;;  %v3598_v36 = vshrl.u32 %v8082_v21, 16  ;;  %v3590_v55 = vor.u32 %v3589_v44, %v3585_v34  ;;  %v3601_v24 = vshll.u32 %v8082_v21, 16  ;;  %v8116_v10 = vpop.f32.mrf.mxu1 }
  0xf0   : > { %6337 = vmatprep.mubr.msk.bf16.mxu1 %vm757_vm2, %v9509_v38  ;;  %v3607_v56 = vshll.u32 %v8087_v47, 16  ;;  %v3611_v2 = vshrl.u32 %v8087_v47, 16  ;;  %v2894_v7 = vrot.slane %v2892_v27, 4  ;;  %9511 = vst [vmem:[#allocation12_spill] sm:$0xff] %v8116_v10  ;;  %v8122_v60 = vsel %vm6985_vm6, %v5673_v6, %v2892_v27  ;;  %v8137_v27 = vld [vmem:[%s6653_s8 + $0x88] sm:$0xf] }
  0xf1   : > { %v3586_v17 = vsel %vm6694_vm3, %v3581_v32, %v3585_v34  ;;  %v3600_v63 = vrot.slane %v3598_v36, 4  ;;  %v3591_v23 = vrot.slane %v3590_v55, 4  ;;  %v3603_v58 = vrot.slane %v3601_v24, 5  ;;  %v8127_v32 = vld [vmem:[%s6653_s8 + $0x84] sm:$0xf] }
  0xf2   : > { %v3609_v35 = vrot.slane %v3607_v56, 5  ;;  %v3613_v15 = vrot.slane %v3611_v2, 4  ;;  %v3617_v34 = vshll.u32 %v8104_v4, 16  ;;  %v5674_v44 = vrot.slane %v5658_v20, 9  ;;  %v8140_v24 = vld [vmem:[%s6653_s8 + $0x8c] sm:$0x1] }
  0xf3   : > { %v2899_v38 = vrot.slane %v7531_v52, 5  ;;  %v3596_v36 = vsel %vm6694_vm3, %v3591_v23, %v3595_v13  ;;  %v3604_v55 = vor.u32 %v3603_v58, %v3600_v63  ;;  %9512 = vst [vmem:[#allocation11_spill] sm:$0xff] %v8140_v24  ;;  %v9513_v13 = vcombine.low %v7973_v62, %v7986_v51 }
  0xf4   : > { %6374 = vmatmul.mubr.msk.bf16.gmra.mxu0 %vm757_vm2, %v8039_v53  ;;  %v2896_v53 = vsel %vm6985_vm6, %v2894_v7, %v2895_v61  ;;  %v3614_v6 = vor.u32 %v3613_v15, %v3609_v35  ;;  %v5782_v56 = vcombine.low %v3586_v17, %v3596_v36  ;;  %v3619_v52 = vrot.slane %v3617_v34, 5  ;;  %v9514_v7 = vld [vmem:[#allocation6_spill] sm:$0xff]  ;;  %v8152_v17 = vpop.f32.mrf.mxu1  ;;  %v8159_v34 = vpop.f32.mrf.mxu0 }
  0xf5   : > { %6377 = vmatprep.mubr.msk.bf16.mxu0 %vm757_vm2, %v5781_v0  ;;  %v8144_v2 = vsel %vm6985_vm6, %v5674_v44, %v2899_v38  ;;  %v2901_v0 = vrot.slane %v2899_v38, 4  ;;  %v3605_v61 = vrot.slane %v3604_v55, 4  ;;  %v2902_v63 = vrot.slane %v9514_v7, 5  ;;  %9515 = vst [vmem:[#allocation13_spill] sm:$0xff] %v8152_v17  ;;  %v5659_v44 = vld [vmem:[%s6653_s8 + $0x84] sm:$0xe] }
  0xf6   : > { %v3615_v20 = vrot.slane %v3614_v6, 4  ;;  %v3622_v23 = vshrl.u32 %v8127_v32, 16  ;;  %v3625_v58 = vshll.u32 %v8127_v32, 16  ;;  %v3631_v15 = vshll.u32 %v8137_v27, 16  ;;  %v8171_v6 = vld [vmem:[%s6653_s8 + $0x90] sm:$0xf] }
  0xf7   : > { %6338 = vmatmul.mubr.msk.bf16.gmra.mxu1 %vm757_vm2, %v9513_v13  ;;  %v3635_v62 = vshrl.u32 %v8137_v27, 16  ;;  %v3641_v51 = vshll.u32 %v8140_v24, 16  ;;  %v3610_v38 = vsel %vm6694_vm3, %v3605_v61, %v3609_v35  ;;  %9516 = vst [vmem:[#allocation14_spill] sm:$0xff] %v8171_v6  ;;  %v5693_v13 = vcombine.low %v8122_v60, %v2896_v53  ;;  %v8175_v17 = vld [vmem:[%s6653_s8 + $0x94] sm:$0xf] }
  0xf8   : > { %6341 = vmatprep.mubr.msk.bf16.mxu1 %vm757_vm2, %v5691_v31  ;;  %v3620_v36 = vsel %vm6694_vm3, %v3615_v20, %v3619_v52  ;;  %v8168_v31 = vsel %vm6985_vm6, %v2901_v0, %v2902_v63  ;;  %v3624_v55 = vrot.slane %v3622_v23, 4  ;;  %v3627_v59 = vrot.slane %v3625_v58, 5  ;;  %v8179_v20 = vpop.f32.mrf.mxu1  ;;  %v9518_v60 = vld [vmem:[#allocation5_spill] sm:$0xff]  ;;  %v8185_v58 = vld [vmem:[%s6653_s8 + $0x98] sm:$0x1] }
  0xf9   : > { %v5783_v7 = vcombine.low %v3610_v38, %v3620_v36  ;;  %v3633_v12 = vrot.slane %v3631_v15, 5  ;;  %v3637_v61 = vrot.slane %v3635_v62, 4  ;;  %v3643_v52 = vrot.slane %v3641_v51, 5  ;;  %9517 = vst [vmem:[#allocation3_spill] sm:$0xff] %v8179_v20  ;;  %9519 = vst [vmem:[#allocation4_spill] sm:$0xff] %v8185_v58  ;;  %v8188_v38 = vpop.f32.mrf.mxu0 }
  0xfa   : > { %v5675_v0 = vrot.slane %v5659_v44, 9  ;;  %v3628_v63 = vor.u32 %v3627_v59, %v3624_v55  ;;  %v2906_v23 = vrot.slane %v7561_v14, 5  ;;  %v2909_v53 = vrot.slane %v9518_v60, 5  ;;  %v5660_v59 = vld [vmem:[%s6653_s8 + $0x90] sm:$0xe] }
  0xfb   : > { %v3646_v15 = vshrl.u32 %v8171_v6, 16  ;;  %v3638_v62 = vor.u32 %v3637_v61, %v3633_v12  ;;  %v3649_v51 = vshll.u32 %v8171_v6, 16  ;;  %v3655_v44 = vshll.u32 %v8175_v17, 16  ;;  %v8201_v22 = vpop.f32.mrf.mxu1 }
  0xfc   : > { %6378 = vmatmul.mubr.msk.bf16.gmra.mxu0 %vm757_vm2, %v5782_v56  ;;  %v3659_v56 = vshrl.u32 %v8175_v17, 16  ;;  %v3629_v14 = vrot.slane %v3628_v63, 4  ;;  %v2907_v36 = vsel %vm6985_vm6, %v5675_v0, %v2906_v23  ;;  %v2908_v55 = vrot.slane %v2906_v23, 4  ;;  %9521 = vst [vmem:[#allocation6_spill] sm:$0xff] %v8201_v22 }
  0xfd   : > { %6381 = vmatprep.mubr.msk.bf16.mxu0 %vm757_vm2, %v5783_v7  ;;  %v3648_v60 = vrot.slane %v3646_v15, 4  ;;  %v9520_v35 = vcombine.low %v8062_v29, %v8078_v16  ;;  %v3639_v7 = vrot.slane %v3638_v62, 4  ;;  %v3651_v61 = vrot.slane %v3649_v51, 5  ;;  %v8210_v16 = vld [vmem:[%s6653_s8 + $0x9c] sm:$0xf] }
  0xfe   : > { %v3657_v20 = vrot.slane %v3655_v44, 5  ;;  %v3661_v10 = vrot.slane %v3659_v56, 4  ;;  %v3634_v63 = vsel %vm6694_vm3, %v3629_v14, %v3633_v12  ;;  %v2910_v0 = vsel %vm6985_vm6, %v2908_v55, %v2909_v53  ;;  %9522 = vst [vmem:[#allocation5_spill] sm:$0xff] %v8210_v16  ;;  %v8217_v44 = vld [vmem:[%s6653_s8 + $0xa0] sm:$0xf] }
  0xff   : > { %6342 = vmatmul.mubr.msk.bf16.gmra.mxu1 %vm757_vm2, %v9520_v35  ;;  %v3665_v23 = vshll.u32 %v8185_v58, 16  ;;  %v5676_v29 = vrot.slane %v5660_v59, 9  ;;  %v8212_v35 = vpop.f32.mrf.mxu0  ;;  %v3644_v15 = vsel %vm6694_vm3, %v3639_v7, %v3643_v52  ;;  %v5695_v62 = vcombine.low %v2907_v36, %v2910_v0  ;;  %9523 = vst [vmem:[#allocation15_spill] sm:$0xff] %v8217_v44  ;;  %v9524_v14 = vld [vmem:[#allocation7_spill] sm:$0xff]  ;;  %v8223_v52 = vpop.f32.mrf.mxu1 }
 0x100   : > { %6345 = vmatprep.mubr.msk.bf16.mxu1 %vm757_vm2, %v5693_v13  ;;  %v3652_v51 = vor.u32 %v3651_v61, %v3648_v60  ;;  %v3662_v13 = vor.u32 %v3661_v10, %v3657_v20  ;;  %v5784_v12 = vcombine.low %v3634_v63, %v3644_v15  ;;  %v2913_v53 = vrot.slane %v7600_v57, 5  ;;  %9525 = vst [vmem:[#allocation7_spill] sm:$0xff] %v8223_v52  ;;  %v8229_v60 = vld [vmem:[%s6653_s8 + $0xa4] sm:$0x1] }
 0x101   : > { %v3667_v56 = vrot.slane %v3665_v23, 5  ;;  %v2916_v55 = vrot.slane %v9524_v14, 5  ;;  %v3670_v58 = vshrl.u32 %v8210_v16, 16  ;;  %v3673_v6 = vshll.u32 %v8210_v16, 16  ;;  %9526 = vst [vmem:[#allocation16_spill] sm:$0xff] %v8229_v60  ;;  %v8233_v61 = vpop.f32.mrf.mxu0  ;;  %v9537_v16 = vld [vmem:[#allocation8_spill] sm:$0xff] }
 0x102   : > { %v3653_v59 = vrot.slane %v3652_v51, 4  ;;  %v3663_v22 = vrot.slane %v3662_v13, 4  ;;  %v2914_v10 = vsel %vm6985_vm6, %v5676_v29, %v2913_v53  ;;  %v2915_v36 = vrot.slane %v2913_v53, 4  ;;  %v5661_v51 = vld [vmem:[%s6653_s8 + $0x9c] sm:$0xe] }
 0x103   : > { %v3679_v57 = vshll.u32 %v8217_v44, 16  ;;  %v3683_v7 = vshrl.u32 %v8217_v44, 16  ;;  %v3672_v23 = vrot.slane %v3670_v58, 4  ;;  %v3675_v15 = vrot.slane %v3673_v6, 5  ;;  %v8243_v14 = vld [vmem:[%s6653_s8 + $0xa8] sm:$0xf] }
 0x104   : > { %6382 = vmatmul.mubr.msk.bf16.gmra.mxu0 %vm757_vm2, %v5784_v12  ;;  %v3658_v63 = vsel %vm6694_vm3, %v3653_v59, %v3657_v20  ;;  %v3668_v0 = vsel %vm6694_vm3, %v3663_v22, %v3667_v56  ;;  %v2917_v13 = vsel %vm6985_vm6, %v2915_v36, %v2916_v55  ;;  %9527 = vst [vmem:[#allocation17_spill] sm:$0xff] %v8243_v14  ;;  %v3689_v6 = vshll.u32 %v8229_v60, 16  ;;  %v8251_v56 = vpop.f32.mrf.mxu1  ;;  %v8254_v59 = vld [vmem:[%s6653_s8 + $0xac] sm:$0xf]  ;;  %v8258_v36 = vpop.f32.mrf.mxu0  ;;  %v6551_v60 = vld [vmem:[%s6653_s8 + $0xbc] sm:$0x1] }
 0x105   : > { %v5785_v29 = vcombine.low %v3658_v63, %v3668_v0  ;;  %v3681_v12 = vrot.slane %v3679_v57, 5  ;;  %v3685_v53 = vrot.slane %v3683_v7, 4  ;;  %v9528_v52 = vcombine.low %v8144_v2, %v8168_v31  ;;  %9529 = vst [vmem:[#allocation18_spill] sm:$0xff] %v8251_v56  ;;  %9530 = vst [vmem:[#allocation19_spill] sm:$0xff] %v8254_v59  ;;  %v8263_v63 = vld [vmem:[%s6653_s8 + $0xb0] sm:$0x1] }
 0x106   : > { %v5696_v22 = vcombine.low %v2914_v10, %v2917_v13  ;;  %v3676_v58 = vor.u32 %v3675_v15, %v3672_v23  ;;  %v5677_v2 = vrot.slane %v5661_v51, 9  ;;  %v2920_v31 = vrot.slane %v7639_v45, 5  ;;  %v8272_v13 = vpop.f32.mrf.mxu1 }
 0x107   : > { %6346 = vmatmul.mubr.msk.bf16.gmra.mxu1 %vm757_vm2, %v9528_v52  ;;  %6385 = vmatprep.mubr.msk.bf16.mxu0 %vm757_vm2, %v5785_v29  ;;  %v3686_v55 = vor.u32 %v3685_v53, %v3681_v12  ;;  %v9531_v52 = vld [vmem:[#allocation9_spill] sm:$0xff]  ;;  %v3691_v7 = vrot.slane %v3689_v6, 5  ;;  %v3694_v0 = vshrl.u32 %v8243_v14, 16  ;;  %v3697_v23 = vshll.u32 %v8243_v14, 16  ;;  %9533 = vst [vmem:[#allocation20_spill] sm:$0xff] %v8272_v13 }
 0x108   : > { %6349 = vmatprep.mubr.msk.bf16.mxu1 %vm757_vm2, %v5695_v62  ;;  %v2923_v10 = vrot.slane %v9531_v52, 5  ;;  %v3677_v57 = vrot.slane %v3676_v58, 4  ;;  %9532 = vst [vmem:[#allocation9_spill] sm:$0xff] %v8263_v63  ;;  %v2921_v15 = vsel %vm6985_vm6, %v5677_v2, %v2920_v31  ;;  %v2922_v29 = vrot.slane %v2920_v31, 4  ;;  %v5662_v52 = vld [vmem:[%s6653_s8 + $0xa8] sm:$0xe]  ;;  %v8281_v56 = vpop.f32.mrf.mxu0 }
 0x109   : > { %v3687_v62 = vrot.slane %v3686_v55, 4  ;;  %v3703_v51 = vshll.u32 %v8254_v59, 16  ;;  %v3696_v53 = vrot.slane %v3694_v0, 4  ;;  %v3699_v58 = vrot.slane %v3697_v23, 5  ;;  %9534 = vst [vmem:[#allocation21_spill] sm:$0xff] %v8281_v56 }
 0x10a   : > { %v3682_v45 = vsel %vm6694_vm3, %v3677_v57, %v3681_v12  ;;  %v3707_v6 = vshrl.u32 %v8254_v59, 16  ;;  %v2924_v2 = vsel %vm6985_vm6, %v2922_v29, %v2923_v10  ;;  %v3713_v20 = vshll.u32 %v8263_v63, 16  ;;  %v8284_v12 = vld [vmem:[%s6653_s8 + $0xb4] sm:$0xf]  ;;  %v8287_v14 = vld [vmem:[%s6653_s8 + $0xb8] sm:$0xf] }
 0x10b   : > { %v3692_v55 = vsel %vm6694_vm3, %v3687_v62, %v3691_v7  ;;  %v3705_v31 = vrot.slane %v3703_v51, 5  ;;  %9535 = vst [vmem:[#allocation22_spill] sm:$0xff] %v8284_v12  ;;  %v5697_v0 = vcombine.low %v2921_v15, %v2924_v2  ;;  %v3700_v23 = vor.u32 %v3699_v58, %v3696_v53  ;;  %9536 = vst [vmem:[#allocation23_spill] sm:$0xff] %v8287_v14  ;;  %v6549_v7 = vld [vmem:[%s6653_s8 + $0xac] sm:$0xf] }
 0x10c   : > { %v5786_v57 = vcombine.low %v3682_v45, %v3692_v55  ;;  %v3709_v13 = vrot.slane %v3707_v6, 4  ;;  %v3715_v59 = vrot.slane %v3713_v20, 5  ;;  %v5678_v24 = vrot.slane %v5662_v52, 9  ;;  %v8296_v15 = vld [vmem:[%s6653_s8 + $0xbc] sm:$0x1] }
 0x10d   : > { %v2927_v62 = vrot.slane %v6549_v7, 5  ;;  %v2930_v10 = vrot.slane %v9537_v16, 5  ;;  %v3701_v29 = vrot.slane %v3700_v23, 4  ;;  %v8293_v63 = vpop.f32.mrf.mxu1  ;;  %9539 = vst [vmem:[#allocation24_spill] sm:$0xff] %v8296_v15  ;;  %v3718_v45 = vshrl.u32 %v8284_v12, 16 }
 0x10e   : > { %6386 = vmatmul.mubr.msk.bf16.gmra.mxu0 %vm757_vm2, %v5786_v57  ;;  %v3710_v51 = vor.u32 %v3709_v13, %v3705_v31  ;;  %9538 = vst [vmem:[#allocation8_spill] sm:$0xff] %v8293_v63  ;;  %v3721_v20 = vshll.u32 %v8284_v12, 16  ;;  %v3727_v53 = vshll.u32 %v8287_v14, 16  ;;  %v3731_v58 = vshrl.u32 %v8287_v14, 16  ;;  %v8305_v13 = vpop.f32.mrf.mxu0  ;;  %v5663_v57 = vld [vmem:[%s6653_s8 + $0xb4] sm:$0xe] }
 0x10f   : > { %6350 = vmatmul.mubr.msk.bf16.gmra.mxu1 %vm757_vm2, %v5696_v22  ;;  %v2928_v16 = vsel %vm6985_vm6, %v5678_v24, %v2927_v62  ;;  %v2929_v22 = vrot.slane %v2927_v62, 4  ;;  %9540 = vst [vmem:[#allocation25_spill] sm:$0xff] %v8305_v13  ;;  %v3706_v6 = vsel %vm6694_vm3, %v3701_v29, %v3705_v31  ;;  %v3720_v55 = vrot.slane %v3718_v45, 4  ;;  %v8314_v62 = vld [vmem:[%s6653_s8 + $0xc0] sm:$0xf]  ;;  %v8319_v45 = vpop.f32.mrf.mxu1 }
 0x110   : > { %6353 = vmatprep.mubr.msk.bf16.mxu1 %vm757_vm2, %v5697_v0  ;;  %v3711_v52 = vrot.slane %v3710_v51, 4  ;;  %v3723_v2 = vrot.slane %v3721_v20, 5  ;;  %v3729_v23 = vrot.slane %v3727_v53, 5  ;;  %v3733_v24 = vrot.slane %v3731_v58, 4  ;;  %9541 = vst [vmem:[#allocation26_spill] sm:$0xff] %v8314_v62  ;;  %9542 = vst [vmem:[#allocation27_spill] sm:$0xff] %v8319_v45  ;;  %v8324_v58 = vpop.f32.mrf.mxu0 }
 0x111   : > { %v2931_v0 = vsel %vm6985_vm6, %v2929_v22, %v2930_v10  ;;  %v3737_v7 = vshll.u32 %v8296_v15, 16  ;;  %v8322_v20 = vld [vmem:[%s6653_s8 + $0xc4] sm:$0xf]  ;;  %v5679_v12 = vrot.slane %v5663_v57, 9  ;;  %v6550_v13 = vld [vmem:[%s6653_s8 + $0xb8] sm:$0xf] }
 0x112   : > { %v3716_v31 = vsel %vm6694_vm3, %v3711_v52, %v3715_v59  ;;  %v5698_v29 = vcombine.low %v2928_v16, %v2931_v0  ;;  %v3724_v51 = vor.u32 %v3723_v2, %v3720_v55  ;;  %v3734_v22 = vor.u32 %v3733_v24, %v3729_v23  ;;  %v8329_v56 = vld [vmem:[%s6653_s8 + $0xc8] sm:$0x1]  ;;  %v5664_v2 = vld [vmem:[%s6653_s8 + $0xc0] sm:$0xe] }
 0x113   : > { %v5787_v10 = vcombine.low %v3706_v6, %v3716_v31  ;;  %v3739_v53 = vrot.slane %v3737_v7, 5  ;;  %v2934_v63 = vrot.slane %v6550_v13, 5  ;;  %v2937_v44 = vrot.slane %v6551_v60, 5  ;;  %9543 = vst [vmem:[#allocation28_spill] sm:$0xff] %v8329_v56  ;;  %v8340_v13 = vpop.f32.mrf.mxu1  ;;  %v8346_v31 = vpop.f32.mrf.mxu0 }
 0x114   : > { %v3725_v14 = vrot.slane %v3724_v51, 4  ;;  %v3742_v59 = vshrl.u32 %v8314_v62, 16  ;;  %v3735_v16 = vrot.slane %v3734_v22, 4  ;;  %v3745_v6 = vshll.u32 %v8314_v62, 16  ;;  %9544 = vst [vmem:[#allocation29_spill] sm:$0xff] %v8340_v13 }
 0x115   : > { %6389 = vmatprep.mubr.msk.bf16.mxu0 %vm757_vm2, %v5787_v10  ;;  %v3751_v52 = vshll.u32 %v8322_v20, 16  ;;  %v3755_v55 = vshrl.u32 %v8322_v20, 16  ;;  %v2935_v57 = vsel %vm6985_vm6, %v5679_v12, %v2934_v63  ;;  %v2936_v0 = vrot.slane %v2934_v63, 4  ;;  %v8349_v22 = vld [vmem:[%s6653_s8 + $0xcc] sm:$0xf] }
 0x116   : > { %v3730_v60 = vsel %vm6694_vm3, %v3725_v14, %v3729_v23  ;;  %v3744_v24 = vrot.slane %v3742_v59, 4  ;;  %v3740_v7 = vsel %vm6694_vm3, %v3735_v16, %v3739_v53  ;;  %v3747_v51 = vrot.slane %v3745_v6, 5  ;;  %9545 = vst [vmem:[#allocation30_spill] sm:$0xff] %v8349_v22  ;;  %v6552_v53 = vld [vmem:[%s6653_s8 + $0xc4] sm:$0xf]  ;;  %v8359_v6 = vpop.f32.mrf.mxu1 }
 0x117   : > { %6354 = vmatmul.mubr.msk.bf16.gmra.mxu1 %vm757_vm2, %v5698_v29  ;;  %v3753_v10 = vrot.slane %v3751_v52, 5  ;;  %v3757_v29 = vrot.slane %v3755_v55, 4  ;;  %v5788_v14 = vcombine.low %v3730_v60, %v3740_v7  ;;  %v2938_v12 = vsel %vm6985_vm6, %v2936_v0, %v2937_v44  ;;  %v8356_v62 = vld [vmem:[%s6653_s8 + $0xd0] sm:$0xf]  ;;  %9547 = vst [vmem:[#allocation32_spill] sm:$0xff] %v8359_v6 }
 0x118   : > { %v3761_v63 = vshll.u32 %v8329_v56, 16  ;;  %v5680_v23 = vrot.slane %v5664_v2, 9  ;;  %v5699_v59 = vcombine.low %v2935_v57, %v2938_v12  ;;  %v3748_v13 = vor.u32 %v3747_v51, %v3744_v24  ;;  %9546 = vst [vmem:[#allocation31_spill] sm:$0xff] %v8356_v62  ;;  %v6553_v55 = vld [vmem:[%s6653_s8 + $0xc8] sm:$0x1] }
 0x119   : > { %v3758_v45 = vor.u32 %v3757_v29, %v3753_v10  ;;  %v2941_v16 = vrot.slane %v6552_v53, 5  ;;  %6390 = vmatmul.mubr.msk.bf16.gmra.mxu0 %vm757_vm2, %v5788_v14  ;;  %v2944_v60 = vrot.slane %v6553_v55, 5  ;;  %v8363_v7 = vld [vmem:[%s6653_s8 + $0xd4] sm:$0x1]  ;;  %v3766_v44 = vshrl.u32 %v8349_v22, 16 }
 0x11a   : > { %v3763_v52 = vrot.slane %v3761_v63, 5  ;;  %v3769_v2 = vshll.u32 %v8349_v22, 16  ;;  %6357 = vmatprep.mubr.msk.bf16.mxu1 %vm757_vm2, %v5699_v59  ;;  %v3749_v57 = vrot.slane %v3748_v13, 4  ;;  %v8368_v24 = vpop.f32.mrf.mxu0  ;;  %v3775_v63 = vshll.u32 %v8356_v62, 16 }
 0x11b   : > { %v3759_v0 = vrot.slane %v3758_v45, 4  ;;  %v2942_v51 = vsel %vm6985_vm6, %v5680_v23, %v2941_v16  ;;  %v2943_v29 = vrot.slane %v2941_v16, 4  ;;  %v3768_v14 = vrot.slane %v3766_v44, 4  ;;  %v5843_v16 = vld [vmem:[%s6653_s8 + $0x18] sm:$0xe] }
 0x11c   : > { %v3771_v12 = vrot.slane %v3769_v2, 5  ;;  %v3779_v53 = vshrl.u32 %v8356_v62, 16  ;;  %v3754_v55 = vsel %vm6694_vm3, %v3749_v57, %v3753_v10  ;;  %v3785_v23 = vshll.u32 %v8363_v7, 16  ;;  %v8381_v59 = vpop.f32.mrf.mxu0  ;;  %v5844_v57 = vld [vmem:[%s6653_s8 + $0x24] sm:$0xe] }
 0x11d   : > { %v3764_v45 = vsel %vm6694_vm3, %v3759_v0, %v3763_v52  ;;  %v2945_v13 = vsel %vm6985_vm6, %v2943_v29, %v2944_v60  ;;  %9548 = vst [vmem:[#allocation33_spill] sm:$0xff] %v8381_v59  ;;  %v3777_v10 = vrot.slane %v3775_v63, 5  ;;  %v6554_v60 = vld [vmem:[%s6653_s8 + $0x18] sm:$0xf]  ;;  %v6555_v29 = vld [vmem:[%s6653_s8 + $0x1c] sm:$0xf] }
 0x11e   : > { %v5789_v44 = vcombine.low %v3754_v55, %v3764_v45  ;;  %v8384_v2 = vpop.f32.mrf.mxu1  ;;  %v5700_v6 = vcombine.low %v2942_v51, %v2945_v13  ;;  %v3772_v22 = vor.u32 %v3771_v12, %v3768_v14  ;;  %v3781_v0 = vrot.slane %v3779_v53, 4  ;;  %v8388_v56 = vpop.f32.mrf.mxu0  ;;  %v6556_v55 = vld [vmem:[%s6653_s8 + $0x20] sm:$0x1]  ;;  %v5845_v53 = vld [vmem:[%s6653_s8 + $0x30] sm:$0xe] }
 0x11f   : > { %9549 = vst [vmem:[#allocation34_spill] sm:$0xff] %v8384_v2  ;;  %v3787_v62 = vrot.slane %v3785_v23, 5  ;;  %v5809_v59 = vcombine.low %v6554_v60, %v6555_v29  ;;  %v5859_v12 = vrot.slane %v5843_v16, 9  ;;  %v4414_v63 = vrot.slane %v6555_v29, 5  ;;  %v6557_v60 = vld [vmem:[%s6653_s8 + $0x24] sm:$0xf] }
 0x120   : > { %6393 = vmatprep.mubr.msk.bf16.mxu0 %vm757_vm2, %v5789_v44  ;;  %6358 = vmatmul.mubr.msk.bf16.gmra.mxu1 %vm757_vm2, %v5700_v6  ;;  %v3773_v51 = vrot.slane %v3772_v22, 4  ;;  %v8394_v14 = vpop.f32.mrf.mxu1  ;;  %v4417_v45 = vrot.slane %v6556_v55, 5  ;;  %v3782_v13 = vor.u32 %v3781_v0, %v3777_v10  ;;  %v8398_v23 = vpop.f32.mrf.mxu0  ;;  %v6558_v52 = vld [vmem:[%s6653_s8 + $0x28] sm:$0xf]  ;;  %v5860_v2 = vrot.slane %v5844_v57, 9 }
 0x121   : > { %9550 = vst [vmem:[#allocation35_spill] sm:$0xff] %v8394_v14  ;;  %9551 = vst [vmem:[#allocation36_spill] sm:$0xff] %v8398_v23  ;;  %6401 = vmatprep.mubr.msk.bf16.mxu1 %vm757_vm2, %v5809_v59  ;;  %v5810_v44 = vcombine.low %v6557_v60, %v6558_v52  ;;  %v4415_v16 = vsel %vm6985_vm6, %v5859_v12, %v4414_v63  ;;  %v4416_v29 = vrot.slane %v4414_v63, 4  ;;  %v4421_v0 = vrot.slane %v6558_v52, 5  ;;  %v5846_v57 = vld [vmem:[%s6653_s8 + $0x3c] sm:$0xe] }
 0x122   : > { %v3778_v22 = vsel %vm6694_vm3, %v3773_v51, %v3777_v10  ;;  %v8405_v6 = vpop.f32.mrf.mxu1  ;;  %v3783_v55 = vrot.slane %v3782_v13, 4  ;;  %v6223_v14 = vpop.f32.mrf.mxu0  ;;  %v5811_v59 = vcombine.low %v7824_v3, %v7827_v33  ;;  %v5861_v23 = vrot.slane %v5845_v53, 9 }
 0x123   : > { %9552 = vst [vmem:[#allocation37_spill] sm:$0xff] %v8405_v6  ;;  %v4428_v60 = vrot.slane %v7827_v33, 5  ;;  %v4418_v10 = vsel %vm6985_vm6, %v4416_v29, %v4417_v45  ;;  %v8419_v51 = vsel %vm6985_vm6, %v5860_v2, %v4421_v0  ;;  %v4423_v52 = vrot.slane %v4421_v0, 4 }
 0x124   : > { %v8413_v15 = vpop.f32.mrf.mxu1  ;;  %v4431_v12 = vrot.slane %v7840_v39, 5  ;;  %v3788_v63 = vsel %vm6694_vm3, %v3783_v55, %v3787_v62  ;;  %v5879_v3 = vcombine.low %v4415_v16, %v4418_v10  ;;  %v1578_v53 = vpop.f32.mrf.mxu0  ;;  %v9554_v29 = vrot.slane %v7801_v42, 5 }
 0x125   : > { %9553 = vst [vmem:[#allocation38_spill] sm:$0xff] %v8413_v15  ;;  %v8426_v33 = vsel %vm6985_vm6, %v5861_v23, %v4428_v60  ;;  %v4430_v13 = vrot.slane %v4428_v60, 4  ;;  %v5847_v15 = vld [vmem:[%s6653_s8 + $0x48] sm:$0xe]  ;;  %v5790_v6 = vcombine.low %v3778_v22, %v3788_v63  ;;  %v5862_v39 = vrot.slane %v5846_v57, 9 }
 0x126   : > { %v6187_v45 = vpop.f32.mrf.mxu1  ;;  %v4425_v2 = vsel %vm6985_vm6, %v4423_v52, %v9554_v29  ;;  %v6224_v23 = vpop.f32.mrf.mxu0  ;;  %v4435_v22 = vrot.slane %v7867_v25, 5  ;;  %v5863_v55 = vrot.slane %v5847_v15, 9  ;;  %v4442_v60 = vrot.slane %v7918_v19, 5  ;;  %v5848_v57 = vld [vmem:[%s6653_s8 + $0x54] sm:$0xe] }
 0x127   : > { %v1150_v62 = vadd.f32 %v6187_v45, %v8069_v43  ;;  %v5880_v16 = vcombine.low %v8419_v51, %v4425_v2  ;;  %v8439_v0 = vsel %vm6985_vm6, %v4430_v13, %v4431_v12  ;;  %6394 = vmatmul.mubr.msk.bf16.gmra.mxu0 %vm757_vm2, %v5790_v6  ;;  %v5813_v43 = vcombine.low %v7909_v1, %v7918_v19  ;;  %v5850_v2 = vld [vmem:[%s6653_s8 + $0x6c] sm:$0xe] }
 0x128   : > { %6402 = vmatmul.mubr.msk.bf16.vlgmr.msra.gmra.mxu1 %vm757_vm2, %v5810_v44  ;;  %v1141_v42 = vpop.f32.mrf.mxu1  ;;  %v5881_v37 = vcombine.low %v8426_v33, %v8439_v0  ;;  %6437 = vmatprep.mubr.msk.bf16.mxu0 %vm757_vm2, %v5879_v3  ;;  %v1581_v6 = vpop.f32.mrf.mxu0  ;;  %v8455_v44 = vsel %vm6985_vm6, %v5862_v39, %v4435_v22  ;;  %v4437_v51 = vrot.slane %v4435_v22, 4  ;;  %v8459_v1 = vsel %vm6985_vm6, %v5863_v55, %v4442_v60 }
 0x129   : > { %v1707_v10 = vadd.f32 %v6223_v14, %v1150_v62  ;;  %v1142_v25 = vadd.f32 %v1141_v42, %v8107_v40  ;;  %6405 = vmatprep.mubr.msk.bf16.mxu1 %vm757_vm2, %v5811_v59  ;;  %v4444_v19 = vrot.slane %v4442_v60, 4  ;;  %v4445_v15 = vrot.slane %v7927_v48, 5  ;;  %v5849_v14 = vld [vmem:[%s6653_s8 + $0x60] sm:$0xe] }
 0x12a   : > { %v6188_v52 = vpop.f32.mrf.mxu1  ;;  %v5814_v40 = vcombine.low %v7945_v54, %v7958_v46  ;;  %v6227_v63 = vpop.f32.mrf.mxu0  ;;  %v9555_v3 = vrot.slane %v7880_v50, 5  ;;  %v5864_v13 = vrot.slane %v5848_v57, 9  ;;  %v5865_v22 = vrot.slane %v5849_v14, 9 }
 0x12b   : > { %1740 = vst.msk [vmem:[#allocation2 + $0x10] sm:$0xff] %vm1737_vm7, %v1707_v10  ;;  %v1705_v59 = vadd.f32 %v1578_v53, %v1142_v25  ;;  %v1153_v12 = vadd.f32 %v6188_v52, %v8129_v9  ;;  %v8477_v29 = vsel %vm6985_vm6, %v4444_v19, %v4445_v15  ;;  %v4449_v53 = vrot.slane %v7958_v46, 5  ;;  %v5851_v19 = vld [vmem:[%s6653_s8 + $0x78] sm:$0xe]  ;;  %v9563_v46 = vld [vmem:[#allocation25_spill] sm:$0xff] }
 0x12c   : > { %v8471_v33 = vsel %vm6985_vm6, %v4437_v51, %v9555_v3  ;;  %v1144_v45 = vpop.f32.mrf.mxu1  ;;  %v5815_v9 = vcombine.low %v7990_v11, %v7999_v8  ;;  %v1594_v62 = vpop.f32.mrf.mxu0  ;;  %v5883_v0 = vcombine.low %v8459_v1, %v8477_v29  ;;  %v4456_v57 = vrot.slane %v7999_v8, 5 }
 0x12d   : > { %v5882_v48 = vcombine.low %v8455_v44, %v8471_v33  ;;  %1738 = vst.msk [vmem:[#allocation2] sm:$0xff] %vm1737_vm7, %v1705_v59  ;;  %v1708_v50 = vadd.f32 %v6224_v23, %v1153_v12  ;;  %v1145_v39 = vadd.f32 %v1144_v45, %v8159_v34  ;;  %v8489_v55 = vsel %vm6985_vm6, %v5864_v13, %v4449_v53  ;;  %v5852_v13 = vld [vmem:[%s6653_s8 + $0x84] sm:$0xe]  ;;  %v9562_v44 = vld [vmem:[#allocation5_spill] sm:$0xff] }
 0x12e   : > { %v6191_v42 = vpop.f32.mrf.mxu1  ;;  %v4451_v60 = vrot.slane %v4449_v53, 4  ;;  %v4459_v10 = vrot.slane %v8006_v41, 5  ;;  %v6228_v25 = vpop.f32.mrf.mxu0  ;;  %v5816_v51 = vcombine.low %v8032_v26, %v8052_v5  ;;  %v5866_v52 = vrot.slane %v5850_v2, 9 }
 0x12f   : > { %1741 = vst.msk [vmem:[#allocation2 + $0x18] sm:$0xff] %vm1737_vm7, %v1708_v50  ;;  %v1706_v23 = vadd.f32 %v1581_v6, %v1145_v39  ;;  %v1166_v34 = vadd.f32 %v6191_v42, %v8188_v38  ;;  %6438 = vmatmul.mubr.msk.bf16.vlgmr.msra.gmra.mxu0 %vm757_vm2, %v5880_v16  ;;  %v9556_v14 = vrot.slane %v7965_v18, 5  ;;  %v8508_v38 = vsel %vm6985_vm6, %v5865_v22, %v4456_v57  ;;  %v5853_v42 = vld [vmem:[%s6653_s8 + $0x90] sm:$0xe] }
 0x130   : > { %6406 = vmatmul.mubr.msk.bf16.gmra.mxu1 %vm757_vm2, %v5812_v30  ;;  %v1157_v15 = vpop.f32.mrf.mxu1  ;;  %v4458_v6 = vrot.slane %v4456_v57, 4  ;;  %v4463_v59 = vrot.slane %v8052_v5, 5  ;;  %v4522_v12 = vrot.slane %v8363_v7, 5  ;;  %6441 = vmatprep.mubr.msk.bf16.mxu0 %vm757_vm2, %v5881_v37  ;;  %v1597_v16 = vpop.f32.mrf.mxu0  ;;  %v5817_v39 = vcombine.low %v8082_v21, %v8087_v47  ;;  %v9583_v7 = vld [vmem:[#allocation13_spill] sm:$0xff] }
 0x131   : > { %v8504_v41 = vsel %vm6985_vm6, %v4451_v60, %v9556_v14  ;;  %1739 = vst.msk [vmem:[#allocation2 + $0x8] sm:$0xff] %vm1737_vm7, %v1706_v23  ;;  %v1711_v30 = vadd.f32 %v6227_v63, %v1166_v34  ;;  %v1158_v18 = vadd.f32 %v1157_v15, %v8212_v35  ;;  %6409 = vmatprep.mubr.msk.bf16.mxu1 %vm757_vm2, %v5813_v43  ;;  %v5867_v63 = vrot.slane %v5851_v19, 9 }
 0x132   : > { %v5884_v3 = vcombine.low %v8489_v55, %v8504_v41  ;;  %v6192_v45 = vpop.f32.mrf.mxu1  ;;  %v8521_v53 = vsel %vm6985_vm6, %v4458_v6, %v4459_v10  ;;  %v8525_v2 = vsel %vm6985_vm6, %v5866_v52, %v4463_v59  ;;  %v4465_v37 = vrot.slane %v4463_v59, 4  ;;  %v6231_v50 = vpop.f32.mrf.mxu0  ;;  %v9574_v41 = vld [vmem:[#allocation33_spill] sm:$0xff] }
 0x133   : > { %1744 = vst.msk [vmem:[#allocation2 + $0x30] sm:$0xff] %vm1737_vm7, %v1711_v30  ;;  %v1709_v35 = vadd.f32 %v1594_v62, %v1158_v18  ;;  %v1169_v43 = vadd.f32 %v6192_v45, %v8233_v61  ;;  %v4470_v22 = vrot.slane %v8087_v47, 5  ;;  %v5885_v57 = vcombine.low %v8508_v38, %v8521_v53  ;;  %v9558_v30 = vld [vmem:[#allocation14_spill] sm:$0xff]  ;;  %v9559_v45 = vld [vmem:[#allocation21_spill] sm:$0xff] }
 0x134   : > { %v1160_v60 = vpop.f32.mrf.mxu1  ;;  %v9557_v10 = vrot.slane %v8056_v28, 5  ;;  %v5818_v61 = vcombine.low %v8127_v32, %v8137_v27  ;;  %v5868_v62 = vrot.slane %v5852_v13, 9  ;;  %v1610_v19 = vpop.f32.mrf.mxu0  ;;  %v4473_v28 = vrot.slane %v8104_v4, 5 }
 0x135   : > { %1742 = vst.msk [vmem:[#allocation2 + $0x20] sm:$0xff] %vm1737_vm7, %v1709_v35  ;;  %v1712_v34 = vadd.f32 %v6228_v25, %v1169_v43  ;;  %v1161_v52 = vadd.f32 %v1160_v60, %v8258_v36  ;;  %v4472_v6 = vrot.slane %v4470_v22, 4  ;;  %v4477_v59 = vrot.slane %v8137_v27, 5  ;;  %v9560_v43 = vld [vmem:[#allocation4_spill] sm:$0xff] }
 0x136   : > { %v8539_v23 = vsel %vm6985_vm6, %v4465_v37, %v9557_v10  ;;  %v6195_v14 = vpop.f32.mrf.mxu1  ;;  %v5819_v18 = vcombine.low %v9558_v30, %v8175_v17  ;;  %v5869_v13 = vrot.slane %v5853_v42, 9  ;;  %v6232_v36 = vpop.f32.mrf.mxu0  ;;  %v4484_v35 = vrot.slane %v8175_v17, 5  ;;  %v5854_v10 = vld [vmem:[%s6653_s8 + $0x9c] sm:$0xe] }
 0x137   : > { %v5886_v15 = vcombine.low %v8525_v2, %v8539_v23  ;;  %1745 = vst.msk [vmem:[#allocation2 + $0x38] sm:$0xff] %vm1737_vm7, %v1712_v34  ;;  %v1710_v25 = vadd.f32 %v1597_v16, %v1161_v52  ;;  %v1182_v37 = vadd.f32 %v6195_v14, %v9559_v45  ;;  %v4487_v60 = vrot.slane %v9560_v43, 5  ;;  %6442 = vmatmul.mubr.msk.bf16.gmra.mxu0 %vm757_vm2, %v5882_v48  ;;  %v9561_v52 = vld [vmem:[#allocation15_spill] sm:$0xff]  ;;  %v9567_v43 = vld [vmem:[#allocation17_spill] sm:$0xff]  ;;  %v9582_v2 = vld [vmem:[#allocation12_spill] sm:$0xff] }
 0x138   : > { %6410 = vmatmul.mubr.msk.bf16.gmra.mxu1 %vm757_vm2, %v5814_v40  ;;  %v1173_v4 = vpop.f32.mrf.mxu1  ;;  %v8566_v16 = vsel %vm6985_vm6, %v5867_v63, %v4470_v22  ;;  %v8570_v42 = vsel %vm6985_vm6, %v5868_v62, %v4477_v59  ;;  %v4479_v34 = vrot.slane %v4477_v59, 4  ;;  %v5820_v33 = vcombine.low %v9562_v44, %v9561_v52  ;;  %6445 = vmatprep.mubr.msk.bf16.mxu0 %vm757_vm2, %v5883_v0  ;;  %v1613_v48 = vpop.f32.mrf.mxu0  ;;  %v9564_v14 = vld [vmem:[#allocation11_spill] sm:$0xff] }
 0x139   : > { %1743 = vst.msk [vmem:[#allocation2 + $0x28] sm:$0xff] %vm1737_vm7, %v1710_v25  ;;  %v1715_v54 = vadd.f32 %v6231_v50, %v1182_v37  ;;  %v1174_v40 = vadd.f32 %v1173_v4, %v9563_v46  ;;  %6413 = vmatprep.mubr.msk.bf16.mxu1 %vm757_vm2, %v5815_v9  ;;  %v8586_v63 = vsel %vm6985_vm6, %v4472_v6, %v4473_v28  ;;  %v4486_v22 = vrot.slane %v4484_v35, 4  ;;  %v5855_v9 = vld [vmem:[%s6653_s8 + $0xa8] sm:$0xe]  ;;  %v9572_v37 = vld [vmem:[#allocation22_spill] sm:$0xff] }
 0x13a   : > { %v6196_v62 = vpop.f32.mrf.mxu1  ;;  %v9565_v1 = vrot.slane %v9564_v14, 5  ;;  %v8596_v0 = vsel %vm6985_vm6, %v5869_v13, %v4484_v35  ;;  %v5870_v11 = vrot.slane %v5854_v10, 9  ;;  %v4491_v8 = vrot.slane %v9561_v52, 5  ;;  %v6235_v6 = vpop.f32.mrf.mxu0  ;;  %v5856_v13 = vld [vmem:[%s6653_s8 + $0xb4] sm:$0xe]  ;;  %v9571_v10 = vld [vmem:[#allocation23_spill] sm:$0xff] }
 0x13b   : > { %1748 = vst.msk [vmem:[#allocation2 + $0x50] sm:$0xff] %vm1737_vm7, %v1715_v54  ;;  %v1713_v50 = vadd.f32 %v1610_v19, %v1174_v40  ;;  %v1185_v28 = vadd.f32 %v6196_v62, %v8324_v58  ;;  %v8606_v25 = vsel %vm6985_vm6, %v4486_v22, %v4487_v60  ;;  %v9566_v58 = vld [vmem:[#allocation19_spill] sm:$0xff]  ;;  %v5871_v54 = vrot.slane %v5855_v9, 9  ;;  %v9568_v62 = vld [vmem:[#allocation16_spill] sm:$0xff] }
 0x13c   : > { %v8592_v29 = vsel %vm6985_vm6, %v4479_v34, %v9565_v1  ;;  %v1176_v45 = vpop.f32.mrf.mxu1  ;;  %v8613_v35 = vsel %vm6985_vm6, %v5870_v11, %v4491_v8  ;;  %v4493_v19 = vrot.slane %v4491_v8, 4  ;;  %v1626_v60 = vpop.f32.mrf.mxu0  ;;  %v4498_v46 = vrot.slane %v9566_v58, 5  ;;  %v5857_v40 = vld [vmem:[%s6653_s8 + $0xc0] sm:$0xe]  ;;  %v9570_v11 = vld [vmem:[#allocation9_spill] sm:$0xff] }
 0x13d   : > { %v5888_v59 = vcombine.low %v8570_v42, %v8592_v29  ;;  %1746 = vst.msk [vmem:[#allocation2 + $0x40] sm:$0xff] %vm1737_vm7, %v1713_v50  ;;  %v1716_v4 = vadd.f32 %v6232_v36, %v1185_v28  ;;  %v1177_v34 = vadd.f32 %v1176_v45, %v8346_v31  ;;  %v9569_v14 = vrot.slane %v9568_v62, 5 }
 0x13e   : > { %v6199_v22 = vpop.f32.mrf.mxu1  ;;  %v4501_v8 = vrot.slane %v9570_v11, 5  ;;  %v5822_v50 = vcombine.low %v9572_v37, %v9571_v10  ;;  %v5872_v36 = vrot.slane %v5856_v13, 9  ;;  %v6236_v28 = vpop.f32.mrf.mxu0  ;;  %v8636_v62 = vsel %vm6985_vm6, %v5871_v54, %v4498_v46 }
 0x13f   : > { %v8625_v1 = vsel %vm6985_vm6, %v4493_v19, %v9569_v14  ;;  %1749 = vst.msk [vmem:[#allocation2 + $0x58] sm:$0xff] %vm1737_vm7, %v1716_v4  ;;  %v1714_v31 = vadd.f32 %v1613_v48, %v1177_v34  ;;  %v1198_v9 = vadd.f32 %v6199_v22, %v8368_v24  ;;  %6446 = vmatmul.mubr.msk.bf16.gmra.mxu0 %vm757_vm2, %v5884_v3  ;;  %v4500_v48 = vrot.slane %v4498_v46, 4  ;;  %v9573_v19 = vld [vmem:[#allocation26_spill] sm:$0xff]  ;;  %v9575_v3 = vld [vmem:[#allocation28_spill] sm:$0xff] }
 0x140   : > { %v5890_v45 = vcombine.low %v8613_v35, %v8625_v1  ;;  %6414 = vmatmul.mubr.msk.bf16.gmra.mxu1 %vm757_vm2, %v5816_v51  ;;  %v1189_v24 = vpop.f32.mrf.mxu1  ;;  %v4505_v13 = vrot.slane %v9571_v10, 5  ;;  %v5823_v4 = vcombine.low %v9573_v19, %v8322_v20  ;;  %v5873_v34 = vrot.slane %v5857_v40, 9  ;;  %6449 = vmatprep.mubr.msk.bf16.mxu0 %vm757_vm2, %v5885_v57  ;;  %v1629_v5 = vpop.f32.mrf.mxu0  ;;  %v5858_v46 = vld [vmem:[%s6653_s8 + $0xcc] sm:$0xe]  ;;  %v9577_v22 = vld [vmem:[#allocation30_spill] sm:$0xff]  ;;  %v9593_v10 = vld [vmem:[#allocation29_spill] sm:$0xff] }
 0x141   : > { %1747 = vst.msk [vmem:[#allocation2 + $0x48] sm:$0xff] %vm1737_vm7, %v1714_v31  ;;  %v1719_v55 = vadd.f32 %v6235_v6, %v1198_v9  ;;  %v1190_v26 = vadd.f32 %v1189_v24, %v9574_v41  ;;  %6417 = vmatprep.mubr.msk.bf16.mxu1 %vm757_vm2, %v5817_v39  ;;  %v4512_v51 = vrot.slane %v8322_v20, 5  ;;  %v4515_v54 = vrot.slane %v9575_v3, 5  ;;  %v9576_v6 = vld [vmem:[#allocation31_spill] sm:$0xff]  ;;  %v9595_v19 = vld [vmem:[#allocation34_spill] sm:$0xff] }
 0x142   : > { %v6200_v40 = vpop.f32.mrf.mxu1  ;;  %v8664_v38 = vsel %vm6985_vm6, %v4500_v48, %v4501_v8  ;;  %v8668_v53 = vsel %vm6985_vm6, %v5872_v36, %v4505_v13  ;;  %v4507_v57 = vrot.slane %v4505_v13, 4  ;;  %v5824_v21 = vcombine.low %v9577_v22, %v9576_v6  ;;  %v6239_v14 = vpop.f32.mrf.mxu0  ;;  %v9578_v36 = vld [vmem:[#allocation24_spill] sm:$0xff] }
 0x143   : > { %1752 = vst.msk [vmem:[#allocation2 + $0x70] sm:$0xff] %vm1737_vm7, %v1719_v55  ;;  %v1717_v47 = vadd.f32 %v1626_v60, %v1190_v26  ;;  %v1201_v39 = vadd.f32 %v6200_v40, %v8388_v56  ;;  %v5891_v11 = vcombine.low %v8636_v62, %v8664_v38  ;;  %v8678_v8 = vsel %vm6985_vm6, %v5873_v34, %v4512_v51  ;;  %v9580_v55 = vld [vmem:[#allocation36_spill] sm:$0xff] }
 0x144   : > { %v1192_v31 = vpop.f32.mrf.mxu1  ;;  %v9579_v9 = vrot.slane %v9578_v36, 5  ;;  %v4514_v48 = vrot.slane %v4512_v51, 4  ;;  %v5874_v13 = vrot.slane %v5858_v46, 9  ;;  %v4519_v60 = vrot.slane %v9576_v6, 5  ;;  %v1642_v26 = vpop.f32.mrf.mxu0  ;;  %v9594_v38 = vld [vmem:[#allocation32_spill] sm:$0xff] }
 0x145   : > { %1750 = vst.msk [vmem:[#allocation2 + $0x60] sm:$0xff] %vm1737_vm7, %v1717_v47  ;;  %v1720_v56 = vadd.f32 %v6236_v28, %v1201_v39  ;;  %v1193_v41 = vadd.f32 %v1192_v31, %v9580_v55  ;;  %v5887_v34 = vcombine.low %v8566_v16, %v8586_v63  ;;  %v9581_v47 = vld [vmem:[#allocation10_spill] sm:$0xff]  ;;  %v9588_v42 = vcombine.low %v9567_v43, %v9566_v58  ;;  %v9591_v43 = vld [vmem:[#allocation8_spill] sm:$0xff] }
 0x146   : > { %v8684_v24 = vsel %vm6985_vm6, %v4507_v57, %v9579_v9  ;;  %v6203_v40 = vpop.f32.mrf.mxu1  ;;  %v8695_v57 = vsel %vm6985_vm6, %v4514_v48, %v4515_v54  ;;  %v8699_v51 = vsel %vm6985_vm6, %v5874_v13, %v4519_v60  ;;  %v4521_v46 = vrot.slane %v4519_v60, 4  ;;  %v6240_v16 = vpop.f32.mrf.mxu0  ;;  %v9584_v9 = vld [vmem:[#allocation3_spill] sm:$0xff] }
 0x147   : > { %v5892_v3 = vcombine.low %v8668_v53, %v8684_v24  ;;  %1753 = vst.msk [vmem:[#allocation2 + $0x78] sm:$0xff] %vm1737_vm7, %v1720_v56  ;;  %v1718_v28 = vadd.f32 %v1629_v5, %v1193_v41  ;;  %v1214_v39 = vadd.f32 %v6203_v40, %v9581_v47  ;;  %v5893_v63 = vcombine.low %v8678_v8, %v8695_v57 }
 0x148   : > { %6450 = vmatmul.mubr.msk.bf16.gmra.mxu0 %vm757_vm2, %v5886_v15  ;;  %6418 = vmatmul.mubr.msk.bf16.gmra.mxu1 %vm757_vm2, %v5818_v61  ;;  %v1205_v54 = vpop.f32.mrf.mxu1  ;;  %v8717_v5 = vsel %vm6985_vm6, %v4521_v46, %v4522_v12  ;;  %v1645_v15 = vpop.f32.mrf.mxu0  ;;  %v9586_v41 = vcombine.low %v8596_v0, %v8606_v25  ;;  %v9590_v25 = vld [vmem:[#allocation20_spill] sm:$0xff] }
 0x149   : > { %1751 = vst.msk [vmem:[#allocation2 + $0x68] sm:$0xff] %vm1737_vm7, %v1718_v28  ;;  %6453 = vmatprep.mubr.msk.bf16.mxu0 %vm757_vm2, %v5887_v34  ;;  %v1723_v31 = vadd.f32 %v6239_v14, %v1214_v39  ;;  %v1206_v23 = vadd.f32 %v1205_v54, %v9582_v2  ;;  %6421 = vmatprep.mubr.msk.bf16.mxu1 %vm757_vm2, %v5819_v18  ;;  %v9585_v18 = vld [vmem:[#allocation6_spill] sm:$0xff] }
 0x14a   : > { %v5894_v32 = vcombine.low %v8699_v51, %v8717_v5  ;;  %v6204_v27 = vpop.f32.mrf.mxu1  ;;  %v6243_v61 = vpop.f32.mrf.mxu0 }
 0x14b   : > { %1756 = vst.msk [vmem:[#allocation2 + $0x90] sm:$0xff] %vm1737_vm7, %v1723_v31  ;;  %v1721_v49 = vadd.f32 %v1642_v26, %v1206_v23  ;;  %v1217_v12 = vadd.f32 %v6204_v27, %v9583_v7  ;;  %v9587_v26 = vld [vmem:[#allocation7_spill] sm:$0xff] }
 0x14c   : > { %v1208_v36 = vpop.f32.mrf.mxu1  ;;  %v1658_v13 = vpop.f32.mrf.mxu0 }
 0x14d   : > { %1754 = vst.msk [vmem:[#allocation2 + $0x80] sm:$0xff] %vm1737_vm7, %v1721_v49  ;;  %v1724_v14 = vadd.f32 %v6240_v16, %v1217_v12  ;;  %v1209_v48 = vadd.f32 %v1208_v36, %v9584_v9  ;;  %v9596_v9 = vld [vmem:[#allocation35_spill] sm:$0xff] }
 0x14e   : > { %v6207_v17 = vpop.f32.mrf.mxu1  ;;  %v6244_v56 = vpop.f32.mrf.mxu0 }
 0x14f   : > { %1757 = vst.msk [vmem:[#allocation2 + $0x98] sm:$0xff] %vm1737_vm7, %v1724_v14  ;;  %v1722_v30 = vadd.f32 %v1645_v15, %v1209_v48  ;;  %v1230_v60 = vadd.f32 %v6207_v17, %v9585_v18  ;;  %v9592_v15 = vld [vmem:[#allocation27_spill] sm:$0xff] }
 0x150   : > { %6454 = vmatmul.mubr.msk.bf16.gmra.mxu0 %vm757_vm2, %v5888_v59  ;;  %6422 = vmatmul.mubr.msk.bf16.gmra.mxu1 %vm757_vm2, %v5820_v33  ;;  %v1221_v55 = vpop.f32.mrf.mxu1  ;;  %v1661_v46 = vpop.f32.mrf.mxu0  ;;  %v9589_v33 = vld [vmem:[#allocation18_spill] sm:$0xff] }
 0x151   : > { %1755 = vst.msk [vmem:[#allocation2 + $0x88] sm:$0xff] %vm1737_vm7, %v1722_v30  ;;  %6457 = vmatprep.mubr.msk.bf16.mxu0 %vm757_vm2, %v9586_v41  ;;  %v1727_v34 = vadd.f32 %v6243_v61, %v1230_v60  ;;  %v1222_v40 = vadd.f32 %v1221_v55, %v9587_v26  ;;  %6425 = vmatprep.mubr.msk.bf16.mxu1 %vm757_vm2, %v9588_v42  ;;  %v9598_v30 = vld [vmem:[#allocation38_spill] sm:$0xff] }
 0x152   : > { %v6208_v52 = vpop.f32.mrf.mxu1  ;;  %v6247_v59 = vpop.f32.mrf.mxu0 }
 0x153   : > { %1760 = vst.msk [vmem:[#allocation2 + $0xb0] sm:$0xff] %vm1737_vm7, %v1727_v34  ;;  %v1725_v44 = vadd.f32 %v1658_v13, %v1222_v40  ;;  %v1233_v29 = vadd.f32 %v6208_v52, %v9589_v33 }
 0x154   : > { %v1224_v28 = vpop.f32.mrf.mxu1  ;;  %v1674_v39 = vpop.f32.mrf.mxu0 }
 0x155   : > { %1758 = vst.msk [vmem:[#allocation2 + $0xa0] sm:$0xff] %vm1737_vm7, %v1725_v44  ;;  %v1728_v0 = vadd.f32 %v6244_v56, %v1233_v29  ;;  %v1225_v47 = vadd.f32 %v1224_v28, %v9590_v25 }
 0x156   : > { %v6211_v16 = vpop.f32.mrf.mxu1  ;;  %v6248_v31 = vpop.f32.mrf.mxu0 }
 0x157   : > { %1761 = vst.msk [vmem:[#allocation2 + $0xb8] sm:$0xff] %vm1737_vm7, %v1728_v0  ;;  %v1726_v58 = vadd.f32 %v1661_v46, %v1225_v47  ;;  %v1246_v54 = vadd.f32 %v6211_v16, %v9591_v43 }
 0x158   : > { %6458 = vmatmul.mubr.msk.bf16.gmra.mxu0 %vm757_vm2, %v5890_v45  ;;  %6426 = vmatmul.mubr.msk.bf16.gmra.mxu1 %vm757_vm2, %v5822_v50  ;;  %v1237_v2 = vpop.f32.mrf.mxu1  ;;  %v1677_v49 = vpop.f32.mrf.mxu0 }
 0x159   : > { %1759 = vst.msk [vmem:[#allocation2 + $0xa8] sm:$0xff] %vm1737_vm7, %v1726_v58  ;;  %6461 = vmatprep.mubr.msk.bf16.mxu0 %vm757_vm2, %v5891_v11  ;;  %v1731_v23 = vadd.f32 %v6247_v59, %v1246_v54  ;;  %v1238_v27 = vadd.f32 %v1237_v2, %v9592_v15  ;;  %6429 = vmatprep.mubr.msk.bf16.mxu1 %vm757_vm2, %v5823_v4 }
 0x15a   : > { %v6212_v37 = vpop.f32.mrf.mxu1  ;;  %v6251_v50 = vpop.f32.mrf.mxu0 }
 0x15b   : > { %1764 = vst.msk [vmem:[#allocation2 + $0xd0] sm:$0xff] %vm1737_vm7, %v1731_v23  ;;  %v1729_v35 = vadd.f32 %v1674_v39, %v1238_v27  ;;  %v1249_v1 = vadd.f32 %v6212_v37, %v9593_v10 }
 0x15c   : > { %v1240_v45 = vpop.f32.mrf.mxu1  ;;  %v1690_v7 = vpop.f32.mrf.mxu0 }
 0x15d   : > { %1762 = vst.msk [vmem:[#allocation2 + $0xc0] sm:$0xff] %vm1737_vm7, %v1729_v35  ;;  %v1732_v62 = vadd.f32 %v6248_v31, %v1249_v1  ;;  %v1241_v11 = vadd.f32 %v1240_v45, %v9594_v38 }
 0x15e   : > { %v6215_v12 = vpop.f32.mrf.mxu1  ;;  %v6252_v61 = vpop.f32.mrf.mxu0 }
 0x15f   : > { %1765 = vst.msk [vmem:[#allocation2 + $0xd8] sm:$0xff] %vm1737_vm7, %v1732_v62  ;;  %v1730_v20 = vadd.f32 %v1677_v49, %v1241_v11  ;;  %v1262_v4 = vadd.f32 %v6215_v12, %v9595_v19 }
 0x160   : > { %6462 = vmatmul.mubr.msk.bf16.gmra.mxu0 %vm757_vm2, %v5892_v3  ;;  %6430 = vmatmul.mubr.msk.bf16.gmra.mxu1 %vm757_vm2, %v5824_v21  ;;  %v1253_v36 = vpop.f32.mrf.mxu1  ;;  %v1693_v13 = vpop.f32.mrf.mxu0  ;;  %v9597_v3 = vld [vmem:[#allocation37_spill] sm:$0xff] }
 0x161   : > { %1763 = vst.msk [vmem:[#allocation2 + $0xc8] sm:$0xff] %vm1737_vm7, %v1730_v20  ;;  %6465 = vmatprep.mubr.msk.bf16.mxu0 %vm757_vm2, %v5893_v63  ;;  %v1735_v14 = vadd.f32 %v6251_v50, %v1262_v4  ;;  %v1254_v48 = vadd.f32 %v1253_v36, %v9596_v9 }
 0x162   : > { %v6216_v53 = vpop.f32.mrf.mxu1  ;;  %v8798_v22 = vpop.f32.mrf.mxu0 }
 0x163   : > { %1768 = vst.msk [vmem:[#allocation2 + $0xf0] sm:$0xff] %vm1737_vm7, %v1735_v14  ;;  %v1733_v24 = vadd.f32 %v1690_v7, %v1254_v48  ;;  %v1265_v6 = vadd.f32 %v6216_v53, %v9597_v3 }
 0x164   : > { %v1256_v21 = vpop.f32.mrf.mxu1  ;;  %v8802_v57 = vpop.f32.mrf.mxu0 }
 0x165   : > { %1766 = vst.msk [vmem:[#allocation2 + $0xe0] sm:$0xff] %vm1737_vm7, %v1733_v24  ;;  %v1736_v17 = vadd.f32 %v6252_v61, %v1265_v6  ;;  %v1257_v8 = vadd.f32 %v1256_v21, %v9598_v30 }
 0x166   : > { %v8804_v63 = vpop.f32.mrf.mxu1  ;;  %v8807_v60 = vpop.f32.mrf.mxu0 }
 0x167   : > { %1769 = vst.msk [vmem:[#allocation2 + $0xf8] sm:$0xff] %vm1737_vm7, %v1736_v17  ;;  %v1734_v18 = vadd.f32 %v1693_v13, %v1257_v8 }
 0x168   : > { %6466 = vmatmul.mubr.msk.bf16.gmra.mxu0 %vm757_vm2, %v5894_v32  ;;  %v8813_v56 = vpop.f32.mrf.mxu1  ;;  %v8816_v55 = vpop.f32.mrf.mxu0 }
 0x169   : > { %1767 = vst.msk [vmem:[#allocation2 + $0xe8] sm:$0xff] %vm1737_vm7, %v1734_v18 }
 0x16a   : > { %v8818_v41 = vpop.f32.mrf.mxu1 }
 0x16b   : > { %v8820_v34 = vpop.f32.mrf.mxu0 }
 0x16c   : > { %v8822_v26 = vpop.f32.mrf.mxu1 }
 0x16d   : > { %v8824_v40 = vpop.f32.mrf.mxu0 }
 0x16e   : > { %v8826_v46 = vpop.f32.mrf.mxu1 }
 0x16f   : > { %v8828_v42 = vpop.f32.mrf.mxu0 }
 0x170   : > { %v8830_v51 = vpop.f32.mrf.mxu1 }
 0x171   : > { %v8832_v5 = vpop.f32.mrf.mxu0 }
 0x172   : > { %v8834_v32 = vpop.f32.mrf.mxu1 }
 0x173   : > { %v8836_v52 = vpop.f32.mrf.mxu0 }
 0x174   : > { %v8838_v44 = vpop.f32.mrf.mxu1 }
 0x175   : > { %v8840_v33 = vpop.f32.mrf.mxu0 }
 0x176   : > { %v8842_v29 = vpop.f32.mrf.mxu1 }
 0x177   : > { %v8844_v59 = vpop.f32.mrf.mxu0 }
 0x178   : > { %v8846_v28 = vpop.f32.mrf.mxu1 }
 0x179   : > { %v8848_v0 = vpop.f32.mrf.mxu0 }
 0x17a   : > { %v8850_v25 = vpop.f32.mrf.mxu1 }
 0x17b   : > { %v8852_v47 = vpop.f32.mrf.mxu0 }
 0x17c   : > { %v8854_v39 = vpop.f32.mrf.mxu1 }
 0x17d   : > { %v8856_v16 = vpop.f32.mrf.mxu0 }
 0x17e   : > { %v8858_v58 = vpop.f32.mrf.mxu1 }
 0x17f   : > { %v8860_v43 = vpop.f32.mrf.mxu0 }
 0x180   : > { %v8862_v54 = vpop.f32.mrf.mxu1 }
 0x181   : > { %v8864_v31 = vpop.f32.mrf.mxu0 }
 0x182   : > { %v8866_v2 = vpop.f32.mrf.mxu1 }
 0x184   : > { %v8868_v23 = vpop.f32.mrf.mxu0  ;;  %v8870_v15 = vpop.f32.mrf.mxu1 }
 0x186   : > { %v8872_v27 = vpop.f32.mrf.mxu0  ;;  %v8874_v49 = vpop.f32.mrf.mxu1 }
 0x188   : > { %v8876_v37 = vpop.f32.mrf.mxu0  ;;  %v8878_v35 = vpop.f32.mrf.mxu1 }
 0x18a   : > { %v8880_v10 = vpop.f32.mrf.mxu0  ;;  %v8882_v1 = vpop.f32.mrf.mxu1 }
 0x18c   : > { %v8884_v50 = vpop.f32.mrf.mxu0  ;;  %v8886_v45 = vpop.f32.mrf.mxu1 }
 0x18e   : > { %v8888_v62 = vpop.f32.mrf.mxu0  ;;  %v8890_v38 = vpop.f32.mrf.mxu1 }
 0x190   : > { %v8892_v11 = vpop.f32.mrf.mxu0  ;;  %v8894_v7 = vpop.f32.mrf.mxu1 }
 0x192   : > { %v8896_v12 = vpop.f32.mrf.mxu0  ;;  %v8898_v20 = vpop.f32.mrf.mxu1 }
 0x194   : > { %v8900_v19 = vpop.f32.mrf.mxu0  ;;  %v8902_v4 = vpop.f32.mrf.mxu1 }
 0x196   : > { %v8904_v61 = vpop.f32.mrf.mxu0  ;;  %v8906_v36 = vpop.f32.mrf.mxu1 }
 0x197   : > { %9599 = vst [vmem:[#allocation14_spill] sm:$0xff] %v8904_v61  ;;  %v3252_v61 = vld [vmem:[#allocation2] sm:$0xff] }
 0x198   : > { %v8908_v14 = vpop.f32.mrf.mxu0  ;;  %v8910_v9 = vpop.f32.mrf.mxu1 }
 0x199   : > { %9600 = vst [vmem:[#allocation21_spill] sm:$0xff] %v8908_v14 }
 0x19a   : > { %v8912_v48 = vpop.f32.mrf.mxu0  ;;  %v8914_v13 = vpop.f32.mrf.mxu1 }
 0x19b   : > { %9601 = vst [vmem:[#allocation4_spill] sm:$0xff] %v8912_v48  ;;  %9602 = vst [vmem:[#allocation15_spill] sm:$0xff] %v8914_v13 }
 0x19c   : > { %v8916_v53 = vpop.f32.mrf.mxu0  ;;  %v8918_v24 = vpop.f32.mrf.mxu1 }
 0x19d   : > { %9603 = vst [vmem:[#allocation5_spill] sm:$0xff] %v8916_v53  ;;  %9604 = vst [vmem:[#allocation25_spill] sm:$0xff] %v8918_v24  ;;  %v2668_v53 = vadd.f32 %v8798_v22, %v8804_v63  ;;  %v2663_v63 = vadd.f32 %v8816_v55, %v8822_v26  ;;  %v2676_v55 = vadd.f32 %v8824_v40, %v8830_v51 }
 0x19e   : > { %v8920_v3 = vpop.f32.mrf.mxu0  ;;  %v8922_v6 = vpop.f32.mrf.mxu1  ;;  %v2679_v40 = vadd.f32 %v8832_v5, %v8838_v44  ;;  %v2692_v5 = vadd.f32 %v8840_v33, %v8846_v28  ;;  %v2695_v33 = vadd.f32 %v8848_v0, %v8854_v39  ;;  %v2708_v0 = vadd.f32 %v8856_v16, %v8862_v54 }
 0x19f   : > { %9605 = vst [vmem:[#allocation11_spill] sm:$0xff] %v8920_v3  ;;  %9606 = vst [vmem:[#allocation19_spill] sm:$0xff] %v8922_v6  ;;  %v2660_v6 = vadd.f32 %v8802_v57, %v8813_v56  ;;  %v2711_v16 = vadd.f32 %v8864_v31, %v8870_v15  ;;  %v2724_v31 = vadd.f32 %v8872_v27, %v8878_v35 }
 0x1a0   : > { %v8924_v21 = vpop.f32.mrf.mxu0  ;;  %v8926_v17 = vpop.f32.mrf.mxu1  ;;  %v2727_v27 = vadd.f32 %v8880_v10, %v8886_v45  ;;  %v2740_v10 = vadd.f32 %v8888_v62, %v8894_v7  ;;  %v2743_v62 = vadd.f32 %v8896_v12, %v8902_v4 }
 0x1a1   : > { %9607 = vst [vmem:[#allocation17_spill] sm:$0xff] %v8924_v21  ;;  %9608 = vst [vmem:[#allocation16_spill] sm:$0xff] %v8926_v17  ;;  %v3254_v17 = vld [vmem:[#allocation2 + $0x10] sm:$0xff] }
 0x1a2   : > { %v8928_v30 = vpop.f32.mrf.mxu0  ;;  %v8930_v8 = vpop.f32.mrf.mxu1 }
 0x1a3   : > { %9609 = vst [vmem:[#allocation9_spill] sm:$0xff] %v8928_v30  ;;  %9610 = vst [vmem:[#allocation23_spill] sm:$0xff] %v8930_v8  ;;  %v2671_v8 = vadd.f32 %v8807_v60, %v8818_v41  ;;  %v2684_v60 = vadd.f32 %v8820_v34, %v8826_v46  ;;  %v2687_v34 = vadd.f32 %v8828_v42, %v8834_v32 }
 0x1a4   : > { %v8932_v18 = vpop.f32.mrf.mxu0  ;;  %v8934_v48 = vpop.f32.mrf.mxu1  ;;  %v2700_v42 = vadd.f32 %v8836_v52, %v8842_v29  ;;  %v2703_v52 = vadd.f32 %v8844_v59, %v8850_v25  ;;  %v2716_v59 = vadd.f32 %v8852_v47, %v8858_v58  ;;  %v2719_v47 = vadd.f32 %v8860_v43, %v8866_v2 }
 0x1a5   : > { %9611 = vst [vmem:[#allocation22_spill] sm:$0xff] %v8932_v18  ;;  %9612 = vst [vmem:[#allocation26_spill] sm:$0xff] %v8934_v48  ;;  %v2732_v43 = vadd.f32 %v8868_v23, %v8874_v49  ;;  %v2735_v23 = vadd.f32 %v8876_v37, %v8882_v1  ;;  %v2748_v37 = vadd.f32 %v8884_v50, %v8890_v38 }
 0x1a6   : > { %v8938_v24 = vpop.f32.mrf.mxu0  ;;  %v2751_v50 = vadd.f32 %v8892_v11, %v8898_v20  ;;  %v2764_v11 = vadd.f32 %v8900_v19, %v8906_v36 }
 0x1a7   : > { %v6331_v3 = vpop.f32.mrf.mxu1 }
 0x1a8   : > { %v3222_v21 = vadd.f32 %v6331_v3, %v2668_v53  ;;  %v8942_v14 = vpop.f32.mrf.mxu0  ;;  %v3255_v3 = vld [vmem:[#allocation2 + $0x18] sm:$0xff] }
 0x1a9   : > { %9613 = vst [vmem:[#allocation33_spill] sm:$0xff] %v8942_v14  ;;  %v3093_v30 = vpop.f32.mrf.mxu1 }
 0x1aa   : > { %v3286_v18 = vadd.f32 %v3254_v17, %v3222_v21  ;;  %v3220_v13 = vadd.f32 %v3093_v30, %v2660_v6  ;;  %v8946_v48 = vpop.f32.mrf.mxu0  ;;  %v3253_v17 = vld [vmem:[#allocation2 + $0x8] sm:$0xff] }
 0x1ab   : > { %v6332_v22 = vpop.f32.mrf.mxu1 }
 0x1ac   : > { %3318 = vst.msk [vmem:[#allocation2 + $0x10] sm:$0xff] %vm1737_vm7, %v3286_v18  ;;  %v3284_v57 = vadd.f32 %v3252_v61, %v3220_v13  ;;  %v3223_v56 = vadd.f32 %v6332_v22, %v2671_v8  ;;  %v8951_v53 = vpop.f32.mrf.mxu0  ;;  %v3258_v8 = vld [vmem:[#allocation2 + $0x30] sm:$0xff] }
 0x1ad   : > { %v3096_v14 = vpop.f32.mrf.mxu1 }
 0x1ae   : > { %3316 = vst.msk [vmem:[#allocation2] sm:$0xff] %vm1737_vm7, %v3284_v57  ;;  %v3287_v41 = vadd.f32 %v3255_v3, %v3223_v56  ;;  %v3221_v6 = vadd.f32 %v3096_v14, %v2663_v63  ;;  %v8956_v21 = vpop.f32.mrf.mxu0  ;;  %v3256_v63 = vld [vmem:[#allocation2 + $0x20] sm:$0xff] }
 0x1af   : > { %v6335_v30 = vpop.f32.mrf.mxu1 }
 0x1b0   : > { %3319 = vst.msk [vmem:[#allocation2 + $0x18] sm:$0xff] %vm1737_vm7, %v3287_v41  ;;  %v3285_v26 = vadd.f32 %v3253_v17, %v3221_v6  ;;  %v3226_v61 = vadd.f32 %v6335_v30, %v2684_v60  ;;  %v8961_v13 = vpop.f32.mrf.mxu0  ;;  %v3259_v60 = vld [vmem:[#allocation2 + $0x38] sm:$0xff]  ;;  %v3257_v30 = vld [vmem:[#allocation2 + $0x28] sm:$0xff] }
 0x1b1   : > { %v3109_v18 = vpop.f32.mrf.mxu1 }
 0x1b2   : > { %3317 = vst.msk [vmem:[#allocation2 + $0x8] sm:$0xff] %vm1737_vm7, %v3285_v26  ;;  %v3290_v46 = vadd.f32 %v3258_v8, %v3226_v61  ;;  %v3224_v14 = vadd.f32 %v3109_v18, %v2676_v55  ;;  %v8966_v22 = vpop.f32.mrf.mxu0  ;;  %v3262_v8 = vld [vmem:[#allocation2 + $0x50] sm:$0xff] }
 0x1b3   : > { %v6336_v57 = vpop.f32.mrf.mxu1 }
 0x1b4   : > { %3322 = vst.msk [vmem:[#allocation2 + $0x30] sm:$0xff] %vm1737_vm7, %v3290_v46  ;;  %v3288_v51 = vadd.f32 %v3256_v63, %v3224_v14  ;;  %v3227_v56 = vadd.f32 %v6336_v57, %v2687_v34  ;;  %v8971_v3 = vpop.f32.mrf.mxu0  ;;  %v3260_v14 = vld [vmem:[#allocation2 + $0x40] sm:$0xff] }
 0x1b5   : > { %v3112_v41 = vpop.f32.mrf.mxu1 }
 0x1b6   : > { %3320 = vst.msk [vmem:[#allocation2 + $0x20] sm:$0xff] %vm1737_vm7, %v3288_v51  ;;  %v3291_v32 = vadd.f32 %v3259_v60, %v3227_v56  ;;  %v3225_v6 = vadd.f32 %v3112_v41, %v2679_v40  ;;  %v8976_v17 = vpop.f32.mrf.mxu0  ;;  %v3263_v51 = vld [vmem:[#allocation2 + $0x58] sm:$0xff] }
 0x1b7   : > { %v6339_v55 = vpop.f32.mrf.mxu1 }
 0x1b8   : > { %3323 = vst.msk [vmem:[#allocation2 + $0x38] sm:$0xff] %vm1737_vm7, %v3291_v32  ;;  %v3289_v44 = vadd.f32 %v3257_v30, %v3225_v6  ;;  %v3230_v26 = vadd.f32 %v6339_v55, %v2700_v42  ;;  %v8981_v61 = vpop.f32.mrf.mxu0  ;;  %v3261_v42 = vld [vmem:[#allocation2 + $0x48] sm:$0xff]  ;;  %v3266_v55 = vld [vmem:[#allocation2 + $0x70] sm:$0xff] }
 0x1b9   : > { %v3125_v18 = vpop.f32.mrf.mxu1 }
 0x1ba   : > { %3321 = vst.msk [vmem:[#allocation2 + $0x28] sm:$0xff] %vm1737_vm7, %v3289_v44  ;;  %v3294_v29 = vadd.f32 %v3262_v8, %v3230_v26  ;;  %v3228_v34 = vadd.f32 %v3125_v18, %v2692_v5  ;;  %v8986_v46 = vpop.f32.mrf.mxu0  ;;  %v3264_v8 = vld [vmem:[#allocation2 + $0x60] sm:$0xff] }
 0x1bb   : > { %v6340_v63 = vpop.f32.mrf.mxu1 }
 0x1bc   : > { %3326 = vst.msk [vmem:[#allocation2 + $0x50] sm:$0xff] %vm1737_vm7, %v3294_v29  ;;  %v3292_v28 = vadd.f32 %v3260_v14, %v3228_v34  ;;  %v3231_v57 = vadd.f32 %v6340_v63, %v2703_v52  ;;  %v8991_v40 = vpop.f32.mrf.mxu0  ;;  %v3267_v34 = vld [vmem:[#allocation2 + $0x78] sm:$0xff] }
 0x1bd   : > { %v3128_v56 = vpop.f32.mrf.mxu1 }
 0x1be   : > { %3324 = vst.msk [vmem:[#allocation2 + $0x40] sm:$0xff] %vm1737_vm7, %v3292_v28  ;;  %v3295_v25 = vadd.f32 %v3263_v51, %v3231_v57  ;;  %v3229_v60 = vadd.f32 %v3128_v56, %v2695_v33  ;;  %v8996_v41 = vpop.f32.mrf.mxu0  ;;  %v3265_v28 = vld [vmem:[#allocation2 + $0x68] sm:$0xff] }
 0x1bf   : > { %v6343_v32 = vpop.f32.mrf.mxu1 }
 0x1c0   : > { %3327 = vst.msk [vmem:[#allocation2 + $0x58] sm:$0xff] %vm1737_vm7, %v3295_v25  ;;  %v3293_v39 = vadd.f32 %v3261_v42, %v3229_v60  ;;  %v3234_v6 = vadd.f32 %v6343_v32, %v2716_v59  ;;  %v9001_v30 = vpop.f32.mrf.mxu0  ;;  %v3270_v59 = vld [vmem:[#allocation2 + $0x90] sm:$0xff]  ;;  %v3268_v42 = vld [vmem:[#allocation2 + $0x80] sm:$0xff] }
 0x1c1   : > { %v3141_v5 = vpop.f32.mrf.mxu1 }
 0x1c2   : > { %3325 = vst.msk [vmem:[#allocation2 + $0x48] sm:$0xff] %vm1737_vm7, %v3293_v39  ;;  %v3298_v58 = vadd.f32 %v3266_v55, %v3234_v6  ;;  %v3232_v44 = vadd.f32 %v3141_v5, %v2708_v0  ;;  %v9006_v26 = vpop.f32.mrf.mxu0  ;;  %v3271_v6 = vld [vmem:[#allocation2 + $0x98] sm:$0xff] }
 0x1c3   : > { %v6344_v18 = vpop.f32.mrf.mxu1 }
 0x1c4   : > { %3330 = vst.msk [vmem:[#allocation2 + $0x70] sm:$0xff] %vm1737_vm7, %v3298_v58  ;;  %v3296_v54 = vadd.f32 %v3264_v8, %v3232_v44  ;;  %v3235_v52 = vadd.f32 %v6344_v18, %v2719_v47  ;;  %v9011_v29 = vpop.f32.mrf.mxu0  ;;  %v3269_v47 = vld [vmem:[#allocation2 + $0x88] sm:$0xff]  ;;  %v3274_v18 = vld [vmem:[#allocation2 + $0xb0] sm:$0xff] }
 0x1c5   : > { %v3144_v14 = vpop.f32.mrf.mxu1 }
 0x1c6   : > { %3328 = vst.msk [vmem:[#allocation2 + $0x60] sm:$0xff] %vm1737_vm7, %v3296_v54  ;;  %v3299_v2 = vadd.f32 %v3267_v34, %v3235_v52  ;;  %v3233_v63 = vadd.f32 %v3144_v14, %v2711_v16  ;;  %v9016_v33 = vpop.f32.mrf.mxu0  ;;  %v3272_v34 = vld [vmem:[#allocation2 + $0xa0] sm:$0xff] }
 0x1c7   : > { %v6347_v57 = vpop.f32.mrf.mxu1 }
 0x1c8   : > { %3331 = vst.msk [vmem:[#allocation2 + $0x78] sm:$0xff] %vm1737_vm7, %v3299_v2  ;;  %v3297_v15 = vadd.f32 %v3265_v28, %v3233_v63  ;;  %v3238_v51 = vadd.f32 %v6347_v57, %v2732_v43  ;;  %v9021_v56 = vpop.f32.mrf.mxu0  ;;  %v3275_v63 = vld [vmem:[#allocation2 + $0xb8] sm:$0xff] }
 0x1c9   : > { %v3157_v25 = vpop.f32.mrf.mxu1 }
 0x1ca   : > { %3329 = vst.msk [vmem:[#allocation2 + $0x68] sm:$0xff] %vm1737_vm7, %v3297_v15  ;;  %v3302_v49 = vadd.f32 %v3270_v59, %v3238_v51  ;;  %v3236_v60 = vadd.f32 %v3157_v25, %v2724_v31  ;;  %v9026_v0 = vpop.f32.mrf.mxu0  ;;  %v3273_v31 = vld [vmem:[#allocation2 + $0xa8] sm:$0xff]  ;;  %v9614_v59 = vld [vmem:[#allocation14_spill] sm:$0xff] }
 0x1cb   : > { %v6348_v32 = vpop.f32.mrf.mxu1  ;;  %v2756_v12 = vadd.f32 %v9614_v59, %v8910_v9 }
 0x1cc   : > { %3334 = vst.msk [vmem:[#allocation2 + $0x90] sm:$0xff] %vm1737_vm7, %v3302_v49  ;;  %v3300_v35 = vadd.f32 %v3268_v42, %v3236_v60  ;;  %v3239_v39 = vadd.f32 %v6348_v32, %v2735_v23  ;;  %v3278_v23 = vld [vmem:[#allocation2 + $0xd0] sm:$0xff]  ;;  %v9615_v60 = vld [vmem:[#allocation15_spill] sm:$0xff] }
 0x1cd   : > { %v3160_v55 = vpop.f32.mrf.mxu1  ;;  %v9616_v42 = vld [vmem:[#allocation21_spill] sm:$0xff] }
 0x1ce   : > { %3332 = vst.msk [vmem:[#allocation2 + $0x80] sm:$0xff] %vm1737_vm7, %v3300_v35  ;;  %v3303_v1 = vadd.f32 %v3271_v6, %v3239_v39  ;;  %v3237_v5 = vadd.f32 %v3160_v55, %v2727_v27  ;;  %v9034_v44 = vpop.f32.mrf.mxu0  ;;  %v2767_v19 = vadd.f32 %v9616_v42, %v9615_v60  ;;  %v3276_v35 = vld [vmem:[#allocation2 + $0xc0] sm:$0xff]  ;;  %v9617_v6 = vld [vmem:[#allocation25_spill] sm:$0xff]  ;;  %v9618_v55 = vld [vmem:[#allocation4_spill] sm:$0xff] }
 0x1cf   : > { %v6351_v58 = vpop.f32.mrf.mxu1  ;;  %v2759_v9 = vadd.f32 %v9618_v55, %v9617_v6  ;;  %v3281_v6 = vld [vmem:[#allocation2 + $0xe8] sm:$0xff] }
 0x1d0   : > { %3335 = vst.msk [vmem:[#allocation2 + $0x98] sm:$0xff] %vm1737_vm7, %v3303_v1  ;;  %v3301_v45 = vadd.f32 %v3269_v47, %v3237_v5  ;;  %v3242_v8 = vadd.f32 %v6351_v58, %v2748_v37  ;;  %v9039_v54 = vpop.f32.mrf.mxu0  ;;  %v3279_v47 = vld [vmem:[#allocation2 + $0xd8] sm:$0xff] }
 0x1d1   : > { %v3173_v16 = vpop.f32.mrf.mxu1 }
 0x1d2   : > { %3333 = vst.msk [vmem:[#allocation2 + $0x88] sm:$0xff] %vm1737_vm7, %v3301_v45  ;;  %v3306_v38 = vadd.f32 %v3274_v18, %v3242_v8  ;;  %v3240_v52 = vadd.f32 %v3173_v16, %v2740_v10  ;;  %v9044_v43 = vpop.f32.mrf.mxu0  ;;  %v3277_v8 = vld [vmem:[#allocation2 + $0xc8] sm:$0xff]  ;;  %v9619_v18 = vld [vmem:[#allocation19_spill] sm:$0xff]  ;;  %v9620_v16 = vld [vmem:[#allocation5_spill] sm:$0xff] }
 0x1d3   : > { %v6352_v14 = vpop.f32.mrf.mxu1 }
 0x1d4   : > { %3338 = vst.msk [vmem:[#allocation2 + $0xb0] sm:$0xff] %vm1737_vm7, %v3306_v38  ;;  %v3304_v7 = vadd.f32 %v3272_v34, %v3240_v52  ;;  %v3243_v2 = vadd.f32 %v6352_v14, %v2751_v50  ;;  %v9052_v15 = vpop.f32.mrf.mxu0  ;;  %v2780_v50 = vadd.f32 %v9620_v16, %v9619_v18  ;;  %v9621_v14 = vld [vmem:[#allocation16_spill] sm:$0xff] }
 0x1d5   : > { %v3176_v28 = vpop.f32.mrf.mxu1 }
 0x1d6   : > { %3336 = vst.msk [vmem:[#allocation2 + $0xa0] sm:$0xff] %vm1737_vm7, %v3304_v7  ;;  %v3307_v20 = vadd.f32 %v3275_v63, %v3243_v2  ;;  %v3241_v57 = vadd.f32 %v3176_v28, %v2743_v62  ;;  %v9622_v62 = vld [vmem:[#allocation11_spill] sm:$0xff]  ;;  %v3282_v63 = vld [vmem:[#allocation2 + $0xf0] sm:$0xff] }
 0x1d7   : > { %v6355_v51 = vpop.f32.mrf.mxu1  ;;  %v2772_v7 = vadd.f32 %v9622_v62, %v9621_v14  ;;  %v9628_v14 = vld [vmem:[#allocation33_spill] sm:$0xff] }
 0x1d8   : > { %3339 = vst.msk [vmem:[#allocation2 + $0xb8] sm:$0xff] %vm1737_vm7, %v3307_v20  ;;  %v3305_v4 = vadd.f32 %v3273_v31, %v3241_v57  ;;  %v3246_v25 = vadd.f32 %v6355_v51, %v2764_v11  ;;  %v9623_v11 = vld [vmem:[#allocation23_spill] sm:$0xff]  ;;  %v9624_v20 = vld [vmem:[#allocation17_spill] sm:$0xff] }
 0x1d9   : > { %v3189_v49 = vpop.f32.mrf.mxu1  ;;  %v9060_v27 = vpop.f32.mrf.mxu0  ;;  %v2783_v57 = vadd.f32 %v9624_v20, %v9623_v11 }
 0x1da   : > { %3337 = vst.msk [vmem:[#allocation2 + $0xa8] sm:$0xff] %vm1737_vm7, %v3305_v4  ;;  %v3310_v36 = vadd.f32 %v3278_v23, %v3246_v25  ;;  %v3244_v32 = vadd.f32 %v3189_v49, %v2756_v12  ;;  %v3280_v12 = vld [vmem:[#allocation2 + $0xe0] sm:$0xff]  ;;  %v9625_v25 = vld [vmem:[#allocation26_spill] sm:$0xff]  ;;  %v9626_v23 = vld [vmem:[#allocation9_spill] sm:$0xff] }
 0x1db   : > { %v6356_v39 = vpop.f32.mrf.mxu1  ;;  %v9065_v5 = vpop.f32.mrf.mxu0  ;;  %v2775_v49 = vadd.f32 %v9626_v23, %v9625_v25  ;;  %v4833_v25 = vld [vmem:[#allocation2 + $0x18] sm:$0xff] }
 0x1dc   : > { %3342 = vst.msk [vmem:[#allocation2 + $0xd0] sm:$0xff] %vm1737_vm7, %v3310_v36  ;;  %v3308_v37 = vadd.f32 %v3276_v35, %v3244_v32  ;;  %v3247_v1 = vadd.f32 %v6356_v39, %v2767_v19  ;;  %v3283_v19 = vld [vmem:[#allocation2 + $0xf8] sm:$0xff] }
 0x1dd   : > { %v3192_v58 = vpop.f32.mrf.mxu1  ;;  %v9071_v52 = vpop.f32.mrf.mxu0 }
 0x1de   : > { %3340 = vst.msk [vmem:[#allocation2 + $0xc0] sm:$0xff] %vm1737_vm7, %v3308_v37  ;;  %v3311_v10 = vadd.f32 %v3279_v47, %v3247_v1  ;;  %v3245_v45 = vadd.f32 %v3192_v58, %v2759_v9 }
 0x1df   : > { %v9078_v59 = vpop.f32.mrf.mxu0 }
 0x1e0   : > { %3343 = vst.msk [vmem:[#allocation2 + $0xd8] sm:$0xff] %vm1737_vm7, %v3311_v10  ;;  %v3309_v38 = vadd.f32 %v3277_v8, %v3245_v45  ;;  %v6359_v34 = vpop.f32.mrf.mxu1  ;;  %v9627_v10 = vld [vmem:[#allocation22_spill] sm:$0xff] }
 0x1e1   : > { %v3250_v2 = vadd.f32 %v6359_v34, %v2780_v50 }
 0x1e2   : > { %3341 = vst.msk [vmem:[#allocation2 + $0xc8] sm:$0xff] %vm1737_vm7, %v3309_v38  ;;  %v3205_v28 = vpop.f32.mrf.mxu1 }
 0x1e3   : > { %v3314_v31 = vadd.f32 %v3282_v63, %v3250_v2  ;;  %v3248_v51 = vadd.f32 %v3205_v28, %v2772_v7  ;;  %v4832_v7 = vld [vmem:[#allocation2 + $0x10] sm:$0xff] }
 0x1e4   : > { %v6360_v4 = vpop.f32.mrf.mxu1 }
 0x1e5   : > { %3346 = vst.msk [vmem:[#allocation2 + $0xf0] sm:$0xff] %vm1737_vm7, %v3314_v31  ;;  %v3312_v60 = vadd.f32 %v3280_v12, %v3248_v51  ;;  %v3251_v42 = vadd.f32 %v6360_v4, %v2783_v57  ;;  %v4830_v57 = vld [vmem:[#allocation2] sm:$0xff] }
 0x1e6   : > { %v3208_v36 = vpop.f32.mrf.mxu1 }
 0x1e7   : > { %3344 = vst.msk [vmem:[#allocation2 + $0xe0] sm:$0xff] %vm1737_vm7, %v3312_v60  ;;  %v3315_v32 = vadd.f32 %v3283_v19, %v3251_v42  ;;  %v3249_v35 = vadd.f32 %v3208_v36, %v2775_v49  ;;  %v9084_v39 = vpop.f32.mrf.mxu0  ;;  %v4831_v36 = vld [vmem:[#allocation2 + $0x8] sm:$0xff] }
 0x1e8   : > { %v6403_v55 = vpop.f32.mrf.mxu1 }
 0x1e9   : > { %3347 = vst.msk [vmem:[#allocation2 + $0xf8] sm:$0xff] %vm1737_vm7, %v3315_v32  ;;  %v3313_v9 = vadd.f32 %v3281_v6, %v3249_v35  ;;  %v9087_v37 = vpop.f32.mrf.mxu0  ;;  %v4246_v45 = vadd.f32 %v6403_v55, %v9627_v10 }
 0x1ea   : > { %v4237_v1 = vpop.f32.mrf.mxu1 }
 0x1eb   : > { %3345 = vst.msk [vmem:[#allocation2 + $0xe8] sm:$0xff] %vm1737_vm7, %v3313_v9  ;;  %v9090_v47 = vpop.f32.mrf.mxu0  ;;  %v4238_v16 = vadd.f32 %v4237_v1, %v8938_v24  ;;  %v4836_v9 = vld [vmem:[#allocation2 + $0x30] sm:$0xff] }
 0x1ec   : > { %v6404_v58 = vpop.f32.mrf.mxu1 }
 0x1ed   : > { %v9093_v8 = vpop.f32.mrf.mxu0  ;;  %v4249_v62 = vadd.f32 %v6404_v58, %v9628_v14 }
 0x1ee   : > { %v4240_v18 = vpop.f32.mrf.mxu1 }
 0x1ef   : > { %v6439_v50 = vpop.f32.mrf.mxu0  ;;  %v4241_v20 = vadd.f32 %v4240_v18, %v8946_v48 }
 0x1f0   : > { %v6407_v38 = vpop.f32.mrf.mxu1  ;;  %v4800_v34 = vadd.f32 %v6439_v50, %v4246_v45 }
 0x1f1   : > { %v4671_v2 = vpop.f32.mrf.mxu0  ;;  %v4262_v24 = vadd.f32 %v6407_v38, %v8951_v53  ;;  %v9107_v53 = vld [vmem:[%s9380_s2] ss:$0 sm:$0xff] }
 0x1f2   : > { %v4253_v63 = vpop.f32.mrf.mxu1  ;;  %v4864_v28 = vadd.f32 %v4832_v7, %v4800_v34  ;;  %v4798_v11 = vadd.f32 %v4671_v2, %v4238_v16  ;;  %v9114_v16 = vld [vmem:[%s9381_s3] ss:$0 sm:$0xff]  ;;  %v4837_v2 = vld [vmem:[#allocation2 + $0x38] sm:$0xff] }
 0x1f3   : > { %v6440_v31 = vpop.f32.mrf.mxu0  ;;  %v4254_v19 = vadd.f32 %v4253_v63, %v8956_v21 }
 0x1f4   : > { %v6408_v51 = vpop.f32.mrf.mxu1  ;;  %4896 = vst.msk [vmem:[#allocation2 + $0x10] sm:$0xff] %vm1737_vm7, %v4864_v28  ;;  %v4862_v12 = vadd.f32 %v4830_v57, %v4798_v11  ;;  %v4801_v4 = vadd.f32 %v6440_v31, %v4249_v62 }
 0x1f5   : > { %v4674_v23 = vpop.f32.mrf.mxu0  ;;  %v4265_v55 = vadd.f32 %v6408_v51, %v8961_v13  ;;  %v4834_v13 = vld [vmem:[#allocation2 + $0x20] sm:$0xff] }
 0x1f6   : > { %v4256_v49 = vpop.f32.mrf.mxu1  ;;  %4894 = vst.msk [vmem:[#allocation2] sm:$0xff] %vm1737_vm7, %v4862_v12  ;;  %v4865_v60 = vadd.f32 %v4833_v25, %v4801_v4  ;;  %v4799_v42 = vadd.f32 %v4674_v23, %v4241_v20 }
 0x1f7   : > { %v6443_v48 = vpop.f32.mrf.mxu0  ;;  %v4257_v45 = vadd.f32 %v4256_v49, %v8966_v22  ;;  %v9121_v22 = vld [vmem:[%s9382_s4] ss:$0 sm:$0xff] }
 0x1f8   : > { %v6411_v32 = vpop.f32.mrf.mxu1  ;;  %4897 = vst.msk [vmem:[#allocation2 + $0x18] sm:$0xff] %vm1737_vm7, %v4865_v60  ;;  %v4863_v35 = vadd.f32 %v4831_v36, %v4799_v42  ;;  %v4804_v6 = vadd.f32 %v6443_v48, %v4262_v24  ;;  %v4835_v42 = vld [vmem:[#allocation2 + $0x28] sm:$0xff] }
 0x1f9   : > { %v4687_v1 = vpop.f32.mrf.mxu0  ;;  %v4278_v28 = vadd.f32 %v6411_v32, %v8971_v3 }
 0x1fa   : > { %v4269_v58 = vpop.f32.mrf.mxu1  ;;  %4895 = vst.msk [vmem:[#allocation2 + $0x8] sm:$0xff] %vm1737_vm7, %v4863_v35  ;;  %v4868_v21 = vadd.f32 %v4836_v9, %v4804_v6  ;;  %v4802_v10 = vadd.f32 %v4687_v1, %v4254_v19  ;;  %v4840_v1 = vld [vmem:[#allocation2 + $0x50] sm:$0xff] }
 0x1fb   : > { %v4928_v18 = vld [vmem:[#allocation2 + $0x10] sm:$0xff]  ;;  %v6444_v50 = vpop.f32.mrf.mxu0  ;;  %v4270_v24 = vadd.f32 %v4269_v58, %v8976_v17 }
 0x1fc   : > { %v6412_v38 = vpop.f32.mrf.mxu1  ;;  %v4967_v34 = vmul.f32 %v9107_v53, %v4928_v18  ;;  %4900 = vst.msk [vmem:[#allocation2 + $0x30] sm:$0xff] %vm1737_vm7, %v4868_v21  ;;  %v4866_v14 = vadd.f32 %v4834_v13, %v4802_v10  ;;  %v4805_v62 = vadd.f32 %v6444_v50, %v4265_v55 }
 0x1fd   : > { %v4926_v7 = vld [vmem:[#allocation2] sm:$0xff]  ;;  %v4690_v63 = vpop.f32.mrf.mxu0  ;;  %v4281_v25 = vadd.f32 %v6412_v38, %v8981_v61 }
 0x1fe   : > { %v4272_v11 = vpop.f32.mrf.mxu1  ;;  %v5006_v20 = vadd.f32 %v9114_v16, %v4967_v34  ;;  %v4965_v57 = vmul.f32 %v9107_v53, %v4926_v7  ;;  %4898 = vst.msk [vmem:[#allocation2 + $0x20] sm:$0xff] %vm1737_vm7, %v4866_v14  ;;  %v4869_v31 = vadd.f32 %v4837_v2, %v4805_v62  ;;  %v4803_v51 = vadd.f32 %v4690_v63, %v4257_v45  ;;  %v4838_v34 = vld [vmem:[#allocation2 + $0x40] sm:$0xff] }
 0x1ff   : > { %v4929_v12 = vld [vmem:[#allocation2 + $0x18] sm:$0xff]  ;;  %v6447_v4 = vpop.f32.mrf.mxu0  ;;  %v4273_v35 = vadd.f32 %v4272_v11, %v8986_v46 }
 0x200   : > { %v6415_v23 = vpop.f32.mrf.mxu1  ;;  %vm5038_vm9 = vcmp.gt.f32.partialorder %v5006_v20, 0.0  ;;  %v5077_v3 = vmul.f32 %v9121_v22, %v5006_v20  ;;  %v5004_v49 = vadd.f32 %v9114_v16, %v4965_v57  ;;  %v4968_v60 = vmul.f32 %v9107_v53, %v4929_v12  ;;  %4901 = vst.msk [vmem:[#allocation2 + $0x38] sm:$0xff] %vm1737_vm7, %v4869_v31 }
 0x201   : > { %v4927_v19 = vld [vmem:[#allocation2 + $0x8] sm:$0xff]  ;;  %v4867_v36 = vadd.f32 %v4835_v42, %v4803_v51  ;;  %v4808_v48 = vadd.f32 %v6447_v4, %v4278_v28  ;;  %v4703_v32 = vpop.f32.mrf.mxu0  ;;  %v4294_v17 = vadd.f32 %v6415_v23, %v8991_v40  ;;  %v4841_v51 = vld [vmem:[#allocation2 + $0x58] sm:$0xff] }
 0x202   : > { %v4285_v61 = vpop.f32.mrf.mxu1  ;;  %v5109_v6 = vsel %vm5038_vm9, %v5006_v20, %v5077_v3  ;;  %vm5036_vm10 = vcmp.gt.f32.partialorder %v5004_v49, 0.0  ;;  %v5075_v55 = vmul.f32 %v9121_v22, %v5004_v49  ;;  %v5007_v9 = vadd.f32 %v9114_v16, %v4968_v60 }
 0x203   : > { %v5953_v58 = vpack.c.bf16 %v5109_v6, %v5109_v6  ;;  %v4966_v21 = vmul.f32 %v9107_v53, %v4927_v19  ;;  %v4932_v46 = vld [vmem:[#allocation2 + $0x30] sm:$0xff]  ;;  %4899 = vst.msk [vmem:[#allocation2 + $0x28] sm:$0xff] %vm1737_vm7, %v4867_v36  ;;  %v4872_v40 = vadd.f32 %v4840_v1, %v4808_v48  ;;  %v4806_v10 = vadd.f32 %v4703_v32, %v4270_v24  ;;  %v6448_v45 = vpop.f32.mrf.mxu0  ;;  %v4839_v36 = vld [vmem:[#allocation2 + $0x48] sm:$0xff] }
 0x204   : > { %v6416_v18 = vpop.f32.mrf.mxu1  ;;  %v5107_v13 = vsel %vm5036_vm10, %v5004_v49, %v5075_v55  ;;  %vm5039_vm11 = vcmp.gt.f32.partialorder %v5007_v9, 0.0  ;;  %v5078_v50 = vmul.f32 %v9121_v22, %v5007_v9  ;;  %v4971_v38 = vmul.f32 %v9107_v53, %v4932_v46 }
 0x205   : > { %5270 = vst.msk [vmem:[%s9139_s28 + $0x8] sm:$0xf] %vm5267_vm8, %v5953_v58  ;;  %v5951_v14 = vpack.c.bf16 %v5107_v13, %v5107_v13  ;;  %v5005_v62 = vadd.f32 %v9114_v16, %v4966_v21  ;;  %v4930_v7 = vld [vmem:[#allocation2 + $0x20] sm:$0xff]  ;;  %v4870_v2 = vadd.f32 %v4838_v34, %v4806_v10  ;;  %v4809_v63 = vadd.f32 %v6448_v45, %v4281_v25  ;;  %v4706_v28 = vpop.f32.mrf.mxu0 }
 0x206   : > { %4904 = vst.msk [vmem:[#allocation2 + $0x50] sm:$0xff] %vm1737_vm7, %v4872_v40  ;;  %v4288_v11 = vpop.f32.mrf.mxu1  ;;  %v5110_v20 = vsel %vm5039_vm11, %v5007_v9, %v5078_v50  ;;  %v5010_v57 = vadd.f32 %v9114_v16, %v4971_v38  ;;  %v4969_v31 = vmul.f32 %v9107_v53, %v4930_v7  ;;  %v4807_v12 = vadd.f32 %v4706_v28, %v4273_v35  ;;  %v4844_v40 = vld [vmem:[#allocation2 + $0x70] sm:$0xff]  ;;  %v4842_v28 = vld [vmem:[#allocation2 + $0x60] sm:$0xff] }
 0x207   : > { %5268 = vst.msk [vmem:[%s9139_s28] sm:$0xf] %vm5267_vm8, %v5951_v14  ;;  %v5954_v4 = vpack.c.bf16 %v5110_v20, %v5110_v20  ;;  %vm5037_vm12 = vcmp.gt.f32.partialorder %v5005_v62, 0.0  ;;  %v5076_v24 = vmul.f32 %v9121_v22, %v5005_v62  ;;  %v4933_v23 = vld [vmem:[#allocation2 + $0x38] sm:$0xff]  ;;  %v4873_v25 = vadd.f32 %v4841_v51, %v4809_v63 }
 0x208   : > { %4902 = vst.msk [vmem:[#allocation2 + $0x40] sm:$0xff] %vm1737_vm7, %v4870_v2  ;;  %v6451_v3 = vpop.f32.mrf.mxu0  ;;  %v9157_v49 = vpop.f32.mrf.mxu1  ;;  %vm5042_vm13 = vcmp.gt.f32.partialorder %v5010_v57, 0.0  ;;  %v5081_v60 = vmul.f32 %v9121_v22, %v5010_v57  ;;  %v5008_v42 = vadd.f32 %v9114_v16, %v4969_v31  ;;  %v4972_v19 = vmul.f32 %v9107_v53, %v4933_v23  ;;  %v4843_v23 = vld [vmem:[#allocation2 + $0x68] sm:$0xff] }
 0x209   : > { %5271 = vst.msk [vmem:[%s9139_s28 + $0xc] sm:$0xf] %vm5267_vm8, %v5954_v4  ;;  %v5108_v48 = vsel %vm5037_vm12, %v5005_v62, %v5076_v24  ;;  %v4871_v32 = vadd.f32 %v4839_v36, %v4807_v12  ;;  %v4812_v35 = vadd.f32 %v6451_v3, %v4294_v17  ;;  %v4286_v6 = vadd.f32 %v4285_v61, %v8996_v41  ;;  %v4845_v24 = vld [vmem:[#allocation2 + $0x78] sm:$0xff] }
 0x20a   : > { %4905 = vst.msk [vmem:[#allocation2 + $0x58] sm:$0xff] %vm1737_vm7, %v4873_v25  ;;  %v4719_v55 = vpop.f32.mrf.mxu0  ;;  %v4301_v9 = vpop.f32.mrf.mxu1  ;;  %v5952_v1 = vpack.c.bf16 %v5108_v48, %v5108_v48  ;;  %v5113_v58 = vsel %vm5042_vm13, %v5010_v57, %v5081_v60  ;;  %vm5040_vm14 = vcmp.gt.f32.partialorder %v5008_v42, 0.0  ;;  %v5079_v21 = vmul.f32 %v9121_v22, %v5008_v42  ;;  %v4931_v46 = vld [vmem:[#allocation2 + $0x28] sm:$0xff] }
 0x20b   : > { %v5957_v10 = vpack.c.bf16 %v5113_v58, %v5113_v58  ;;  %v5011_v45 = vadd.f32 %v9114_v16, %v4972_v19  ;;  %v4970_v13 = vmul.f32 %v9107_v53, %v4931_v46  ;;  %4903 = vst.msk [vmem:[#allocation2 + $0x48] sm:$0xff] %vm1737_vm7, %v4871_v32  ;;  %v4876_v17 = vadd.f32 %v4844_v40, %v4812_v35 }
 0x20c   : > { %v6452_v41 = vpop.f32.mrf.mxu0  ;;  %v6420_v61 = vpop.f32.mrf.mxu1  ;;  %5269 = vst.msk [vmem:[%s9139_s28 + $0x4] sm:$0xf] %vm5267_vm8, %v5952_v1  ;;  %v5111_v50 = vsel %vm5040_vm14, %v5008_v42, %v5079_v21  ;;  %v4810_v34 = vadd.f32 %v4719_v55, %v4286_v6  ;;  %v4297_v14 = vadd.f32 %v6416_v18, %v9001_v30  ;;  %v4289_v62 = vadd.f32 %v4288_v11, %v9006_v26 }
 0x20d   : > { %v4936_v38 = vld [vmem:[#allocation2 + $0x50] sm:$0xff]  ;;  %5274 = vst.msk [vmem:[%s9139_s28 + $0x18] sm:$0xf] %vm5267_vm8, %v5957_v10  ;;  %v5955_v7 = vpack.c.bf16 %v5111_v50, %v5111_v50  ;;  %vm5043_vm15 = vcmp.gt.f32.partialorder %v5011_v45, 0.0  ;;  %v5082_v2 = vmul.f32 %v9121_v22, %v5011_v45  ;;  %v5009_v63 = vadd.f32 %v9114_v16, %v4970_v13 }
 0x20e   : > { %4908 = vst.msk [vmem:[#allocation2 + $0x70] sm:$0xff] %vm1737_vm7, %v4876_v17  ;;  %v4722_v20 = vpop.f32.mrf.mxu0  ;;  %v9179_v57 = vpop.f32.mrf.mxu1  ;;  %v4975_v31 = vmul.f32 %v9107_v53, %v4936_v38  ;;  %v4874_v18 = vadd.f32 %v4842_v28, %v4810_v34  ;;  %v4813_v51 = vadd.f32 %v6452_v41, %v4297_v14  ;;  %v4310_v55 = vadd.f32 %v9157_v49, %v9011_v29 }
 0x20f   : > { %v4934_v30 = vld [vmem:[#allocation2 + $0x40] sm:$0xff]  ;;  %v4811_v26 = vadd.f32 %v4722_v20, %v4289_v62  ;;  %5272 = vst.msk [vmem:[%s9139_s28 + $0x10] sm:$0xf] %vm5267_vm8, %v5955_v7  ;;  %v5114_v11 = vsel %vm5043_vm15, %v5011_v45, %v5082_v2  ;;  %vm5041_vm0 = vcmp.gt.f32.partialorder %v5009_v63, 0.0  ;;  %v5080_v12 = vmul.f32 %v9121_v22, %v5009_v63  ;;  %v4848_v7 = vld [vmem:[#allocation2 + $0x90] sm:$0xff] }
 0x210   : > { %v4973_v4 = vmul.f32 %v9107_v53, %v4934_v30  ;;  %v6455_v25 = vpop.f32.mrf.mxu0  ;;  %v9186_v3 = vpop.f32.mrf.mxu1  ;;  %v5958_v60 = vpack.c.bf16 %v5114_v11, %v5114_v11  ;;  %v5014_v42 = vadd.f32 %v9114_v16, %v4975_v31  ;;  %4906 = vst.msk [vmem:[#allocation2 + $0x60] sm:$0xff] %vm1737_vm7, %v4874_v18  ;;  %v4877_v36 = vadd.f32 %v4845_v24, %v4813_v51  ;;  %v4846_v18 = vld [vmem:[#allocation2 + $0x80] sm:$0xff] }
 0x211   : > { %v4937_v19 = vld [vmem:[#allocation2 + $0x58] sm:$0xff]  ;;  %v4875_v48 = vadd.f32 %v4843_v23, %v4811_v26  ;;  %v5112_v32 = vsel %vm5041_vm0, %v5009_v63, %v5080_v12  ;;  %v4302_v10 = vadd.f32 %v4301_v9, %v9016_v33  ;;  %v4816_v38 = vadd.f32 %v6455_v25, %v4310_v55 }
 0x212   : > { %v5012_v35 = vadd.f32 %v9114_v16, %v4973_v4  ;;  %v4976_v6 = vmul.f32 %v9107_v53, %v4937_v19  ;;  %v4735_v1 = vpop.f32.mrf.mxu0  ;;  %v9194_v58 = vpop.f32.mrf.mxu1  ;;  %5275 = vst.msk [vmem:[%s9139_s28 + $0x1c] sm:$0xf] %vm5267_vm8, %v5958_v60  ;;  %v5956_v21 = vpack.c.bf16 %v5112_v32, %v5112_v32  ;;  %vm5046_vm1 = vcmp.gt.f32.partialorder %v5014_v42, 0.0  ;;  %v4935_v40 = vld [vmem:[#allocation2 + $0x48] sm:$0xff]  ;;  %v4849_v60 = vld [vmem:[#allocation2 + $0x98] sm:$0xff] }
 0x213   : > { %v5085_v46 = vmul.f32 %v9121_v22, %v5014_v42  ;;  %4909 = vst.msk [vmem:[#allocation2 + $0x78] sm:$0xff] %vm1737_vm7, %v4877_v36  ;;  %4907 = vst.msk [vmem:[#allocation2 + $0x68] sm:$0xff] %vm1737_vm7, %v4875_v48  ;;  %v4974_v45 = vmul.f32 %v9107_v53, %v4935_v40  ;;  %v4814_v34 = vadd.f32 %v4735_v1, %v4302_v10 }
 0x214   : > { %vm5044_vm2 = vcmp.gt.f32.partialorder %v5012_v35, 0.0  ;;  %v5083_v29 = vmul.f32 %v9121_v22, %v5012_v35  ;;  %v5015_v49 = vadd.f32 %v9114_v16, %v4976_v6  ;;  %v6456_v13 = vpop.f32.mrf.mxu0  ;;  %v9205_v17 = vpop.f32.mrf.mxu1  ;;  %5273 = vst.msk [vmem:[%s9139_s28 + $0x14] sm:$0xf] %vm5267_vm8, %v5956_v21  ;;  %v4313_v14 = vadd.f32 %v6420_v61, %v9021_v56  ;;  %v4847_v21 = vld [vmem:[#allocation2 + $0x88] sm:$0xff] }
 0x215   : > { %v5117_v41 = vsel %vm5046_vm1, %v5014_v42, %v5085_v46  ;;  %v4940_v50 = vld [vmem:[#allocation2 + $0x70] sm:$0xff]  ;;  %v5013_v20 = vadd.f32 %v9114_v16, %v4974_v45  ;;  %v4880_v30 = vadd.f32 %v4848_v7, %v4816_v38  ;;  %v4878_v51 = vadd.f32 %v4846_v18, %v4814_v34 }
 0x216   : > { %v5961_v33 = vpack.c.bf16 %v5117_v41, %v5117_v41  ;;  %v5115_v9 = vsel %vm5044_vm2, %v5012_v35, %v5083_v29  ;;  %vm5047_vm3 = vcmp.gt.f32.partialorder %v5015_v49, 0.0  ;;  %v5086_v62 = vmul.f32 %v9121_v22, %v5015_v49  ;;  %v4738_v2 = vpop.f32.mrf.mxu0  ;;  %v9211_v63 = vpop.f32.mrf.mxu1 }
 0x217   : > { %v5959_v28 = vpack.c.bf16 %v5115_v9, %v5115_v9  ;;  %v4979_v31 = vmul.f32 %v9107_v53, %v4940_v50  ;;  %v4938_v61 = vld [vmem:[#allocation2 + $0x60] sm:$0xff]  ;;  %v4817_v26 = vadd.f32 %v6456_v13, %v4313_v14  ;;  %v4305_v11 = vadd.f32 %v9179_v57, %v9026_v0  ;;  %4912 = vst.msk [vmem:[#allocation2 + $0x90] sm:$0xff] %vm1737_vm7, %v4880_v30  ;;  %v4852_v14 = vld [vmem:[#allocation2 + $0xb0] sm:$0xff] }
 0x218   : > { %5278 = vst.msk [vmem:[%s9139_s28 + $0x28] sm:$0xf] %vm5267_vm8, %v5961_v33  ;;  %v5118_v56 = vsel %vm5047_vm3, %v5015_v49, %v5086_v62  ;;  %v6459_v12 = vpop.f32.mrf.mxu0  ;;  %v9219_v4 = vpop.f32.mrf.mxu1  ;;  %vm5045_vm4 = vcmp.gt.f32.partialorder %v5013_v20, 0.0  ;;  %v5084_v23 = vmul.f32 %v9121_v22, %v5013_v20  ;;  %v4977_v42 = vmul.f32 %v9107_v53, %v4938_v61 }
 0x219   : > { %5276 = vst.msk [vmem:[%s9139_s28 + $0x20] sm:$0xf] %vm5267_vm8, %v5959_v28  ;;  %v5962_v24 = vpack.c.bf16 %v5118_v56, %v5118_v56  ;;  %v5018_v25 = vadd.f32 %v9114_v16, %v4979_v31  ;;  %v4881_v0 = vadd.f32 %v4849_v60, %v4817_v26  ;;  %v4815_v57 = vadd.f32 %v4738_v2, %v4305_v11 }
 0x21a   : > { %v4941_v19 = vld [vmem:[#allocation2 + $0x78] sm:$0xff]  ;;  %v4939_v36 = vld [vmem:[#allocation2 + $0x68] sm:$0xff]  ;;  %4910 = vst.msk [vmem:[#allocation2 + $0x80] sm:$0xff] %vm1737_vm7, %v4878_v51  ;;  %v4326_v48 = vadd.f32 %v9186_v3, %v9034_v44  ;;  %v4751_v32 = vpop.f32.mrf.mxu0  ;;  %v9230_v35 = vpop.f32.mrf.mxu1  ;;  %v5116_v6 = vsel %vm5045_vm4, %v5013_v20, %v5084_v23  ;;  %v5016_v40 = vadd.f32 %v9114_v16, %v4977_v42  ;;  %v4318_v41 = vadd.f32 %v9194_v58, %v9039_v54  ;;  %v4850_v20 = vld [vmem:[#allocation2 + $0xa0] sm:$0xff] }
 0x21b   : > { %5279 = vst.msk [vmem:[%s9139_s28 + $0x2c] sm:$0xf] %vm5267_vm8, %v5962_v24  ;;  %vm5050_vm5 = vcmp.gt.f32.partialorder %v5018_v25, 0.0  ;;  %v5089_v55 = vmul.f32 %v9121_v22, %v5018_v25  ;;  %v4980_v1 = vmul.f32 %v9107_v53, %v4941_v19  ;;  %v5960_v46 = vpack.c.bf16 %v5116_v6, %v5116_v6  ;;  %v4853_v42 = vld [vmem:[#allocation2 + $0xb8] sm:$0xff] }
 0x21c   : > { %v4978_v10 = vmul.f32 %v9107_v53, %v4939_v36  ;;  %4913 = vst.msk [vmem:[#allocation2 + $0x98] sm:$0xff] %vm1737_vm7, %v4881_v0  ;;  %v4879_v44 = vadd.f32 %v4847_v21, %v4815_v57  ;;  %v6460_v3 = vpop.f32.mrf.mxu0  ;;  %v9239_v29 = vpop.f32.mrf.mxu1  ;;  %v4820_v13 = vadd.f32 %v6459_v12, %v4326_v48  ;;  %vm5048_vm6 = vcmp.gt.f32.partialorder %v5016_v40, 0.0 }
 0x21d   : > { %v5121_v49 = vsel %vm5050_vm5, %v5018_v25, %v5089_v55  ;;  %v5019_v45 = vadd.f32 %v9114_v16, %v4980_v1  ;;  %5277 = vst.msk [vmem:[%s9139_s28 + $0x24] sm:$0xf] %vm5267_vm8, %v5960_v46  ;;  %v5087_v38 = vmul.f32 %v9121_v22, %v5016_v40  ;;  %v4818_v7 = vadd.f32 %v4751_v32, %v4318_v41 }
 0x21e   : > { %v5965_v50 = vpack.c.bf16 %v5121_v49, %v5121_v49  ;;  %v5017_v34 = vadd.f32 %v9114_v16, %v4978_v10  ;;  %4911 = vst.msk [vmem:[#allocation2 + $0x88] sm:$0xff] %vm1737_vm7, %v4879_v44  ;;  %v4754_v33 = vpop.f32.mrf.mxu0  ;;  %v4884_v62 = vadd.f32 %v4852_v14, %v4820_v13  ;;  %v9250_v2 = vpop.f32.mrf.mxu1  ;;  %v4944_v28 = vld [vmem:[#allocation2 + $0x90] sm:$0xff]  ;;  %v4329_v31 = vadd.f32 %v9205_v17, %v9044_v43 }
 0x21f   : > { %vm5051_vm9 = vcmp.gt.f32.partialorder %v5019_v45, 0.0  ;;  %v5090_v9 = vmul.f32 %v9121_v22, %v5019_v45  ;;  %v5119_v54 = vsel %vm5048_vm6, %v5016_v40, %v5087_v38  ;;  %v4983_v61 = vmul.f32 %v9107_v53, %v4944_v28  ;;  %v4851_v40 = vld [vmem:[#allocation2 + $0xa8] sm:$0xff] }
 0x220   : > { %5282 = vst.msk [vmem:[%s9139_s28 + $0x38] sm:$0xf] %vm5267_vm8, %v5965_v50  ;;  %vm5049_vm10 = vcmp.gt.f32.partialorder %v5017_v34, 0.0  ;;  %v5088_v58 = vmul.f32 %v9121_v22, %v5017_v34  ;;  %v6463_v30 = vpop.f32.mrf.mxu0  ;;  %v5963_v18 = vpack.c.bf16 %v5119_v54, %v5119_v54  ;;  %v4882_v26 = vadd.f32 %v4850_v20, %v4818_v7  ;;  %v6431_v0 = vpop.f32.mrf.mxu1 }
 0x221   : > { %v5122_v56 = vsel %vm5051_vm9, %v5019_v45, %v5090_v9  ;;  %v4942_v51 = vld [vmem:[#allocation2 + $0x80] sm:$0xff]  ;;  %4916 = vst.msk [vmem:[#allocation2 + $0xb0] sm:$0xff] %vm1737_vm7, %v4884_v62  ;;  %v4821_v23 = vadd.f32 %v6460_v3, %v4329_v31  ;;  %v5022_v17 = vadd.f32 %v9114_v16, %v4983_v61  ;;  %v4321_v19 = vadd.f32 %v9211_v63, %v9052_v15 }
 0x222   : > { %v5966_v11 = vpack.c.bf16 %v5122_v56, %v5122_v56  ;;  %v5120_v12 = vsel %vm5049_vm10, %v5017_v34, %v5088_v58  ;;  %v4981_v24 = vmul.f32 %v9107_v53, %v4942_v51  ;;  %v4767_v25 = vpop.f32.mrf.mxu0  ;;  %5280 = vst.msk [vmem:[%s9139_s28 + $0x30] sm:$0xf] %vm5267_vm8, %v5963_v18  ;;  %v4342_v36 = vadd.f32 %v9219_v4, %v9060_v27  ;;  %v4349_v45 = vpop.f32.mrf.mxu1  ;;  %v4854_v34 = vld [vmem:[#allocation2 + $0xc0] sm:$0xff] }
 0x223   : > { %v5964_v43 = vpack.c.bf16 %v5120_v12, %v5120_v12  ;;  %v4945_v60 = vld [vmem:[#allocation2 + $0x98] sm:$0xff]  ;;  %4914 = vst.msk [vmem:[#allocation2 + $0xa0] sm:$0xff] %vm1737_vm7, %v4882_v26  ;;  %v4885_v32 = vadd.f32 %v4853_v42, %v4821_v23  ;;  %v4334_v6 = vadd.f32 %v9230_v35, %v9065_v5  ;;  %vm5054_vm11 = vcmp.gt.f32.partialorder %v5022_v17, 0.0  ;;  %v4856_v5 = vld [vmem:[#allocation2 + $0xd0] sm:$0xff] }
 0x224   : > { %5283 = vst.msk [vmem:[%s9139_s28 + $0x3c] sm:$0xf] %vm5267_vm8, %v5966_v11  ;;  %v5020_v57 = vadd.f32 %v9114_v16, %v4981_v24  ;;  %v4984_v48 = vmul.f32 %v9107_v53, %v4945_v60  ;;  %v6464_v55 = vpop.f32.mrf.mxu0  ;;  %v5093_v15 = vmul.f32 %v9121_v22, %v5022_v17  ;;  %v4819_v1 = vadd.f32 %v4754_v33, %v4321_v19  ;;  %v6432_v51 = vpop.f32.mrf.mxu1  ;;  %v4857_v12 = vld [vmem:[#allocation2 + $0xd8] sm:$0xff]  ;;  %v4855_v60 = vld [vmem:[#allocation2 + $0xc8] sm:$0xff]  ;;  %v4860_v42 = vld [vmem:[#allocation2 + $0xf0] sm:$0xff] }
 0x225   : > { %5281 = vst.msk [vmem:[%s9139_s28 + $0x34] sm:$0xf] %vm5267_vm8, %v5964_v43  ;;  %v4943_v63 = vld [vmem:[#allocation2 + $0x88] sm:$0xff]  ;;  %v4824_v27 = vadd.f32 %v6463_v30, %v4342_v36  ;;  %v4822_v49 = vadd.f32 %v4767_v25, %v4334_v6  ;;  %v4345_v28 = vadd.f32 %v9239_v29, %v9071_v52  ;;  %v4337_v20 = vadd.f32 %v9250_v2, %v9078_v59 }
 0x226   : > { %vm5052_vm12 = vcmp.gt.f32.partialorder %v5020_v57, 0.0  ;;  %v5091_v4 = vmul.f32 %v9121_v22, %v5020_v57  ;;  %v5023_v21 = vadd.f32 %v9114_v16, %v4984_v48  ;;  %v4982_v46 = vmul.f32 %v9107_v53, %v4943_v63  ;;  %4917 = vst.msk [vmem:[#allocation2 + $0xb8] sm:$0xff] %vm1737_vm7, %v4885_v32  ;;  %v4770_v35 = vpop.f32.mrf.mxu0  ;;  %v4352_v32 = vpop.f32.mrf.mxu1 }
 0x227   : > { %v5125_v10 = vsel %vm5054_vm11, %v5022_v17, %v5093_v15  ;;  %v4883_v44 = vadd.f32 %v4851_v40, %v4819_v1  ;;  %v4888_v3 = vadd.f32 %v4856_v5, %v4824_v27  ;;  %v4886_v7 = vadd.f32 %v4854_v34, %v4822_v49  ;;  %v4858_v1 = vld [vmem:[#allocation2 + $0xe0] sm:$0xff]  ;;  %v4861_v34 = vld [vmem:[#allocation2 + $0xf8] sm:$0xff] }
 0x228   : > { %v5969_v13 = vpack.c.bf16 %v5125_v10, %v5125_v10  ;;  %v5123_v41 = vsel %vm5052_vm12, %v5020_v57, %v5091_v4  ;;  %vm5055_vm13 = vcmp.gt.f32.partialorder %v5023_v21, 0.0  ;;  %v5094_v50 = vmul.f32 %v9121_v22, %v5023_v21  ;;  %v4948_v38 = vld [vmem:[#allocation2 + $0xb0] sm:$0xff]  ;;  %v6467_v14 = vpop.f32.mrf.mxu0 }
 0x229   : > { %v5967_v33 = vpack.c.bf16 %v5123_v41, %v5123_v41  ;;  %v5021_v9 = vadd.f32 %v9114_v16, %v4982_v46  ;;  %v4987_v62 = vmul.f32 %v9107_v53, %v4948_v38  ;;  %4915 = vst.msk [vmem:[#allocation2 + $0xa8] sm:$0xff] %vm1737_vm7, %v4883_v44  ;;  %4920 = vst.msk [vmem:[#allocation2 + $0xd0] sm:$0xff] %vm1737_vm7, %v4888_v3 }
 0x22a   : > { %5286 = vst.msk [vmem:[%s9139_s28 + $0x48] sm:$0xf] %vm5267_vm8, %v5969_v13  ;;  %v5126_v54 = vsel %vm5055_vm13, %v5023_v21, %v5094_v50  ;;  %v4946_v58 = vld [vmem:[#allocation2 + $0xa0] sm:$0xff]  ;;  %v4358_v31 = vadd.f32 %v6431_v0, %v9084_v39  ;;  %v4783_v61 = vpop.f32.mrf.mxu0  ;;  %v4825_v52 = vadd.f32 %v6464_v55, %v4345_v28  ;;  %v4823_v29 = vadd.f32 %v4770_v35, %v4337_v20 }
 0x22b   : > { %5284 = vst.msk [vmem:[%s9139_s28 + $0x40] sm:$0xf] %vm5267_vm8, %v5967_v33  ;;  %v5970_v30 = vpack.c.bf16 %v5126_v54, %v5126_v54  ;;  %vm5053_vm14 = vcmp.gt.f32.partialorder %v5021_v9, 0.0  ;;  %v5092_v18 = vmul.f32 %v9121_v22, %v5021_v9  ;;  %v5026_v56 = vadd.f32 %v9114_v16, %v4987_v62 }
 0x22c   : > { %4918 = vst.msk [vmem:[#allocation2 + $0xc0] sm:$0xff] %vm1737_vm7, %v4886_v7  ;;  %v4985_v26 = vmul.f32 %v9107_v53, %v4946_v58  ;;  %v4828_v11 = vadd.f32 %v6467_v14, %v4358_v31  ;;  %v4350_v24 = vadd.f32 %v4349_v45, %v9087_v37  ;;  %v4889_v17 = vadd.f32 %v4857_v12, %v4825_v52  ;;  %v6468_v48 = vpop.f32.mrf.mxu0  ;;  %v4859_v14 = vld [vmem:[#allocation2 + $0xe8] sm:$0xff] }
 0x22d   : > { %5287 = vst.msk [vmem:[%s9139_s28 + $0x4c] sm:$0xf] %vm5267_vm8, %v5970_v30  ;;  %v5124_v59 = vsel %vm5053_vm14, %v5021_v9, %v5092_v18  ;;  %vm5058_vm15 = vcmp.gt.f32.partialorder %v5026_v56, 0.0  ;;  %v5097_v39 = vmul.f32 %v9121_v22, %v5026_v56  ;;  %v4949_v2 = vld [vmem:[#allocation2 + $0xb8] sm:$0xff]  ;;  %v4887_v36 = vadd.f32 %v4855_v60, %v4823_v29 }
 0x22e   : > { %v5968_v23 = vpack.c.bf16 %v5124_v59, %v5124_v59  ;;  %v5024_v25 = vadd.f32 %v9114_v16, %v4985_v26  ;;  %v4988_v43 = vmul.f32 %v9107_v53, %v4949_v2  ;;  %v4892_v0 = vadd.f32 %v4860_v42, %v4828_v11  ;;  %4921 = vst.msk [vmem:[#allocation2 + $0xd8] sm:$0xff] %vm1737_vm7, %v4889_v17 }
 0x22f   : > { %v5129_v19 = vsel %vm5058_vm15, %v5026_v56, %v5097_v39  ;;  %v4826_v57 = vadd.f32 %v4783_v61, %v4350_v24  ;;  %4919 = vst.msk [vmem:[#allocation2 + $0xc8] sm:$0xff] %vm1737_vm7, %v4887_v36  ;;  %v4361_v46 = vadd.f32 %v6432_v51, %v9090_v47  ;;  %v4353_v10 = vadd.f32 %v4352_v32, %v9093_v8  ;;  %v4786_v47 = vpop.f32.mrf.mxu0 }
 0x230   : > { %5285 = vst.msk [vmem:[%s9139_s28 + $0x44] sm:$0xf] %vm5267_vm8, %v5968_v23  ;;  %v5973_v6 = vpack.c.bf16 %v5129_v19, %v5129_v19  ;;  %vm5056_vm0 = vcmp.gt.f32.partialorder %v5024_v25, 0.0  ;;  %v5095_v37 = vmul.f32 %v9121_v22, %v5024_v25  ;;  %v5027_v55 = vadd.f32 %v9114_v16, %v4988_v43  ;;  %v4947_v15 = vld [vmem:[#allocation2 + $0xa8] sm:$0xff]  ;;  %v4952_v63 = vld [vmem:[#allocation2 + $0xd0] sm:$0xff] }
 0x231   : > { %v4986_v27 = vmul.f32 %v9107_v53, %v4947_v15  ;;  %v4991_v4 = vmul.f32 %v9107_v53, %v4952_v63  ;;  %4924 = vst.msk [vmem:[#allocation2 + $0xf0] sm:$0xff] %vm1737_vm7, %v4892_v0  ;;  %v4890_v21 = vadd.f32 %v4858_v1, %v4826_v57  ;;  %v4829_v41 = vadd.f32 %v6468_v48, %v4361_v46 }
 0x232   : > { %5290 = vst.msk [vmem:[%s9139_s28 + $0x58] sm:$0xf] %vm5267_vm8, %v5973_v6  ;;  %v5127_v40 = vsel %vm5056_vm0, %v5024_v25, %v5095_v37  ;;  %vm5059_vm1 = vcmp.gt.f32.partialorder %v5027_v55, 0.0  ;;  %v5098_v5 = vmul.f32 %v9121_v22, %v5027_v55  ;;  %v4827_v50 = vadd.f32 %v4786_v47, %v4353_v10 }
 0x233   : > { %v4950_v35 = vld [vmem:[#allocation2 + $0xc0] sm:$0xff]  ;;  %v5971_v44 = vpack.c.bf16 %v5127_v40, %v5127_v40  ;;  %v5025_v3 = vadd.f32 %v9114_v16, %v4986_v27  ;;  %v5030_v49 = vadd.f32 %v9114_v16, %v4991_v4  ;;  %4922 = vst.msk [vmem:[#allocation2 + $0xe0] sm:$0xff] %vm1737_vm7, %v4890_v21  ;;  %v4893_v62 = vadd.f32 %v4861_v34, %v4829_v41 }
 0x234   : > { %v4989_v45 = vmul.f32 %v9107_v53, %v4950_v35  ;;  %v5130_v13 = vsel %vm5059_vm1, %v5027_v55, %v5098_v5  ;;  %v4891_v7 = vadd.f32 %v4859_v14, %v4827_v50 }
 0x235   : > { %5288 = vst.msk [vmem:[%s9139_s28 + $0x50] sm:$0xf] %vm5267_vm8, %v5971_v44  ;;  %v5974_v38 = vpack.c.bf16 %v5130_v13, %v5130_v13  ;;  %vm5057_vm2 = vcmp.gt.f32.partialorder %v5025_v3, 0.0  ;;  %v5096_v8 = vmul.f32 %v9121_v22, %v5025_v3  ;;  %vm5062_vm3 = vcmp.gt.f32.partialorder %v5030_v49, 0.0  ;;  %v4953_v58 = vld [vmem:[#allocation2 + $0xd8] sm:$0xff] }
 0x236   : > { %v5101_v33 = vmul.f32 %v9121_v22, %v5030_v49  ;;  %v5028_v9 = vadd.f32 %v9114_v16, %v4989_v45  ;;  %v4951_v30 = vld [vmem:[#allocation2 + $0xc8] sm:$0xff]  ;;  %4925 = vst.msk [vmem:[#allocation2 + $0xf8] sm:$0xff] %vm1737_vm7, %v4893_v62  ;;  %4923 = vst.msk [vmem:[#allocation2 + $0xe8] sm:$0xff] %vm1737_vm7, %v4891_v7  ;;  %v4992_v61 = vmul.f32 %v9107_v53, %v4953_v58 }
 0x237   : > { %5291 = vst.msk [vmem:[%s9139_s28 + $0x5c] sm:$0xf] %vm5267_vm8, %v5974_v38  ;;  %v5128_v54 = vsel %vm5057_vm2, %v5025_v3, %v5096_v8  ;;  %v4990_v51 = vmul.f32 %v9107_v53, %v4951_v30 }
 0x238   : > { %v5972_v28 = vpack.c.bf16 %v5128_v54, %v5128_v54  ;;  %v5133_v20 = vsel %vm5062_vm3, %v5030_v49, %v5101_v33  ;;  %vm5060_vm4 = vcmp.gt.f32.partialorder %v5028_v9, 0.0  ;;  %v5099_v31 = vmul.f32 %v9121_v22, %v5028_v9  ;;  %v4956_v18 = vld [vmem:[#allocation2 + $0xf0] sm:$0xff] }
 0x239   : > { %v5977_v56 = vpack.c.bf16 %v5133_v20, %v5133_v20  ;;  %v4995_v26 = vmul.f32 %v9107_v53, %v4956_v18  ;;  %v5031_v59 = vadd.f32 %v9114_v16, %v4992_v61  ;;  %v5029_v39 = vadd.f32 %v9114_v16, %v4990_v51 }
 0x23a   : > { %5289 = vst.msk [vmem:[%s9139_s28 + $0x54] sm:$0xf] %vm5267_vm8, %v5972_v28  ;;  %v5131_v52 = vsel %vm5060_vm4, %v5028_v9, %v5099_v31  ;;  %v4954_v29 = vld [vmem:[#allocation2 + $0xe0] sm:$0xff] }
 0x23b   : > { %5294 = vst.msk [vmem:[%s9139_s28 + $0x68] sm:$0xf] %vm5267_vm8, %v5977_v56  ;;  %v5975_v11 = vpack.c.bf16 %v5131_v52, %v5131_v52  ;;  %v5034_v2 = vadd.f32 %v9114_v16, %v4995_v26  ;;  %v4993_v12 = vmul.f32 %v9107_v53, %v4954_v29  ;;  %vm5063_vm7 = vcmp.gt.f32.partialorder %v5031_v59, 0.0 }
 0x23c   : > { %v5102_v24 = vmul.f32 %v9121_v22, %v5031_v59  ;;  %vm5061_vm5 = vcmp.gt.f32.partialorder %v5029_v39, 0.0  ;;  %v5100_v23 = vmul.f32 %v9121_v22, %v5029_v39 }
 0x23d   : > { %5292 = vst.msk [vmem:[%s9139_s28 + $0x60] sm:$0xf] %vm5267_vm8, %v5975_v11  ;;  %vm5066_vm6 = vcmp.gt.f32.partialorder %v5034_v2, 0.0  ;;  %v5105_v25 = vmul.f32 %v9121_v22, %v5034_v2  ;;  %v5032_v43 = vadd.f32 %v9114_v16, %v4993_v12  ;;  %v4957_v42 = vld [vmem:[#allocation2 + $0xf8] sm:$0xff]  ;;  %v4955_v19 = vld [vmem:[#allocation2 + $0xe8] sm:$0xff] }
 0x23e   : > { %v5134_v17 = vsel %vm5063_vm7, %v5031_v59, %v5102_v24  ;;  %v5132_v60 = vsel %vm5061_vm5, %v5029_v39, %v5100_v23  ;;  %v4996_v6 = vmul.f32 %v9107_v53, %v4957_v42  ;;  %v4994_v37 = vmul.f32 %v9107_v53, %v4955_v19 }
 0x23f   : > { %v5978_v36 = vpack.c.bf16 %v5134_v17, %v5134_v17  ;;  %v5976_v0 = vpack.c.bf16 %v5132_v60, %v5132_v60  ;;  %v5137_v57 = vsel %vm5066_vm6, %v5034_v2, %v5105_v25  ;;  %vm5064_vm9 = vcmp.gt.f32.partialorder %v5032_v43, 0.0 }
 0x240   : > { %v5981_v48 = vpack.c.bf16 %v5137_v57, %v5137_v57  ;;  %v5103_v32 = vmul.f32 %v9121_v22, %v5032_v43  ;;  %v5035_v15 = vadd.f32 %v9114_v16, %v4996_v6  ;;  %v5033_v63 = vadd.f32 %v9114_v16, %v4994_v37 }
 0x241   : > { %5295 = vst.msk [vmem:[%s9139_s28 + $0x6c] sm:$0xf] %vm5267_vm8, %v5978_v36  ;;  %5293 = vst.msk [vmem:[%s9139_s28 + $0x64] sm:$0xf] %vm5267_vm8, %v5976_v0 }
 0x242   : > { %5298 = vst.msk [vmem:[%s9139_s28 + $0x78] sm:$0xf] %vm5267_vm8, %v5981_v48  ;;  %v5135_v55 = vsel %vm5064_vm9, %v5032_v43, %v5103_v32  ;;  %vm5067_vm10 = vcmp.gt.f32.partialorder %v5035_v15, 0.0  ;;  %v5106_v27 = vmul.f32 %v9121_v22, %v5035_v15  ;;  %vm5065_vm11 = vcmp.gt.f32.partialorder %v5033_v63, 0.0 }
 0x243   : > { %v5979_v1 = vpack.c.bf16 %v5135_v55, %v5135_v55  ;;  %v5104_v53 = vmul.f32 %v9121_v22, %v5033_v63 }
 0x244   : > { %v5138_v4 = vsel %vm5067_vm10, %v5035_v15, %v5106_v27 }
 0x245   : > { %5296 = vst.msk [vmem:[%s9139_s28 + $0x70] sm:$0xf] %vm5267_vm8, %v5979_v1  ;;  %v5136_v21 = vsel %vm5065_vm11, %v5033_v63, %v5104_v53  ;;  %v5982_v46 = vpack.c.bf16 %v5138_v4, %v5138_v4 }
 0x246   : > { %v5980_v40 = vpack.c.bf16 %v5136_v21, %v5136_v21 }
 0x247   : > { %5299 = vst.msk [vmem:[%s9139_s28 + $0x7c] sm:$0xf] %vm5267_vm8, %v5982_v46 }
 0x248   : > { %5297 = vst.msk [vmem:[%s9139_s28 + $0x74] sm:$0xf] %vm5267_vm8, %v5980_v40 }
 0x249 PF: > { %s15_s20 = sadd.s32 1, %s6581_s20   ;;  %s9629_s18 = smov %s6577_s19 }
 0x24a   : > { %p12_p5 = scmp.ge.s32.totalorder %s15_s20, 4   ;;  %s9630_s19 = smov %s9632_s21 }
 0x24c   :  { %14 = sbr.rel (!%p12_p5) target bundleno = 2 (0x2), region = 81 }

// kernel: tpu_custom_call.1
= control target key start
LH: loop header
LB: loop body
LE: loop exit
PB: predicated region body
PF: predicated region fallthrough
CT: control target
= control target key end

     0   :  { %v3005_v0 = vmov 0   ;;  %vm906_vm0 = vcmask 261120   ;;  %vm25_vm1 = vcmask 523264   ;;  %vm2374_vm3 = vcmask 519168   ;;  %s4305_s1 = inlined_call_operand.vmem [shape: bf16[288,64], index: 1, kind: input, shape index: {}]   ;;  %s4306_s0 = inlined_call_operand.vmem [shape: bf16[512,288], index: 0, kind: input, shape index: {}]   ;;  %s4307_s2 = inlined_call_operand.vmem [shape: f32[1,64], index: 2, kind: input, shape index: {}]   ;;  %s4308_s3 = inlined_call_operand.vmem [shape: f32[1,64], index: 3, kind: input, shape index: {}]   ;;  %s4309_s4 = inlined_call_operand.vmem [shape: f32[1,64], index: 4, kind: input, shape index: {}]   ;;  %s4310_s5 = inlined_call_operand.vmem [shape: bf16[512,64], index: 5, kind: output, shape index: {}]  }
   0x1   :  { %1003 = vmatprep.subr.bf16.mxu0 %v3005_v0  ;;  %2822 = vmatprep.subr.bf16.mxu1 %v3005_v0  ;;  %v2856_v1 = vld [vmem:[%s4305_s1 + $0x38] sm:$0xff]   ;;  %v2857_v2 = vld [vmem:[%s4305_s1 + $0x30] sm:$0xff]   ;;  %v2858_v3 = vld [vmem:[%s4305_s1 + $0x28] sm:$0xff]  }
   0x2   :  { %1004 = vmatpush1.bf16.msra.mxu0 %v2856_v1  ;;  %2838 = vmatpush1.bf16.msra.mxu1 %v2856_v1  ;;  %v2859_v4 = vld [vmem:[%s4305_s1 + $0x20] sm:$0xff]   ;;  %v2860_v5 = vld [vmem:[%s4305_s1 + $0x18] sm:$0xff]   ;;  %v2861_v7 = vld [vmem:[%s4305_s1 + $0x10] sm:$0xff]  }
   0x3   :  { %1005 = vmatprep.subr.bf16.mxu0 %v3005_v0  ;;  %2823 = vmatprep.subr.bf16.mxu1 %v3005_v0  ;;  %v2874_v6 = vld [vmem:[%s4306_s0 + $0x4] ss:$12 sps:$4 sm:$0xff]   ;;  %v2862_v9 = vld [vmem:[%s4305_s1 + $0x8] sm:$0xff]   ;;  %v2864_v11 = vld [vmem:[%s4305_s1 + $0x78] sm:$0xff]  }
   0x4   :  { %v2877_v8 = vld [vmem:[%s4306_s0 + $0x244] ss:$12 sps:$4 sm:$0xff]   ;;  %1035 = vmatprep.mubr.bf16.mxu0 %v2874_v6  ;;  %v2866_v13 = vld [vmem:[%s4305_s1 + $0x68] sm:$0xff]   ;;  %v2868_v15 = vld [vmem:[%s4305_s1 + $0x58] sm:$0xff]  }
   0x5   :  { %1227 = vmatprep.mubr.bf16.mxu1 %v2877_v8  ;;  %v2863_v10 = vld [vmem:[%s4305_s1] sm:$0xff]   ;;  %v2865_v12 = vld [vmem:[%s4305_s1 + $0x70] sm:$0xff]   ;;  %v2870_v17 = vld [vmem:[%s4305_s1 + $0x48] sm:$0xff]  }
   0x6   :  { %1006 = vmatpush1.bf16.msra.mxu0 %v2857_v2  ;;  %2839 = vmatpush1.bf16.msra.mxu1 %v2857_v2  ;;  %v2867_v14 = vld [vmem:[%s4305_s1 + $0x60] sm:$0xff]   ;;  %v2869_v16 = vld [vmem:[%s4305_s1 + $0x50] sm:$0xff]   ;;  %v2878_v19 = vld [vmem:[%s4305_s1 + $0x88] sm:$0xff]  }
   0x7   :  { %1007 = vmatprep.subr.bf16.mxu0 %v3005_v0  ;;  %2824 = vmatprep.subr.bf16.mxu1 %v3005_v0  ;;  %v2871_v18 = vld [vmem:[%s4305_s1 + $0x40] sm:$0xff]   ;;  %v2879_v22 = vld [vmem:[%s4306_s0 + $0x1c] ss:$12 sps:$4 sm:$0xff]   ;;  %v2891_v31 = vld [vmem:[%s4306_s0 + $0x4c] ss:$12 sps:$4 sm:$0xff]  }
   0x8   :  { %v2872_v20 = vld [vmem:[%s4306_s0] ss:$12 sps:$4 sm:$0xff]   ;;  %v2881_v23 = vld [vmem:[%s4306_s0 + $0x25c] ss:$12 sps:$4 sm:$0xff]   ;;  %v2883_v25 = vld [vmem:[%s4306_s0 + $0x18] ss:$12 sps:$4 sm:$0xff]  }
   0x9   :  { %v2875_v21 = vld [vmem:[%s4306_s0 + $0x240] ss:$12 sps:$4 sm:$0xff]   ;;  %v2884_v26 = vld [vmem:[%s4306_s0 + $0x258] ss:$12 sps:$4 sm:$0xff]   ;;  %v2889_v29 = vld [vmem:[%s4306_s0 + $0x30] ss:$12 sps:$4 sm:$0xff]  }
   0xa   :  { %1008 = vmatpush1.bf16.msra.mxu0 %v2858_v3  ;;  %2840 = vmatpush1.bf16.msra.mxu1 %v2858_v3  ;;  %v2903_v24 = vld [vmem:[%s4305_s1 + $0x80] sm:$0xff]   ;;  %v2890_v30 = vld [vmem:[%s4306_s0 + $0x270] ss:$12 sps:$4 sm:$0xff]   ;;  %v2893_v32 = vld [vmem:[%s4306_s0 + $0x28c] ss:$12 sps:$4 sm:$0xff]  }
   0xb   :  { %1009 = vmatprep.subr.bf16.mxu0 %v3005_v0  ;;  %2825 = vmatprep.subr.bf16.mxu1 %v3005_v0  ;;  %v2885_v27 = vld [vmem:[%s4306_s0 + $0x34] ss:$12 sps:$4 sm:$0xff]   ;;  %v2897_v35 = vld [vmem:[%s4306_s0 + $0x64] ss:$12 sps:$4 sm:$0xff]   ;;  %v2904_v39 = vld [vmem:[%s4306_s0 + $0x7c] ss:$12 sps:$4 sm:$0xff]  }
   0xc   :  { %v2887_v28 = vld [vmem:[%s4306_s0 + $0x274] ss:$12 sps:$4 sm:$0xff]   ;;  %v2899_v36 = vld [vmem:[%s4306_s0 + $0x2a4] ss:$12 sps:$4 sm:$0xff]   ;;  %v2906_v40 = vld [vmem:[%s4306_s0 + $0x2bc] ss:$12 sps:$4 sm:$0xff]  }
   0xd   :  { %v2895_v33 = vld [vmem:[%s4306_s0 + $0x48] ss:$12 sps:$4 sm:$0xff]   ;;  %v2901_v37 = vld [vmem:[%s4306_s0 + $0x60] ss:$12 sps:$4 sm:$0xff]   ;;  %v2908_v41 = vld [vmem:[%s4306_s0 + $0x78] ss:$12 sps:$4 sm:$0xff]  }
   0xe   :  { %1010 = vmatpush1.bf16.msra.mxu0 %v2859_v4  ;;  %2841 = vmatpush1.bf16.msra.mxu1 %v2859_v4  ;;  %v2896_v34 = vld [vmem:[%s4306_s0 + $0x288] ss:$12 sps:$4 sm:$0xff]   ;;  %v2902_v38 = vld [vmem:[%s4306_s0 + $0x2a0] ss:$12 sps:$4 sm:$0xff]   ;;  %v2909_v42 = vld [vmem:[%s4306_s0 + $0x2b8] ss:$12 sps:$4 sm:$0xff]  }
   0xf   :  { %1011 = vmatprep.subr.bf16.mxu0 %v3005_v0  ;;  %2826 = vmatprep.subr.bf16.mxu1 %v3005_v0  ;;  %v2910_v43 = vld [vmem:[%s4306_s0 + $0x94] ss:$12 sps:$4 sm:$0xff]   ;;  %v2914_v45 = vld [vmem:[%s4306_s0 + $0x90] ss:$12 sps:$4 sm:$0xff]   ;;  %v2916_v47 = vld [vmem:[%s4306_s0 + $0xac] ss:$12 sps:$4 sm:$0xff]  }
  0x10   :  { %v2912_v44 = vld [vmem:[%s4306_s0 + $0x2d4] ss:$12 sps:$4 sm:$0xff]   ;;  %v2915_v46 = vld [vmem:[%s4306_s0 + $0x2d0] ss:$12 sps:$4 sm:$0xff]   ;;  %v2918_v48 = vld [vmem:[%s4306_s0 + $0x2ec] ss:$12 sps:$4 sm:$0xff]  }
  0x11   :  { %v2920_v49 = vld [vmem:[%s4306_s0 + $0xa8] ss:$12 sps:$4 sm:$0xff]   ;;  %v2922_v51 = vld [vmem:[%s4306_s0 + $0xc4] ss:$12 sps:$4 sm:$0xff]   ;;  %v2925_v53 = vld [vmem:[%s4306_s0 + $0xc0] ss:$12 sps:$4 sm:$0xff]  }
  0x12   :  { %1012 = vmatpush1.bf16.msra.mxu0 %v2860_v5  ;;  %2842 = vmatpush1.bf16.msra.mxu1 %v2860_v5  ;;  %v2921_v50 = vld [vmem:[%s4306_s0 + $0x2e8] ss:$12 sps:$4 sm:$0xff]   ;;  %v2926_v54 = vld [vmem:[%s4306_s0 + $0x20] ss:$12 sps:$4 sm:$0xff]   ;;  %v2929_v56 = vld [vmem:[%s4306_s0 + $0x38] ss:$12 sps:$4 sm:$0xff]  }
  0x13   :  { %1013 = vmatprep.subr.bf16.mxu0 %v3005_v0  ;;  %2827 = vmatprep.subr.bf16.mxu1 %v3005_v0  ;;  %v2924_v52 = vld [vmem:[%s4306_s0 + $0x8] ss:$12 sps:$4 sm:$0xff]   ;;  %v2930_v57 = vld [vmem:[%s4306_s0 + $0xd8] ss:$12 sps:$4 sm:$0xff]   ;;  %v2931_v58 = vld [vmem:[%s4306_s0 + $0x50] ss:$12 sps:$4 sm:$0xff]  }
  0x14   :  { %v2927_v55 = vld [vmem:[%s4306_s0 + $0xdc] ss:$12 sps:$4 sm:$0xff]   ;;  %v2932_v59 = vld [vmem:[%s4306_s0 + $0xf4] ss:$12 sps:$4 sm:$0xff]   ;;  %v2937_v63 = vld [vmem:[%s4306_s0 + $0x10c] ss:$12 sps:$4 sm:$0xff]  }
  0x15   :  { %v2934_v60 = vld [vmem:[%s4306_s0 + $0x68] ss:$12 sps:$4 sm:$0xff]   ;;  %v2935_v61 = vld [vmem:[%s4306_s0 + $0xf0] ss:$12 sps:$4 sm:$0xff]   ;;  %v2936_v62 = vld [vmem:[%s4306_s0 + $0x80] ss:$12 sps:$4 sm:$0xff]  }
  0x16   :  { %1014 = vmatpush1.bf16.msra.mxu0 %v2861_v7  ;;  %2843 = vmatpush1.bf16.msra.mxu1 %v2861_v7  ;;  %v2940_v1 = vld [vmem:[%s4306_s0 + $0x108] ss:$12 sps:$4 sm:$0xff]   ;;  %v2941_v2 = vld [vmem:[%s4306_s0 + $0xb0] ss:$12 sps:$4 sm:$0xff]   ;;  %v2945_v5 = vld [vmem:[%s4306_s0 + $0x120] ss:$12 sps:$4 sm:$0xff]  }
  0x17   :  { %1015 = vmatprep.subr.bf16.mxu0 %v3005_v0  ;;  %2828 = vmatprep.subr.bf16.mxu1 %v3005_v0  ;;  %v2942_v3 = vld [vmem:[%s4306_s0 + $0x124] ss:$12 sps:$4 sm:$0xff]   ;;  %v2944_v4 = vld [vmem:[%s4306_s0 + $0xc8] ss:$12 sps:$4 sm:$0xff]   ;;  %v2946_v6 = vld [vmem:[%s4306_s0 + $0xe0] ss:$12 sps:$4 sm:$0xff]  }
  0x18   :  { %v2947_v7 = vld [vmem:[%s4306_s0 + $0x13c] ss:$12 sps:$4 sm:$0xff]   ;;  %v2949_v8 = vld [vmem:[%s4306_s0 + $0xf8] ss:$12 sps:$4 sm:$0xff]  }
  0x1a   :  { %1016 = vmatpush1.bf16.msra.mxu0 %v2862_v9  ;;  %2844 = vmatpush1.bf16.msra.mxu1 %v2862_v9  ;;  %v2950_v9 = vld [vmem:[%s4306_s0 + $0x138] ss:$12 sps:$4 sm:$0xff]  }
  0x1b   :  { %1017 = vmatprep.subr.bf16.mxu0 %v3005_v0  ;;  %2829 = vmatprep.subr.bf16.mxu1 %v3005_v0 }
  0x1e   :  { %1018 = vmatpush1.bf16.msra.mxu0 %v2863_v10  ;;  %2845 = vmatpush1.bf16.msra.mxu1 %v2863_v10  ;;  %v2951_v10 = vld [vmem:[%s4306_s0 + $0x110] ss:$12 sps:$4 sm:$0xff]  }
  0x1f   :  { %1019 = vmatprep.subr.bf16.mxu0 %v3005_v0  ;;  %2830 = vmatprep.subr.bf16.mxu1 %v3005_v0 }
  0x22   :  { %1020 = vmatpush2.bf16.msra.mxu0 %v2864_v11  ;;  %2846 = vmatpush2.bf16.msra.mxu1 %v2864_v11  ;;  %v2952_v11 = vld [vmem:[%s4306_s0 + $0x154] ss:$12 sps:$4 sm:$0xff]  }
  0x23   :  { %1021 = vmatprep.subr.bf16.mxu0 %v3005_v0  ;;  %2831 = vmatprep.subr.bf16.mxu1 %v3005_v0 }
  0x26   :  { %1022 = vmatpush2.bf16.msra.mxu0 %v2865_v12  ;;  %2847 = vmatpush2.bf16.msra.mxu1 %v2865_v12  ;;  %v2954_v12 = vld [vmem:[%s4306_s0 + $0x128] ss:$12 sps:$4 sm:$0xff]  }
  0x27   :  { %1023 = vmatprep.subr.bf16.mxu0 %v3005_v0  ;;  %2832 = vmatprep.subr.bf16.mxu1 %v3005_v0 }
  0x2a   :  { %1024 = vmatpush2.bf16.msra.mxu0 %v2866_v13  ;;  %2848 = vmatpush2.bf16.msra.mxu1 %v2866_v13  ;;  %v2955_v13 = vld [vmem:[%s4306_s0 + $0x150] ss:$12 sps:$4 sm:$0xff]  }
  0x2b   :  { %1025 = vmatprep.subr.bf16.mxu0 %v3005_v0  ;;  %2833 = vmatprep.subr.bf16.mxu1 %v3005_v0 }
  0x2e   :  { %1026 = vmatpush2.bf16.msra.mxu0 %v2867_v14  ;;  %2849 = vmatpush2.bf16.msra.mxu1 %v2867_v14  ;;  %v2956_v14 = vld [vmem:[%s4306_s0 + $0x140] ss:$12 sps:$4 sm:$0xff]  }
  0x2f   :  { %1027 = vmatprep.subr.bf16.mxu0 %v3005_v0  ;;  %2834 = vmatprep.subr.bf16.mxu1 %v3005_v0 }
  0x32   :  { %1028 = vmatpush2.bf16.msra.mxu0 %v2868_v15  ;;  %2850 = vmatpush2.bf16.msra.mxu1 %v2868_v15  ;;  %v2957_v15 = vld [vmem:[%s4306_s0 + $0x16c] ss:$12 sps:$4 sm:$0xff]  }
  0x33   :  { %1029 = vmatprep.subr.bf16.mxu0 %v3005_v0  ;;  %2835 = vmatprep.subr.bf16.mxu1 %v3005_v0 }
  0x36   :  { %1030 = vmatpush2.bf16.msra.mxu0 %v2869_v16  ;;  %2851 = vmatpush2.bf16.msra.mxu1 %v2869_v16  ;;  %v2959_v16 = vld [vmem:[%s4306_s0 + $0x158] ss:$12 sps:$4 sm:$0xff]  }
  0x37   :  { %1031 = vmatprep.subr.bf16.mxu0 %v3005_v0  ;;  %2836 = vmatprep.subr.bf16.mxu1 %v3005_v0 }
  0x3a   :  { %1032 = vmatpush2.bf16.msra.mxu0 %v2870_v17  ;;  %2852 = vmatpush2.bf16.msra.mxu1 %v2870_v17  ;;  %v2960_v17 = vld [vmem:[%s4306_s0 + $0x168] ss:$12 sps:$4 sm:$0xff]  }
  0x3b   :  { %1033 = vmatprep.subr.bf16.mxu0 %v3005_v0  ;;  %2837 = vmatprep.subr.bf16.mxu1 %v3005_v0  ;;  %v2939_v0 = vld [vmem:[%s4306_s0 + $0x98] ss:$12 sps:$4 sm:$0xff]  }
  0x3e   :  { %1034 = vmatpush2.bf16.msra.mxu0 %v2871_v18  ;;  %2853 = vmatpush2.bf16.msra.mxu1 %v2871_v18  ;;  %v2961_v18 = vld [vmem:[%s4306_s0 + $0x170] ss:$12 sps:$4 sm:$0xff]  }
  0x3f   :  { %2754 = vmatprep.subr.bf16.mxu1 %v2878_v19 }
  0x41   :  { %1036 = vmatmul.mubr.bf16.vlgmr.msra.gmra.mxu0 %v2872_v20  ;;  %1228 = vmatmul.mubr.bf16.vlgmr.msra.gmra.mxu1 %v2875_v21  ;;  %v2964_v20 = vld [vmem:[%s4306_s0 + $0x188] ss:$12 sps:$4 sm:$0xff]   ;;  %v3006_v21 = vmov 0.0  }
  0x42   :  { %2755 = vmatpush3.bf16.msra.mxu1 %v2878_v19  ;;  %1043 = vmatprep.mubr.bf16.mxu0 %v2879_v22  ;;  %v2962_v19 = vld [vmem:[%s4306_s0 + $0x184] ss:$12 sps:$4 sm:$0xff]   ;;  %28 = vst.msk [vmem:[#allocation2 + $0x10] sm:$0xff] %vm25_vm1, %v3006_v21  ;;  %26 = vst.msk [vmem:[#allocation2] sm:$0xff] %vm25_vm1, %v3006_v21  ;;  %v2965_v22 = vld [vmem:[%s4306_s0 + $0x180] ss:$12 sps:$4 sm:$0xff]  }
  0x43   :  { %1235 = vmatprep.mubr.bf16.mxu1 %v2881_v23  ;;  %2756 = vmatprep.subr.bf16.mxu1 %v2903_v24  ;;  %27 = vst.msk [vmem:[#allocation2 + $0x8] sm:$0xff] %vm25_vm1, %v3006_v21  ;;  %29 = vst.msk [vmem:[#allocation2 + $0x18] sm:$0xff] %vm25_vm1, %v3006_v21  ;;  %v2966_v23 = vld [vmem:[%s4306_s0 + $0x1a0] ss:$12 sps:$4 sm:$0xff]  }
  0x44   :  { %30 = vst.msk [vmem:[#allocation2 + $0x20] sm:$0xff] %vm25_vm1, %v3006_v21  ;;  %31 = vst.msk [vmem:[#allocation2 + $0x28] sm:$0xff] %vm25_vm1, %v3006_v21 }
  0x45   :  { %32 = vst.msk [vmem:[#allocation2 + $0x30] sm:$0xff] %vm25_vm1, %v3006_v21  ;;  %33 = vst.msk [vmem:[#allocation2 + $0x38] sm:$0xff] %vm25_vm1, %v3006_v21 }
  0x46   :  { %2757 = vmatpush3.bf16.msra.mxu1 %v2903_v24  ;;  %34 = vst.msk [vmem:[#allocation2 + $0x40] sm:$0xff] %vm25_vm1, %v3006_v21  ;;  %35 = vst.msk [vmem:[#allocation2 + $0x48] sm:$0xff] %vm25_vm1, %v3006_v21  ;;  %v2967_v24 = vld [vmem:[%s4306_s0 + $0x19c] ss:$12 sps:$4 sm:$0xff]  }
  0x47   :  { %36 = vst.msk [vmem:[#allocation2 + $0x50] sm:$0xff] %vm25_vm1, %v3006_v21  ;;  %37 = vst.msk [vmem:[#allocation2 + $0x58] sm:$0xff] %vm25_vm1, %v3006_v21 }
  0x48   :  { %38 = vst.msk [vmem:[#allocation2 + $0x60] sm:$0xff] %vm25_vm1, %v3006_v21  ;;  %39 = vst.msk [vmem:[#allocation2 + $0x68] sm:$0xff] %vm25_vm1, %v3006_v21 }
  0x49   :  { %1044 = vmatmul.mubr.bf16.gmra.mxu0 %v2883_v25  ;;  %1236 = vmatmul.mubr.bf16.gmra.mxu1 %v2884_v26  ;;  %40 = vst.msk [vmem:[#allocation2 + $0x70] sm:$0xff] %vm25_vm1, %v3006_v21  ;;  %41 = vst.msk [vmem:[#allocation2 + $0x78] sm:$0xff] %vm25_vm1, %v3006_v21  ;;  %v2969_v25 = vld [vmem:[%s4306_s0 + $0x1b8] ss:$12 sps:$4 sm:$0xff]  }
  0x4a   :  { %1051 = vmatprep.mubr.bf16.mxu0 %v2885_v27  ;;  %1243 = vmatprep.mubr.bf16.mxu1 %v2887_v28  ;;  %42 = vst.msk [vmem:[#allocation2 + $0x80] sm:$0xff] %vm25_vm1, %v3006_v21  ;;  %43 = vst.msk [vmem:[#allocation2 + $0x88] sm:$0xff] %vm25_vm1, %v3006_v21  ;;  %v2970_v26 = vld [vmem:[%s4306_s0 + $0x198] ss:$12 sps:$4 sm:$0xff]   ;;  %v2971_v27 = vld [vmem:[%s4306_s0 + $0x1d0] ss:$12 sps:$4 sm:$0xff]  }
  0x4b   :  { %44 = vst.msk [vmem:[#allocation2 + $0x90] sm:$0xff] %vm25_vm1, %v3006_v21  ;;  %45 = vst.msk [vmem:[#allocation2 + $0x98] sm:$0xff] %vm25_vm1, %v3006_v21  ;;  %v2972_v28 = vld [vmem:[%s4306_s0 + $0x1b4] ss:$12 sps:$4 sm:$0xff]  }
  0x4c   :  { %46 = vst.msk [vmem:[#allocation2 + $0xa0] sm:$0xff] %vm25_vm1, %v3006_v21  ;;  %47 = vst.msk [vmem:[#allocation2 + $0xa8] sm:$0xff] %vm25_vm1, %v3006_v21 }
  0x4d   :  { %48 = vst.msk [vmem:[#allocation2 + $0xb0] sm:$0xff] %vm25_vm1, %v3006_v21  ;;  %49 = vst.msk [vmem:[#allocation2 + $0xb8] sm:$0xff] %vm25_vm1, %v3006_v21 }
  0x4e   :  { %50 = vst.msk [vmem:[#allocation2 + $0xc0] sm:$0xff] %vm25_vm1, %v3006_v21  ;;  %51 = vst.msk [vmem:[#allocation2 + $0xc8] sm:$0xff] %vm25_vm1, %v3006_v21 }
  0x4f   :  { %52 = vst.msk [vmem:[#allocation2 + $0xd0] sm:$0xff] %vm25_vm1, %v3006_v21  ;;  %53 = vst.msk [vmem:[#allocation2 + $0xd8] sm:$0xff] %vm25_vm1, %v3006_v21 }
  0x50   :  { %54 = vst.msk [vmem:[#allocation2 + $0xe0] sm:$0xff] %vm25_vm1, %v3006_v21  ;;  %55 = vst.msk [vmem:[#allocation2 + $0xe8] sm:$0xff] %vm25_vm1, %v3006_v21 }
  0x51   :  { %1052 = vmatmul.mubr.bf16.gmra.mxu0 %v2889_v29  ;;  %1244 = vmatmul.mubr.bf16.gmra.mxu1 %v2890_v30  ;;  %56 = vst.msk [vmem:[#allocation2 + $0xf0] sm:$0xff] %vm25_vm1, %v3006_v21  ;;  %57 = vst.msk [vmem:[#allocation2 + $0xf8] sm:$0xff] %vm25_vm1, %v3006_v21  ;;  %v2974_v29 = vld [vmem:[%s4306_s0 + $0x1e8] ss:$12 sps:$4 sm:$0xff]   ;;  %v2975_v30 = vld [vmem:[%s4306_s0 + $0x1b0] ss:$12 sps:$4 sm:$0xff]  }
  0x52   :  { %1059 = vmatprep.mubr.bf16.mxu0 %v2891_v31  ;;  %1251 = vmatprep.mubr.bf16.mxu1 %v2893_v32  ;;  %58 = vst.msk [vmem:[#allocation2 + $0x100] sm:$0xff] %vm25_vm1, %v3006_v21  ;;  %59 = vst.msk [vmem:[#allocation2 + $0x108] sm:$0xff] %vm25_vm1, %v3006_v21  ;;  %v2976_v31 = vld [vmem:[%s4306_s0 + $0x200] ss:$12 sps:$4 sm:$0xff]  }
  0x53   :  { %60 = vst.msk [vmem:[#allocation2 + $0x110] sm:$0xff] %vm25_vm1, %v3006_v21  ;;  %61 = vst.msk [vmem:[#allocation2 + $0x118] sm:$0xff] %vm25_vm1, %v3006_v21  ;;  %v2977_v32 = vld [vmem:[%s4306_s0 + $0x1cc] ss:$12 sps:$4 sm:$0xff]  }
  0x54   :  { %62 = vst.msk [vmem:[#allocation2 + $0x120] sm:$0xff] %vm25_vm1, %v3006_v21  ;;  %63 = vst.msk [vmem:[#allocation2 + $0x128] sm:$0xff] %vm25_vm1, %v3006_v21 }
  0x55   :  { %64 = vst.msk [vmem:[#allocation2 + $0x130] sm:$0xff] %vm25_vm1, %v3006_v21  ;;  %65 = vst.msk [vmem:[#allocation2 + $0x138] sm:$0xff] %vm25_vm1, %v3006_v21 }
  0x56   :  { %66 = vst.msk [vmem:[#allocation2 + $0x140] sm:$0xff] %vm25_vm1, %v3006_v21  ;;  %67 = vst.msk [vmem:[#allocation2 + $0x148] sm:$0xff] %vm25_vm1, %v3006_v21 }
  0x57   :  { %68 = vst.msk [vmem:[#allocation2 + $0x150] sm:$0xff] %vm25_vm1, %v3006_v21  ;;  %69 = vst.msk [vmem:[#allocation2 + $0x158] sm:$0xff] %vm25_vm1, %v3006_v21 }
  0x58   :  { %70 = vst.msk [vmem:[#allocation2 + $0x160] sm:$0xff] %vm25_vm1, %v3006_v21  ;;  %71 = vst.msk [vmem:[#allocation2 + $0x168] sm:$0xff] %vm25_vm1, %v3006_v21 }
  0x59   :  { %1060 = vmatmul.mubr.bf16.gmra.mxu0 %v2895_v33  ;;  %1252 = vmatmul.mubr.bf16.gmra.mxu1 %v2896_v34  ;;  %72 = vst.msk [vmem:[#allocation2 + $0x170] sm:$0xff] %vm25_vm1, %v3006_v21  ;;  %73 = vst.msk [vmem:[#allocation2 + $0x178] sm:$0xff] %vm25_vm1, %v3006_v21  ;;  %v2979_v33 = vld [vmem:[%s4306_s0 + $0x218] ss:$12 sps:$4 sm:$0xff]   ;;  %v2980_v34 = vld [vmem:[%s4306_s0 + $0x1c8] ss:$12 sps:$4 sm:$0xff]  }
  0x5a   :  { %1067 = vmatprep.mubr.bf16.mxu0 %v2897_v35  ;;  %1259 = vmatprep.mubr.bf16.mxu1 %v2899_v36  ;;  %74 = vst.msk [vmem:[#allocation2 + $0x180] sm:$0xff] %vm25_vm1, %v3006_v21  ;;  %75 = vst.msk [vmem:[#allocation2 + $0x188] sm:$0xff] %vm25_vm1, %v3006_v21  ;;  %v2981_v35 = vld [vmem:[%s4306_s0 + $0x230] ss:$12 sps:$4 sm:$0xff]  }
  0x5b   :  { %76 = vst.msk [vmem:[#allocation2 + $0x190] sm:$0xff] %vm25_vm1, %v3006_v21  ;;  %77 = vst.msk [vmem:[#allocation2 + $0x198] sm:$0xff] %vm25_vm1, %v3006_v21  ;;  %v2982_v36 = vld [vmem:[%s4306_s0 + $0x1e4] ss:$12 sps:$4 sm:$0xff]  }
  0x5c   :  { %78 = vst.msk [vmem:[#allocation2 + $0x1a0] sm:$0xff] %vm25_vm1, %v3006_v21  ;;  %79 = vst.msk [vmem:[#allocation2 + $0x1a8] sm:$0xff] %vm25_vm1, %v3006_v21 }
  0x5d   :  { %80 = vst.msk [vmem:[#allocation2 + $0x1b0] sm:$0xff] %vm25_vm1, %v3006_v21  ;;  %81 = vst.msk [vmem:[#allocation2 + $0x1b8] sm:$0xff] %vm25_vm1, %v3006_v21 }
  0x5e   :  { %82 = vst.msk [vmem:[#allocation2 + $0x1c0] sm:$0xff] %vm25_vm1, %v3006_v21  ;;  %83 = vst.msk [vmem:[#allocation2 + $0x1c8] sm:$0xff] %vm25_vm1, %v3006_v21 }
  0x5f   :  { %84 = vst.msk [vmem:[#allocation2 + $0x1d0] sm:$0xff] %vm25_vm1, %v3006_v21  ;;  %85 = vst.msk [vmem:[#allocation2 + $0x1d8] sm:$0xff] %vm25_vm1, %v3006_v21 }
  0x60   :  { %86 = vst.msk [vmem:[#allocation2 + $0x1e0] sm:$0xff] %vm25_vm1, %v3006_v21  ;;  %87 = vst.msk [vmem:[#allocation2 + $0x1e8] sm:$0xff] %vm25_vm1, %v3006_v21 }
  0x61   :  { %1068 = vmatmul.mubr.bf16.gmra.mxu0 %v2901_v37  ;;  %1260 = vmatmul.mubr.bf16.gmra.mxu1 %v2902_v38  ;;  %88 = vst.msk [vmem:[#allocation2 + $0x1f0] sm:$0xff] %vm25_vm1, %v3006_v21  ;;  %89 = vst.msk [vmem:[#allocation2 + $0x1f8] sm:$0xff] %vm25_vm1, %v3006_v21  ;;  %v2984_v37 = vld [vmem:[%s4306_s0 + $0x248] ss:$12 sps:$4 sm:$0xff]   ;;  %v2985_v38 = vld [vmem:[%s4306_s0 + $0x1e0] ss:$12 sps:$4 sm:$0xff]  }
  0x62   :  { %1075 = vmatprep.mubr.bf16.mxu0 %v2904_v39  ;;  %1267 = vmatprep.mubr.bf16.mxu1 %v2906_v40  ;;  %v2986_v39 = vld [vmem:[%s4306_s0 + $0x260] ss:$12 sps:$4 sm:$0xff]   ;;  %v2987_v40 = vld [vmem:[%s4306_s0 + $0x1fc] ss:$12 sps:$4 sm:$0xff]  }
  0x69   :  { %1076 = vmatmul.mubr.bf16.gmra.mxu0 %v2908_v41  ;;  %1268 = vmatmul.mubr.bf16.gmra.mxu1 %v2909_v42  ;;  %v2989_v41 = vld [vmem:[%s4306_s0 + $0x278] ss:$12 sps:$4 sm:$0xff]  }
  0x6a   :  { %1083 = vmatprep.mubr.bf16.mxu0 %v2910_v43  ;;  %1275 = vmatprep.mubr.bf16.mxu1 %v2912_v44  ;;  %v2990_v42 = vld [vmem:[%s4306_s0 + $0x1f8] ss:$12 sps:$4 sm:$0xff]   ;;  %v2991_v43 = vld [vmem:[%s4306_s0 + $0x290] ss:$12 sps:$4 sm:$0xff]   ;;  %v2992_v44 = vld [vmem:[%s4306_s0 + $0x214] ss:$12 sps:$4 sm:$0xff]  }
  0x71   :  { %1084 = vmatmul.mubr.bf16.gmra.mxu0 %v2914_v45  ;;  %1276 = vmatmul.mubr.bf16.gmra.mxu1 %v2915_v46  ;;  %v2994_v45 = vld [vmem:[%s4306_s0 + $0x2a8] ss:$12 sps:$4 sm:$0xff]   ;;  %v2995_v46 = vld [vmem:[%s4306_s0 + $0x210] ss:$12 sps:$4 sm:$0xff]  }
  0x72   :  { %1091 = vmatprep.mubr.bf16.mxu0 %v2916_v47  ;;  %1283 = vmatprep.mubr.bf16.mxu1 %v2918_v48  ;;  %v2996_v47 = vld [vmem:[%s4306_s0 + $0x2c0] ss:$12 sps:$4 sm:$0xff]  }
  0x73   :  { %v2997_v48 = vld [vmem:[%s4306_s0 + $0x22c] ss:$12 sps:$4 sm:$0xff]  }
  0x79   :  { %1092 = vmatmul.mubr.bf16.gmra.mxu0 %v2920_v49  ;;  %1284 = vmatmul.mubr.bf16.gmra.mxu1 %v2921_v50  ;;  %v2999_v49 = vld [vmem:[%s4306_s0 + $0x2d8] ss:$12 sps:$4 sm:$0xff]   ;;  %v3000_v50 = vld [vmem:[%s4306_s0 + $0x228] ss:$12 sps:$4 sm:$0xff]  }
  0x7a   :  { %1099 = vmatprep.mubr.bf16.mxu0 %v2922_v51  ;;  %2758 = vmatprep.mubr.msk.bf16.mxu1 %vm906_vm0, %v2924_v52  ;;  %v3001_v51 = vld [vmem:[%s4306_s0 + $0x2f0] ss:$12 sps:$4 sm:$0xff]  }
  0x81   :  { %1100 = vmatmul.mubr.bf16.gmra.mxu0 %v2925_v53  ;;  %2759 = vmatmul.mubr.msk.bf16.vlgmr.msra.gmra.mxu1 %vm906_vm0, %v2926_v54 }
  0x82   :  { %1107 = vmatprep.mubr.bf16.mxu0 %v2927_v55  ;;  %2762 = vmatprep.mubr.msk.bf16.mxu1 %vm906_vm0, %v2929_v56 }
  0x89   :  { %1108 = vmatmul.mubr.bf16.gmra.mxu0 %v2930_v57  ;;  %2763 = vmatmul.mubr.msk.bf16.gmra.mxu1 %vm906_vm0, %v2931_v58 }
  0x8a   :  { %1115 = vmatprep.mubr.bf16.mxu0 %v2932_v59  ;;  %2766 = vmatprep.mubr.msk.bf16.mxu1 %vm906_vm0, %v2934_v60 }
  0x91   :  { %1116 = vmatmul.mubr.bf16.gmra.mxu0 %v2935_v61  ;;  %2767 = vmatmul.mubr.msk.bf16.gmra.mxu1 %vm906_vm0, %v2936_v62 }
  0x92   :  { %1123 = vmatprep.mubr.bf16.mxu0 %v2937_v63  ;;  %2770 = vmatprep.mubr.msk.bf16.mxu1 %vm906_vm0, %v2939_v0 }
  0x99   :  { %1124 = vmatmul.mubr.bf16.gmra.mxu0 %v2940_v1  ;;  %2771 = vmatmul.mubr.msk.bf16.gmra.mxu1 %vm906_vm0, %v2941_v2 }
  0x9a   :  { %1131 = vmatprep.mubr.bf16.mxu0 %v2942_v3  ;;  %2774 = vmatprep.mubr.msk.bf16.mxu1 %vm906_vm0, %v2944_v4 }
  0xa1   :  { %1132 = vmatmul.mubr.bf16.gmra.mxu0 %v2945_v5  ;;  %2775 = vmatmul.mubr.msk.bf16.gmra.mxu1 %vm906_vm0, %v2946_v6 }
  0xa2   :  { %1139 = vmatprep.mubr.bf16.mxu0 %v2947_v7  ;;  %2778 = vmatprep.mubr.msk.bf16.mxu1 %vm906_vm0, %v2949_v8 }
  0xa9   :  { %1140 = vmatmul.mubr.bf16.gmra.mxu0 %v2950_v9  ;;  %2779 = vmatmul.mubr.msk.bf16.gmra.mxu1 %vm906_vm0, %v2951_v10 }
  0xaa   :  { %1147 = vmatprep.mubr.bf16.mxu0 %v2952_v11  ;;  %2782 = vmatprep.mubr.msk.bf16.mxu1 %vm906_vm0, %v2954_v12 }
  0xb1   :  { %1148 = vmatmul.mubr.bf16.gmra.mxu0 %v2955_v13  ;;  %2783 = vmatmul.mubr.msk.bf16.gmra.mxu1 %vm906_vm0, %v2956_v14 }
  0xb2   :  { %1155 = vmatprep.mubr.bf16.mxu0 %v2957_v15  ;;  %2786 = vmatprep.mubr.msk.bf16.mxu1 %vm906_vm0, %v2959_v16 }
  0xb9   :  { %1156 = vmatmul.mubr.bf16.gmra.mxu0 %v2960_v17  ;;  %2787 = vmatmul.mubr.msk.bf16.gmra.mxu1 %vm906_vm0, %v2961_v18 }
  0xba   :  { %1163 = vmatprep.mubr.bf16.mxu0 %v2962_v19  ;;  %2790 = vmatprep.mubr.msk.bf16.mxu1 %vm906_vm0, %v2964_v20 }
  0xc1   :  { %1164 = vmatmul.mubr.bf16.gmra.mxu0 %v2965_v22  ;;  %2791 = vmatmul.mubr.msk.bf16.gmra.mxu1 %vm906_vm0, %v2966_v23 }
  0xc2   :  { %1171 = vmatprep.mubr.bf16.mxu0 %v2967_v24  ;;  %2794 = vmatprep.mubr.msk.bf16.mxu1 %vm906_vm0, %v2969_v25 }
  0xc9   :  { %1172 = vmatmul.mubr.bf16.gmra.mxu0 %v2970_v26  ;;  %2795 = vmatmul.mubr.msk.bf16.gmra.mxu1 %vm906_vm0, %v2971_v27 }
  0xca   :  { %1179 = vmatprep.mubr.bf16.mxu0 %v2972_v28  ;;  %2798 = vmatprep.mubr.msk.bf16.mxu1 %vm906_vm0, %v2974_v29 }
  0xd1   :  { %1180 = vmatmul.mubr.bf16.gmra.mxu0 %v2975_v30  ;;  %2799 = vmatmul.mubr.msk.bf16.gmra.mxu1 %vm906_vm0, %v2976_v31 }
  0xd2   :  { %1187 = vmatprep.mubr.bf16.mxu0 %v2977_v32  ;;  %2802 = vmatprep.mubr.msk.bf16.mxu1 %vm906_vm0, %v2979_v33 }
  0xd9   :  { %1188 = vmatmul.mubr.bf16.gmra.mxu0 %v2980_v34  ;;  %2803 = vmatmul.mubr.msk.bf16.gmra.mxu1 %vm906_vm0, %v2981_v35 }
  0xda   :  { %1195 = vmatprep.mubr.bf16.mxu0 %v2982_v36  ;;  %2806 = vmatprep.mubr.msk.bf16.mxu1 %vm906_vm0, %v2984_v37 }
  0xe1   :  { %1196 = vmatmul.mubr.bf16.gmra.mxu0 %v2985_v38  ;;  %2807 = vmatmul.mubr.msk.bf16.gmra.mxu1 %vm906_vm0, %v2986_v39 }
  0xe2   :  { %1203 = vmatprep.mubr.bf16.mxu0 %v2987_v40  ;;  %2810 = vmatprep.mubr.msk.bf16.mxu1 %vm906_vm0, %v2989_v41 }
  0xe9   :  { %1204 = vmatmul.mubr.bf16.gmra.mxu0 %v2990_v42  ;;  %2811 = vmatmul.mubr.msk.bf16.gmra.mxu1 %vm906_vm0, %v2991_v43 }
  0xea   :  { %1211 = vmatprep.mubr.bf16.mxu0 %v2992_v44  ;;  %2814 = vmatprep.mubr.msk.bf16.mxu1 %vm906_vm0, %v2994_v45 }
  0xf1   :  { %1212 = vmatmul.mubr.bf16.gmra.mxu0 %v2995_v46  ;;  %2815 = vmatmul.mubr.msk.bf16.gmra.mxu1 %vm906_vm0, %v2996_v47 }
  0xf2   :  { %1219 = vmatprep.mubr.bf16.mxu0 %v2997_v48  ;;  %2818 = vmatprep.mubr.msk.bf16.mxu1 %vm906_vm0, %v2999_v49 }
  0xf9   :  { %1220 = vmatmul.mubr.bf16.gmra.mxu0 %v3000_v50  ;;  %2819 = vmatmul.mubr.msk.bf16.gmra.mxu1 %vm906_vm0, %v3001_v51 }
 0x101   :  { %v3571_v52 = vpop.f32.mrf.mxu0  ;;  %v3573_v53 = vpop.f32.mrf.mxu1 }
 0x103   :  { %v1039_v54 = vpop.f32.mrf.mxu0  ;;  %v1231_v55 = vpop.f32.mrf.mxu1 }
 0x104   :  { %v92_v55 = vld [vmem:[#allocation2 + $0x10] sm:$0xff] }
 0x105   :  { %v3575_v56 = vpop.f32.mrf.mxu0  ;;  %v3577_v57 = vpop.f32.mrf.mxu1 }
 0x107   :  { %v1042_v58 = vpop.f32.mrf.mxu0  ;;  %v1234_v59 = vpop.f32.mrf.mxu1 }
 0x109   :  { %v1045_v60 = vpop.f32.mrf.mxu0  ;;  %v3579_v61 = vpop.f32.mrf.mxu1 }
 0x10b   :  { %v1047_v62 = vpop.f32.mrf.mxu0  ;;  %v1239_v63 = vpop.f32.mrf.mxu1 }
 0x10c   :  { %v90_v63 = vld [vmem:[#allocation2] sm:$0xff] }
 0x10d   :  { %v3581_v0 = vpop.f32.mrf.mxu0  ;;  %v3583_v1 = vpop.f32.mrf.mxu1 }
 0x10f   :  { %v1050_v2 = vpop.f32.mrf.mxu0  ;;  %v1242_v3 = vpop.f32.mrf.mxu1 }
 0x111   :  { %v3585_v4 = vpop.f32.mrf.mxu0  ;;  %v3587_v5 = vpop.f32.mrf.mxu1 }
 0x113   :  { %v1055_v6 = vpop.f32.mrf.mxu0  ;;  %v1247_v7 = vpop.f32.mrf.mxu1 }
 0x115   :  { %v3589_v8 = vpop.f32.mrf.mxu0  ;;  %v3591_v9 = vpop.f32.mrf.mxu1 }
 0x117   :  { %v1058_v10 = vpop.f32.mrf.mxu0  ;;  %v1250_v11 = vpop.f32.mrf.mxu1 }
 0x118   :  { %v93_v10 = vld [vmem:[#allocation2 + $0x18] sm:$0xff] }
 0x119   :  { %v3593_v12 = vpop.f32.mrf.mxu0  ;;  %v3595_v13 = vpop.f32.mrf.mxu1 }
 0x11b   :  { %v1063_v14 = vpop.f32.mrf.mxu0  ;;  %v1255_v15 = vpop.f32.mrf.mxu1 }
 0x11d   :  { %v3597_v16 = vpop.f32.mrf.mxu0  ;;  %v3599_v17 = vpop.f32.mrf.mxu1 }
 0x11f   :  { %v1066_v18 = vpop.f32.mrf.mxu0  ;;  %v1258_v19 = vpop.f32.mrf.mxu1 }
 0x120   :  { %v91_v19 = vld [vmem:[#allocation2 + $0x8] sm:$0xff] }
 0x121   :  { %v3601_v20 = vpop.f32.mrf.mxu0  ;;  %v3603_v21 = vpop.f32.mrf.mxu1 }
 0x123   :  { %v1071_v22 = vpop.f32.mrf.mxu0  ;;  %v1263_v23 = vpop.f32.mrf.mxu1 }
 0x125   :  { %v3605_v24 = vpop.f32.mrf.mxu0  ;;  %v3607_v25 = vpop.f32.mrf.mxu1 }
 0x127   :  { %v1074_v26 = vpop.f32.mrf.mxu0  ;;  %v1266_v27 = vpop.f32.mrf.mxu1 }
 0x129   :  { %v3609_v28 = vpop.f32.mrf.mxu0  ;;  %v3611_v29 = vpop.f32.mrf.mxu1 }
 0x12b   :  { %v1079_v30 = vpop.f32.mrf.mxu0  ;;  %v1271_v31 = vpop.f32.mrf.mxu1 }
 0x12d   :  { %v3613_v32 = vpop.f32.mrf.mxu0  ;;  %v3615_v33 = vpop.f32.mrf.mxu1 }
 0x12f   :  { %v1082_v34 = vpop.f32.mrf.mxu0  ;;  %v1274_v35 = vpop.f32.mrf.mxu1 }
 0x130   :  { %v94_v35 = vld [vmem:[#allocation2 + $0x20] sm:$0xff] }
 0x131   :  { %v3617_v36 = vpop.f32.mrf.mxu0  ;;  %v3619_v37 = vpop.f32.mrf.mxu1 }
 0x133   :  { %v1087_v38 = vpop.f32.mrf.mxu0  ;;  %v1279_v39 = vpop.f32.mrf.mxu1 }
 0x135   :  { %v3621_v40 = vpop.f32.mrf.mxu0  ;;  %v3623_v41 = vpop.f32.mrf.mxu1 }
 0x137   :  { %v1090_v42 = vpop.f32.mrf.mxu0  ;;  %v1282_v43 = vpop.f32.mrf.mxu1 }
 0x138   :  { %v3656_v43 = vld [vmem:[%s4308_s3] ss:$0 sm:$0xff] }
 0x139   :  { %v3625_v44 = vpop.f32.mrf.mxu0  ;;  %v3627_v45 = vpop.f32.mrf.mxu1 }
 0x13b   :  { %v1095_v46 = vpop.f32.mrf.mxu0  ;;  %v1287_v47 = vpop.f32.mrf.mxu1 }
 0x13c   :  { %v97_v46 = vld [vmem:[#allocation2 + $0x38] sm:$0xff] }
 0x13d   :  { %v3629_v48 = vpop.f32.mrf.mxu0  ;;  %v3631_v49 = vpop.f32.mrf.mxu1 }
 0x13f   :  { %v1098_v50 = vpop.f32.mrf.mxu0  ;;  %v1290_v51 = vpop.f32.mrf.mxu1 }
 0x141   :  { %v3633_v54 = vpop.f32.mrf.mxu0  ;;  %v2760_v58 = vpop.f32.mrf.mxu1 }
 0x142   :  { %v1335_v59 = vadd.f32 %v2760_v58, %v1045_v60 }
 0x143   :  { %v1103_v62 = vpop.f32.mrf.mxu0  ;;  %v1326_v2 = vpop.f32.mrf.mxu1 }
 0x144   :  { %v1583_v3 = vadd.f32 %v1335_v59, %v92_v55  ;;  %v1327_v6 = vadd.f32 %v1326_v2, %v3571_v52  ;;  %v96_v52 = vld [vmem:[#allocation2 + $0x30] sm:$0xff] }
 0x145   :  { %v3636_v7 = vpop.f32.mrf.mxu0  ;;  %v2761_v11 = vpop.f32.mrf.mxu1 }
 0x146   :  { %1648 = vst.msk [vmem:[#allocation2 + $0x10] sm:$0xff] %vm25_vm1, %v1583_v3  ;;  %v1581_v14 = vadd.f32 %v1327_v6, %v90_v63  ;;  %v1338_v15 = vadd.f32 %v2761_v11, %v3581_v0  ;;  %v3649_v0 = vld [vmem:[%s4307_s2] ss:$0 sm:$0xff]  ;;  %v95_v6 = vld [vmem:[#allocation2 + $0x28] sm:$0xff] }
 0x147   :  { %v1106_v18 = vpop.f32.mrf.mxu0  ;;  %v1329_v22 = vpop.f32.mrf.mxu1 }
 0x148   :  { %1646 = vst.msk [vmem:[#allocation2] sm:$0xff] %vm25_vm1, %v1581_v14  ;;  %v1584_v60 = vadd.f32 %v1338_v15, %v93_v10  ;;  %v1330_v23 = vadd.f32 %v1329_v22, %v3575_v56  ;;  %v100_v22 = vld [vmem:[#allocation2 + $0x50] sm:$0xff] }
 0x149   :  { %v3642_v26 = vpop.f32.mrf.mxu0  ;;  %v2764_v27 = vpop.f32.mrf.mxu1 }
 0x14a   :  { %1649 = vst.msk [vmem:[#allocation2 + $0x18] sm:$0xff] %vm25_vm1, %v1584_v60  ;;  %v1582_v30 = vadd.f32 %v1330_v23, %v91_v19  ;;  %v1351_v31 = vadd.f32 %v2764_v27, %v3593_v12 }
 0x14b   :  { %v1111_v34 = vpop.f32.mrf.mxu0  ;;  %v1342_v38 = vpop.f32.mrf.mxu1 }
 0x14c   :  { %1647 = vst.msk [vmem:[#allocation2 + $0x8] sm:$0xff] %vm25_vm1, %v1582_v30  ;;  %v1587_v56 = vadd.f32 %v1351_v31, %v96_v52  ;;  %v1343_v39 = vadd.f32 %v1342_v38, %v3585_v4  ;;  %v3666_v4 = vld [vmem:[%s4309_s4] ss:$0 sm:$0xff] }
 0x14d   :  { %v1715_v42 = vld [vmem:[#allocation2 + $0x10] sm:$0xff]  ;;  %v3658_v12 = vpop.f32.mrf.mxu0  ;;  %v2765_v47 = vpop.f32.mrf.mxu1 }
 0x14e   :  { %v1786_v50 = vmul.f32 %v3649_v0, %v1715_v42  ;;  %1652 = vst.msk [vmem:[#allocation2 + $0x30] sm:$0xff] %vm25_vm1, %v1587_v56  ;;  %v1585_v51 = vadd.f32 %v1343_v39, %v94_v35  ;;  %v1354_v55 = vadd.f32 %v2765_v47, %v3597_v16  ;;  %v98_v35 = vld [vmem:[#allocation2 + $0x40] sm:$0xff] }
 0x14f   :  { %v1713_v58 = vld [vmem:[#allocation2] sm:$0xff]  ;;  %v1114_v59 = vpop.f32.mrf.mxu0  ;;  %v1345_v62 = vpop.f32.mrf.mxu1 }
 0x150   :  { %v1857_v63 = vadd.f32 %v3656_v43, %v1786_v50  ;;  %v1784_v2 = vmul.f32 %v3649_v0, %v1713_v58  ;;  %1650 = vst.msk [vmem:[#allocation2 + $0x20] sm:$0xff] %vm25_vm1, %v1585_v51  ;;  %v1588_v3 = vadd.f32 %v1354_v55, %v97_v46  ;;  %v1346_v10 = vadd.f32 %v1345_v62, %v3589_v8  ;;  %v101_v58 = vld [vmem:[#allocation2 + $0x58] sm:$0xff] }
 0x151   :  { %v1716_v11 = vld [vmem:[#allocation2 + $0x18] sm:$0xff]  ;;  %v3672_v16 = vpop.f32.mrf.mxu0  ;;  %v2768_v14 = vpop.f32.mrf.mxu1 }
 0x152   :  { %vm1921_vm2 = vcmp.gt.f32.partialorder %v1857_v63, 0.0  ;;  %v1992_v15 = vmul.f32 %v3666_v4, %v1857_v63  ;;  %v1855_v18 = vadd.f32 %v3656_v43, %v1784_v2  ;;  %v1787_v19 = vmul.f32 %v3649_v0, %v1716_v11  ;;  %1653 = vst.msk [vmem:[#allocation2 + $0x38] sm:$0xff] %vm25_vm1, %v1588_v3 }
 0x153   :  { %v1714_v60 = vld [vmem:[#allocation2 + $0x8] sm:$0xff]  ;;  %v1586_v23 = vadd.f32 %v1346_v10, %v95_v6  ;;  %v1367_v52 = vadd.f32 %v2768_v14, %v3609_v28  ;;  %v1119_v8 = vpop.f32.mrf.mxu0  ;;  %v1358_v27 = vpop.f32.mrf.mxu1 }
 0x154   :  { %v2056_v30 = vsel %vm1921_vm2, %v1857_v63, %v1992_v15  ;;  %vm1919_vm4 = vcmp.gt.f32.partialorder %v1855_v18, 0.0  ;;  %v1990_v31 = vmul.f32 %v3666_v4, %v1855_v18  ;;  %v1858_v34 = vadd.f32 %v3656_v43, %v1787_v19  ;;  %v99_v15 = vld [vmem:[#allocation2 + $0x48] sm:$0xff] }
 0x155   :  { %v2658_v38 = vpack.c.bf16 %v2056_v30, %v2056_v30  ;;  %v1785_v56 = vmul.f32 %v3649_v0, %v1714_v60  ;;  %v1719_v39 = vld [vmem:[#allocation2 + $0x30] sm:$0xff]  ;;  %1651 = vst.msk [vmem:[#allocation2 + $0x28] sm:$0xff] %vm25_vm1, %v1586_v23  ;;  %v1591_v42 = vadd.f32 %v1367_v52, %v100_v22  ;;  %v1359_v46 = vadd.f32 %v1358_v27, %v3601_v20  ;;  %v3684_v47 = vpop.f32.mrf.mxu0  ;;  %v2769_v28 = vpop.f32.mrf.mxu1 }
 0x156   :  { %v2054_v50 = vsel %vm1919_vm4, %v1855_v18, %v1990_v31  ;;  %vm1922_vm5 = vcmp.gt.f32.partialorder %v1858_v34, 0.0  ;;  %v1993_v51 = vmul.f32 %v3666_v4, %v1858_v34  ;;  %v1790_v55 = vmul.f32 %v3649_v0, %v1719_v39  ;;  %v104_v30 = vld [vmem:[#allocation2 + $0x70] sm:$0xff] }
 0x157   :  { %2377 = vst.msk [vmem:[%s4310_s5 + $0x8] sm:$0xf] %vm2374_vm3, %v2658_v38  ;;  %v2656_v59 = vpack.c.bf16 %v2054_v50, %v2054_v50  ;;  %v1856_v62 = vadd.f32 %v3656_v43, %v1785_v56  ;;  %v1717_v63 = vld [vmem:[#allocation2 + $0x20] sm:$0xff]  ;;  %v1589_v20 = vadd.f32 %v1359_v46, %v98_v35  ;;  %v1370_v2 = vadd.f32 %v2769_v28, %v3613_v32  ;;  %v1122_v3 = vpop.f32.mrf.mxu0  ;;  %v1361_v6 = vpop.f32.mrf.mxu1 }
 0x158   :  { %1656 = vst.msk [vmem:[#allocation2 + $0x50] sm:$0xff] %vm25_vm1, %v1591_v42  ;;  %v2057_v10 = vsel %vm1922_vm5, %v1858_v34, %v1993_v51  ;;  %v1861_v11 = vadd.f32 %v3656_v43, %v1790_v55  ;;  %v1788_v14 = vmul.f32 %v3649_v0, %v1717_v63  ;;  %v1362_v18 = vadd.f32 %v1361_v6, %v3605_v24 }
 0x159   :  { %2375 = vst.msk [vmem:[%s4310_s5] sm:$0xf] %vm2374_vm3, %v2656_v59  ;;  %v2659_v19 = vpack.c.bf16 %v2057_v10, %v2057_v10  ;;  %vm1920_vm6 = vcmp.gt.f32.partialorder %v1856_v62, 0.0  ;;  %v1991_v22 = vmul.f32 %v3666_v4, %v1856_v62  ;;  %v1720_v32 = vld [vmem:[#allocation2 + $0x38] sm:$0xff]  ;;  %v1592_v60 = vadd.f32 %v1370_v2, %v101_v58  ;;  %v3704_v23 = vpop.f32.mrf.mxu0  ;;  %v2772_v52 = vpop.f32.mrf.mxu1  ;;  %v102_v59 = vld [vmem:[#allocation2 + $0x60] sm:$0xff] }
 0x15a   :  { %1654 = vst.msk [vmem:[#allocation2 + $0x40] sm:$0xff] %vm25_vm1, %v1589_v20  ;;  %vm1925_vm7 = vcmp.gt.f32.partialorder %v1861_v11, 0.0  ;;  %v1996_v8 = vmul.f32 %v3666_v4, %v1861_v11  ;;  %v1859_v24 = vadd.f32 %v3656_v43, %v1788_v14  ;;  %v1791_v27 = vmul.f32 %v3649_v0, %v1720_v32 }
 0x15b   :  { %2378 = vst.msk [vmem:[%s4310_s5 + $0xc] sm:$0xf] %vm2374_vm3, %v2659_v19  ;;  %v2055_v31 = vsel %vm1920_vm6, %v1856_v62, %v1991_v22  ;;  %v1590_v34 = vadd.f32 %v1362_v18, %v99_v15  ;;  %v1383_v35 = vadd.f32 %v2772_v52, %v3625_v44  ;;  %v1127_v38 = vpop.f32.mrf.mxu0  ;;  %v1374_v56 = vpop.f32.mrf.mxu1  ;;  %v105_v44 = vld [vmem:[#allocation2 + $0x78] sm:$0xff]  ;;  %v103_v18 = vld [vmem:[#allocation2 + $0x68] sm:$0xff] }
 0x15c   :  { %1657 = vst.msk [vmem:[#allocation2 + $0x58] sm:$0xff] %vm25_vm1, %v1592_v60  ;;  %v2657_v39 = vpack.c.bf16 %v2055_v31, %v2055_v31  ;;  %v2060_v42 = vsel %vm1925_vm7, %v1861_v11, %v1996_v8  ;;  %vm1923_vm8 = vcmp.gt.f32.partialorder %v1859_v24, 0.0  ;;  %v1994_v46 = vmul.f32 %v3666_v4, %v1859_v24  ;;  %v1718_v28 = vld [vmem:[#allocation2 + $0x28] sm:$0xff] }
 0x15d   :  { %v2662_v50 = vpack.c.bf16 %v2060_v42, %v2060_v42  ;;  %v1862_v51 = vadd.f32 %v3656_v43, %v1791_v27  ;;  %v1789_v55 = vmul.f32 %v3649_v0, %v1718_v28  ;;  %1655 = vst.msk [vmem:[#allocation2 + $0x48] sm:$0xff] %vm25_vm1, %v1590_v34  ;;  %v1595_v58 = vadd.f32 %v1383_v35, %v104_v30  ;;  %v3719_v62 = vpop.f32.mrf.mxu0  ;;  %v2773_v63 = vpop.f32.mrf.mxu1  ;;  %v108_v30 = vld [vmem:[#allocation2 + $0x90] sm:$0xff] }
 0x15e   :  { %2376 = vst.msk [vmem:[%s4310_s5 + $0x4] sm:$0xf] %vm2374_vm3, %v2657_v39  ;;  %v2058_v20 = vsel %vm1923_vm8, %v1859_v24, %v1994_v46  ;;  %v1375_v3 = vadd.f32 %v1374_v56, %v3617_v36  ;;  %v1386_v6 = vadd.f32 %v2773_v63, %v3629_v48 }
 0x15f   :  { %v1723_v2 = vld [vmem:[#allocation2 + $0x50] sm:$0xff]  ;;  %2381 = vst.msk [vmem:[%s4310_s5 + $0x18] sm:$0xf] %vm2374_vm3, %v2662_v50  ;;  %v2660_v10 = vpack.c.bf16 %v2058_v20, %v2058_v20  ;;  %vm1926_vm9 = vcmp.gt.f32.partialorder %v1862_v51, 0.0  ;;  %v1997_v11 = vmul.f32 %v3666_v4, %v1862_v51  ;;  %v1860_v14 = vadd.f32 %v3656_v43, %v1789_v55  ;;  %v1130_v15 = vpop.f32.mrf.mxu0  ;;  %v1377_v19 = vpop.f32.mrf.mxu1  ;;  %v106_v20 = vld [vmem:[#allocation2 + $0x80] sm:$0xff] }
 0x160   :  { %1660 = vst.msk [vmem:[#allocation2 + $0x70] sm:$0xff] %vm25_vm1, %v1595_v58  ;;  %v1794_v36 = vmul.f32 %v3649_v0, %v1723_v2  ;;  %v1593_v48 = vadd.f32 %v1375_v3, %v102_v59  ;;  %v1596_v32 = vadd.f32 %v1386_v6, %v105_v44  ;;  %v1378_v60 = vadd.f32 %v1377_v19, %v3621_v40 }
 0x161   :  { %v1721_v22 = vld [vmem:[#allocation2 + $0x40] sm:$0xff]  ;;  %2379 = vst.msk [vmem:[%s4310_s5 + $0x10] sm:$0xf] %vm2374_vm3, %v2660_v10  ;;  %v2061_v52 = vsel %vm1926_vm9, %v1862_v51, %v1997_v11  ;;  %vm1924_vm10 = vcmp.gt.f32.partialorder %v1860_v14, 0.0  ;;  %v1995_v8 = vmul.f32 %v3666_v4, %v1860_v14  ;;  %v3742_v27 = vpop.f32.mrf.mxu0  ;;  %v2776_v31 = vpop.f32.mrf.mxu1 }
 0x162   :  { %v1792_v24 = vmul.f32 %v3649_v0, %v1721_v22  ;;  %v2663_v34 = vpack.c.bf16 %v2061_v52, %v2061_v52  ;;  %v1865_v35 = vadd.f32 %v3656_v43, %v1794_v36  ;;  %1658 = vst.msk [vmem:[#allocation2 + $0x60] sm:$0xff] %vm25_vm1, %v1593_v48  ;;  %1661 = vst.msk [vmem:[#allocation2 + $0x78] sm:$0xff] %vm25_vm1, %v1596_v32 }
 0x163   :  { %v1724_v38 = vld [vmem:[#allocation2 + $0x58] sm:$0xff]  ;;  %v1594_v40 = vadd.f32 %v1378_v60, %v103_v18  ;;  %v1399_v56 = vadd.f32 %v2776_v31, %v3642_v26  ;;  %v2059_v39 = vsel %vm1924_vm10, %v1860_v14, %v1995_v8  ;;  %v1135_v28 = vpop.f32.mrf.mxu0  ;;  %v1390_v50 = vpop.f32.mrf.mxu1 }
 0x164   :  { %v1863_v42 = vadd.f32 %v3656_v43, %v1792_v24  ;;  %v1795_v46 = vmul.f32 %v3649_v0, %v1724_v38  ;;  %2382 = vst.msk [vmem:[%s4310_s5 + $0x1c] sm:$0xf] %vm2374_vm3, %v2663_v34  ;;  %v2661_v51 = vpack.c.bf16 %v2059_v39, %v2059_v39  ;;  %vm1929_vm11 = vcmp.gt.f32.partialorder %v1865_v35, 0.0  ;;  %v1722_v58 = vld [vmem:[#allocation2 + $0x48] sm:$0xff]  ;;  %v109_v14 = vld [vmem:[#allocation2 + $0x98] sm:$0xff] }
 0x165   :  { %v2000_v55 = vmul.f32 %v3666_v4, %v1865_v35  ;;  %1659 = vst.msk [vmem:[#allocation2 + $0x68] sm:$0xff] %vm25_vm1, %v1594_v40  ;;  %v1599_v26 = vadd.f32 %v1399_v56, %v108_v30  ;;  %v1793_v63 = vmul.f32 %v3649_v0, %v1722_v58  ;;  %v3759_v2 = vpop.f32.mrf.mxu0  ;;  %v2777_v3 = vpop.f32.mrf.mxu1  ;;  %v1391_v11 = vadd.f32 %v1390_v50, %v3633_v54  ;;  %v107_v24 = vld [vmem:[#allocation2 + $0x88] sm:$0xff] }
 0x166   :  { %vm1927_vm12 = vcmp.gt.f32.partialorder %v1863_v42, 0.0  ;;  %v1998_v59 = vmul.f32 %v3666_v4, %v1863_v42  ;;  %v1866_v44 = vadd.f32 %v3656_v43, %v1795_v46  ;;  %2380 = vst.msk [vmem:[%s4310_s5 + $0x14] sm:$0xf] %vm2374_vm3, %v2661_v51  ;;  %v1402_v15 = vadd.f32 %v2777_v3, %v3658_v12 }
 0x167   :  { %v2064_v6 = vsel %vm1929_vm11, %v1865_v35, %v2000_v55  ;;  %v1727_v10 = vld [vmem:[#allocation2 + $0x70] sm:$0xff]  ;;  %1664 = vst.msk [vmem:[#allocation2 + $0x90] sm:$0xff] %vm25_vm1, %v1599_v26  ;;  %v1138_v22 = vpop.f32.mrf.mxu0  ;;  %v1393_v48 = vpop.f32.mrf.mxu1  ;;  %v1864_v60 = vadd.f32 %v3656_v43, %v1793_v63  ;;  %v1597_v8 = vadd.f32 %v1391_v11, %v106_v20 }
 0x168   :  { %v2666_v18 = vpack.c.bf16 %v2064_v6, %v2064_v6  ;;  %v2062_v19 = vsel %vm1927_vm12, %v1863_v42, %v1998_v59  ;;  %vm1930_vm13 = vcmp.gt.f32.partialorder %v1866_v44, 0.0  ;;  %v2001_v36 = vmul.f32 %v3666_v4, %v1866_v44  ;;  %v112_v42 = vld [vmem:[#allocation2 + $0xb0] sm:$0xff] }
 0x169   :  { %v2664_v32 = vpack.c.bf16 %v2062_v19, %v2062_v19  ;;  %v1798_v52 = vmul.f32 %v3649_v0, %v1727_v10  ;;  %v1725_v12 = vld [vmem:[#allocation2 + $0x60] sm:$0xff]  ;;  %v1728_v30 = vld [vmem:[#allocation2 + $0x78] sm:$0xff]  ;;  %v1600_v31 = vadd.f32 %v1402_v15, %v109_v14  ;;  %v1394_v34 = vadd.f32 %v1393_v48, %v3636_v7  ;;  %v3776_v35 = vpop.f32.mrf.mxu0  ;;  %v2780_v38 = vpop.f32.mrf.mxu1  ;;  %1662 = vst.msk [vmem:[#allocation2 + $0x80] sm:$0xff] %vm25_vm1, %v1597_v8 }
 0x16a   :  { %2385 = vst.msk [vmem:[%s4310_s5 + $0x28] sm:$0xf] %vm2374_vm3, %v2666_v18  ;;  %v2065_v54 = vsel %vm1930_vm13, %v1866_v44, %v2001_v36  ;;  %vm1928_vm14 = vcmp.gt.f32.partialorder %v1864_v60, 0.0  ;;  %v1999_v56 = vmul.f32 %v3666_v4, %v1864_v60  ;;  %v1796_v46 = vmul.f32 %v3649_v0, %v1725_v12  ;;  %v110_v19 = vld [vmem:[#allocation2 + $0xa0] sm:$0xff] }
 0x16b   :  { %2383 = vst.msk [vmem:[%s4310_s5 + $0x20] sm:$0xf] %vm2374_vm3, %v2664_v32  ;;  %v2667_v40 = vpack.c.bf16 %v2065_v54, %v2065_v54  ;;  %v1869_v39 = vadd.f32 %v3656_v43, %v1798_v52  ;;  %v1799_v7 = vmul.f32 %v3649_v0, %v1728_v30  ;;  %v1598_v50 = vadd.f32 %v1394_v34, %v107_v24  ;;  %v1143_v55 = vpop.f32.mrf.mxu0  ;;  %v1406_v58 = vpop.f32.mrf.mxu1  ;;  %v113_v30 = vld [vmem:[#allocation2 + $0xb8] sm:$0xff]  ;;  %v111_v34 = vld [vmem:[#allocation2 + $0xa8] sm:$0xff] }
 0x16c   :  { %v1726_v28 = vld [vmem:[#allocation2 + $0x68] sm:$0xff]  ;;  %1665 = vst.msk [vmem:[#allocation2 + $0x98] sm:$0xff] %vm25_vm1, %v1600_v31  ;;  %v1415_v51 = vadd.f32 %v2780_v38, %v3704_v23  ;;  %v2063_v26 = vsel %vm1928_vm14, %v1864_v60, %v1999_v56  ;;  %v1867_v20 = vadd.f32 %v3656_v43, %v1796_v46  ;;  %v1407_v36 = vadd.f32 %v1406_v58, %v3672_v16 }
 0x16d   :  { %2386 = vst.msk [vmem:[%s4310_s5 + $0x2c] sm:$0xf] %vm2374_vm3, %v2667_v40  ;;  %vm1933_vm15 = vcmp.gt.f32.partialorder %v1869_v39, 0.0  ;;  %v2004_v59 = vmul.f32 %v3666_v4, %v1869_v39  ;;  %v1797_v44 = vmul.f32 %v3649_v0, %v1726_v28  ;;  %v2665_v63 = vpack.c.bf16 %v2063_v26, %v2063_v26  ;;  %v3798_v10 = vpop.f32.mrf.mxu0  ;;  %v2781_v11 = vpop.f32.mrf.mxu1 }
 0x16e   :  { %v1870_v3 = vadd.f32 %v3656_v43, %v1799_v7  ;;  %v1731_v6 = vld [vmem:[#allocation2 + $0x90] sm:$0xff]  ;;  %1663 = vst.msk [vmem:[#allocation2 + $0x88] sm:$0xff] %vm25_vm1, %v1598_v50  ;;  %v1603_v23 = vadd.f32 %v1415_v51, %v112_v42  ;;  %vm1931_vm0 = vcmp.gt.f32.partialorder %v1867_v20, 0.0  ;;  %v2002_v48 = vmul.f32 %v3666_v4, %v1867_v20 }
 0x16f   :  { %v2068_v14 = vsel %vm1933_vm15, %v1869_v39, %v2004_v59  ;;  %v1868_v15 = vadd.f32 %v3656_v43, %v1797_v44  ;;  %v1802_v18 = vmul.f32 %v3649_v0, %v1731_v6  ;;  %2384 = vst.msk [vmem:[%s4310_s5 + $0x24] sm:$0xf] %vm2374_vm3, %v2665_v63  ;;  %v1146_v32 = vpop.f32.mrf.mxu0  ;;  %v1409_v60 = vpop.f32.mrf.mxu1  ;;  %v1601_v12 = vadd.f32 %v1407_v36, %v110_v19 }
 0x170   :  { %v2670_v22 = vpack.c.bf16 %v2068_v14, %v2068_v14  ;;  %vm1934_vm2 = vcmp.gt.f32.partialorder %v1870_v3, 0.0  ;;  %1668 = vst.msk [vmem:[#allocation2 + $0xb0] sm:$0xff] %vm25_vm1, %v1603_v23  ;;  %v2005_v52 = vmul.f32 %v3666_v4, %v1870_v3  ;;  %v2066_v24 = vsel %vm1931_vm0, %v1867_v20, %v2002_v48  ;;  %v1729_v54 = vld [vmem:[#allocation2 + $0x80] sm:$0xff] }
 0x171   :  { %vm1932_vm4 = vcmp.gt.f32.partialorder %v1868_v15, 0.0  ;;  %v2003_v8 = vmul.f32 %v3666_v4, %v1868_v15  ;;  %v1873_v16 = vadd.f32 %v3656_v43, %v1802_v18  ;;  %v1418_v31 = vadd.f32 %v2781_v11, %v3719_v62  ;;  %v3818_v40 = vpop.f32.mrf.mxu0  ;;  %v2784_v56 = vpop.f32.mrf.mxu1  ;;  %1666 = vst.msk [vmem:[#allocation2 + $0xa0] sm:$0xff] %vm25_vm1, %v1601_v12  ;;  %v116_v62 = vld [vmem:[#allocation2 + $0xd0] sm:$0xff]  ;;  %v114_v11 = vld [vmem:[#allocation2 + $0xc0] sm:$0xff] }
 0x172   :  { %2389 = vst.msk [vmem:[%s4310_s5 + $0x38] sm:$0xf] %vm2374_vm3, %v2670_v22  ;;  %v1410_v38 = vadd.f32 %v1409_v60, %v3684_v47  ;;  %v2668_v39 = vpack.c.bf16 %v2066_v24, %v2066_v24  ;;  %v2069_v42 = vsel %vm1934_vm2, %v1870_v3, %v2005_v52  ;;  %v1800_v55 = vmul.f32 %v3649_v0, %v1729_v54 }
 0x173   :  { %v2067_v46 = vsel %vm1932_vm4, %v1868_v15, %v2003_v8  ;;  %vm1937_vm5 = vcmp.gt.f32.partialorder %v1873_v16, 0.0  ;;  %v1732_v7 = vld [vmem:[#allocation2 + $0x98] sm:$0xff]  ;;  %v2671_v28 = vpack.c.bf16 %v2069_v42, %v2069_v42  ;;  %v2008_v51 = vmul.f32 %v3666_v4, %v1873_v16  ;;  %v1151_v58 = vpop.f32.mrf.mxu0  ;;  %v1422_v47 = vpop.f32.mrf.mxu1 }
 0x174   :  { %v2669_v50 = vpack.c.bf16 %v2067_v46, %v2067_v46  ;;  %2387 = vst.msk [vmem:[%s4310_s5 + $0x30] sm:$0xf] %vm2374_vm3, %v2668_v39  ;;  %v1803_v26 = vmul.f32 %v3649_v0, %v1732_v7  ;;  %v1604_v44 = vadd.f32 %v1418_v31, %v113_v30  ;;  %v1602_v63 = vadd.f32 %v1410_v38, %v111_v34  ;;  %v117_v15 = vld [vmem:[#allocation2 + $0xd8] sm:$0xff]  ;;  %v115_v34 = vld [vmem:[#allocation2 + $0xc8] sm:$0xff] }
 0x175   :  { %v1730_v59 = vld [vmem:[#allocation2 + $0x88] sm:$0xff]  ;;  %v1431_v20 = vadd.f32 %v2784_v56, %v3776_v35  ;;  %2390 = vst.msk [vmem:[%s4310_s5 + $0x3c] sm:$0xf] %vm2374_vm3, %v2671_v28  ;;  %v2072_v3 = vsel %vm1937_vm5, %v1873_v16, %v2008_v51  ;;  %v1871_v6 = vadd.f32 %v3656_v43, %v1800_v55  ;;  %v1423_v14 = vadd.f32 %v1422_v47, %v3742_v27  ;;  %v3842_v35 = vpop.f32.mrf.mxu0  ;;  %v2785_v18 = vpop.f32.mrf.mxu1  ;;  %v120_v56 = vld [vmem:[#allocation2 + $0xf0] sm:$0xff] }
 0x176   :  { %2388 = vst.msk [vmem:[%s4310_s5 + $0x34] sm:$0xf] %vm2374_vm3, %v2669_v50  ;;  %v1801_v23 = vmul.f32 %v3649_v0, %v1730_v59  ;;  %v2674_v19 = vpack.c.bf16 %v2072_v3, %v2072_v3  ;;  %v1874_v36 = vadd.f32 %v3656_v43, %v1803_v26  ;;  %v1434_v32 = vadd.f32 %v2785_v18, %v3798_v10 }
 0x177   :  { %v1735_v22 = vld [vmem:[#allocation2 + $0xb0] sm:$0xff]  ;;  %1669 = vst.msk [vmem:[#allocation2 + $0xb8] sm:$0xff] %vm25_vm1, %v1604_v44  ;;  %1667 = vst.msk [vmem:[#allocation2 + $0xa8] sm:$0xff] %vm25_vm1, %v1602_v63  ;;  %v1607_v48 = vadd.f32 %v1431_v20, %v116_v62  ;;  %vm1935_vm6 = vcmp.gt.f32.partialorder %v1871_v6, 0.0  ;;  %v2006_v60 = vmul.f32 %v3666_v4, %v1871_v6  ;;  %v1154_v8 = vpop.f32.mrf.mxu0  ;;  %v1425_v16 = vpop.f32.mrf.mxu1  ;;  %v1605_v10 = vadd.f32 %v1423_v14, %v114_v11  ;;  %v118_v20 = vld [vmem:[#allocation2 + $0xe0] sm:$0xff] }
 0x178   :  { %v1872_v27 = vadd.f32 %v3656_v43, %v1801_v23  ;;  %v1806_v52 = vmul.f32 %v3649_v0, %v1735_v22  ;;  %2393 = vst.msk [vmem:[%s4310_s5 + $0x48] sm:$0xf] %vm2374_vm3, %v2674_v19  ;;  %vm1938_vm7 = vcmp.gt.f32.partialorder %v1874_v36, 0.0  ;;  %v2009_v24 = vmul.f32 %v3666_v4, %v1874_v36  ;;  %v1733_v7 = vld [vmem:[#allocation2 + $0xa0] sm:$0xff]  ;;  %v121_v22 = vld [vmem:[#allocation2 + $0xf8] sm:$0xff] }
 0x179   :  { %1672 = vst.msk [vmem:[#allocation2 + $0xd0] sm:$0xff] %vm25_vm1, %v1607_v48  ;;  %v1608_v54 = vadd.f32 %v1434_v32, %v117_v15  ;;  %v2070_v12 = vsel %vm1935_vm6, %v1871_v6, %v2006_v60  ;;  %v1157_v38 = vpop.f32.mrf.mxu0  ;;  %v2788_v39 = vpop.f32.mrf.mxu1  ;;  %1670 = vst.msk [vmem:[#allocation2 + $0xc0] sm:$0xff] %vm25_vm1, %v1605_v10  ;;  %v1426_v28 = vadd.f32 %v1425_v16, %v3759_v2 }
 0x17a   :  { %vm1936_vm8 = vcmp.gt.f32.partialorder %v1872_v27, 0.0  ;;  %v2007_v30 = vmul.f32 %v3666_v4, %v1872_v27  ;;  %v1877_v31 = vadd.f32 %v3656_v43, %v1806_v52  ;;  %v2672_v42 = vpack.c.bf16 %v2070_v12, %v2070_v12 }
 0x17b   :  { %v2073_v46 = vsel %vm1938_vm7, %v1874_v36, %v2009_v24  ;;  %1673 = vst.msk [vmem:[#allocation2 + $0xd8] sm:$0xff] %vm25_vm1, %v1608_v54  ;;  %v1447_v50 = vadd.f32 %v2788_v39, %v1157_v38  ;;  %v1159_v58 = vpop.f32.mrf.mxu0  ;;  %v1438_v47 = vpop.f32.mrf.mxu1  ;;  %v1804_v59 = vmul.f32 %v3649_v0, %v1733_v7  ;;  %v1606_v44 = vadd.f32 %v1426_v28, %v115_v34 }
 0x17c   :  { %v2675_v51 = vpack.c.bf16 %v2073_v46, %v2073_v46  ;;  %v2071_v55 = vsel %vm1936_vm8, %v1872_v27, %v2007_v30  ;;  %vm1941_vm9 = vcmp.gt.f32.partialorder %v1877_v31, 0.0  ;;  %v2012_v62 = vmul.f32 %v3666_v4, %v1877_v31  ;;  %2391 = vst.msk [vmem:[%s4310_s5 + $0x40] sm:$0xf] %vm2374_vm3, %v2672_v42  ;;  %v119_v30 = vld [vmem:[#allocation2 + $0xe8] sm:$0xff]  ;;  %v122_v58 = vld [vmem:[#allocation2 + $0x100] sm:$0xff] }
 0x17d   :  { %v2673_v26 = vpack.c.bf16 %v2071_v55, %v2071_v55  ;;  %v1611_v63 = vadd.f32 %v1447_v50, %v120_v56  ;;  %v1439_v23 = vadd.f32 %v1438_v47, %v3818_v40  ;;  %v1160_v11 = vpop.f32.mrf.mxu0  ;;  %v2789_v14 = vpop.f32.mrf.mxu1  ;;  %v1875_v18 = vadd.f32 %v3656_v43, %v1804_v59  ;;  %1671 = vst.msk [vmem:[#allocation2 + $0xc8] sm:$0xff] %vm25_vm1, %v1606_v44 }
 0x17e   :  { %2394 = vst.msk [vmem:[%s4310_s5 + $0x4c] sm:$0xf] %vm2374_vm3, %v2675_v51  ;;  %v2076_v2 = vsel %vm1941_vm9, %v1877_v31, %v2012_v62  ;;  %v1736_v3 = vld [vmem:[#allocation2 + $0xb8] sm:$0xff]  ;;  %v1734_v6 = vld [vmem:[#allocation2 + $0xa8] sm:$0xff]  ;;  %v1450_v32 = vadd.f32 %v2789_v14, %v1160_v11 }
 0x17f   :  { %2392 = vst.msk [vmem:[%s4310_s5 + $0x44] sm:$0xf] %vm2374_vm3, %v2673_v26  ;;  %v2678_v15 = vpack.c.bf16 %v2076_v2, %v2076_v2  ;;  %v1807_v19 = vmul.f32 %v3649_v0, %v1736_v3  ;;  %v1805_v36 = vmul.f32 %v3649_v0, %v1734_v6  ;;  %v1609_v48 = vadd.f32 %v1439_v23, %v118_v20  ;;  %v1162_v60 = vpop.f32.mrf.mxu0  ;;  %v1441_v27 = vpop.f32.mrf.mxu1 }
 0x180   :  { %1676 = vst.msk [vmem:[#allocation2 + $0xf0] sm:$0xff] %vm25_vm1, %v1611_v63  ;;  %v1739_v40 = vld [vmem:[#allocation2 + $0xd0] sm:$0xff]  ;;  %vm1939_vm10 = vcmp.gt.f32.partialorder %v1875_v18, 0.0  ;;  %v2010_v52 = vmul.f32 %v3666_v4, %v1875_v18  ;;  %v1737_v10 = vld [vmem:[#allocation2 + $0xc0] sm:$0xff]  ;;  %v1612_v12 = vadd.f32 %v1450_v32, %v121_v22  ;;  %v1442_v31 = vadd.f32 %v1441_v27, %v3842_v35 }
 0x181   :  { %2397 = vst.msk [vmem:[%s4310_s5 + $0x58] sm:$0xf] %vm2374_vm3, %v2678_v15  ;;  %v1878_v8 = vadd.f32 %v3656_v43, %v1807_v19  ;;  %v1876_v16 = vadd.f32 %v3656_v43, %v1805_v36  ;;  %v1810_v24 = vmul.f32 %v3649_v0, %v1739_v40  ;;  %v1165_v34 = vpop.f32.mrf.mxu0  ;;  %v2792_v38 = vpop.f32.mrf.mxu1  ;;  %v1808_v28 = vmul.f32 %v3649_v0, %v1737_v10 }
 0x182   :  { %v1740_v54 = vld [vmem:[#allocation2 + $0xd8] sm:$0xff]  ;;  %1674 = vst.msk [vmem:[#allocation2 + $0xe0] sm:$0xff] %vm25_vm1, %v1609_v48  ;;  %v2074_v56 = vsel %vm1939_vm10, %v1875_v18, %v2010_v52  ;;  %1677 = vst.msk [vmem:[#allocation2 + $0xf8] sm:$0xff] %vm25_vm1, %v1612_v12  ;;  %v1610_v62 = vadd.f32 %v1442_v31, %v119_v30  ;;  %v123_v12 = vld [vmem:[#allocation2 + $0x108] sm:$0xff] }
 0x183   :  { %vm1942_vm11 = vcmp.gt.f32.partialorder %v1878_v8, 0.0  ;;  %v2013_v39 = vmul.f32 %v3666_v4, %v1878_v8  ;;  %vm1940_vm12 = vcmp.gt.f32.partialorder %v1876_v16, 0.0  ;;  %v2676_v42 = vpack.c.bf16 %v2074_v56, %v2074_v56  ;;  %v1167_v50 = vpop.f32.mrf.mxu0  ;;  %v1454_v51 = vpop.f32.mrf.mxu1  ;;  %v124_v31 = vld [vmem:[#allocation2 + $0x110] sm:$0xff] }
 0x184   :  { %v2011_v46 = vmul.f32 %v3666_v4, %v1876_v16  ;;  %v1881_v7 = vadd.f32 %v3656_v43, %v1810_v24  ;;  %v1811_v35 = vmul.f32 %v3649_v0, %v1740_v54  ;;  %v1455_v47 = vadd.f32 %v1454_v51, %v1165_v34  ;;  %v1738_v63 = vld [vmem:[#allocation2 + $0xc8] sm:$0xff]  ;;  %1675 = vst.msk [vmem:[#allocation2 + $0xe8] sm:$0xff] %vm25_vm1, %v1610_v62 }
 0x185   :  { %v2077_v55 = vsel %vm1942_vm11, %v1878_v8, %v2013_v39  ;;  %2395 = vst.msk [vmem:[%s4310_s5 + $0x50] sm:$0xf] %vm2374_vm3, %v2676_v42  ;;  %v1168_v2 = vpop.f32.mrf.mxu0  ;;  %v2793_v3 = vpop.f32.mrf.mxu1  ;;  %v1879_v23 = vadd.f32 %v3656_v43, %v1808_v28  ;;  %v1809_v14 = vmul.f32 %v3649_v0, %v1738_v63 }
 0x186   :  { %v2679_v26 = vpack.c.bf16 %v2077_v55, %v2077_v55  ;;  %v2075_v59 = vsel %vm1940_vm12, %v1876_v16, %v2011_v46  ;;  %vm1945_vm13 = vcmp.gt.f32.partialorder %v1881_v7, 0.0  ;;  %v2016_v44 = vmul.f32 %v3666_v4, %v1881_v7 }
 0x187   :  { %v1743_v20 = vld [vmem:[#allocation2 + $0xf0] sm:$0xff]  ;;  %v2677_v6 = vpack.c.bf16 %v2075_v59, %v2075_v59  ;;  %v1882_v11 = vadd.f32 %v3656_v43, %v1811_v35  ;;  %v1613_v19 = vadd.f32 %v1455_v47, %v122_v58  ;;  %v1170_v36 = vpop.f32.mrf.mxu0  ;;  %v1457_v22 = vpop.f32.mrf.mxu1  ;;  %vm1943_vm14 = vcmp.gt.f32.partialorder %v1879_v23, 0.0 }
 0x188   :  { %2398 = vst.msk [vmem:[%s4310_s5 + $0x5c] sm:$0xf] %vm2374_vm3, %v2679_v26  ;;  %v2080_v15 = vsel %vm1945_vm13, %v1881_v7, %v2016_v44  ;;  %v1814_v18 = vmul.f32 %v3649_v0, %v1743_v20  ;;  %v2014_v48 = vmul.f32 %v3666_v4, %v1879_v23  ;;  %v1880_v27 = vadd.f32 %v3656_v43, %v1809_v14 }
 0x189   :  { %2396 = vst.msk [vmem:[%s4310_s5 + $0x54] sm:$0xf] %vm2374_vm3, %v2677_v6  ;;  %v2682_v40 = vpack.c.bf16 %v2080_v15, %v2080_v15  ;;  %vm1946_vm15 = vcmp.gt.f32.partialorder %v1882_v11, 0.0  ;;  %v1741_v32 = vld [vmem:[#allocation2 + $0xe0] sm:$0xff]  ;;  %v2017_v60 = vmul.f32 %v3666_v4, %v1882_v11  ;;  %v1173_v16 = vpop.f32.mrf.mxu0  ;;  %v3922_v24 = vpop.f32.mrf.mxu1  ;;  %v1744_v54 = vld [vmem:[#allocation2 + $0xf8] sm:$0xff]  ;;  %v1458_v30 = vadd.f32 %v1457_v22, %v1168_v2 }
 0x18a   :  { %v1885_v52 = vadd.f32 %v3656_v43, %v1814_v18  ;;  %v1812_v8 = vmul.f32 %v3649_v0, %v1741_v32  ;;  %1678 = vst.msk [vmem:[#allocation2 + $0x100] sm:$0xff] %vm25_vm1, %v1613_v19  ;;  %v2078_v10 = vsel %vm1943_vm14, %v1879_v23, %v2014_v48  ;;  %v1463_v34 = vadd.f32 %v2792_v38, %v1173_v16  ;;  %v125_v23 = vld [vmem:[#allocation2 + $0x118] sm:$0xff] }
 0x18b   :  { %2401 = vst.msk [vmem:[%s4310_s5 + $0x68] sm:$0xf] %vm2374_vm3, %v2682_v40  ;;  %v2680_v56 = vpack.c.bf16 %v2078_v10, %v2078_v10  ;;  %v2081_v39 = vsel %vm1946_vm15, %v1882_v11, %v2017_v60  ;;  %vm1944_vm0 = vcmp.gt.f32.partialorder %v1880_v27, 0.0  ;;  %v2015_v42 = vmul.f32 %v3666_v4, %v1880_v27  ;;  %v1175_v46 = vpop.f32.mrf.mxu0  ;;  %v1470_v7 = vpop.f32.mrf.mxu1  ;;  %v1742_v35 = vld [vmem:[#allocation2 + $0xe8] sm:$0xff]  ;;  %v126_v40 = vld [vmem:[#allocation2 + $0x120] sm:$0xff] }
 0x18c   :  { %v2683_v28 = vpack.c.bf16 %v2081_v39, %v2081_v39  ;;  %vm1949_vm2 = vcmp.gt.f32.partialorder %v1885_v52, 0.0  ;;  %v2020_v50 = vmul.f32 %v3666_v4, %v1885_v52  ;;  %v1883_v51 = vadd.f32 %v3656_v43, %v1812_v8 }
 0x18d   :  { %2399 = vst.msk [vmem:[%s4310_s5 + $0x60] sm:$0xf] %vm2374_vm3, %v2680_v56  ;;  %v2079_v38 = vsel %vm1944_vm0, %v1880_v27, %v2015_v42  ;;  %v1815_v55 = vmul.f32 %v3649_v0, %v1744_v54  ;;  %v1614_v62 = vadd.f32 %v1458_v30, %v123_v12  ;;  %v1615_v58 = vadd.f32 %v1463_v34, %v124_v31  ;;  %v1176_v47 = vpop.f32.mrf.mxu0  ;;  %v3937_v26 = vpop.f32.mrf.mxu1  ;;  %v127_v56 = vld [vmem:[#allocation2 + $0x128] sm:$0xff] }
 0x18e   :  { %2402 = vst.msk [vmem:[%s4310_s5 + $0x6c] sm:$0xf] %vm2374_vm3, %v2683_v28  ;;  %v2681_v59 = vpack.c.bf16 %v2079_v38, %v2079_v38  ;;  %v2084_v44 = vsel %vm1949_vm2, %v1885_v52, %v2020_v50  ;;  %vm1947_vm4 = vcmp.gt.f32.partialorder %v1883_v51, 0.0  ;;  %v2018_v63 = vmul.f32 %v3666_v4, %v1883_v51 }
 0x18f   :  { %v2686_v20 = vpack.c.bf16 %v2084_v44, %v2084_v44  ;;  %v1886_v2 = vadd.f32 %v3656_v43, %v1815_v55  ;;  %v1813_v6 = vmul.f32 %v3649_v0, %v1742_v35  ;;  %1679 = vst.msk [vmem:[#allocation2 + $0x108] sm:$0xff] %vm25_vm1, %v1614_v62  ;;  %1680 = vst.msk [vmem:[#allocation2 + $0x110] sm:$0xff] %vm25_vm1, %v1615_v58  ;;  %v1178_v14 = vpop.f32.mrf.mxu0  ;;  %v1473_v15 = vpop.f32.mrf.mxu1 }
 0x190   :  { %v1466_v11 = vadd.f32 %v2793_v3, %v1176_v47  ;;  %2400 = vst.msk [vmem:[%s4310_s5 + $0x64] sm:$0xf] %vm2374_vm3, %v2681_v59  ;;  %v2082_v18 = vsel %vm1947_vm4, %v1883_v51, %v2018_v63 }
 0x191   :  { %v1745_v19 = vld [vmem:[#allocation2 + $0x100] sm:$0xff]  ;;  %2405 = vst.msk [vmem:[%s4310_s5 + $0x78] sm:$0xf] %vm2374_vm3, %v2686_v20  ;;  %v2684_v36 = vpack.c.bf16 %v2082_v18, %v2082_v18  ;;  %vm1950_vm5 = vcmp.gt.f32.partialorder %v1886_v2, 0.0  ;;  %v2021_v22 = vmul.f32 %v3666_v4, %v1886_v2  ;;  %v1884_v3 = vadd.f32 %v3656_v43, %v1813_v6  ;;  %v1181_v48 = vpop.f32.mrf.mxu0  ;;  %v3958_v32 = vpop.f32.mrf.mxu1  ;;  %v128_v20 = vld [vmem:[#allocation2 + $0x130] sm:$0xff] }
 0x192   :  { %v1816_v60 = vmul.f32 %v3649_v0, %v1745_v19  ;;  %v1616_v27 = vadd.f32 %v1466_v11, %v125_v23  ;;  %v1471_v52 = vadd.f32 %v1470_v7, %v1181_v48 }
 0x193   :  { %2403 = vst.msk [vmem:[%s4310_s5 + $0x70] sm:$0xf] %vm2374_vm3, %v2684_v36  ;;  %v2085_v8 = vsel %vm1950_vm5, %v1886_v2, %v2021_v22  ;;  %vm1948_vm6 = vcmp.gt.f32.partialorder %v1884_v3, 0.0  ;;  %v2019_v16 = vmul.f32 %v3666_v4, %v1884_v3  ;;  %v1183_v10 = vpop.f32.mrf.mxu0  ;;  %v3966_v54 = vpop.f32.mrf.mxu1 }
 0x194   :  { %v2687_v12 = vpack.c.bf16 %v2085_v8, %v2085_v8  ;;  %v1887_v30 = vadd.f32 %v3656_v43, %v1816_v60  ;;  %1681 = vst.msk [vmem:[#allocation2 + $0x118] sm:$0xff] %vm25_vm1, %v1616_v27  ;;  %v1617_v31 = vadd.f32 %v1471_v52, %v126_v40  ;;  %v129_v10 = vld [vmem:[#allocation2 + $0x138] sm:$0xff] }
 0x195   :  { %v2083_v34 = vsel %vm1948_vm6, %v1884_v3, %v2019_v16  ;;  %v1184_v39 = vpop.f32.mrf.mxu0  ;;  %v3970_v42 = vpop.f32.mrf.mxu1 }
 0x196   :  { %2406 = vst.msk [vmem:[%s4310_s5 + $0x7c] sm:$0xf] %vm2374_vm3, %v2687_v12  ;;  %v2685_v46 = vpack.c.bf16 %v2083_v34, %v2083_v34  ;;  %vm1951_vm7 = vcmp.gt.f32.partialorder %v1887_v30, 0.0  ;;  %v2022_v7 = vmul.f32 %v3666_v4, %v1887_v30  ;;  %v1746_v28 = vld [vmem:[#allocation2 + $0x108] sm:$0xff]  ;;  %v1747_v50 = vld [vmem:[#allocation2 + $0x110] sm:$0xff]  ;;  %v1474_v51 = vadd.f32 %v1473_v15, %v1184_v39 }
 0x197   :  { %1682 = vst.msk [vmem:[#allocation2 + $0x120] sm:$0xff] %vm25_vm1, %v1617_v31  ;;  %v1817_v38 = vmul.f32 %v3649_v0, %v1746_v28  ;;  %v1818_v55 = vmul.f32 %v3649_v0, %v1747_v50  ;;  %v1186_v35 = vpop.f32.mrf.mxu0  ;;  %v3980_v62 = vpop.f32.mrf.mxu1  ;;  %v4023_v50 = vld [vmem:[%s4307_s2] ss:$0 sm:$0xff] }
 0x198   :  { %2404 = vst.msk [vmem:[%s4310_s5 + $0x74] sm:$0xf] %vm2374_vm3, %v2685_v46  ;;  %v2086_v58 = vsel %vm1951_vm7, %v1887_v30, %v2022_v7  ;;  %v1618_v47 = vadd.f32 %v1474_v51, %v127_v56 }
 0x199   :  { %v2688_v59 = vpack.c.bf16 %v2086_v58, %v2086_v58  ;;  %v1888_v44 = vadd.f32 %v3656_v43, %v1817_v38  ;;  %v1889_v63 = vadd.f32 %v3656_v43, %v1818_v55  ;;  %v1189_v2 = vpop.f32.mrf.mxu0  ;;  %v3988_v6 = vpop.f32.mrf.mxu1  ;;  %v130_v38 = vld [vmem:[#allocation2 + $0x140] sm:$0xff]  ;;  %v140_v55 = vld [vmem:[#allocation2 + $0x190] sm:$0xff] }
 0x19a   :  { %1683 = vst.msk [vmem:[#allocation2 + $0x128] sm:$0xff] %vm25_vm1, %v1618_v47  ;;  %v1479_v23 = vadd.f32 %v3922_v24, %v1189_v2 }
 0x19b   :  { %2407 = vst.msk [vmem:[%s4310_s5 + $0x80] sm:$0xf] %vm2374_vm3, %v2688_v59  ;;  %vm1952_vm8 = vcmp.gt.f32.partialorder %v1888_v44, 0.0  ;;  %v2023_v11 = vmul.f32 %v3666_v4, %v1888_v44  ;;  %vm1953_vm9 = vcmp.gt.f32.partialorder %v1889_v63, 0.0  ;;  %v2024_v14 = vmul.f32 %v3666_v4, %v1889_v63  ;;  %v1748_v15 = vld [vmem:[#allocation2 + $0x118] sm:$0xff]  ;;  %v1191_v18 = vpop.f32.mrf.mxu0  ;;  %v3998_v19 = vpop.f32.mrf.mxu1  ;;  %v138_v59 = vld [vmem:[#allocation2 + $0x180] sm:$0xff] }
 0x19c   :  { %v1819_v36 = vmul.f32 %v3649_v0, %v1748_v15  ;;  %v1619_v22 = vadd.f32 %v1479_v23, %v128_v20  ;;  %v4043_v18 = vld [vmem:[%s4309_s4] ss:$0 sm:$0xff] }
 0x19d   :  { %v2087_v3 = vsel %vm1952_vm8, %v1888_v44, %v2023_v11  ;;  %v2088_v24 = vsel %vm1953_vm9, %v1889_v63, %v2024_v14  ;;  %v1192_v48 = vpop.f32.mrf.mxu0  ;;  %v4001_v60 = vpop.f32.mrf.mxu1  ;;  %v4032_v63 = vld [vmem:[%s4308_s3] ss:$0 sm:$0xff] }
 0x19e   :  { %v1749_v40 = vld [vmem:[#allocation2 + $0x120] sm:$0xff]  ;;  %v2689_v27 = vpack.c.bf16 %v2087_v3, %v2087_v3  ;;  %v2690_v52 = vpack.c.bf16 %v2088_v24, %v2088_v24  ;;  %v1890_v8 = vadd.f32 %v3656_v43, %v1819_v36  ;;  %1684 = vst.msk [vmem:[#allocation2 + $0x130] sm:$0xff] %vm25_vm1, %v1619_v22  ;;  %v1482_v12 = vadd.f32 %v3937_v26, %v1192_v48  ;;  %v131_v3 = vld [vmem:[#allocation2 + $0x148] sm:$0xff]  ;;  %v141_v24 = vld [vmem:[#allocation2 + $0x198] sm:$0xff] }
 0x19f   :  { %v1820_v16 = vmul.f32 %v3649_v0, %v1749_v40  ;;  %v1194_v30 = vpop.f32.mrf.mxu0  ;;  %v4007_v31 = vpop.f32.mrf.mxu1 }
 0x1a0   :  { %2408 = vst.msk [vmem:[%s4310_s5 + $0x84] sm:$0xf] %vm2374_vm3, %v2689_v27  ;;  %2409 = vst.msk [vmem:[%s4310_s5 + $0x88] sm:$0xf] %vm2374_vm3, %v2690_v52  ;;  %vm1954_vm10 = vcmp.gt.f32.partialorder %v1890_v8, 0.0  ;;  %v2025_v0 = vmul.f32 %v3666_v4, %v1890_v8  ;;  %v1620_v26 = vadd.f32 %v1482_v12, %v129_v10  ;;  %v139_v52 = vld [vmem:[#allocation2 + $0x188] sm:$0xff] }
 0x1a1   :  { %v1891_v34 = vadd.f32 %v3656_v43, %v1820_v16  ;;  %v1750_v56 = vld [vmem:[#allocation2 + $0x128] sm:$0xff]  ;;  %v1197_v39 = vpop.f32.mrf.mxu0  ;;  %v2808_v46 = vpop.f32.mrf.mxu1 }
 0x1a2   :  { %v2089_v7 = vsel %vm1954_vm10, %v1890_v8, %v2025_v0  ;;  %v1821_v51 = vmul.f32 %v4023_v50, %v1750_v56  ;;  %1685 = vst.msk [vmem:[#allocation2 + $0x138] sm:$0xff] %vm25_vm1, %v1620_v26  ;;  %v1487_v43 = vadd.f32 %v3966_v54, %v1197_v39  ;;  %v1527_v58 = vadd.f32 %v2808_v46, %v3579_v61  ;;  %v132_v56 = vld [vmem:[#allocation2 + $0x150] sm:$0xff] }
 0x1a3   :  { %vm1955_vm11 = vcmp.gt.f32.partialorder %v1891_v34, 0.0  ;;  %v2026_v28 = vmul.f32 %v3666_v4, %v1891_v34  ;;  %v2691_v35 = vpack.c.bf16 %v2089_v7, %v2089_v7  ;;  %v1199_v47 = vpop.f32.mrf.mxu0  ;;  %v1518_v44 = vpop.f32.mrf.mxu1 }
 0x1a4   :  { %v1892_v20 = vadd.f32 %v4032_v63, %v1821_v51  ;;  %v1519_v2 = vadd.f32 %v1518_v44, %v3573_v53  ;;  %v1621_v23 = vadd.f32 %v1487_v43, %v130_v38  ;;  %v1631_v11 = vadd.f32 %v1527_v58, %v140_v55  ;;  %v142_v55 = vld [vmem:[#allocation2 + $0x1a0] sm:$0xff] }
 0x1a5   :  { %v2090_v4 = vsel %vm1955_vm11, %v1891_v34, %v2026_v28  ;;  %2410 = vst.msk [vmem:[%s4310_s5 + $0x8c] sm:$0xf] %vm2374_vm3, %v2691_v35  ;;  %v1751_v61 = vld [vmem:[#allocation2 + $0x130] sm:$0xff]  ;;  %v1200_v14 = vpop.f32.mrf.mxu0  ;;  %v2809_v15 = vpop.f32.mrf.mxu1 }
 0x1a6   :  { %v2692_v54 = vpack.c.bf16 %v2090_v4, %v2090_v4  ;;  %vm1956_vm12 = vcmp.gt.f32.partialorder %v1892_v20, 0.0  ;;  %v2027_v36 = vmul.f32 %v4043_v18, %v1892_v20  ;;  %v1822_v53 = vmul.f32 %v4023_v50, %v1751_v61  ;;  %1686 = vst.msk [vmem:[#allocation2 + $0x140] sm:$0xff] %vm25_vm1, %v1621_v23  ;;  %1696 = vst.msk [vmem:[#allocation2 + $0x190] sm:$0xff] %vm25_vm1, %v1631_v11  ;;  %v144_v28 = vld [vmem:[#allocation2 + $0x1b0] sm:$0xff]  ;;  %v133_v4 = vld [vmem:[#allocation2 + $0x158] sm:$0xff] }
 0x1a7   :  { %v1629_v22 = vadd.f32 %v1519_v2, %v138_v59  ;;  %v1490_v40 = vadd.f32 %v3980_v62, %v1200_v14  ;;  %v1530_v48 = vadd.f32 %v2809_v15, %v3583_v1  ;;  %v1202_v27 = vpop.f32.mrf.mxu0  ;;  %v1521_v8 = vpop.f32.mrf.mxu1  ;;  %v145_v2 = vld [vmem:[#allocation2 + $0x1b8] sm:$0xff] }
 0x1a8   :  { %2411 = vst.msk [vmem:[%s4310_s5 + $0x90] sm:$0xf] %vm2374_vm3, %v2692_v54  ;;  %v2091_v16 = vsel %vm1956_vm12, %v1892_v20, %v2027_v36  ;;  %v1893_v10 = vadd.f32 %v4032_v63, %v1822_v53  ;;  %v1522_v12 = vadd.f32 %v1521_v8, %v3577_v57 }
 0x1a9   :  { %1694 = vst.msk [vmem:[#allocation2 + $0x180] sm:$0xff] %vm25_vm1, %v1629_v22  ;;  %v2693_v30 = vpack.c.bf16 %v2091_v16, %v2091_v16  ;;  %v1622_v0 = vadd.f32 %v1490_v40, %v131_v3  ;;  %v1632_v34 = vadd.f32 %v1530_v48, %v141_v24  ;;  %v1205_v26 = vpop.f32.mrf.mxu0  ;;  %v2812_v39 = vpop.f32.mrf.mxu1  ;;  %v1752_v1 = vld [vmem:[#allocation2 + $0x138] sm:$0xff]  ;;  %v143_v3 = vld [vmem:[#allocation2 + $0x1a8] sm:$0xff] }
 0x1aa   :  { %vm1957_vm13 = vcmp.gt.f32.partialorder %v1893_v10, 0.0  ;;  %v2028_v62 = vmul.f32 %v4043_v18, %v1893_v10  ;;  %v1630_v46 = vadd.f32 %v1522_v12, %v139_v52  ;;  %v1495_v7 = vadd.f32 %v3958_v32, %v1205_v26  ;;  %v134_v26 = vld [vmem:[#allocation2 + $0x160] sm:$0xff] }
 0x1ab   :  { %2412 = vst.msk [vmem:[%s4310_s5 + $0x94] sm:$0xf] %vm2374_vm3, %v2693_v30  ;;  %v1823_v57 = vmul.f32 %v4023_v50, %v1752_v1  ;;  %v1543_v51 = vadd.f32 %v2812_v39, %v3595_v13  ;;  %v1207_v38 = vpop.f32.mrf.mxu0  ;;  %v1534_v35 = vpop.f32.mrf.mxu1 }
 0x1ac   :  { %1687 = vst.msk [vmem:[#allocation2 + $0x148] sm:$0xff] %vm25_vm1, %v1622_v0  ;;  %1697 = vst.msk [vmem:[#allocation2 + $0x198] sm:$0xff] %vm25_vm1, %v1632_v34  ;;  %v2092_v43 = vsel %vm1957_vm13, %v1893_v10, %v2028_v62  ;;  %v1623_v32 = vadd.f32 %v1495_v7, %v132_v56  ;;  %v1535_v58 = vadd.f32 %v1534_v35, %v3587_v5 }
 0x1ad   :  { %1695 = vst.msk [vmem:[#allocation2 + $0x188] sm:$0xff] %vm25_vm1, %v1630_v46  ;;  %v2694_v47 = vpack.c.bf16 %v2092_v43, %v2092_v43  ;;  %v1894_v59 = vadd.f32 %v4032_v63, %v1823_v57  ;;  %v1635_v44 = vadd.f32 %v1543_v51, %v144_v28  ;;  %v1208_v20 = vpop.f32.mrf.mxu0  ;;  %v2813_v54 = vpop.f32.mrf.mxu1  ;;  %v1753_v61 = vld [vmem:[#allocation2 + $0x140] sm:$0xff]  ;;  %v1763_v23 = vld [vmem:[#allocation2 + $0x190] sm:$0xff] }
 0x1ae   :  { %1688 = vst.msk [vmem:[#allocation2 + $0x150] sm:$0xff] %vm25_vm1, %v1623_v32  ;;  %v1633_v13 = vadd.f32 %v1535_v58, %v142_v55  ;;  %v1498_v11 = vadd.f32 %v3970_v42, %v1208_v20  ;;  %v1546_v14 = vadd.f32 %v2813_v54, %v3599_v17  ;;  %v1824_v15 = vmul.f32 %v4023_v50, %v1753_v61 }
 0x1af   :  { %2413 = vst.msk [vmem:[%s4310_s5 + $0x98] sm:$0xf] %vm2374_vm3, %v2694_v47  ;;  %vm1958_vm14 = vcmp.gt.f32.partialorder %v1894_v59, 0.0  ;;  %v2029_v5 = vmul.f32 %v4043_v18, %v1894_v59  ;;  %v1834_v36 = vmul.f32 %v4023_v50, %v1763_v23  ;;  %v1210_v22 = vpop.f32.mrf.mxu0  ;;  %v1537_v42 = vpop.f32.mrf.mxu1 }
 0x1b0   :  { %v1761_v53 = vld [vmem:[#allocation2 + $0x180] sm:$0xff]  ;;  %1700 = vst.msk [vmem:[#allocation2 + $0x1b0] sm:$0xff] %vm25_vm1, %v1635_v44  ;;  %1698 = vst.msk [vmem:[#allocation2 + $0x1a0] sm:$0xff] %vm25_vm1, %v1633_v13  ;;  %v1624_v24 = vadd.f32 %v1498_v11, %v133_v4  ;;  %v1636_v40 = vadd.f32 %v1546_v14, %v145_v2  ;;  %v1538_v48 = vadd.f32 %v1537_v42, %v3591_v9 }
 0x1b1   :  { %v1832_v17 = vmul.f32 %v4023_v50, %v1761_v53  ;;  %v2093_v27 = vsel %vm1958_vm14, %v1894_v59, %v2029_v5  ;;  %v1895_v52 = vadd.f32 %v4032_v63, %v1824_v15  ;;  %v1905_v8 = vadd.f32 %v4032_v63, %v1834_v36  ;;  %v1213_v16 = vpop.f32.mrf.mxu0  ;;  %v4087_v10 = vpop.f32.mrf.mxu1 }
 0x1b2   :  { %v2695_v12 = vpack.c.bf16 %v2093_v27, %v2093_v27  ;;  %1689 = vst.msk [vmem:[#allocation2 + $0x158] sm:$0xff] %vm25_vm1, %v1624_v24  ;;  %1701 = vst.msk [vmem:[#allocation2 + $0x1b8] sm:$0xff] %vm25_vm1, %v1636_v40  ;;  %v1634_v56 = vadd.f32 %v1538_v48, %v143_v3  ;;  %v1503_v9 = vadd.f32 %v3998_v19, %v1213_v16 }
 0x1b3   :  { %v1903_v30 = vadd.f32 %v4032_v63, %v1832_v17  ;;  %v1754_v0 = vld [vmem:[#allocation2 + $0x148] sm:$0xff]  ;;  %v1764_v34 = vld [vmem:[#allocation2 + $0x198] sm:$0xff]  ;;  %vm1959_vm15 = vcmp.gt.f32.partialorder %v1895_v52, 0.0  ;;  %v2030_v39 = vmul.f32 %v4043_v18, %v1895_v52  ;;  %vm1969_vm0 = vcmp.gt.f32.partialorder %v1905_v8, 0.0  ;;  %v1215_v46 = vpop.f32.mrf.mxu0  ;;  %v4095_v7 = vpop.f32.mrf.mxu1 }
 0x1b4   :  { %v2040_v62 = vmul.f32 %v4043_v18, %v1905_v8  ;;  %v1762_v1 = vld [vmem:[#allocation2 + $0x188] sm:$0xff]  ;;  %2414 = vst.msk [vmem:[%s4310_s5 + $0x9c] sm:$0xf] %vm2374_vm3, %v2695_v12  ;;  %v1825_v19 = vmul.f32 %v4023_v50, %v1754_v0  ;;  %v1835_v57 = vmul.f32 %v4023_v50, %v1764_v34  ;;  %v1625_v43 = vadd.f32 %v1503_v9, %v134_v26 }
 0x1b5   :  { %vm1967_vm2 = vcmp.gt.f32.partialorder %v1903_v30, 0.0  ;;  %v2038_v28 = vmul.f32 %v4043_v18, %v1903_v30  ;;  %1699 = vst.msk [vmem:[#allocation2 + $0x1a8] sm:$0xff] %vm25_vm1, %v1634_v56  ;;  %v2094_v51 = vsel %vm1959_vm15, %v1895_v52, %v2030_v39  ;;  %v1833_v55 = vmul.f32 %v4023_v50, %v1762_v1  ;;  %v1755_v35 = vld [vmem:[#allocation2 + $0x150] sm:$0xff]  ;;  %v4106_v32 = vpop.f32.mrf.mxu0  ;;  %v4108_v58 = vpop.f32.mrf.mxu1 }
 0x1b6   :  { %v2104_v38 = vsel %vm1969_vm0, %v1905_v8, %v2040_v62  ;;  %v2696_v47 = vpack.c.bf16 %v2094_v51, %v2094_v51  ;;  %v1896_v4 = vadd.f32 %v4032_v63, %v1825_v19  ;;  %v1906_v54 = vadd.f32 %v4032_v63, %v1835_v57  ;;  %1690 = vst.msk [vmem:[#allocation2 + $0x160] sm:$0xff] %vm25_vm1, %v1625_v43 }
 0x1b7   :  { %v2706_v59 = vpack.c.bf16 %v2104_v38, %v2104_v38  ;;  %v2102_v44 = vsel %vm1967_vm2, %v1903_v30, %v2038_v28  ;;  %v1767_v20 = vld [vmem:[#allocation2 + $0x1b0] sm:$0xff]  ;;  %v1904_v61 = vadd.f32 %v4032_v63, %v1833_v55  ;;  %v1826_v23 = vmul.f32 %v4023_v50, %v1755_v35  ;;  %v1765_v13 = vld [vmem:[#allocation2 + $0x1a0] sm:$0xff]  ;;  %v1218_v11 = vpop.f32.mrf.mxu0  ;;  %v4115_v14 = vpop.f32.mrf.mxu1 }
 0x1b8   :  { %v2704_v2 = vpack.c.bf16 %v2102_v44, %v2102_v44  ;;  %2415 = vst.msk [vmem:[%s4310_s5 + $0xa0] sm:$0xf] %vm2374_vm3, %v2696_v47  ;;  %vm1960_vm4 = vcmp.gt.f32.partialorder %v1896_v4, 0.0  ;;  %v2031_v5 = vmul.f32 %v4043_v18, %v1896_v4  ;;  %v1838_v15 = vmul.f32 %v4023_v50, %v1767_v20 }
 0x1b9   :  { %2425 = vst.msk [vmem:[%s4310_s5 + $0xc8] sm:$0xf] %vm2374_vm3, %v2706_v59  ;;  %v1836_v36 = vmul.f32 %v4023_v50, %v1765_v13  ;;  %vm1970_vm5 = vcmp.gt.f32.partialorder %v1906_v54, 0.0  ;;  %v2041_v53 = vmul.f32 %v4043_v18, %v1906_v54  ;;  %vm1968_vm6 = vcmp.gt.f32.partialorder %v1904_v61, 0.0  ;;  %v1756_v3 = vld [vmem:[#allocation2 + $0x158] sm:$0xff]  ;;  %v4134_v42 = vpop.f32.mrf.mxu0  ;;  %v4139_v27 = vpop.f32.mrf.mxu1 }
 0x1ba   :  { %2423 = vst.msk [vmem:[%s4310_s5 + $0xc0] sm:$0xf] %vm2374_vm3, %v2704_v2  ;;  %v2039_v22 = vmul.f32 %v4043_v18, %v1904_v61  ;;  %v2095_v17 = vsel %vm1960_vm4, %v1896_v4, %v2031_v5  ;;  %v1897_v24 = vadd.f32 %v4032_v63, %v1826_v23  ;;  %v1909_v40 = vadd.f32 %v4032_v63, %v1838_v15  ;;  %v1768_v30 = vld [vmem:[#allocation2 + $0x1b8] sm:$0xff]  ;;  %v148_v23 = vld [vmem:[#allocation2 + $0x1d0] sm:$0xff]  ;;  %v146_v5 = vld [vmem:[#allocation2 + $0x1c0] sm:$0xff] }
 0x1bb   :  { %v1907_v48 = vadd.f32 %v4032_v63, %v1836_v36  ;;  %v2697_v52 = vpack.c.bf16 %v2095_v17, %v2095_v17  ;;  %v2105_v8 = vsel %vm1970_vm5, %v1906_v54, %v2041_v53  ;;  %v1827_v12 = vmul.f32 %v4023_v50, %v1756_v3  ;;  %v1223_v34 = vpop.f32.mrf.mxu0  ;;  %v1566_v38 = vpop.f32.mrf.mxu1  ;;  %v135_v36 = vld [vmem:[#allocation2 + $0x168] sm:$0xff] }
 0x1bc   :  { %v2103_v16 = vsel %vm1968_vm6, %v1904_v61, %v2039_v22  ;;  %v1766_v0 = vld [vmem:[#allocation2 + $0x1a8] sm:$0xff]  ;;  %v2707_v56 = vpack.c.bf16 %v2105_v8, %v2105_v8  ;;  %vm1961_vm7 = vcmp.gt.f32.partialorder %v1897_v24, 0.0  ;;  %v2032_v9 = vmul.f32 %v4043_v18, %v1897_v24 }
 0x1bd   :  { %v2705_v26 = vpack.c.bf16 %v2103_v16, %v2103_v16  ;;  %2416 = vst.msk [vmem:[%s4310_s5 + $0xa4] sm:$0xf] %vm2374_vm3, %v2697_v52  ;;  %vm1973_vm8 = vcmp.gt.f32.partialorder %v1909_v40, 0.0  ;;  %v2044_v39 = vmul.f32 %v4043_v18, %v1909_v40  ;;  %vm1971_vm9 = vcmp.gt.f32.partialorder %v1907_v48, 0.0  ;;  %v4149_v1 = vpop.f32.mrf.mxu0  ;;  %v1757_v51 = vld [vmem:[#allocation2 + $0x160] sm:$0xff]  ;;  %v2821_v22 = vpop.f32.mrf.mxu1 }
 0x1be   :  { %v2042_v62 = vmul.f32 %v4043_v18, %v1907_v48  ;;  %2426 = vst.msk [vmem:[%s4310_s5 + $0xcc] sm:$0xf] %vm2374_vm3, %v2707_v56  ;;  %v2096_v46 = vsel %vm1961_vm7, %v1897_v24, %v2032_v9  ;;  %v1898_v28 = vadd.f32 %v4032_v63, %v1827_v12  ;;  %v1839_v19 = vmul.f32 %v4023_v50, %v1768_v30  ;;  %v136_v12 = vld [vmem:[#allocation2 + $0x170] sm:$0xff] }
 0x1bf   :  { %2424 = vst.msk [vmem:[%s4310_s5 + $0xc4] sm:$0xf] %vm2374_vm3, %v2705_v26  ;;  %v1837_v57 = vmul.f32 %v4023_v50, %v1766_v0  ;;  %v2698_v55 = vpack.c.bf16 %v2096_v46, %v2096_v46  ;;  %v2108_v35 = vsel %vm1973_vm8, %v1909_v40, %v2044_v39  ;;  %v1828_v47 = vmul.f32 %v4023_v50, %v1757_v51  ;;  %v1226_v59 = vpop.f32.mrf.mxu0  ;;  %v152_v30 = vld [vmem:[#allocation2 + $0x1f0] sm:$0xff]  ;;  %v1569_v0 = vpop.f32.mrf.mxu1  ;;  %v150_v39 = vld [vmem:[#allocation2 + $0x1e0] sm:$0xff] }
 0x1c0   :  { %v2106_v43 = vsel %vm1971_vm9, %v1907_v48, %v2042_v62  ;;  %v2710_v44 = vpack.c.bf16 %v2108_v35, %v2108_v35  ;;  %vm1962_vm10 = vcmp.gt.f32.partialorder %v1898_v28, 0.0  ;;  %v2033_v20 = vmul.f32 %v4043_v18, %v1898_v28  ;;  %v137_v62 = vld [vmem:[#allocation2 + $0x178] sm:$0xff] }
 0x1c1   :  { %v2708_v4 = vpack.c.bf16 %v2106_v43, %v2106_v43  ;;  %2417 = vst.msk [vmem:[%s4310_s5 + $0xa8] sm:$0xf] %vm2374_vm3, %v2698_v55  ;;  %v1910_v2 = vadd.f32 %v4032_v63, %v1839_v19  ;;  %v1908_v54 = vadd.f32 %v4032_v63, %v1837_v57  ;;  %v1899_v61 = vadd.f32 %v4032_v63, %v1828_v47 }
 0x1c2   :  { %v1559_v13 = vadd.f32 %v4087_v10, %v3611_v29  ;;  %2429 = vst.msk [vmem:[%s4310_s5 + $0xd8] sm:$0xf] %vm2374_vm3, %v2710_v44  ;;  %v2097_v11 = vsel %vm1962_vm10, %v1898_v28, %v2033_v20  ;;  %v1551_v15 = vadd.f32 %v4095_v7, %v3603_v21  ;;  %v1506_v53 = vadd.f32 %v4007_v31, %v4106_v32  ;;  %v149_v29 = vld [vmem:[#allocation2 + $0x1d8] sm:$0xff] }
 0x1c3   :  { %2427 = vst.msk [vmem:[%s4310_s5 + $0xd0] sm:$0xf] %vm2374_vm3, %v2708_v4  ;;  %v1562_v10 = vadd.f32 %v4108_v58, %v3615_v33  ;;  %v2699_v3 = vpack.c.bf16 %v2097_v11, %v2097_v11  ;;  %vm1974_vm11 = vcmp.gt.f32.partialorder %v1910_v2, 0.0  ;;  %v2045_v17 = vmul.f32 %v4043_v18, %v1910_v2  ;;  %v147_v58 = vld [vmem:[#allocation2 + $0x1c8] sm:$0xff] }
 0x1c4   :  { %vm1972_vm12 = vcmp.gt.f32.partialorder %v1908_v54, 0.0  ;;  %v2043_v24 = vmul.f32 %v4043_v18, %v1908_v54  ;;  %vm1963_vm13 = vcmp.gt.f32.partialorder %v1899_v61, 0.0  ;;  %v2034_v40 = vmul.f32 %v4043_v18, %v1899_v61 }
 0x1c5   :  { %v1639_v21 = vadd.f32 %v1559_v13, %v148_v23  ;;  %2418 = vst.msk [vmem:[%s4310_s5 + $0xac] sm:$0xf] %vm2374_vm3, %v2699_v3  ;;  %v2109_v31 = vsel %vm1974_vm11, %v1910_v2, %v2045_v17  ;;  %v1637_v7 = vadd.f32 %v1551_v15, %v146_v5  ;;  %v1626_v33 = vadd.f32 %v1506_v53, %v135_v36 }
 0x1c6   :  { %v1640_v32 = vadd.f32 %v1562_v10, %v149_v29  ;;  %v2711_v48 = vpack.c.bf16 %v2109_v31, %v2109_v31  ;;  %v2107_v52 = vsel %vm1972_vm12, %v1908_v54, %v2043_v24  ;;  %v2098_v8 = vsel %vm1963_vm13, %v1899_v61, %v2034_v40 }
 0x1c7   :  { %1704 = vst.msk [vmem:[#allocation2 + $0x1d0] sm:$0xff] %vm25_vm1, %v1639_v21  ;;  %v1554_v16 = vadd.f32 %v4115_v14, %v3607_v25  ;;  %v2709_v34 = vpack.c.bf16 %v2107_v52, %v2107_v52  ;;  %v2700_v56 = vpack.c.bf16 %v2098_v8, %v2098_v8  ;;  %1702 = vst.msk [vmem:[#allocation2 + $0x1c0] sm:$0xff] %vm25_vm1, %v1637_v7  ;;  %v153_v25 = vld [vmem:[#allocation2 + $0x1f8] sm:$0xff] }
 0x1c8   :  { %1691 = vst.msk [vmem:[#allocation2 + $0x168] sm:$0xff] %vm25_vm1, %v1626_v33  ;;  %1705 = vst.msk [vmem:[#allocation2 + $0x1d8] sm:$0xff] %vm25_vm1, %v1640_v32  ;;  %v1511_v26 = vadd.f32 %v3988_v6, %v4134_v42  ;;  %v1575_v9 = vadd.f32 %v4139_v27, %v3627_v45  ;;  %v1567_v46 = vadd.f32 %v1566_v38, %v3619_v37  ;;  %v151_v6 = vld [vmem:[#allocation2 + $0x1e8] sm:$0xff] }
 0x1c9   :  { %2430 = vst.msk [vmem:[%s4310_s5 + $0xdc] sm:$0xf] %vm2374_vm3, %v2711_v48  ;;  %v1638_v14 = vadd.f32 %v1554_v16, %v147_v58  ;;  %v1514_v28 = vadd.f32 %v4001_v60, %v4149_v1  ;;  %v1578_v19 = vadd.f32 %v2821_v22, %v3631_v49  ;;  %2428 = vst.msk [vmem:[%s4310_s5 + $0xd4] sm:$0xf] %vm2374_vm3, %v2709_v34 }
 0x1ca   :  { %2419 = vst.msk [vmem:[%s4310_s5 + $0xb0] sm:$0xf] %vm2374_vm3, %v2700_v56  ;;  %v1627_v45 = vadd.f32 %v1511_v26, %v136_v12  ;;  %v1643_v42 = vadd.f32 %v1575_v9, %v152_v30  ;;  %v1570_v37 = vadd.f32 %v1569_v0, %v3623_v41  ;;  %v1641_v60 = vadd.f32 %v1567_v46, %v150_v39 }
 0x1cb   :  { %1703 = vst.msk [vmem:[#allocation2 + $0x1c8] sm:$0xff] %vm25_vm1, %v1638_v14  ;;  %v1628_v27 = vadd.f32 %v1514_v28, %v137_v62  ;;  %v1644_v49 = vadd.f32 %v1578_v19, %v153_v25 }
 0x1cc   :  { %1692 = vst.msk [vmem:[#allocation2 + $0x170] sm:$0xff] %vm25_vm1, %v1627_v45  ;;  %1708 = vst.msk [vmem:[#allocation2 + $0x1f0] sm:$0xff] %vm25_vm1, %v1643_v42  ;;  %v1642_v1 = vadd.f32 %v1570_v37, %v151_v6 }
 0x1cd   :  { %1706 = vst.msk [vmem:[#allocation2 + $0x1e0] sm:$0xff] %vm25_vm1, %v1641_v60  ;;  %1693 = vst.msk [vmem:[#allocation2 + $0x178] sm:$0xff] %vm25_vm1, %v1628_v27 }
 0x1ce   :  { %1709 = vst.msk [vmem:[#allocation2 + $0x1f8] sm:$0xff] %vm25_vm1, %v1644_v49  ;;  %v1771_v57 = vld [vmem:[#allocation2 + $0x1d0] sm:$0xff]  ;;  %1707 = vst.msk [vmem:[#allocation2 + $0x1e8] sm:$0xff] %vm25_vm1, %v1642_v1  ;;  %v1769_v51 = vld [vmem:[#allocation2 + $0x1c0] sm:$0xff] }
 0x1cf   :  { %v1842_v41 = vmul.f32 %v4023_v50, %v1771_v57  ;;  %v1758_v38 = vld [vmem:[#allocation2 + $0x168] sm:$0xff]  ;;  %v1772_v55 = vld [vmem:[#allocation2 + $0x1d8] sm:$0xff]  ;;  %v1840_v35 = vmul.f32 %v4023_v50, %v1769_v51 }
 0x1d0   :  { %v1829_v43 = vmul.f32 %v4023_v50, %v1758_v38  ;;  %v1843_v47 = vmul.f32 %v4023_v50, %v1772_v55 }
 0x1d1   :  { %v1913_v59 = vadd.f32 %v4032_v63, %v1842_v41  ;;  %v1911_v44 = vadd.f32 %v4032_v63, %v1840_v35 }
 0x1d2   :  { %v1900_v4 = vadd.f32 %v4032_v63, %v1829_v43  ;;  %v1914_v20 = vadd.f32 %v4032_v63, %v1843_v47  ;;  %v1770_v2 = vld [vmem:[#allocation2 + $0x1c8] sm:$0xff] }
 0x1d3   :  { %vm1977_vm1 = vcmp.gt.f32.partialorder %v1913_v59, 0.0  ;;  %v2048_v54 = vmul.f32 %v4043_v18, %v1913_v59  ;;  %v1841_v61 = vmul.f32 %v4023_v50, %v1770_v2  ;;  %v1759_v23 = vld [vmem:[#allocation2 + $0x170] sm:$0xff]  ;;  %vm1975_vm14 = vcmp.gt.f32.partialorder %v1911_v44, 0.0 }
 0x1d4   :  { %v2046_v13 = vmul.f32 %v4043_v18, %v1911_v44  ;;  %vm1964_vm15 = vcmp.gt.f32.partialorder %v1900_v4, 0.0  ;;  %v2035_v11 = vmul.f32 %v4043_v18, %v1900_v4  ;;  %vm1978_vm0 = vcmp.gt.f32.partialorder %v1914_v20, 0.0  ;;  %v1775_v53 = vld [vmem:[#allocation2 + $0x1f0] sm:$0xff]  ;;  %v1773_v29 = vld [vmem:[#allocation2 + $0x1e0] sm:$0xff]  ;;  %v1760_v24 = vld [vmem:[#allocation2 + $0x178] sm:$0xff] }
 0x1d5   :  { %v2112_v5 = vsel %vm1977_vm1, %v1913_v59, %v2048_v54  ;;  %v2049_v15 = vmul.f32 %v4043_v18, %v1914_v20  ;;  %v1912_v36 = vadd.f32 %v4032_v63, %v1841_v61  ;;  %v1830_v17 = vmul.f32 %v4023_v50, %v1759_v23  ;;  %v1776_v40 = vld [vmem:[#allocation2 + $0x1f8] sm:$0xff]  ;;  %v1774_v21 = vld [vmem:[#allocation2 + $0x1e8] sm:$0xff] }
 0x1d6   :  { %v2714_v10 = vpack.c.bf16 %v2112_v5, %v2112_v5  ;;  %v2110_v22 = vsel %vm1975_vm14, %v1911_v44, %v2046_v13  ;;  %v2099_v3 = vsel %vm1964_vm15, %v1900_v4, %v2035_v11  ;;  %v1846_v52 = vmul.f32 %v4023_v50, %v1775_v53 }
 0x1d7   :  { %v2712_v31 = vpack.c.bf16 %v2110_v22, %v2110_v22  ;;  %v2701_v7 = vpack.c.bf16 %v2099_v3, %v2099_v3  ;;  %v2113_v33 = vsel %vm1978_vm0, %v1914_v20, %v2049_v15  ;;  %vm1976_vm2 = vcmp.gt.f32.partialorder %v1912_v36, 0.0 }
 0x1d8   :  { %2433 = vst.msk [vmem:[%s4310_s5 + $0xe8] sm:$0xf] %vm2374_vm3, %v2714_v10  ;;  %v2715_v32 = vpack.c.bf16 %v2113_v33, %v2113_v33  ;;  %v2047_v58 = vmul.f32 %v4043_v18, %v1912_v36  ;;  %v1901_v48 = vadd.f32 %v4032_v63, %v1830_v17  ;;  %v1844_v8 = vmul.f32 %v4023_v50, %v1773_v29 }
 0x1d9   :  { %2431 = vst.msk [vmem:[%s4310_s5 + $0xe0] sm:$0xf] %vm2374_vm3, %v2712_v31  ;;  %2420 = vst.msk [vmem:[%s4310_s5 + $0xb4] sm:$0xf] %vm2374_vm3, %v2701_v7  ;;  %v1831_v16 = vmul.f32 %v4023_v50, %v1760_v24  ;;  %v1847_v12 = vmul.f32 %v4023_v50, %v1776_v40  ;;  %v1845_v30 = vmul.f32 %v4023_v50, %v1774_v21 }
 0x1da   :  { %2434 = vst.msk [vmem:[%s4310_s5 + $0xec] sm:$0xf] %vm2374_vm3, %v2715_v32  ;;  %v2111_v0 = vsel %vm1976_vm2, %v1912_v36, %v2047_v58  ;;  %vm1965_vm4 = vcmp.gt.f32.partialorder %v1901_v48, 0.0  ;;  %v2036_v34 = vmul.f32 %v4043_v18, %v1901_v48  ;;  %v1917_v56 = vadd.f32 %v4032_v63, %v1846_v52 }
 0x1db   :  { %v2713_v26 = vpack.c.bf16 %v2111_v0, %v2111_v0  ;;  %v1915_v9 = vadd.f32 %v4032_v63, %v1844_v8  ;;  %v1902_v39 = vadd.f32 %v4032_v63, %v1831_v16  ;;  %v1918_v62 = vadd.f32 %v4032_v63, %v1847_v12 }
 0x1dc   :  { %v2100_v25 = vsel %vm1965_vm4, %v1901_v48, %v2036_v34  ;;  %vm1981_vm5 = vcmp.gt.f32.partialorder %v1917_v56, 0.0  ;;  %v2052_v50 = vmul.f32 %v4043_v18, %v1917_v56  ;;  %v1916_v14 = vadd.f32 %v4032_v63, %v1845_v30 }
 0x1dd   :  { %2432 = vst.msk [vmem:[%s4310_s5 + $0xe4] sm:$0xf] %vm2374_vm3, %v2713_v26  ;;  %v2702_v46 = vpack.c.bf16 %v2100_v25, %v2100_v25  ;;  %vm1979_vm6 = vcmp.gt.f32.partialorder %v1915_v9, 0.0  ;;  %v2050_v28 = vmul.f32 %v4043_v18, %v1915_v9  ;;  %vm1966_vm7 = vcmp.gt.f32.partialorder %v1902_v39, 0.0 }
 0x1de   :  { %v2116_v19 = vsel %vm1981_vm5, %v1917_v56, %v2052_v50  ;;  %v2037_v6 = vmul.f32 %v4043_v18, %v1902_v39  ;;  %vm1982_vm8 = vcmp.gt.f32.partialorder %v1918_v62, 0.0  ;;  %v2053_v45 = vmul.f32 %v4043_v18, %v1918_v62 }
 0x1df   :  { %2421 = vst.msk [vmem:[%s4310_s5 + $0xb8] sm:$0xf] %vm2374_vm3, %v2702_v46  ;;  %v2718_v63 = vpack.c.bf16 %v2116_v19, %v2116_v19  ;;  %v2114_v42 = vsel %vm1979_vm6, %v1915_v9, %v2050_v28  ;;  %vm1980_vm9 = vcmp.gt.f32.partialorder %v1916_v14, 0.0  ;;  %v2051_v37 = vmul.f32 %v4043_v18, %v1916_v14 }
 0x1e0   :  { %v2716_v60 = vpack.c.bf16 %v2114_v42, %v2114_v42  ;;  %v2101_v27 = vsel %vm1966_vm7, %v1902_v39, %v2037_v6  ;;  %v2117_v49 = vsel %vm1982_vm8, %v1918_v62, %v2053_v45 }
 0x1e1   :  { %2437 = vst.msk [vmem:[%s4310_s5 + $0xf8] sm:$0xf] %vm2374_vm3, %v2718_v63  ;;  %v2703_v1 = vpack.c.bf16 %v2101_v27, %v2101_v27  ;;  %v2719_v57 = vpack.c.bf16 %v2117_v49, %v2117_v49  ;;  %v2115_v41 = vsel %vm1980_vm9, %v1916_v14, %v2051_v37 }
 0x1e2   :  { %2435 = vst.msk [vmem:[%s4310_s5 + $0xf0] sm:$0xf] %vm2374_vm3, %v2716_v60  ;;  %v2717_v51 = vpack.c.bf16 %v2115_v41, %v2115_v41 }
 0x1e3   :  { %2422 = vst.msk [vmem:[%s4310_s5 + $0xbc] sm:$0xf] %vm2374_vm3, %v2703_v1  ;;  %2438 = vst.msk [vmem:[%s4310_s5 + $0xfc] sm:$0xf] %vm2374_vm3, %v2719_v57 }
 0x1e4   :  { %2436 = vst.msk [vmem:[%s4310_s5 + $0xf4] sm:$0xf] %vm2374_vm3, %v2717_v51 }

</bundles_post_ra>
